<compile_context>
chip_gen: v5e
topology: v5e:2x2
jax: 0.10.0
libtpu: 0.0.40
codegen_flags: <defaults>
</compile_context>

<pallas_src>
import jax
import jax.numpy as jnp
import numpy as np
from jax import lax
from jax.experimental import pallas as pl
from jax.experimental.pallas import tpu as pltpu

# --- module-consistent dims (small) ---
EMB_DIM = 32          # embedding_dim
HIDDEN_DIM = 32       # hidden_dim
CHAR_HIDDEN_DIM = 16  # char_hidden_dim
VOCAB_SIZE = 50       # vocab_size
TAGSET_SIZE = 8       # tagset_size
CHAR_INPUT_DIM = 300  # fixed in the PyTorch module: nn.LSTM(300, char_hidden_dim)
SEQ_LEN = 8

LANE = 128            # padded per-gate width == padded hidden width
GATE_PAD = 4 * LANE   # padded 4-gate width (i|f|g|o), 512 lanes
CHAR_PAD = 384        # char feature dim padded to 3*128
TAG_PAD = 128         # lane-dense padded tag width
NEG_BIG = -1e9        # bias for padded logit columns (drops out of softmax)


# ----------------------------- kernel -----------------------------
def _lstm_cell(gates_in, h, c, whh_t):
    """One LSTM step; gate blocks padded to 128 lanes each (order i, f, g, o).

    h/c are carried in f32; the recurrence matmul runs in bf16 on the MXU with
    f32 accumulation."""
    gates = gates_in + jnp.dot(h.astype(jnp.bfloat16), whh_t,
                               preferred_element_type=jnp.float32)
    i = jax.nn.sigmoid(gates[:, 0 * LANE:1 * LANE])
    f = jax.nn.sigmoid(gates[:, 1 * LANE:2 * LANE])
    g = jnp.tanh(gates[:, 2 * LANE:3 * LANE])
    o = jax.nn.sigmoid(gates[:, 3 * LANE:4 * LANE])
    c_new = f * c + i * g
    h_new = o * jnp.tanh(c_new)
    return h_new, c_new


def _make_kernel(seq_len):
    T = seq_len

    def kernel(emb_ref, char_ref,
               c_wih_ref, c_whh_ref, c_b_ref,
               w_wih_emb_ref, w_wih_char_ref, w_whh_ref, w_b_ref,
               lin_w_ref, lin_b_ref,
               out_ref,
               char_gates_scr, word_gates_scr, word_h_scr):
        # Rows of every (T*Bb, feat) block are time-major: row = t*Bb + local_b.
        TB = emb_ref.shape[0]
        Bb = TB // T

        # (1) Hoisted input->hidden projections (bf16 operands, f32 accumulate),
        #     biases folded in.  One big GEMM each, off the serial chain.
        char_gates_scr[...] = (
            jnp.dot(char_ref[...], c_wih_ref[...],
                    preferred_element_type=jnp.float32) + c_b_ref[...])
        word_gates_scr[...] = (
            jnp.dot(emb_ref[...], w_wih_emb_ref[...],
                    preferred_element_type=jnp.float32) + w_b_ref[...])

        c_whh = c_whh_ref[...]
        w_whh = w_whh_ref[...]
        w_wih_char = w_wih_char_ref[...]

        # (2) Interleaved char + word recurrences (fully unrolled).  Word step t
        #     consumes char hidden t immediately (replaces torch.cat + the
        #     separate char->word GEMM pass), keeping the serial depth minimal
        #     and giving the scheduler two MXU/EUP streams per step.
        h_c = jnp.zeros((Bb, LANE), jnp.float32)
        c_c = jnp.zeros((Bb, LANE), jnp.float32)
        h_w = jnp.zeros((Bb, LANE), jnp.float32)
        c_w = jnp.zeros((Bb, LANE), jnp.float32)
        for t in range(T):
            h_c, c_c = _lstm_cell(char_gates_scr[pl.ds(t * Bb, Bb), :],
                                  h_c, c_c, c_whh)
            wg = (word_gates_scr[pl.ds(t * Bb, Bb), :]
                  + jnp.dot(h_c.astype(jnp.bfloat16), w_wih_char,
                            preferred_element_type=jnp.float32))
            h_w, c_w = _lstm_cell(wg, h_w, c_w, w_whh)
            word_h_scr[pl.ds(t * Bb, Bb), :] = h_w.astype(jnp.bfloat16)

        # (3) hidden2tag (lane-dense, 128 padded columns) + log_softmax(dim=1).
        #     Padded logit columns carry bias -1e9 -> exp underflows to 0, so
        #     the softmax denominator only sees the real TAGSET_SIZE columns.
        tag_space = (jnp.dot(word_h_scr[...], lin_w_ref[...],
                             preferred_element_type=jnp.float32) + lin_b_ref[...])
        m = jnp.max(tag_space, axis=1, keepdims=True)
        z = tag_space - m
        lse = jnp.log(jnp.sum(jnp.exp(z), axis=1, keepdims=True))
        out_ref[...] = z - lse

    return kernel


# ------------------------ weight preprocessing ------------------------
def _pad_gate_cols(w_t, hid):
    """(rows, 4*hid) laid out [i|f|g|o] -> (rows, 4*128), each gate padded to 128."""
    blocks = []
    for k in range(4):
        blk = w_t[:, k * hid:(k + 1) * hid]
        blocks.append(jnp.pad(blk, ((0, 0), (0, LANE - hid))))
    return jnp.concatenate(blocks, axis=1)


def _pad_gate_bias(b, hid):
    blocks = [jnp.pad(b[k * hid:(k + 1) * hid], (0, LANE - hid)) for k in range(4)]
    return jnp.concatenate(blocks)[None, :].astype(jnp.float32)     # (1, 512)


def _pad_rows(w, rows_to):
    return jnp.pad(w, ((0, rows_to - w.shape[0]), (0, 0)))


def prep_params(params):
    """Pre-transpose / pad / bf16-cast all weights once, on the host (plain JAX)."""
    Hc, H, E = CHAR_HIDDEN_DIM, HIDDEN_DIM, EMB_DIM
    bf16 = jnp.bfloat16
    w_wih_t = _pad_gate_cols(params["w_wih"].T, H)                  # (E+Hc, 512)
    lin_w_t = _pad_rows(params["lin_w"].T, LANE)                    # (128, TAGS)
    lin_w_t = jnp.pad(lin_w_t, ((0, 0), (0, TAG_PAD - TAGSET_SIZE)))  # (128, 128)
    lin_b = jnp.concatenate(
        [params["lin_b"],
         jnp.full((TAG_PAD - TAGSET_SIZE,), NEG_BIG, jnp.float32)])[None, :]
    return {
        "embedding": params["embedding"].astype(bf16),
        # char LSTM (input rows padded 300 -> 384 for clean K tiling)
        "c_wih_t": _pad_rows(_pad_gate_cols(params["c_wih"].T, Hc),
                             CHAR_PAD).astype(bf16),                          # (384, 512)
        "c_whh_t": _pad_rows(_pad_gate_cols(params["c_whh"].T, Hc),
                             LANE).astype(bf16),                              # (128, 512)
        "c_b": _pad_gate_bias(params["c_bih"] + params["c_bhh"], Hc),         # (1, 512) f32
        # word LSTM (input weight split: embedding rows / char-hidden rows)
        "w_wih_emb_t": w_wih_t[:E].astype(bf16),                              # (E, 512)
        "w_wih_char_t": _pad_rows(w_wih_t[E:], LANE).astype(bf16),            # (128, 512)
        "w_whh_t": _pad_rows(_pad_gate_cols(params["w_whh"].T, H),
                             LANE).astype(bf16),                              # (128, 512)
        "w_b": _pad_gate_bias(params["w_bih"] + params["w_bhh"], H),          # (1, 512) f32
        # hidden2tag (lane-dense, padded columns biased to -1e9)
        "lin_w_t": lin_w_t.astype(bf16),                                      # (128, 128)
        "lin_b": lin_b.astype(jnp.float32),                                   # (1, 128)
    }


# ----------------------------- wrappers -----------------------------
def _round_up(x, m):
    return ((x + m - 1) // m) * m


def _choose_block_b(B):
    """Big blocks for throughput; >=2 grid blocks when the batch allows
    (v7x megacore); tiny batches padded up to one 8-aligned block."""
    if B >= 256:
        return 128
    if B >= 16:
        return _round_up(B, 16) // 2     # two grid blocks, multiple of 8
    return _round_up(max(B, 1), 8)       # single padded block


def char_lstm_tagger_forward_batch(prepped, sentences, char_reps, *, block_b=None):
    """sentences: (B, T) int32, char_reps: (B, T, 300) -> (B, T, TAGS) log-probs."""
    B, T = sentences.shape
    if block_b is None:
        block_b = _choose_block_b(B)
    Bp = _round_up(B, block_b)
    nb = Bp // block_b

    if Bp != B:  # pad with dummy sentences instead of shrinking the block
        pad = Bp - B
        sentences = jnp.concatenate(
            [sentences, jnp.zeros((pad, T), sentences.dtype)], axis=0)
        char_reps = jnp.concatenate(
            [char_reps, jnp.zeros((pad, T, char_reps.shape[-1]), char_reps.dtype)],
            axis=0)

    emb = prepped["embedding"][sentences]            # (Bp, T, E) bf16 gather glue
    char_bf = char_reps.astype(jnp.bfloat16)         # cast fused with transpose below

    def to_blocks(x):
        # (Bp, T, F) -> (nb, T*block_b, F); rows inside a block are time-major.
        F = x.shape[-1]
        return (x.reshape(nb, block_b, T, F)
                 .transpose(0, 2, 1, 3)
                 .reshape(nb, T * block_b, F))

    emb_blk = to_blocks(emb)
    char_blk = jnp.pad(to_blocks(char_bf),
                       ((0, 0), (0, 0), (0, CHAR_PAD - CHAR_INPUT_DIM)))

    weights = (prepped["c_wih_t"], prepped["c_whh_t"], prepped["c_b"],
               prepped["w_wih_emb_t"], prepped["w_wih_char_t"],
               prepped["w_whh_t"], prepped["w_b"],
               prepped["lin_w_t"], prepped["lin_b"])

    def blk_spec(feat):
        return pl.BlockSpec((None, T * block_b, feat), lambda b: (b, 0, 0))

    def w_spec(w):
        return pl.BlockSpec(w.shape, lambda b: (0, 0))

    out_blk = pl.pallas_call(
        _make_kernel(T),
        out_shape=jax.ShapeDtypeStruct((nb, T * block_b, TAG_PAD), jnp.float32),
        grid_spec=pltpu.PrefetchScalarGridSpec(
            num_scalar_prefetch=0,
            grid=(nb,),
            in_specs=[blk_spec(EMB_DIM), blk_spec(CHAR_PAD)]
                     + [w_spec(w) for w in weights],
            out_specs=blk_spec(TAG_PAD),
            scratch_shapes=[
                pltpu.VMEM((T * block_b, GATE_PAD), jnp.float32),   # char input gates
                pltpu.VMEM((T * block_b, GATE_PAD), jnp.float32),   # word input gates
                pltpu.VMEM((T * block_b, LANE), jnp.bfloat16),      # word hidden states
            ],
        ),
        compiler_params=pltpu.CompilerParams(
            dimension_semantics=("parallel",)),                     # megacore on v7x
    )(emb_blk, char_blk, *weights)

    # (nb, T*block_b, 128) -> (Bp, T, 128) -> (B, T, TAGS)
    out = (out_blk.reshape(nb, T, block_b, TAG_PAD)
           .transpose(0, 2, 1, 3)
           .reshape(Bp, T, TAG_PAD))
    return out[:B, :, :TAGSET_SIZE]


def char_lstm_tagger_forward(prepped, sentence, char_rep):
    """Single-sentence forward, matching the PyTorch module signature.
    The batch is padded up to one 8-row block inside the batched wrapper."""
    out = char_lstm_tagger_forward_batch(prepped, sentence[None, :],
                                         char_rep[None, :, :])
    return out[0]


# ------------------------- pure-JAX reference -------------------------
def _ref_lstm(xs, wih, whh, bih, bhh, hid):
    def step(carry, x):
        h, c = carry
        gates = x @ wih.T + h @ whh.T + bih + bhh
        i = jax.nn.sigmoid(gates[0 * hid:1 * hid])
        f = jax.nn.sigmoid(gates[1 * hid:2 * hid])
        g = jnp.tanh(gates[2 * hid:3 * hid])
        o = jax.nn.sigmoid(gates[3 * hid:4 * hid])
        c = f * c + i * g
        h = o * jnp.tanh(c)
        return (h, c), h
    (_, _), hs = lax.scan(step, (jnp.zeros(hid), jnp.zeros(hid)), xs)
    return hs


def reference_forward(params, sentence, char_rep):
    emb = params["embedding"][sentence]
    char_h = _ref_lstm(char_rep, params["c_wih"], params["c_whh"],
                       params["c_bih"], params["c_bhh"], CHAR_HIDDEN_DIM)
    feats = jnp.concatenate([emb, char_h], axis=1)
    word_h = _ref_lstm(feats, params["w_wih"], params["w_whh"],
                       params["w_bih"], params["w_bhh"], HIDDEN_DIM)
    tag_space = word_h @ params["lin_w"].T + params["lin_b"]
    return jax.nn.log_softmax(tag_space, axis=1)


# ------------------------- deterministic params -------------------------
def init_params(key):
    ks = jax.random.split(key, 12)
    kc = 1.0 / np.sqrt(CHAR_HIDDEN_DIM)
    kw = 1.0 / np.sqrt(HIDDEN_DIM)
    kl = 1.0 / np.sqrt(HIDDEN_DIM)
    u = lambda k, shape, s: jax.random.uniform(k, shape, jnp.float32, -s, s)
    return {
        "embedding": jax.random.normal(ks[0], (VOCAB_SIZE, EMB_DIM), jnp.float32),
        # char LSTM: nn.LSTM(300, Hc)
        "c_wih": u(ks[1], (4 * CHAR_HIDDEN_DIM, CHAR_INPUT_DIM), kc),
        "c_whh": u(ks[2], (4 * CHAR_HIDDEN_DIM, CHAR_HIDDEN_DIM), kc),
        "c_bih": u(ks[3], (4 * CHAR_HIDDEN_DIM,), kc),
        "c_bhh": u(ks[4], (4 * CHAR_HIDDEN_DIM,), kc),
        # word LSTM: nn.LSTM(E + Hc, H)
        "w_wih": u(ks[5], (4 * HIDDEN_DIM, EMB_DIM + CHAR_HIDDEN_DIM), kw),
        "w_whh": u(ks[6], (4 * HIDDEN_DIM, HIDDEN_DIM), kw),
        "w_bih": u(ks[7], (4 * HIDDEN_DIM,), kw),
        "w_bhh": u(ks[8], (4 * HIDDEN_DIM,), kw),
        # hidden2tag: nn.Linear(H, TAGS)
        "lin_w": u(ks[9], (TAGSET_SIZE, HIDDEN_DIM), kl),
        "lin_b": u(ks[10], (TAGSET_SIZE,), kl),
    }


if __name__ == "__main__":
    key = jax.random.PRNGKey(0)
    kp, ks, kc, ks2, kc2 = jax.random.split(key, 5)
    params = init_params(kp)
    prepped = prep_params(params)

    # bf16 MXU operands w/ f32 accumulation -> slightly looser tolerance vs the
    # pure-f32 reference.
    ATOL = RTOL = 5e-2

    # --- single sentence (matches the PyTorch module's forward signature) ---
    sentence = jax.random.randint(ks, (SEQ_LEN,), 0, VOCAB_SIZE, dtype=jnp.int32)
    char_rep = jax.random.normal(kc, (SEQ_LEN, CHAR_INPUT_DIM), jnp.float32)
    out = jax.block_until_ready(char_lstm_tagger_forward(prepped, sentence, char_rep))
    ref = jax.block_until_ready(reference_forward(params, sentence, char_rep))
    assert out.shape == (SEQ_LEN, TAGSET_SIZE)
    assert np.allclose(np.asarray(out), np.asarray(ref), atol=ATOL, rtol=RTOL), \
        "single-sentence kernel output mismatch vs pure-JAX reference"

    # --- batched path: 32 sentences, default blocking (2 parallel grid blocks) ---
    B = 32
    sents = jax.random.randint(ks2, (B, SEQ_LEN), 0, VOCAB_SIZE, dtype=jnp.int32)
    chars = jax.random.normal(kc2, (B, SEQ_LEN, CHAR_INPUT_DIM), jnp.float32)
    out_b = jax.block_until_ready(
        char_lstm_tagger_forward_batch(prepped, sents, chars))
    ref_b = jax.block_until_ready(
        jax.vmap(lambda s, c: reference_forward(params, s, c))(sents, chars))
    assert out_b.shape == (B, SEQ_LEN, TAGSET_SIZE)
    assert np.allclose(np.asarray(out_b), np.asarray(ref_b), atol=ATOL, rtol=RTOL), \
        "batched kernel output mismatch vs pure-JAX reference"

    print("KERNEL_OK")
</pallas_src>

<mosaic_0001>
module attributes {stable_mosaic.version = 11 : i64} {
  func.func @kernel(%arg0: i32, %arg1: memref<1x64x32xbf16, #tpu.memory_space<vmem>>, %arg2: memref<1x64x384xbf16, #tpu.memory_space<vmem>>, %arg3: memref<384x512xbf16, #tpu.memory_space<vmem>>, %arg4: memref<128x512xbf16, #tpu.memory_space<vmem>>, %arg5: memref<1x512xf32, #tpu.memory_space<vmem>>, %arg6: memref<32x512xbf16, #tpu.memory_space<vmem>>, %arg7: memref<128x512xbf16, #tpu.memory_space<vmem>>, %arg8: memref<128x512xbf16, #tpu.memory_space<vmem>>, %arg9: memref<1x512xf32, #tpu.memory_space<vmem>>, %arg10: memref<128x128xbf16, #tpu.memory_space<vmem>>, %arg11: memref<1x128xf32, #tpu.memory_space<vmem>>, %arg12: memref<1x64x128xf32, #tpu.memory_space<vmem>>, %arg13: memref<64x512xf32, #tpu.memory_space<vmem>>, %arg14: memref<64x512xf32, #tpu.memory_space<vmem>>, %arg15: memref<64x128xbf16, #tpu.memory_space<vmem>>) attributes {dimension_semantics = [#tpu.dimension_semantics<parallel>], iteration_bounds = array<i64: 1>, scalar_prefetch = 0 : i64, scratch_operands = 3 : i64, tpu.core_type = #tpu.core_type<tc>, window_params = [{transform_indices = @transform_0, window_bounds = array<i64: 1, 64, 32>}, {transform_indices = @transform_1, window_bounds = array<i64: 1, 64, 384>}, {pipeline_mode = #tpu.pipeline_mode<synchronous>, transform_indices = @transform_2, window_bounds = array<i64: 384, 512>}, {pipeline_mode = #tpu.pipeline_mode<synchronous>, transform_indices = @transform_3, window_bounds = array<i64: 128, 512>}, {pipeline_mode = #tpu.pipeline_mode<synchronous>, transform_indices = @transform_4, window_bounds = array<i64: 1, 512>}, {pipeline_mode = #tpu.pipeline_mode<synchronous>, transform_indices = @transform_5, window_bounds = array<i64: 32, 512>}, {pipeline_mode = #tpu.pipeline_mode<synchronous>, transform_indices = @transform_6, window_bounds = array<i64: 128, 512>}, {pipeline_mode = #tpu.pipeline_mode<synchronous>, transform_indices = @transform_7, window_bounds = array<i64: 128, 512>}, {pipeline_mode = #tpu.pipeline_mode<synchronous>, transform_indices = @transform_8, window_bounds = array<i64: 1, 512>}, {pipeline_mode = #tpu.pipeline_mode<synchronous>, transform_indices = @transform_9, window_bounds = array<i64: 128, 128>}, {pipeline_mode = #tpu.pipeline_mode<synchronous>, transform_indices = @transform_10, window_bounds = array<i64: 1, 128>}, {transform_indices = @transform_11, window_bounds = array<i64: 1, 64, 128>}]} {
    %c0 = arith.constant 0 : index
    %c0_0 = arith.constant 0 : index
    %c0_1 = arith.constant 0 : index
    %0 = vector.load %arg2[%c0, %c0_0, %c0_1] : memref<1x64x384xbf16, #tpu.memory_space<vmem>>, vector<1x64x384xbf16>
    %1 = vector.shape_cast %0 : vector<1x64x384xbf16> to vector<64x384xbf16>
    %c0_2 = arith.constant 0 : index
    %c0_3 = arith.constant 0 : index
    %2 = vector.load %arg3[%c0_2, %c0_3] : memref<384x512xbf16, #tpu.memory_space<vmem>>, vector<384x512xbf16>
    %cst = arith.constant dense<0.000000e+00> : vector<64x512xf32>
    %3 = tpu.matmul %1, %2, %cst {dimension_numbers = #tpu.dot_dimension_numbers<[1], [0], [0], [1], [0, 0, 1, 1], [], []>} : vector<64x384xbf16>, vector<384x512xbf16>, vector<64x512xf32> -> vector<64x512xf32>
    %c0_4 = arith.constant 0 : index
    %c0_5 = arith.constant 0 : index
    %4 = vector.load %arg5[%c0_4, %c0_5] : memref<1x512xf32, #tpu.memory_space<vmem>>, vector<1x512xf32>
    %5 = vector.broadcast %4 : vector<1x512xf32> to vector<64x512xf32>
    %6 = arith.addf %3, %5 : vector<64x512xf32>
    %c0_6 = arith.constant 0 : index
    %c0_7 = arith.constant 0 : index
    %7 = vector.load %arg13[%c0_6, %c0_7] : memref<64x512xf32, #tpu.memory_space<vmem>>, vector<64x512xf32>
    tpu.vector_store %arg13[%c0_6, %c0_7], %6 {strides = array<i32>} : memref<64x512xf32, #tpu.memory_space<vmem>>, vector<64x512xf32>,
    %c0_8 = arith.constant 0 : index
    %c0_9 = arith.constant 0 : index
    %c0_10 = arith.constant 0 : index
    %8 = vector.load %arg1[%c0_8, %c0_9, %c0_10] : memref<1x64x32xbf16, #tpu.memory_space<vmem>>, vector<1x64x32xbf16>
    %9 = vector.shape_cast %8 : vector<1x64x32xbf16> to vector<64x32xbf16>
    %c0_11 = arith.constant 0 : index
    %c0_12 = arith.constant 0 : index
    %10 = vector.load %arg6[%c0_11, %c0_12] : memref<32x512xbf16, #tpu.memory_space<vmem>>, vector<32x512xbf16>
    %cst_13 = arith.constant dense<0.000000e+00> : vector<64x512xf32>
    %11 = tpu.matmul %9, %10, %cst_13 {dimension_numbers = #tpu.dot_dimension_numbers<[1], [0], [0], [1], [0, 0, 1, 1], [], []>} : vector<64x32xbf16>, vector<32x512xbf16>, vector<64x512xf32> -> vector<64x512xf32>
    %c0_14 = arith.constant 0 : index
    %c0_15 = arith.constant 0 : index
    %12 = vector.load %arg9[%c0_14, %c0_15] : memref<1x512xf32, #tpu.memory_space<vmem>>, vector<1x512xf32>
    %13 = vector.broadcast %12 : vector<1x512xf32> to vector<64x512xf32>
    %14 = arith.addf %11, %13 : vector<64x512xf32>
    %c0_16 = arith.constant 0 : index
    %c0_17 = arith.constant 0 : index
    %15 = vector.load %arg14[%c0_16, %c0_17] : memref<64x512xf32, #tpu.memory_space<vmem>>, vector<64x512xf32>
    tpu.vector_store %arg14[%c0_16, %c0_17], %14 {strides = array<i32>} : memref<64x512xf32, #tpu.memory_space<vmem>>, vector<64x512xf32>,
    %c0_18 = arith.constant 0 : index
    %c0_19 = arith.constant 0 : index
    %16 = vector.load %arg4[%c0_18, %c0_19] : memref<128x512xbf16, #tpu.memory_space<vmem>>, vector<128x512xbf16>
    %c0_20 = arith.constant 0 : index
    %c0_21 = arith.constant 0 : index
    %17 = vector.load %arg8[%c0_20, %c0_21] : memref<128x512xbf16, #tpu.memory_space<vmem>>, vector<128x512xbf16>
    %c0_22 = arith.constant 0 : index
    %c0_23 = arith.constant 0 : index
    %18 = vector.load %arg7[%c0_22, %c0_23] : memref<128x512xbf16, #tpu.memory_space<vmem>>, vector<128x512xbf16>
    %cst_24 = arith.constant 0.000000e+00 : f32
    %19 = vector.broadcast %cst_24 : f32 to vector<8x128xf32>
    %cst_25 = arith.constant 0.000000e+00 : f32
    %20 = vector.broadcast %cst_25 : f32 to vector<8x128xf32>
    %cst_26 = arith.constant 0.000000e+00 : f32
    %21 = vector.broadcast %cst_26 : f32 to vector<8x128xf32>
    %cst_27 = arith.constant 0.000000e+00 : f32
    %22 = vector.broadcast %cst_27 : f32 to vector<8x128xf32>
    %c0_28 = arith.constant 0 : index
    %c0_29 = arith.constant 0 : index
    %23 = vector.load %arg13[%c0_28, %c0_29] : memref<64x512xf32, #tpu.memory_space<vmem>>, vector<8x512xf32>
    %24 = arith.truncf %19 : vector<8x128xf32> to vector<8x128xbf16>
    %cst_30 = arith.constant dense<0.000000e+00> : vector<8x512xf32>
    %25 = tpu.matmul %24, %16, %cst_30 {dimension_numbers = #tpu.dot_dimension_numbers<[1], [0], [0], [1], [0, 0, 1, 1], [], []>} : vector<8x128xbf16>, vector<128x512xbf16>, vector<8x512xf32> -> vector<8x512xf32>
    %26 = arith.addf %23, %25 : vector<8x512xf32>
    %27 = vector.extract_strided_slice %26 {offsets = [0, 0], sizes = [8, 128], strides = [1, 1]} : vector<8x512xf32> to vector<8x128xf32>
    %28 = arith.negf %27 : vector<8x128xf32>
    %29 = math.exp %28 : vector<8x128xf32>
    %cst_31 = arith.constant 1.000000e+00 : f32
    %30 = vector.broadcast %cst_31 : f32 to vector<8x128xf32>
    %31 = arith.addf %30, %29 : vector<8x128xf32>
    %32 = arith.divf %30, %31 : vector<8x128xf32>
    %33 = vector.extract_strided_slice %26 {offsets = [0, 128], sizes = [8, 128], strides = [1, 1]} : vector<8x512xf32> to vector<8x128xf32>
    %34 = arith.negf %33 : vector<8x128xf32>
    %35 = math.exp %34 : vector<8x128xf32>
    %cst_32 = arith.constant 1.000000e+00 : f32
    %36 = vector.broadcast %cst_32 : f32 to vector<8x128xf32>
    %37 = arith.addf %36, %35 : vector<8x128xf32>
    %38 = arith.divf %36, %37 : vector<8x128xf32>
    %39 = vector.extract_strided_slice %26 {offsets = [0, 256], sizes = [8, 128], strides = [1, 1]} : vector<8x512xf32> to vector<8x128xf32>
    %40 = math.tanh %39 : vector<8x128xf32>
    %41 = vector.extract_strided_slice %26 {offsets = [0, 384], sizes = [8, 128], strides = [1, 1]} : vector<8x512xf32> to vector<8x128xf32>
    %42 = arith.negf %41 : vector<8x128xf32>
    %43 = math.exp %42 : vector<8x128xf32>
    %cst_33 = arith.constant 1.000000e+00 : f32
    %44 = vector.broadcast %cst_33 : f32 to vector<8x128xf32>
    %45 = arith.addf %44, %43 : vector<8x128xf32>
    %46 = arith.divf %44, %45 : vector<8x128xf32>
    %47 = arith.mulf %38, %20 : vector<8x128xf32>
    %48 = arith.mulf %32, %40 : vector<8x128xf32>
    %49 = arith.addf %47, %48 : vector<8x128xf32>
    %50 = math.tanh %49 : vector<8x128xf32>
    %51 = arith.mulf %46, %50 : vector<8x128xf32>
    %c0_34 = arith.constant 0 : index
    %c0_35 = arith.constant 0 : index
    %52 = vector.load %arg14[%c0_34, %c0_35] : memref<64x512xf32, #tpu.memory_space<vmem>>, vector<8x512xf32>
    %53 = arith.truncf %51 : vector<8x128xf32> to vector<8x128xbf16>
    %cst_36 = arith.constant dense<0.000000e+00> : vector<8x512xf32>
    %54 = tpu.matmul %53, %18, %cst_36 {dimension_numbers = #tpu.dot_dimension_numbers<[1], [0], [0], [1], [0, 0, 1, 1], [], []>} : vector<8x128xbf16>, vector<128x512xbf16>, vector<8x512xf32> -> vector<8x512xf32>
    %55 = arith.addf %52, %54 : vector<8x512xf32>
    %56 = arith.truncf %21 : vector<8x128xf32> to vector<8x128xbf16>
    %cst_37 = arith.constant dense<0.000000e+00> : vector<8x512xf32>
    %57 = tpu.matmul %56, %17, %cst_37 {dimension_numbers = #tpu.dot_dimension_numbers<[1], [0], [0], [1], [0, 0, 1, 1], [], []>} : vector<8x128xbf16>, vector<128x512xbf16>, vector<8x512xf32> -> vector<8x512xf32>
    %58 = arith.addf %55, %57 : vector<8x512xf32>
    %59 = vector.extract_strided_slice %58 {offsets = [0, 0], sizes = [8, 128], strides = [1, 1]} : vector<8x512xf32> to vector<8x128xf32>
    %60 = arith.negf %59 : vector<8x128xf32>
    %61 = math.exp %60 : vector<8x128xf32>
    %cst_38 = arith.constant 1.000000e+00 : f32
    %62 = vector.broadcast %cst_38 : f32 to vector<8x128xf32>
    %63 = arith.addf %62, %61 : vector<8x128xf32>
    %64 = arith.divf %62, %63 : vector<8x128xf32>
    %65 = vector.extract_strided_slice %58 {offsets = [0, 128], sizes = [8, 128], strides = [1, 1]} : vector<8x512xf32> to vector<8x128xf32>
    %66 = arith.negf %65 : vector<8x128xf32>
    %67 = math.exp %66 : vector<8x128xf32>
    %cst_39 = arith.constant 1.000000e+00 : f32
    %68 = vector.broadcast %cst_39 : f32 to vector<8x128xf32>
    %69 = arith.addf %68, %67 : vector<8x128xf32>
    %70 = arith.divf %68, %69 : vector<8x128xf32>
    %71 = vector.extract_strided_slice %58 {offsets = [0, 256], sizes = [8, 128], strides = [1, 1]} : vector<8x512xf32> to vector<8x128xf32>
    %72 = math.tanh %71 : vector<8x128xf32>
    %73 = vector.extract_strided_slice %58 {offsets = [0, 384], sizes = [8, 128], strides = [1, 1]} : vector<8x512xf32> to vector<8x128xf32>
    %74 = arith.negf %73 : vector<8x128xf32>
    %75 = math.exp %74 : vector<8x128xf32>
    %cst_40 = arith.constant 1.000000e+00 : f32
    %76 = vector.broadcast %cst_40 : f32 to vector<8x128xf32>
    %77 = arith.addf %76, %75 : vector<8x128xf32>
    %78 = arith.divf %76, %77 : vector<8x128xf32>
    %79 = arith.mulf %70, %22 : vector<8x128xf32>
    %80 = arith.mulf %64, %72 : vector<8x128xf32>
    %81 = arith.addf %79, %80 : vector<8x128xf32>
    %82 = math.tanh %81 : vector<8x128xf32>
    %83 = arith.mulf %78, %82 : vector<8x128xf32>
    %84 = arith.truncf %83 : vector<8x128xf32> to vector<8x128xbf16>
    %c0_41 = arith.constant 0 : index
    %c0_42 = arith.constant 0 : index
    %85 = vector.load %arg15[%c0_41, %c0_42] : memref<64x128xbf16, #tpu.memory_space<vmem>>, vector<8x128xbf16>
    tpu.vector_store %arg15[%c0_41, %c0_42], %84 {strides = array<i32>} : memref<64x128xbf16, #tpu.memory_space<vmem>>, vector<8x128xbf16>,
    %c8 = arith.constant 8 : index
    %c0_43 = arith.constant 0 : index
    %86 = vector.load %arg13[%c8, %c0_43] : memref<64x512xf32, #tpu.memory_space<vmem>>, vector<8x512xf32>
    %87 = arith.truncf %51 : vector<8x128xf32> to vector<8x128xbf16>
    %cst_44 = arith.constant dense<0.000000e+00> : vector<8x512xf32>
    %88 = tpu.matmul %87, %16, %cst_44 {dimension_numbers = #tpu.dot_dimension_numbers<[1], [0], [0], [1], [0, 0, 1, 1], [], []>} : vector<8x128xbf16>, vector<128x512xbf16>, vector<8x512xf32> -> vector<8x512xf32>
    %89 = arith.addf %86, %88 : vector<8x512xf32>
    %90 = vector.extract_strided_slice %89 {offsets = [0, 0], sizes = [8, 128], strides = [1, 1]} : vector<8x512xf32> to vector<8x128xf32>
    %91 = arith.negf %90 : vector<8x128xf32>
    %92 = math.exp %91 : vector<8x128xf32>
    %cst_45 = arith.constant 1.000000e+00 : f32
    %93 = vector.broadcast %cst_45 : f32 to vector<8x128xf32>
    %94 = arith.addf %93, %92 : vector<8x128xf32>
    %95 = arith.divf %93, %94 : vector<8x128xf32>
    %96 = vector.extract_strided_slice %89 {offsets = [0, 128], sizes = [8, 128], strides = [1, 1]} : vector<8x512xf32> to vector<8x128xf32>
    %97 = arith.negf %96 : vector<8x128xf32>
    %98 = math.exp %97 : vector<8x128xf32>
    %cst_46 = arith.constant 1.000000e+00 : f32
    %99 = vector.broadcast %cst_46 : f32 to vector<8x128xf32>
    %100 = arith.addf %99, %98 : vector<8x128xf32>
    %101 = arith.divf %99, %100 : vector<8x128xf32>
    %102 = vector.extract_strided_slice %89 {offsets = [0, 256], sizes = [8, 128], strides = [1, 1]} : vector<8x512xf32> to vector<8x128xf32>
    %103 = math.tanh %102 : vector<8x128xf32>
    %104 = vector.extract_strided_slice %89 {offsets = [0, 384], sizes = [8, 128], strides = [1, 1]} : vector<8x512xf32> to vector<8x128xf32>
    %105 = arith.negf %104 : vector<8x128xf32>
    %106 = math.exp %105 : vector<8x128xf32>
    %cst_47 = arith.constant 1.000000e+00 : f32
    %107 = vector.broadcast %cst_47 : f32 to vector<8x128xf32>
    %108 = arith.addf %107, %106 : vector<8x128xf32>
    %109 = arith.divf %107, %108 : vector<8x128xf32>
    %110 = arith.mulf %101, %49 : vector<8x128xf32>
    %111 = arith.mulf %95, %103 : vector<8x128xf32>
    %112 = arith.addf %110, %111 : vector<8x128xf32>
    %113 = math.tanh %112 : vector<8x128xf32>
    %114 = arith.mulf %109, %113 : vector<8x128xf32>
    %c8_48 = arith.constant 8 : index
    %c0_49 = arith.constant 0 : index
    %115 = vector.load %arg14[%c8_48, %c0_49] : memref<64x512xf32, #tpu.memory_space<vmem>>, vector<8x512xf32>
    %116 = arith.truncf %114 : vector<8x128xf32> to vector<8x128xbf16>
    %cst_50 = arith.constant dense<0.000000e+00> : vector<8x512xf32>
    %117 = tpu.matmul %116, %18, %cst_50 {dimension_numbers = #tpu.dot_dimension_numbers<[1], [0], [0], [1], [0, 0, 1, 1], [], []>} : vector<8x128xbf16>, vector<128x512xbf16>, vector<8x512xf32> -> vector<8x512xf32>
    %118 = arith.addf %115, %117 : vector<8x512xf32>
    %119 = arith.truncf %83 : vector<8x128xf32> to vector<8x128xbf16>
    %cst_51 = arith.constant dense<0.000000e+00> : vector<8x512xf32>
    %120 = tpu.matmul %119, %17, %cst_51 {dimension_numbers = #tpu.dot_dimension_numbers<[1], [0], [0], [1], [0, 0, 1, 1], [], []>} : vector<8x128xbf16>, vector<128x512xbf16>, vector<8x512xf32> -> vector<8x512xf32>
    %121 = arith.addf %118, %120 : vector<8x512xf32>
    %122 = vector.extract_strided_slice %121 {offsets = [0, 0], sizes = [8, 128], strides = [1, 1]} : vector<8x512xf32> to vector<8x128xf32>
    %123 = arith.negf %122 : vector<8x128xf32>
    %124 = math.exp %123 : vector<8x128xf32>
    %cst_52 = arith.constant 1.000000e+00 : f32
    %125 = vector.broadcast %cst_52 : f32 to vector<8x128xf32>
    %126 = arith.addf %125, %124 : vector<8x128xf32>
    %127 = arith.divf %125, %126 : vector<8x128xf32>
    %128 = vector.extract_strided_slice %121 {offsets = [0, 128], sizes = [8, 128], strides = [1, 1]} : vector<8x512xf32> to vector<8x128xf32>
    %129 = arith.negf %128 : vector<8x128xf32>
    %130 = math.exp %129 : vector<8x128xf32>
    %cst_53 = arith.constant 1.000000e+00 : f32
    %131 = vector.broadcast %cst_53 : f32 to vector<8x128xf32>
    %132 = arith.addf %131, %130 : vector<8x128xf32>
    %133 = arith.divf %131, %132 : vector<8x128xf32>
    %134 = vector.extract_strided_slice %121 {offsets = [0, 256], sizes = [8, 128], strides = [1, 1]} : vector<8x512xf32> to vector<8x128xf32>
    %135 = math.tanh %134 : vector<8x128xf32>
    %136 = vector.extract_strided_slice %121 {offsets = [0, 384], sizes = [8, 128], strides = [1, 1]} : vector<8x512xf32> to vector<8x128xf32>
    %137 = arith.negf %136 : vector<8x128xf32>
    %138 = math.exp %137 : vector<8x128xf32>
    %cst_54 = arith.constant 1.000000e+00 : f32
    %139 = vector.broadcast %cst_54 : f32 to vector<8x128xf32>
    %140 = arith.addf %139, %138 : vector<8x128xf32>
    %141 = arith.divf %139, %140 : vector<8x128xf32>
    %142 = arith.mulf %133, %81 : vector<8x128xf32>
    %143 = arith.mulf %127, %135 : vector<8x128xf32>
    %144 = arith.addf %142, %143 : vector<8x128xf32>
    %145 = math.tanh %144 : vector<8x128xf32>
    %146 = arith.mulf %141, %145 : vector<8x128xf32>
    %147 = arith.truncf %146 : vector<8x128xf32> to vector<8x128xbf16>
    %c8_55 = arith.constant 8 : index
    %c0_56 = arith.constant 0 : index
    %148 = vector.load %arg15[%c8_55, %c0_56] : memref<64x128xbf16, #tpu.memory_space<vmem>>, vector<8x128xbf16>
    tpu.vector_store %arg15[%c8_55, %c0_56], %147 {strides = array<i32>} : memref<64x128xbf16, #tpu.memory_space<vmem>>, vector<8x128xbf16>,
    %c16 = arith.constant 16 : index
    %c0_57 = arith.constant 0 : index
    %149 = vector.load %arg13[%c16, %c0_57] : memref<64x512xf32, #tpu.memory_space<vmem>>, vector<8x512xf32>
    %150 = arith.truncf %114 : vector<8x128xf32> to vector<8x128xbf16>
    %cst_58 = arith.constant dense<0.000000e+00> : vector<8x512xf32>
    %151 = tpu.matmul %150, %16, %cst_58 {dimension_numbers = #tpu.dot_dimension_numbers<[1], [0], [0], [1], [0, 0, 1, 1], [], []>} : vector<8x128xbf16>, vector<128x512xbf16>, vector<8x512xf32> -> vector<8x512xf32>
    %152 = arith.addf %149, %151 : vector<8x512xf32>
    %153 = vector.extract_strided_slice %152 {offsets = [0, 0], sizes = [8, 128], strides = [1, 1]} : vector<8x512xf32> to vector<8x128xf32>
    %154 = arith.negf %153 : vector<8x128xf32>
    %155 = math.exp %154 : vector<8x128xf32>
    %cst_59 = arith.constant 1.000000e+00 : f32
    %156 = vector.broadcast %cst_59 : f32 to vector<8x128xf32>
    %157 = arith.addf %156, %155 : vector<8x128xf32>
    %158 = arith.divf %156, %157 : vector<8x128xf32>
    %159 = vector.extract_strided_slice %152 {offsets = [0, 128], sizes = [8, 128], strides = [1, 1]} : vector<8x512xf32> to vector<8x128xf32>
    %160 = arith.negf %159 : vector<8x128xf32>
    %161 = math.exp %160 : vector<8x128xf32>
    %cst_60 = arith.constant 1.000000e+00 : f32
    %162 = vector.broadcast %cst_60 : f32 to vector<8x128xf32>
    %163 = arith.addf %162, %161 : vector<8x128xf32>
    %164 = arith.divf %162, %163 : vector<8x128xf32>
    %165 = vector.extract_strided_slice %152 {offsets = [0, 256], sizes = [8, 128], strides = [1, 1]} : vector<8x512xf32> to vector<8x128xf32>
    %166 = math.tanh %165 : vector<8x128xf32>
    %167 = vector.extract_strided_slice %152 {offsets = [0, 384], sizes = [8, 128], strides = [1, 1]} : vector<8x512xf32> to vector<8x128xf32>
    %168 = arith.negf %167 : vector<8x128xf32>
    %169 = math.exp %168 : vector<8x128xf32>
    %cst_61 = arith.constant 1.000000e+00 : f32
    %170 = vector.broadcast %cst_61 : f32 to vector<8x128xf32>
    %171 = arith.addf %170, %169 : vector<8x128xf32>
    %172 = arith.divf %170, %171 : vector<8x128xf32>
    %173 = arith.mulf %164, %112 : vector<8x128xf32>
    %174 = arith.mulf %158, %166 : vector<8x128xf32>
    %175 = arith.addf %173, %174 : vector<8x128xf32>
    %176 = math.tanh %175 : vector<8x128xf32>
    %177 = arith.mulf %172, %176 : vector<8x128xf32>
    %c16_62 = arith.constant 16 : index
    %c0_63 = arith.constant 0 : index
    %178 = vector.load %arg14[%c16_62, %c0_63] : memref<64x512xf32, #tpu.memory_space<vmem>>, vector<8x512xf32>
    %179 = arith.truncf %177 : vector<8x128xf32> to vector<8x128xbf16>
    %cst_64 = arith.constant dense<0.000000e+00> : vector<8x512xf32>
    %180 = tpu.matmul %179, %18, %cst_64 {dimension_numbers = #tpu.dot_dimension_numbers<[1], [0], [0], [1], [0, 0, 1, 1], [], []>} : vector<8x128xbf16>, vector<128x512xbf16>, vector<8x512xf32> -> vector<8x512xf32>
    %181 = arith.addf %178, %180 : vector<8x512xf32>
    %182 = arith.truncf %146 : vector<8x128xf32> to vector<8x128xbf16>
    %cst_65 = arith.constant dense<0.000000e+00> : vector<8x512xf32>
    %183 = tpu.matmul %182, %17, %cst_65 {dimension_numbers = #tpu.dot_dimension_numbers<[1], [0], [0], [1], [0, 0, 1, 1], [], []>} : vector<8x128xbf16>, vector<128x512xbf16>, vector<8x512xf32> -> vector<8x512xf32>
    %184 = arith.addf %181, %183 : vector<8x512xf32>
    %185 = vector.extract_strided_slice %184 {offsets = [0, 0], sizes = [8, 128], strides = [1, 1]} : vector<8x512xf32> to vector<8x128xf32>
    %186 = arith.negf %185 : vector<8x128xf32>
    %187 = math.exp %186 : vector<8x128xf32>
    %cst_66 = arith.constant 1.000000e+00 : f32
    %188 = vector.broadcast %cst_66 : f32 to vector<8x128xf32>
    %189 = arith.addf %188, %187 : vector<8x128xf32>
    %190 = arith.divf %188, %189 : vector<8x128xf32>
    %191 = vector.extract_strided_slice %184 {offsets = [0, 128], sizes = [8, 128], strides = [1, 1]} : vector<8x512xf32> to vector<8x128xf32>
    %192 = arith.negf %191 : vector<8x128xf32>
    %193 = math.exp %192 : vector<8x128xf32>
    %cst_67 = arith.constant 1.000000e+00 : f32
    %194 = vector.broadcast %cst_67 : f32 to vector<8x128xf32>
    %195 = arith.addf %194, %193 : vector<8x128xf32>
    %196 = arith.divf %194, %195 : vector<8x128xf32>
    %197 = vector.extract_strided_slice %184 {offsets = [0, 256], sizes = [8, 128], strides = [1, 1]} : vector<8x512xf32> to vector<8x128xf32>
    %198 = math.tanh %197 : vector<8x128xf32>
    %199 = vector.extract_strided_slice %184 {offsets = [0, 384], sizes = [8, 128], strides = [1, 1]} : vector<8x512xf32> to vector<8x128xf32>
    %200 = arith.negf %199 : vector<8x128xf32>
    %201 = math.exp %200 : vector<8x128xf32>
    %cst_68 = arith.constant 1.000000e+00 : f32
    %202 = vector.broadcast %cst_68 : f32 to vector<8x128xf32>
    %203 = arith.addf %202, %201 : vector<8x128xf32>
    %204 = arith.divf %202, %203 : vector<8x128xf32>
    %205 = arith.mulf %196, %144 : vector<8x128xf32>
    %206 = arith.mulf %190, %198 : vector<8x128xf32>
    %207 = arith.addf %205, %206 : vector<8x128xf32>
    %208 = math.tanh %207 : vector<8x128xf32>
    %209 = arith.mulf %204, %208 : vector<8x128xf32>
    %210 = arith.truncf %209 : vector<8x128xf32> to vector<8x128xbf16>
    %c16_69 = arith.constant 16 : index
    %c0_70 = arith.constant 0 : index
    %211 = vector.load %arg15[%c16_69, %c0_70] : memref<64x128xbf16, #tpu.memory_space<vmem>>, vector<8x128xbf16>
    tpu.vector_store %arg15[%c16_69, %c0_70], %210 {strides = array<i32>} : memref<64x128xbf16, #tpu.memory_space<vmem>>, vector<8x128xbf16>,
    %c24 = arith.constant 24 : index
    %c0_71 = arith.constant 0 : index
    %212 = vector.load %arg13[%c24, %c0_71] : memref<64x512xf32, #tpu.memory_space<vmem>>, vector<8x512xf32>
    %213 = arith.truncf %177 : vector<8x128xf32> to vector<8x128xbf16>
    %cst_72 = arith.constant dense<0.000000e+00> : vector<8x512xf32>
    %214 = tpu.matmul %213, %16, %cst_72 {dimension_numbers = #tpu.dot_dimension_numbers<[1], [0], [0], [1], [0, 0, 1, 1], [], []>} : vector<8x128xbf16>, vector<128x512xbf16>, vector<8x512xf32> -> vector<8x512xf32>
    %215 = arith.addf %212, %214 : vector<8x512xf32>
    %216 = vector.extract_strided_slice %215 {offsets = [0, 0], sizes = [8, 128], strides = [1, 1]} : vector<8x512xf32> to vector<8x128xf32>
    %217 = arith.negf %216 : vector<8x128xf32>
    %218 = math.exp %217 : vector<8x128xf32>
    %cst_73 = arith.constant 1.000000e+00 : f32
    %219 = vector.broadcast %cst_73 : f32 to vector<8x128xf32>
    %220 = arith.addf %219, %218 : vector<8x128xf32>
    %221 = arith.divf %219, %220 : vector<8x128xf32>
    %222 = vector.extract_strided_slice %215 {offsets = [0, 128], sizes = [8, 128], strides = [1, 1]} : vector<8x512xf32> to vector<8x128xf32>
    %223 = arith.negf %222 : vector<8x128xf32>
    %224 = math.exp %223 : vector<8x128xf32>
    %cst_74 = arith.constant 1.000000e+00 : f32
    %225 = vector.broadcast %cst_74 : f32 to vector<8x128xf32>
    %226 = arith.addf %225, %224 : vector<8x128xf32>
    %227 = arith.divf %225, %226 : vector<8x128xf32>
    %228 = vector.extract_strided_slice %215 {offsets = [0, 256], sizes = [8, 128], strides = [1, 1]} : vector<8x512xf32> to vector<8x128xf32>
    %229 = math.tanh %228 : vector<8x128xf32>
    %230 = vector.extract_strided_slice %215 {offsets = [0, 384], sizes = [8, 128], strides = [1, 1]} : vector<8x512xf32> to vector<8x128xf32>
    %231 = arith.negf %230 : vector<8x128xf32>
    %232 = math.exp %231 : vector<8x128xf32>
    %cst_75 = arith.constant 1.000000e+00 : f32
    %233 = vector.broadcast %cst_75 : f32 to vector<8x128xf32>
    %234 = arith.addf %233, %232 : vector<8x128xf32>
    %235 = arith.divf %233, %234 : vector<8x128xf32>
    %236 = arith.mulf %227, %175 : vector<8x128xf32>
    %237 = arith.mulf %221, %229 : vector<8x128xf32>
    %238 = arith.addf %236, %237 : vector<8x128xf32>
    %239 = math.tanh %238 : vector<8x128xf32>
    %240 = arith.mulf %235, %239 : vector<8x128xf32>
    %c24_76 = arith.constant 24 : index
    %c0_77 = arith.constant 0 : index
    %241 = vector.load %arg14[%c24_76, %c0_77] : memref<64x512xf32, #tpu.memory_space<vmem>>, vector<8x512xf32>
    %242 = arith.truncf %240 : vector<8x128xf32> to vector<8x128xbf16>
    %cst_78 = arith.constant dense<0.000000e+00> : vector<8x512xf32>
    %243 = tpu.matmul %242, %18, %cst_78 {dimension_numbers = #tpu.dot_dimension_numbers<[1], [0], [0], [1], [0, 0, 1, 1], [], []>} : vector<8x128xbf16>, vector<128x512xbf16>, vector<8x512xf32> -> vector<8x512xf32>
    %244 = arith.addf %241, %243 : vector<8x512xf32>
    %245 = arith.truncf %209 : vector<8x128xf32> to vector<8x128xbf16>
    %cst_79 = arith.constant dense<0.000000e+00> : vector<8x512xf32>
    %246 = tpu.matmul %245, %17, %cst_79 {dimension_numbers = #tpu.dot_dimension_numbers<[1], [0], [0], [1], [0, 0, 1, 1], [], []>} : vector<8x128xbf16>, vector<128x512xbf16>, vector<8x512xf32> -> vector<8x512xf32>
    %247 = arith.addf %244, %246 : vector<8x512xf32>
    %248 = vector.extract_strided_slice %247 {offsets = [0, 0], sizes = [8, 128], strides = [1, 1]} : vector<8x512xf32> to vector<8x128xf32>
    %249 = arith.negf %248 : vector<8x128xf32>
    %250 = math.exp %249 : vector<8x128xf32>
    %cst_80 = arith.constant 1.000000e+00 : f32
    %251 = vector.broadcast %cst_80 : f32 to vector<8x128xf32>
    %252 = arith.addf %251, %250 : vector<8x128xf32>
    %253 = arith.divf %251, %252 : vector<8x128xf32>
    %254 = vector.extract_strided_slice %247 {offsets = [0, 128], sizes = [8, 128], strides = [1, 1]} : vector<8x512xf32> to vector<8x128xf32>
    %255 = arith.negf %254 : vector<8x128xf32>
    %256 = math.exp %255 : vector<8x128xf32>
    %cst_81 = arith.constant 1.000000e+00 : f32
    %257 = vector.broadcast %cst_81 : f32 to vector<8x128xf32>
    %258 = arith.addf %257, %256 : vector<8x128xf32>
    %259 = arith.divf %257, %258 : vector<8x128xf32>
    %260 = vector.extract_strided_slice %247 {offsets = [0, 256], sizes = [8, 128], strides = [1, 1]} : vector<8x512xf32> to vector<8x128xf32>
    %261 = math.tanh %260 : vector<8x128xf32>
    %262 = vector.extract_strided_slice %247 {offsets = [0, 384], sizes = [8, 128], strides = [1, 1]} : vector<8x512xf32> to vector<8x128xf32>
    %263 = arith.negf %262 : vector<8x128xf32>
    %264 = math.exp %263 : vector<8x128xf32>
    %cst_82 = arith.constant 1.000000e+00 : f32
    %265 = vector.broadcast %cst_82 : f32 to vector<8x128xf32>
    %266 = arith.addf %265, %264 : vector<8x128xf32>
    %267 = arith.divf %265, %266 : vector<8x128xf32>
    %268 = arith.mulf %259, %207 : vector<8x128xf32>
    %269 = arith.mulf %253, %261 : vector<8x128xf32>
    %270 = arith.addf %268, %269 : vector<8x128xf32>
    %271 = math.tanh %270 : vector<8x128xf32>
    %272 = arith.mulf %267, %271 : vector<8x128xf32>
    %273 = arith.truncf %272 : vector<8x128xf32> to vector<8x128xbf16>
    %c24_83 = arith.constant 24 : index
    %c0_84 = arith.constant 0 : index
    %274 = vector.load %arg15[%c24_83, %c0_84] : memref<64x128xbf16, #tpu.memory_space<vmem>>, vector<8x128xbf16>
    tpu.vector_store %arg15[%c24_83, %c0_84], %273 {strides = array<i32>} : memref<64x128xbf16, #tpu.memory_space<vmem>>, vector<8x128xbf16>,
    %c32 = arith.constant 32 : index
    %c0_85 = arith.constant 0 : index
    %275 = vector.load %arg13[%c32, %c0_85] : memref<64x512xf32, #tpu.memory_space<vmem>>, vector<8x512xf32>
    %276 = arith.truncf %240 : vector<8x128xf32> to vector<8x128xbf16>
    %cst_86 = arith.constant dense<0.000000e+00> : vector<8x512xf32>
    %277 = tpu.matmul %276, %16, %cst_86 {dimension_numbers = #tpu.dot_dimension_numbers<[1], [0], [0], [1], [0, 0, 1, 1], [], []>} : vector<8x128xbf16>, vector<128x512xbf16>, vector<8x512xf32> -> vector<8x512xf32>
    %278 = arith.addf %275, %277 : vector<8x512xf32>
    %279 = vector.extract_strided_slice %278 {offsets = [0, 0], sizes = [8, 128], strides = [1, 1]} : vector<8x512xf32> to vector<8x128xf32>
    %280 = arith.negf %279 : vector<8x128xf32>
    %281 = math.exp %280 : vector<8x128xf32>
    %cst_87 = arith.constant 1.000000e+00 : f32
    %282 = vector.broadcast %cst_87 : f32 to vector<8x128xf32>
    %283 = arith.addf %282, %281 : vector<8x128xf32>
    %284 = arith.divf %282, %283 : vector<8x128xf32>
    %285 = vector.extract_strided_slice %278 {offsets = [0, 128], sizes = [8, 128], strides = [1, 1]} : vector<8x512xf32> to vector<8x128xf32>
    %286 = arith.negf %285 : vector<8x128xf32>
    %287 = math.exp %286 : vector<8x128xf32>
    %cst_88 = arith.constant 1.000000e+00 : f32
    %288 = vector.broadcast %cst_88 : f32 to vector<8x128xf32>
    %289 = arith.addf %288, %287 : vector<8x128xf32>
    %290 = arith.divf %288, %289 : vector<8x128xf32>
    %291 = vector.extract_strided_slice %278 {offsets = [0, 256], sizes = [8, 128], strides = [1, 1]} : vector<8x512xf32> to vector<8x128xf32>
    %292 = math.tanh %291 : vector<8x128xf32>
    %293 = vector.extract_strided_slice %278 {offsets = [0, 384], sizes = [8, 128], strides = [1, 1]} : vector<8x512xf32> to vector<8x128xf32>
    %294 = arith.negf %293 : vector<8x128xf32>
    %295 = math.exp %294 : vector<8x128xf32>
    %cst_89 = arith.constant 1.000000e+00 : f32
    %296 = vector.broadcast %cst_89 : f32 to vector<8x128xf32>
    %297 = arith.addf %296, %295 : vector<8x128xf32>
    %298 = arith.divf %296, %297 : vector<8x128xf32>
    %299 = arith.mulf %290, %238 : vector<8x128xf32>
    %300 = arith.mulf %284, %292 : vector<8x128xf32>
    %301 = arith.addf %299, %300 : vector<8x128xf32>
    %302 = math.tanh %301 : vector<8x128xf32>
    %303 = arith.mulf %298, %302 : vector<8x128xf32>
    %c32_90 = arith.constant 32 : index
    %c0_91 = arith.constant 0 : index
    %304 = vector.load %arg14[%c32_90, %c0_91] : memref<64x512xf32, #tpu.memory_space<vmem>>, vector<8x512xf32>
    %305 = arith.truncf %303 : vector<8x128xf32> to vector<8x128xbf16>
    %cst_92 = arith.constant dense<0.000000e+00> : vector<8x512xf32>
    %306 = tpu.matmul %305, %18, %cst_92 {dimension_numbers = #tpu.dot_dimension_numbers<[1], [0], [0], [1], [0, 0, 1, 1], [], []>} : vector<8x128xbf16>, vector<128x512xbf16>, vector<8x512xf32> -> vector<8x512xf32>
    %307 = arith.addf %304, %306 : vector<8x512xf32>
    %308 = arith.truncf %272 : vector<8x128xf32> to vector<8x128xbf16>
    %cst_93 = arith.constant dense<0.000000e+00> : vector<8x512xf32>
    %309 = tpu.matmul %308, %17, %cst_93 {dimension_numbers = #tpu.dot_dimension_numbers<[1], [0], [0], [1], [0, 0, 1, 1], [], []>} : vector<8x128xbf16>, vector<128x512xbf16>, vector<8x512xf32> -> vector<8x512xf32>
    %310 = arith.addf %307, %309 : vector<8x512xf32>
    %311 = vector.extract_strided_slice %310 {offsets = [0, 0], sizes = [8, 128], strides = [1, 1]} : vector<8x512xf32> to vector<8x128xf32>
    %312 = arith.negf %311 : vector<8x128xf32>
    %313 = math.exp %312 : vector<8x128xf32>
    %cst_94 = arith.constant 1.000000e+00 : f32
    %314 = vector.broadcast %cst_94 : f32 to vector<8x128xf32>
    %315 = arith.addf %314, %313 : vector<8x128xf32>
    %316 = arith.divf %314, %315 : vector<8x128xf32>
    %317 = vector.extract_strided_slice %310 {offsets = [0, 128], sizes = [8, 128], strides = [1, 1]} : vector<8x512xf32> to vector<8x128xf32>
    %318 = arith.negf %317 : vector<8x128xf32>
    %319 = math.exp %318 : vector<8x128xf32>
    %cst_95 = arith.constant 1.000000e+00 : f32
    %320 = vector.broadcast %cst_95 : f32 to vector<8x128xf32>
    %321 = arith.addf %320, %319 : vector<8x128xf32>
    %322 = arith.divf %320, %321 : vector<8x128xf32>
    %323 = vector.extract_strided_slice %310 {offsets = [0, 256], sizes = [8, 128], strides = [1, 1]} : vector<8x512xf32> to vector<8x128xf32>
    %324 = math.tanh %323 : vector<8x128xf32>
    %325 = vector.extract_strided_slice %310 {offsets = [0, 384], sizes = [8, 128], strides = [1, 1]} : vector<8x512xf32> to vector<8x128xf32>
    %326 = arith.negf %325 : vector<8x128xf32>
    %327 = math.exp %326 : vector<8x128xf32>
    %cst_96 = arith.constant 1.000000e+00 : f32
    %328 = vector.broadcast %cst_96 : f32 to vector<8x128xf32>
    %329 = arith.addf %328, %327 : vector<8x128xf32>
    %330 = arith.divf %328, %329 : vector<8x128xf32>
    %331 = arith.mulf %322, %270 : vector<8x128xf32>
    %332 = arith.mulf %316, %324 : vector<8x128xf32>
    %333 = arith.addf %331, %332 : vector<8x128xf32>
    %334 = math.tanh %333 : vector<8x128xf32>
    %335 = arith.mulf %330, %334 : vector<8x128xf32>
    %336 = arith.truncf %335 : vector<8x128xf32> to vector<8x128xbf16>
    %c32_97 = arith.constant 32 : index
    %c0_98 = arith.constant 0 : index
    %337 = vector.load %arg15[%c32_97, %c0_98] : memref<64x128xbf16, #tpu.memory_space<vmem>>, vector<8x128xbf16>
    tpu.vector_store %arg15[%c32_97, %c0_98], %336 {strides = array<i32>} : memref<64x128xbf16, #tpu.memory_space<vmem>>, vector<8x128xbf16>,
    %c40 = arith.constant 40 : index
    %c0_99 = arith.constant 0 : index
    %338 = vector.load %arg13[%c40, %c0_99] : memref<64x512xf32, #tpu.memory_space<vmem>>, vector<8x512xf32>
    %339 = arith.truncf %303 : vector<8x128xf32> to vector<8x128xbf16>
    %cst_100 = arith.constant dense<0.000000e+00> : vector<8x512xf32>
    %340 = tpu.matmul %339, %16, %cst_100 {dimension_numbers = #tpu.dot_dimension_numbers<[1], [0], [0], [1], [0, 0, 1, 1], [], []>} : vector<8x128xbf16>, vector<128x512xbf16>, vector<8x512xf32> -> vector<8x512xf32>
    %341 = arith.addf %338, %340 : vector<8x512xf32>
    %342 = vector.extract_strided_slice %341 {offsets = [0, 0], sizes = [8, 128], strides = [1, 1]} : vector<8x512xf32> to vector<8x128xf32>
    %343 = arith.negf %342 : vector<8x128xf32>
    %344 = math.exp %343 : vector<8x128xf32>
    %cst_101 = arith.constant 1.000000e+00 : f32
    %345 = vector.broadcast %cst_101 : f32 to vector<8x128xf32>
    %346 = arith.addf %345, %344 : vector<8x128xf32>
    %347 = arith.divf %345, %346 : vector<8x128xf32>
    %348 = vector.extract_strided_slice %341 {offsets = [0, 128], sizes = [8, 128], strides = [1, 1]} : vector<8x512xf32> to vector<8x128xf32>
    %349 = arith.negf %348 : vector<8x128xf32>
    %350 = math.exp %349 : vector<8x128xf32>
    %cst_102 = arith.constant 1.000000e+00 : f32
    %351 = vector.broadcast %cst_102 : f32 to vector<8x128xf32>
    %352 = arith.addf %351, %350 : vector<8x128xf32>
    %353 = arith.divf %351, %352 : vector<8x128xf32>
    %354 = vector.extract_strided_slice %341 {offsets = [0, 256], sizes = [8, 128], strides = [1, 1]} : vector<8x512xf32> to vector<8x128xf32>
    %355 = math.tanh %354 : vector<8x128xf32>
    %356 = vector.extract_strided_slice %341 {offsets = [0, 384], sizes = [8, 128], strides = [1, 1]} : vector<8x512xf32> to vector<8x128xf32>
    %357 = arith.negf %356 : vector<8x128xf32>
    %358 = math.exp %357 : vector<8x128xf32>
    %cst_103 = arith.constant 1.000000e+00 : f32
    %359 = vector.broadcast %cst_103 : f32 to vector<8x128xf32>
    %360 = arith.addf %359, %358 : vector<8x128xf32>
    %361 = arith.divf %359, %360 : vector<8x128xf32>
    %362 = arith.mulf %353, %301 : vector<8x128xf32>
    %363 = arith.mulf %347, %355 : vector<8x128xf32>
    %364 = arith.addf %362, %363 : vector<8x128xf32>
    %365 = math.tanh %364 : vector<8x128xf32>
    %366 = arith.mulf %361, %365 : vector<8x128xf32>
    %c40_104 = arith.constant 40 : index
    %c0_105 = arith.constant 0 : index
    %367 = vector.load %arg14[%c40_104, %c0_105] : memref<64x512xf32, #tpu.memory_space<vmem>>, vector<8x512xf32>
    %368 = arith.truncf %366 : vector<8x128xf32> to vector<8x128xbf16>
    %cst_106 = arith.constant dense<0.000000e+00> : vector<8x512xf32>
    %369 = tpu.matmul %368, %18, %cst_106 {dimension_numbers = #tpu.dot_dimension_numbers<[1], [0], [0], [1], [0, 0, 1, 1], [], []>} : vector<8x128xbf16>, vector<128x512xbf16>, vector<8x512xf32> -> vector<8x512xf32>
    %370 = arith.addf %367, %369 : vector<8x512xf32>
    %371 = arith.truncf %335 : vector<8x128xf32> to vector<8x128xbf16>
    %cst_107 = arith.constant dense<0.000000e+00> : vector<8x512xf32>
    %372 = tpu.matmul %371, %17, %cst_107 {dimension_numbers = #tpu.dot_dimension_numbers<[1], [0], [0], [1], [0, 0, 1, 1], [], []>} : vector<8x128xbf16>, vector<128x512xbf16>, vector<8x512xf32> -> vector<8x512xf32>
    %373 = arith.addf %370, %372 : vector<8x512xf32>
    %374 = vector.extract_strided_slice %373 {offsets = [0, 0], sizes = [8, 128], strides = [1, 1]} : vector<8x512xf32> to vector<8x128xf32>
    %375 = arith.negf %374 : vector<8x128xf32>
    %376 = math.exp %375 : vector<8x128xf32>
    %cst_108 = arith.constant 1.000000e+00 : f32
    %377 = vector.broadcast %cst_108 : f32 to vector<8x128xf32>
    %378 = arith.addf %377, %376 : vector<8x128xf32>
    %379 = arith.divf %377, %378 : vector<8x128xf32>
    %380 = vector.extract_strided_slice %373 {offsets = [0, 128], sizes = [8, 128], strides = [1, 1]} : vector<8x512xf32> to vector<8x128xf32>
    %381 = arith.negf %380 : vector<8x128xf32>
    %382 = math.exp %381 : vector<8x128xf32>
    %cst_109 = arith.constant 1.000000e+00 : f32
    %383 = vector.broadcast %cst_109 : f32 to vector<8x128xf32>
    %384 = arith.addf %383, %382 : vector<8x128xf32>
    %385 = arith.divf %383, %384 : vector<8x128xf32>
    %386 = vector.extract_strided_slice %373 {offsets = [0, 256], sizes = [8, 128], strides = [1, 1]} : vector<8x512xf32> to vector<8x128xf32>
    %387 = math.tanh %386 : vector<8x128xf32>
    %388 = vector.extract_strided_slice %373 {offsets = [0, 384], sizes = [8, 128], strides = [1, 1]} : vector<8x512xf32> to vector<8x128xf32>
    %389 = arith.negf %388 : vector<8x128xf32>
    %390 = math.exp %389 : vector<8x128xf32>
    %cst_110 = arith.constant 1.000000e+00 : f32
    %391 = vector.broadcast %cst_110 : f32 to vector<8x128xf32>
    %392 = arith.addf %391, %390 : vector<8x128xf32>
    %393 = arith.divf %391, %392 : vector<8x128xf32>
    %394 = arith.mulf %385, %333 : vector<8x128xf32>
    %395 = arith.mulf %379, %387 : vector<8x128xf32>
    %396 = arith.addf %394, %395 : vector<8x128xf32>
    %397 = math.tanh %396 : vector<8x128xf32>
    %398 = arith.mulf %393, %397 : vector<8x128xf32>
    %399 = arith.truncf %398 : vector<8x128xf32> to vector<8x128xbf16>
    %c40_111 = arith.constant 40 : index
    %c0_112 = arith.constant 0 : index
    %400 = vector.load %arg15[%c40_111, %c0_112] : memref<64x128xbf16, #tpu.memory_space<vmem>>, vector<8x128xbf16>
    tpu.vector_store %arg15[%c40_111, %c0_112], %399 {strides = array<i32>} : memref<64x128xbf16, #tpu.memory_space<vmem>>, vector<8x128xbf16>,
    %c48 = arith.constant 48 : index
    %c0_113 = arith.constant 0 : index
    %401 = vector.load %arg13[%c48, %c0_113] : memref<64x512xf32, #tpu.memory_space<vmem>>, vector<8x512xf32>
    %402 = arith.truncf %366 : vector<8x128xf32> to vector<8x128xbf16>
    %cst_114 = arith.constant dense<0.000000e+00> : vector<8x512xf32>
    %403 = tpu.matmul %402, %16, %cst_114 {dimension_numbers = #tpu.dot_dimension_numbers<[1], [0], [0], [1], [0, 0, 1, 1], [], []>} : vector<8x128xbf16>, vector<128x512xbf16>, vector<8x512xf32> -> vector<8x512xf32>
    %404 = arith.addf %401, %403 : vector<8x512xf32>
    %405 = vector.extract_strided_slice %404 {offsets = [0, 0], sizes = [8, 128], strides = [1, 1]} : vector<8x512xf32> to vector<8x128xf32>
    %406 = arith.negf %405 : vector<8x128xf32>
    %407 = math.exp %406 : vector<8x128xf32>
    %cst_115 = arith.constant 1.000000e+00 : f32
    %408 = vector.broadcast %cst_115 : f32 to vector<8x128xf32>
    %409 = arith.addf %408, %407 : vector<8x128xf32>
    %410 = arith.divf %408, %409 : vector<8x128xf32>
    %411 = vector.extract_strided_slice %404 {offsets = [0, 128], sizes = [8, 128], strides = [1, 1]} : vector<8x512xf32> to vector<8x128xf32>
    %412 = arith.negf %411 : vector<8x128xf32>
    %413 = math.exp %412 : vector<8x128xf32>
    %cst_116 = arith.constant 1.000000e+00 : f32
    %414 = vector.broadcast %cst_116 : f32 to vector<8x128xf32>
    %415 = arith.addf %414, %413 : vector<8x128xf32>
    %416 = arith.divf %414, %415 : vector<8x128xf32>
    %417 = vector.extract_strided_slice %404 {offsets = [0, 256], sizes = [8, 128], strides = [1, 1]} : vector<8x512xf32> to vector<8x128xf32>
    %418 = math.tanh %417 : vector<8x128xf32>
    %419 = vector.extract_strided_slice %404 {offsets = [0, 384], sizes = [8, 128], strides = [1, 1]} : vector<8x512xf32> to vector<8x128xf32>
    %420 = arith.negf %419 : vector<8x128xf32>
    %421 = math.exp %420 : vector<8x128xf32>
    %cst_117 = arith.constant 1.000000e+00 : f32
    %422 = vector.broadcast %cst_117 : f32 to vector<8x128xf32>
    %423 = arith.addf %422, %421 : vector<8x128xf32>
    %424 = arith.divf %422, %423 : vector<8x128xf32>
    %425 = arith.mulf %416, %364 : vector<8x128xf32>
    %426 = arith.mulf %410, %418 : vector<8x128xf32>
    %427 = arith.addf %425, %426 : vector<8x128xf32>
    %428 = math.tanh %427 : vector<8x128xf32>
    %429 = arith.mulf %424, %428 : vector<8x128xf32>
    %c48_118 = arith.constant 48 : index
    %c0_119 = arith.constant 0 : index
    %430 = vector.load %arg14[%c48_118, %c0_119] : memref<64x512xf32, #tpu.memory_space<vmem>>, vector<8x512xf32>
    %431 = arith.truncf %429 : vector<8x128xf32> to vector<8x128xbf16>
    %cst_120 = arith.constant dense<0.000000e+00> : vector<8x512xf32>
    %432 = tpu.matmul %431, %18, %cst_120 {dimension_numbers = #tpu.dot_dimension_numbers<[1], [0], [0], [1], [0, 0, 1, 1], [], []>} : vector<8x128xbf16>, vector<128x512xbf16>, vector<8x512xf32> -> vector<8x512xf32>
    %433 = arith.addf %430, %432 : vector<8x512xf32>
    %434 = arith.truncf %398 : vector<8x128xf32> to vector<8x128xbf16>
    %cst_121 = arith.constant dense<0.000000e+00> : vector<8x512xf32>
    %435 = tpu.matmul %434, %17, %cst_121 {dimension_numbers = #tpu.dot_dimension_numbers<[1], [0], [0], [1], [0, 0, 1, 1], [], []>} : vector<8x128xbf16>, vector<128x512xbf16>, vector<8x512xf32> -> vector<8x512xf32>
    %436 = arith.addf %433, %435 : vector<8x512xf32>
    %437 = vector.extract_strided_slice %436 {offsets = [0, 0], sizes = [8, 128], strides = [1, 1]} : vector<8x512xf32> to vector<8x128xf32>
    %438 = arith.negf %437 : vector<8x128xf32>
    %439 = math.exp %438 : vector<8x128xf32>
    %cst_122 = arith.constant 1.000000e+00 : f32
    %440 = vector.broadcast %cst_122 : f32 to vector<8x128xf32>
    %441 = arith.addf %440, %439 : vector<8x128xf32>
    %442 = arith.divf %440, %441 : vector<8x128xf32>
    %443 = vector.extract_strided_slice %436 {offsets = [0, 128], sizes = [8, 128], strides = [1, 1]} : vector<8x512xf32> to vector<8x128xf32>
    %444 = arith.negf %443 : vector<8x128xf32>
    %445 = math.exp %444 : vector<8x128xf32>
    %cst_123 = arith.constant 1.000000e+00 : f32
    %446 = vector.broadcast %cst_123 : f32 to vector<8x128xf32>
    %447 = arith.addf %446, %445 : vector<8x128xf32>
    %448 = arith.divf %446, %447 : vector<8x128xf32>
    %449 = vector.extract_strided_slice %436 {offsets = [0, 256], sizes = [8, 128], strides = [1, 1]} : vector<8x512xf32> to vector<8x128xf32>
    %450 = math.tanh %449 : vector<8x128xf32>
    %451 = vector.extract_strided_slice %436 {offsets = [0, 384], sizes = [8, 128], strides = [1, 1]} : vector<8x512xf32> to vector<8x128xf32>
    %452 = arith.negf %451 : vector<8x128xf32>
    %453 = math.exp %452 : vector<8x128xf32>
    %cst_124 = arith.constant 1.000000e+00 : f32
    %454 = vector.broadcast %cst_124 : f32 to vector<8x128xf32>
    %455 = arith.addf %454, %453 : vector<8x128xf32>
    %456 = arith.divf %454, %455 : vector<8x128xf32>
    %457 = arith.mulf %448, %396 : vector<8x128xf32>
    %458 = arith.mulf %442, %450 : vector<8x128xf32>
    %459 = arith.addf %457, %458 : vector<8x128xf32>
    %460 = math.tanh %459 : vector<8x128xf32>
    %461 = arith.mulf %456, %460 : vector<8x128xf32>
    %462 = arith.truncf %461 : vector<8x128xf32> to vector<8x128xbf16>
    %c48_125 = arith.constant 48 : index
    %c0_126 = arith.constant 0 : index
    %463 = vector.load %arg15[%c48_125, %c0_126] : memref<64x128xbf16, #tpu.memory_space<vmem>>, vector<8x128xbf16>
    tpu.vector_store %arg15[%c48_125, %c0_126], %462 {strides = array<i32>} : memref<64x128xbf16, #tpu.memory_space<vmem>>, vector<8x128xbf16>,
    %c56 = arith.constant 56 : index
    %c0_127 = arith.constant 0 : index
    %464 = vector.load %arg13[%c56, %c0_127] : memref<64x512xf32, #tpu.memory_space<vmem>>, vector<8x512xf32>
    %465 = arith.truncf %429 : vector<8x128xf32> to vector<8x128xbf16>
    %cst_128 = arith.constant dense<0.000000e+00> : vector<8x512xf32>
    %466 = tpu.matmul %465, %16, %cst_128 {dimension_numbers = #tpu.dot_dimension_numbers<[1], [0], [0], [1], [0, 0, 1, 1], [], []>} : vector<8x128xbf16>, vector<128x512xbf16>, vector<8x512xf32> -> vector<8x512xf32>
    %467 = arith.addf %464, %466 : vector<8x512xf32>
    %468 = vector.extract_strided_slice %467 {offsets = [0, 0], sizes = [8, 128], strides = [1, 1]} : vector<8x512xf32> to vector<8x128xf32>
    %469 = arith.negf %468 : vector<8x128xf32>
    %470 = math.exp %469 : vector<8x128xf32>
    %cst_129 = arith.constant 1.000000e+00 : f32
    %471 = vector.broadcast %cst_129 : f32 to vector<8x128xf32>
    %472 = arith.addf %471, %470 : vector<8x128xf32>
    %473 = arith.divf %471, %472 : vector<8x128xf32>
    %474 = vector.extract_strided_slice %467 {offsets = [0, 128], sizes = [8, 128], strides = [1, 1]} : vector<8x512xf32> to vector<8x128xf32>
    %475 = arith.negf %474 : vector<8x128xf32>
    %476 = math.exp %475 : vector<8x128xf32>
    %cst_130 = arith.constant 1.000000e+00 : f32
    %477 = vector.broadcast %cst_130 : f32 to vector<8x128xf32>
    %478 = arith.addf %477, %476 : vector<8x128xf32>
    %479 = arith.divf %477, %478 : vector<8x128xf32>
    %480 = vector.extract_strided_slice %467 {offsets = [0, 256], sizes = [8, 128], strides = [1, 1]} : vector<8x512xf32> to vector<8x128xf32>
    %481 = math.tanh %480 : vector<8x128xf32>
    %482 = vector.extract_strided_slice %467 {offsets = [0, 384], sizes = [8, 128], strides = [1, 1]} : vector<8x512xf32> to vector<8x128xf32>
    %483 = arith.negf %482 : vector<8x128xf32>
    %484 = math.exp %483 : vector<8x128xf32>
    %cst_131 = arith.constant 1.000000e+00 : f32
    %485 = vector.broadcast %cst_131 : f32 to vector<8x128xf32>
    %486 = arith.addf %485, %484 : vector<8x128xf32>
    %487 = arith.divf %485, %486 : vector<8x128xf32>
    %488 = arith.mulf %479, %427 : vector<8x128xf32>
    %489 = arith.mulf %473, %481 : vector<8x128xf32>
    %490 = arith.addf %488, %489 : vector<8x128xf32>
    %491 = math.tanh %490 : vector<8x128xf32>
    %492 = arith.mulf %487, %491 : vector<8x128xf32>
    %c56_132 = arith.constant 56 : index
    %c0_133 = arith.constant 0 : index
    %493 = vector.load %arg14[%c56_132, %c0_133] : memref<64x512xf32, #tpu.memory_space<vmem>>, vector<8x512xf32>
    %494 = arith.truncf %492 : vector<8x128xf32> to vector<8x128xbf16>
    %cst_134 = arith.constant dense<0.000000e+00> : vector<8x512xf32>
    %495 = tpu.matmul %494, %18, %cst_134 {dimension_numbers = #tpu.dot_dimension_numbers<[1], [0], [0], [1], [0, 0, 1, 1], [], []>} : vector<8x128xbf16>, vector<128x512xbf16>, vector<8x512xf32> -> vector<8x512xf32>
    %496 = arith.addf %493, %495 : vector<8x512xf32>
    %497 = arith.truncf %461 : vector<8x128xf32> to vector<8x128xbf16>
    %cst_135 = arith.constant dense<0.000000e+00> : vector<8x512xf32>
    %498 = tpu.matmul %497, %17, %cst_135 {dimension_numbers = #tpu.dot_dimension_numbers<[1], [0], [0], [1], [0, 0, 1, 1], [], []>} : vector<8x128xbf16>, vector<128x512xbf16>, vector<8x512xf32> -> vector<8x512xf32>
    %499 = arith.addf %496, %498 : vector<8x512xf32>
    %500 = vector.extract_strided_slice %499 {offsets = [0, 0], sizes = [8, 128], strides = [1, 1]} : vector<8x512xf32> to vector<8x128xf32>
    %501 = arith.negf %500 : vector<8x128xf32>
    %502 = math.exp %501 : vector<8x128xf32>
    %cst_136 = arith.constant 1.000000e+00 : f32
    %503 = vector.broadcast %cst_136 : f32 to vector<8x128xf32>
    %504 = arith.addf %503, %502 : vector<8x128xf32>
    %505 = arith.divf %503, %504 : vector<8x128xf32>
    %506 = vector.extract_strided_slice %499 {offsets = [0, 128], sizes = [8, 128], strides = [1, 1]} : vector<8x512xf32> to vector<8x128xf32>
    %507 = arith.negf %506 : vector<8x128xf32>
    %508 = math.exp %507 : vector<8x128xf32>
    %cst_137 = arith.constant 1.000000e+00 : f32
    %509 = vector.broadcast %cst_137 : f32 to vector<8x128xf32>
    %510 = arith.addf %509, %508 : vector<8x128xf32>
    %511 = arith.divf %509, %510 : vector<8x128xf32>
    %512 = vector.extract_strided_slice %499 {offsets = [0, 256], sizes = [8, 128], strides = [1, 1]} : vector<8x512xf32> to vector<8x128xf32>
    %513 = math.tanh %512 : vector<8x128xf32>
    %514 = vector.extract_strided_slice %499 {offsets = [0, 384], sizes = [8, 128], strides = [1, 1]} : vector<8x512xf32> to vector<8x128xf32>
    %515 = arith.negf %514 : vector<8x128xf32>
    %516 = math.exp %515 : vector<8x128xf32>
    %cst_138 = arith.constant 1.000000e+00 : f32
    %517 = vector.broadcast %cst_138 : f32 to vector<8x128xf32>
    %518 = arith.addf %517, %516 : vector<8x128xf32>
    %519 = arith.divf %517, %518 : vector<8x128xf32>
    %520 = arith.mulf %511, %459 : vector<8x128xf32>
    %521 = arith.mulf %505, %513 : vector<8x128xf32>
    %522 = arith.addf %520, %521 : vector<8x128xf32>
    %523 = math.tanh %522 : vector<8x128xf32>
    %524 = arith.mulf %519, %523 : vector<8x128xf32>
    %525 = arith.truncf %524 : vector<8x128xf32> to vector<8x128xbf16>
    %c56_139 = arith.constant 56 : index
    %c0_140 = arith.constant 0 : index
    %526 = vector.load %arg15[%c56_139, %c0_140] : memref<64x128xbf16, #tpu.memory_space<vmem>>, vector<8x128xbf16>
    tpu.vector_store %arg15[%c56_139, %c0_140], %525 {strides = array<i32>} : memref<64x128xbf16, #tpu.memory_space<vmem>>, vector<8x128xbf16>,
    %c0_141 = arith.constant 0 : index
    %c0_142 = arith.constant 0 : index
    %527 = vector.load %arg15[%c0_141, %c0_142] : memref<64x128xbf16, #tpu.memory_space<vmem>>, vector<64x128xbf16>
    %c0_143 = arith.constant 0 : index
    %c0_144 = arith.constant 0 : index
    %528 = vector.load %arg10[%c0_143, %c0_144] : memref<128x128xbf16, #tpu.memory_space<vmem>>, vector<128x128xbf16>
    %cst_145 = arith.constant dense<0.000000e+00> : vector<64x128xf32>
    %529 = tpu.matmul %527, %528, %cst_145 {dimension_numbers = #tpu.dot_dimension_numbers<[1], [0], [0], [1], [0, 0, 1, 1], [], []>} : vector<64x128xbf16>, vector<128x128xbf16>, vector<64x128xf32> -> vector<64x128xf32>
    %c0_146 = arith.constant 0 : index
    %c0_147 = arith.constant 0 : index
    %530 = vector.load %arg11[%c0_146, %c0_147] : memref<1x128xf32, #tpu.memory_space<vmem>>, vector<1x128xf32>
    %531 = vector.broadcast %530 : vector<1x128xf32> to vector<64x128xf32>
    %532 = arith.addf %529, %531 : vector<64x128xf32>
    %cst_148 = arith.constant dense<0xFF800000> : vector<64xf32>
    %533 = vector.multi_reduction <maximumf>, %532, %cst_148 [1] : vector<64x128xf32> to vector<64xf32>
    %534 = vector.shape_cast %533 : vector<64xf32> to vector<64x1xf32>
    %535 = vector.broadcast %534 : vector<64x1xf32> to vector<64x128xf32>
    %536 = arith.subf %532, %535 : vector<64x128xf32>
    %537 = math.exp %536 : vector<64x128xf32>
    %cst_149 = arith.constant dense<0.000000e+00> : vector<64xf32>
    %538 = vector.multi_reduction <add>, %537, %cst_149 [1] : vector<64x128xf32> to vector<64xf32>
    %539 = vector.shape_cast %538 : vector<64xf32> to vector<64x1xf32>
    %540 = math.log %539 : vector<64x1xf32>
    %541 = vector.broadcast %540 : vector<64x1xf32> to vector<64x128xf32>
    %542 = arith.subf %536, %541 : vector<64x128xf32>
    %c0_150 = arith.constant 0 : index
    %c0_151 = arith.constant 0 : index
    %c0_152 = arith.constant 0 : index
    %543 = vector.load %arg12[%c0_150, %c0_151, %c0_152] : memref<1x64x128xf32, #tpu.memory_space<vmem>>, vector<1x64x128xf32>
    %544 = vector.shape_cast %543 : vector<1x64x128xf32> to vector<64x128xf32>
    %545 = vector.shape_cast %542 : vector<64x128xf32> to vector<1x64x128xf32>
    tpu.vector_store %arg12[%c0_150, %c0_151, %c0_152], %545 {strides = array<i32>} : memref<1x64x128xf32, #tpu.memory_space<vmem>>, vector<1x64x128xf32>,
    return
  }
  func.func @transform_0(%arg0: i32) -> (i32, i32, i32) {
    %c0_i32 = arith.constant 0 : i32
    %c0_i32_0 = arith.constant 0 : i32
    %c0_i32_1 = arith.constant 0 : i32
    return %arg0, %c0_i32, %c0_i32_0 : i32, i32, i32
  }
  func.func @transform_1(%arg0: i32) -> (i32, i32, i32) {
    %c0_i32 = arith.constant 0 : i32
    %c0_i32_0 = arith.constant 0 : i32
    %c0_i32_1 = arith.constant 0 : i32
    return %arg0, %c0_i32, %c0_i32_0 : i32, i32, i32
  }
  func.func @transform_2(%arg0: i32) -> (i32, i32) {
    %c0_i32 = arith.constant 0 : i32
    %c0_i32_0 = arith.constant 0 : i32
    %c0_i32_1 = arith.constant 0 : i32
    return %c0_i32, %c0_i32_0 : i32, i32
  }
  func.func @transform_3(%arg0: i32) -> (i32, i32) {
    %c0_i32 = arith.constant 0 : i32
    %c0_i32_0 = arith.constant 0 : i32
    %c0_i32_1 = arith.constant 0 : i32
    return %c0_i32, %c0_i32_0 : i32, i32
  }
  func.func @transform_4(%arg0: i32) -> (i32, i32) {
    %c0_i32 = arith.constant 0 : i32
    %c0_i32_0 = arith.constant 0 : i32
    %c0_i32_1 = arith.constant 0 : i32
    return %c0_i32, %c0_i32_0 : i32, i32
  }
  func.func @transform_5(%arg0: i32) -> (i32, i32) {
    %c0_i32 = arith.constant 0 : i32
    %c0_i32_0 = arith.constant 0 : i32
    %c0_i32_1 = arith.constant 0 : i32
    return %c0_i32, %c0_i32_0 : i32, i32
  }
  func.func @transform_6(%arg0: i32) -> (i32, i32) {
    %c0_i32 = arith.constant 0 : i32
    %c0_i32_0 = arith.constant 0 : i32
    %c0_i32_1 = arith.constant 0 : i32
    return %c0_i32, %c0_i32_0 : i32, i32
  }
  func.func @transform_7(%arg0: i32) -> (i32, i32) {
    %c0_i32 = arith.constant 0 : i32
    %c0_i32_0 = arith.constant 0 : i32
    %c0_i32_1 = arith.constant 0 : i32
    return %c0_i32, %c0_i32_0 : i32, i32
  }
  func.func @transform_8(%arg0: i32) -> (i32, i32) {
    %c0_i32 = arith.constant 0 : i32
    %c0_i32_0 = arith.constant 0 : i32
    %c0_i32_1 = arith.constant 0 : i32
    return %c0_i32, %c0_i32_0 : i32, i32
  }
  func.func @transform_9(%arg0: i32) -> (i32, i32) {
    %c0_i32 = arith.constant 0 : i32
    %c0_i32_0 = arith.constant 0 : i32
    %c0_i32_1 = arith.constant 0 : i32
    return %c0_i32, %c0_i32_0 : i32, i32
  }
  func.func @transform_10(%arg0: i32) -> (i32, i32) {
    %c0_i32 = arith.constant 0 : i32
    %c0_i32_0 = arith.constant 0 : i32
    %c0_i32_1 = arith.constant 0 : i32
    return %c0_i32, %c0_i32_0 : i32, i32
  }
  func.func @transform_11(%arg0: i32) -> (i32, i32, i32) {
    %c0_i32 = arith.constant 0 : i32
    %c0_i32_0 = arith.constant 0 : i32
    %c0_i32_1 = arith.constant 0 : i32
    return %arg0, %c0_i32, %c0_i32_0 : i32, i32, i32
  }
}

</mosaic_0001>

<bundles_post_ra>
// kernel: tpu_custom_call.1
= control target key start
LH: loop header
LB: loop body
LE: loop exit
PB: predicated region body
PF: predicated region fallthrough
CT: control target
= control target key end

     0   :  { %16 = vsyncpa [#allocation6], 0  ;;  %s8205_s0 = inlined_call_operand.vmem [shape: bf16[1,64,32], index: 0, kind: input, shape index: {}]   ;;  %s8206_s1 = inlined_call_operand.hbm [shape: bf16[1,64,384], index: 1, kind: input, shape index: {}]   ;;  %s8207_s2 = inlined_call_operand.hbm [shape: bf16[384,512], index: 2, kind: input, shape index: {}]   ;;  %s8208_s3 = inlined_call_operand.hbm [shape: bf16[128,512], index: 3, kind: input, shape index: {}]   ;;  %s8209_s4 = inlined_call_operand.vmem [shape: f32[1,512], index: 4, kind: input, shape index: {}]   ;;  %s8210_s5 = inlined_call_operand.hbm [shape: bf16[32,512], index: 5, kind: input, shape index: {}]   ;;  %s8211_s6 = inlined_call_operand.hbm [shape: bf16[128,512], index: 6, kind: input, shape index: {}]   ;;  %s8212_s7 = inlined_call_operand.hbm [shape: bf16[128,512], index: 7, kind: input, shape index: {}]   ;;  %s8213_s8 = inlined_call_operand.vmem [shape: f32[1,512], index: 8, kind: input, shape index: {}]   ;;  %s8214_s9 = inlined_call_operand.hbm [shape: bf16[128,128], index: 9, kind: input, shape index: {}]   ;;  %s8215_s10 = inlined_call_operand.vmem [shape: f32[1,128], index: 10, kind: input, shape index: {}]   ;;  %s8216_s11 = inlined_call_operand.hbm [shape: f32[1,64,128], index: 11, kind: output, shape index: {}]  }
   0x1   :  { %17 = vsyncpa [#allocation9], 0 }
   0x2   :  { %18 = vsyncpa [#allocation12], 0 }
   0x3   :  { %19 = vsyncpa [#allocation15], 0  ;;  %s40_s19 = sshll.u32 %s8207_s2, 4  ;;  %s41_s19 = int_to_ptr.hbm [resolvable:$true] %s40_s19 }
   0x4   :  { %20 = vsyncpa [#allocation7], 0  ;;  %s6417_s20 = smov [#allocation8]   ;;  %s68_s24 = sshll.u32 %s8210_s5, 4  ;;  %s69_s24 = int_to_ptr.hbm [resolvable:$true] %s68_s24 }
   0x5   :  { %s42_s21 = sshll.u32 %s6417_s20, 4  ;;  %s6418_s25 = smov 256   ;;  %s43_s21 = int_to_ptr.vmem [resolvable:$true] %s42_s21 }
   0x6   :  { %s6419_s26 = smov 16   ;;  %s6420_s27 = smov [#allocation11]  }
   0x7   :  { %48 = dma.hbm_to_vmem [thread:$0]  %s41_s19, 12288, %s43_s21, [#allocation9], %s6418_s25, %s6418_s25, %s6419_s26  }
   0x8   :  { %s70_s28 = sshll.u32 %s6420_s27, 4  ;;  %s94_s30 = sshll.u32 %s8212_s7, 4  ;;  %s71_s28 = int_to_ptr.vmem [resolvable:$true] %s70_s28  ;;  %s95_s30 = int_to_ptr.hbm [resolvable:$true] %s94_s30 }
   0x9   :  { %76 = dma.hbm_to_vmem [thread:$0]  %s69_s24, 1024, %s71_s28, [#allocation12], %s6418_s25, %s6418_s25, %s6419_s26  }
   0xa   :  { %s27_s13 = sshll.u32 %s8206_s1, 4  ;;  %s6421_s14 = smov [#allocation14]   ;;  %s28_s13 = int_to_ptr.hbm [resolvable:$true] %s27_s13 }
   0xb   :  { %s96_s15 = sshll.u32 %s6421_s14, 4  ;;  %s6422_s16 = smov [#allocation5]   ;;  %s97_s15 = int_to_ptr.vmem [resolvable:$true] %s96_s15 }
   0xc   :  { %102 = dma.hbm_to_vmem [thread:$0]  %s95_s30, 4096, %s97_s15, [#allocation15], %s6418_s25, %s6418_s25, %s6419_s26  }
   0xd   :  { %s29_s7 = sshll.u32 %s6422_s16, 4  ;;  %s6423_s17 = smov 192   ;;  %s30_s7 = int_to_ptr.vmem [resolvable:$true] %s29_s7 }
   0xe   :  { %s6424_s18 = smov 12   ;;  %s53_s21 = sshll.u32 %s8208_s3, 4  ;;  %s54_s21 = int_to_ptr.hbm [resolvable:$true] %s53_s21 }
   0xf   :  { %35 = dma.hbm_to_vmem [thread:$0]  %s28_s13, 1536, %s30_s7, [#allocation6], %s6423_s17, %s6423_s17, %s6424_s18  }
  0x10   :  { %s6425_s1 = smov [#allocation10]   ;;  %s81_s27 = sshll.u32 %s8211_s6, 4  ;;  %s82_s27 = int_to_ptr.hbm [resolvable:$true] %s81_s27 }
  0x11   :  { %s55_s22 = sshll.u32 %s6425_s1, 4  ;;  %s6426_s28 = smov [#allocation13]   ;;  %s56_s22 = int_to_ptr.vmem [resolvable:$true] %s55_s22 }
  0x12   :  { %61 = dma.hbm_to_vmem [thread:$0]  %s54_s21, 4096, %s56_s22, [#allocation9], %s6418_s25, %s6418_s25, %s6419_s26  }
  0x13   :  { %s83_s29 = sshll.u32 %s6426_s28, 4  ;;  %s109_s5 = sshll.u32 %s8214_s9, 4  ;;  %s84_s29 = int_to_ptr.vmem [resolvable:$true] %s83_s29  ;;  %s110_s5 = int_to_ptr.hbm [resolvable:$true] %s109_s5 }
  0x14   :  { %89 = dma.hbm_to_vmem [thread:$0]  %s82_s27, 4096, %s84_s29, [#allocation12], %s6418_s25, %s6418_s25, %s6419_s26  }
  0x15   :  { %s6427_s3 = smov [#allocation16]   ;;  %s6428_s6 = smov 64  }
  0x16   :  { %s111_s12 = sshll.u32 %s6427_s3, 4  ;;  %s6429_s13 = smov 4   ;;  %s112_s12 = int_to_ptr.vmem [resolvable:$true] %s111_s12 }
  0x17   :  { %117 = dma.hbm_to_vmem [thread:$0]  %s110_s5, 1024, %s112_s12, [#allocation15], %s6428_s6, %s6428_s6, %s6429_s13  }
  0x18   :  { %6407 = dma.done.wait [#allocation6], 1536  }
  0x19   :  { %6408 = vsyncadd [#allocation6], 4294965760 }
  0x1a   :  { %6409 = dma.done.wait [#allocation9], 16384  }
  0x1b   :  { %6410 = vsyncadd [#allocation9], 4294950912 }
  0x1c   :  { %6411 = dma.done.wait [#allocation12], 5120  }
  0x1d   :  { %6412 = vsyncadd [#allocation12], 4294962176 }
  0x1e   :  { %6413 = dma.done.wait [#allocation15], 5120  }
  0x1f   :  { %6414 = vsyncadd [#allocation15], 4294962176  ;;  %v4859_v0 = vld [vmem:[#allocation8 + $0xe0] sm:$0xf]  ;;  %v5715_v1 = vld [vmem:[#allocation8 + $0xec] sm:$0xf0] }
  0x20   :  { %v5713_v2 = vld [vmem:[#allocation8 + $0xe4] sm:$0xf]  ;;  %v4860_v3 = vor.u32 %v5715_v1, %v4859_v0  ;;  %v4861_v4 = vld [vmem:[#allocation8 + $0xf0] sm:$0xf0]  ;;  %v4843_v9 = vld [vmem:[#allocation8 + $0xc0] sm:$0xf] }
  0x21   :  { %v5745_v5 = vld [vmem:[#allocation8 + $0x1e4] sm:$0xf]  ;;  %v4989_v6 = vld [vmem:[#allocation8 + $0x1f0] sm:$0xf0]  ;;  %v4864_v7 = vor.u32 %v5713_v2, %v4861_v4  ;;  %v5711_v10 = vld [vmem:[#allocation8 + $0xcc] sm:$0xf0] }
  0x22   :  { %v4992_v8 = vor.u32 %v5745_v5, %v4989_v6  ;;  %v5709_v11 = vld [vmem:[#allocation8 + $0xc4] sm:$0xf]  ;;  %815 = vmatpush.bf16.msra.mxu1 %v4860_v3  ;;  %5901 = vmatpush.bf16.msra.mxu2 %v4860_v3  ;;  %v4844_v12 = vor.u32 %v5711_v10, %v4843_v9  ;;  %v4845_v13 = vld [vmem:[#allocation8 + $0xd0] sm:$0xf0]  ;;  %v4827_v18 = vld [vmem:[#allocation8 + $0xa0] sm:$0xf] }
  0x23   :  { %v5741_v14 = vld [vmem:[#allocation8 + $0x1c4] sm:$0xf]  ;;  %v4973_v15 = vld [vmem:[#allocation8 + $0x1d0] sm:$0xf0]  ;;  %902 = vmatpush.bf16.msra.mxu3 %v4864_v7  ;;  %v4848_v16 = vor.u32 %v5709_v11, %v4845_v13  ;;  %v5707_v19 = vld [vmem:[#allocation8 + $0xac] sm:$0xf0] }
  0x24   :  { %931 = vmatpush.bf16.msra.mxu0 %v4992_v8  ;;  %v4976_v17 = vor.u32 %v5741_v14, %v4973_v15  ;;  %v5705_v20 = vld [vmem:[#allocation8 + $0xa4] sm:$0xf]  ;;  %v4829_v21 = vld [vmem:[#allocation8 + $0xb0] sm:$0xf0]  ;;  %v4828_v24 = vor.u32 %v5707_v19, %v4827_v18  ;;  %v4811_v27 = vld [vmem:[#allocation8 + $0x80] sm:$0xf] }
  0x25   :  { %v5737_v22 = vld [vmem:[#allocation8 + $0x1a4] sm:$0xf]  ;;  %v4957_v23 = vld [vmem:[#allocation8 + $0x1b0] sm:$0xf0]  ;;  %v4832_v25 = vor.u32 %v5705_v20, %v4829_v21  ;;  %v5703_v28 = vld [vmem:[#allocation8 + $0x8c] sm:$0xf0] }
  0x26   :  { %816 = vmatpush.bf16.msra.mxu1 %v4844_v12  ;;  %5902 = vmatpush.bf16.msra.mxu2 %v4844_v12  ;;  %v4960_v26 = vor.u32 %v5737_v22, %v4957_v23  ;;  %v5701_v29 = vld [vmem:[#allocation8 + $0x84] sm:$0xf]  ;;  %v4813_v30 = vld [vmem:[#allocation8 + $0x90] sm:$0xf0]  ;;  %v4812_v33 = vor.u32 %v5703_v28, %v4811_v27  ;;  %v4795_v36 = vld [vmem:[#allocation8 + $0x60] sm:$0xf] }
  0x27   :  { %903 = vmatpush.bf16.msra.mxu3 %v4848_v16  ;;  %v5733_v31 = vld [vmem:[#allocation8 + $0x184] sm:$0xf]  ;;  %v4941_v32 = vld [vmem:[#allocation8 + $0x190] sm:$0xf0]  ;;  %v4816_v34 = vor.u32 %v5701_v29, %v4813_v30  ;;  %v5699_v37 = vld [vmem:[#allocation8 + $0x6c] sm:$0xf0] }
  0x28   :  { %932 = vmatpush.bf16.msra.mxu0 %v4976_v17  ;;  %v4944_v35 = vor.u32 %v5733_v31, %v4941_v32  ;;  %v5697_v38 = vld [vmem:[#allocation8 + $0x64] sm:$0xf]  ;;  %v4797_v39 = vld [vmem:[#allocation8 + $0x70] sm:$0xf0]  ;;  %v4796_v42 = vor.u32 %v5699_v37, %v4795_v36  ;;  %v4779_v45 = vld [vmem:[#allocation8 + $0x40] sm:$0xf] }
  0x29   :  { %v5729_v40 = vld [vmem:[#allocation8 + $0x164] sm:$0xf]  ;;  %v4925_v41 = vld [vmem:[#allocation8 + $0x170] sm:$0xf0]  ;;  %v4800_v43 = vor.u32 %v5697_v38, %v4797_v39  ;;  %v5695_v46 = vld [vmem:[#allocation8 + $0x4c] sm:$0xf0] }
  0x2a   :  { %817 = vmatpush.bf16.msra.mxu1 %v4828_v24  ;;  %5903 = vmatpush.bf16.msra.mxu2 %v4828_v24  ;;  %v4928_v44 = vor.u32 %v5729_v40, %v4925_v41  ;;  %v5693_v47 = vld [vmem:[#allocation8 + $0x44] sm:$0xf]  ;;  %v4781_v48 = vld [vmem:[#allocation8 + $0x50] sm:$0xf0]  ;;  %v4780_v51 = vor.u32 %v5695_v46, %v4779_v45  ;;  %v4763_v54 = vld [vmem:[#allocation8 + $0x20] sm:$0xf] }
  0x2b   :  { %904 = vmatpush.bf16.msra.mxu3 %v4832_v25  ;;  %v5725_v49 = vld [vmem:[#allocation8 + $0x144] sm:$0xf]  ;;  %v4909_v50 = vld [vmem:[#allocation8 + $0x150] sm:$0xf0]  ;;  %v4784_v52 = vor.u32 %v5693_v47, %v4781_v48  ;;  %v5691_v55 = vld [vmem:[#allocation8 + $0x2c] sm:$0xf0] }
  0x2c   :  { %933 = vmatpush.bf16.msra.mxu0 %v4960_v26  ;;  %v4912_v53 = vor.u32 %v5725_v49, %v4909_v50  ;;  %v5689_v56 = vld [vmem:[#allocation8 + $0x24] sm:$0xf]  ;;  %v4765_v57 = vld [vmem:[#allocation8 + $0x30] sm:$0xf0]  ;;  %v4764_v60 = vor.u32 %v5691_v55, %v4763_v54  ;;  %v4747_v61 = vld [vmem:[#allocation8] sm:$0xf] }
  0x2d   :  { %v5721_v58 = vld [vmem:[#allocation8 + $0x124] sm:$0xf]  ;;  %v4893_v59 = vld [vmem:[#allocation8 + $0x130] sm:$0xf0]  ;;  %v5687_v62 = vld [vmem:[#allocation8 + $0xc] sm:$0xf0]  ;;  %v4768_v63 = vor.u32 %v5689_v56, %v4765_v57 }
  0x2e   :  { %818 = vmatpush.bf16.msra.mxu1 %v4812_v33  ;;  %5904 = vmatpush.bf16.msra.mxu2 %v4812_v33  ;;  %v4896_v0 = vor.u32 %v5721_v58, %v4893_v59  ;;  %v5685_v1 = vld [vmem:[#allocation8 + $0x4] sm:$0xf]  ;;  %v4749_v2 = vld [vmem:[#allocation8 + $0x10] sm:$0xf0]  ;;  %v4699_v5 = vld [vmem:[#allocation5] sm:$0xf]  ;;  %v4748_v10 = vor.u32 %v5687_v62, %v4747_v61 }
  0x2f   :  { %905 = vmatpush.bf16.msra.mxu3 %v4816_v34  ;;  %v5717_v3 = vld [vmem:[#allocation8 + $0x104] sm:$0xf]  ;;  %v4877_v4 = vld [vmem:[#allocation8 + $0x110] sm:$0xf0]  ;;  %v4987_v6 = vld [vmem:[#allocation8 + $0x1e0] sm:$0xf]  ;;  %v4752_v14 = vor.u32 %v5685_v1, %v4749_v2 }
  0x30   :  { %934 = vmatpush.bf16.msra.mxu0 %v4944_v35  ;;  %v5747_v7 = vld [vmem:[#allocation8 + $0x1ec] sm:$0xf0]  ;;  %v5115_v8 = vld [vmem:[#allocation8 + $0x2e0] sm:$0xf]  ;;  %v5674_v11 = vld [vmem:[#allocation5 + $0x8] sm:$0xf0]  ;;  %v4880_v15 = vor.u32 %v5717_v3, %v4877_v4 }
  0x31   :  { %v5779_v9 = vld [vmem:[#allocation8 + $0x2ec] sm:$0xf0]  ;;  %v5680_v13 = vld [vmem:[#allocation5 + $0x38] sm:$0xf0]  ;;  %v5673_v16 = vld [vmem:[#allocation5 + $0x4] sm:$0xf]  ;;  %v4988_v18 = vor.u32 %v5747_v7, %v4987_v6  ;;  %v6530_v22 = vor.u32 %v5674_v11, %v4699_v5 }
  0x32   :  { %819 = vmatpush.bf16.msra.mxu1 %v4796_v42  ;;  %5905 = vmatpush.bf16.msra.mxu2 %v4796_v42  ;;  %v4723_v12 = vld [vmem:[#allocation5 + $0x30] sm:$0xf]  ;;  %v5116_v19 = vor.u32 %v5779_v9, %v5115_v8  ;;  %v4971_v20 = vld [vmem:[#allocation8 + $0x1c0] sm:$0xf]  ;;  %v4995_v32 = vld [vmem:[#allocation8 + $0x1e8] sm:$0xf] }
  0x33   :  { %906 = vmatpush.bf16.msra.mxu3 %v4800_v43  ;;  %v4701_v17 = vld [vmem:[#allocation5 + $0xc] sm:$0xf0]  ;;  %v6532_v23 = vor.u32 %v5680_v13, %v4723_v12  ;;  %v5099_v24 = vld [vmem:[#allocation8 + $0x2c0] sm:$0xf]  ;;  %v5748_v33 = vld [vmem:[#allocation8 + $0x1f4] sm:$0xf0] }
  0x34   :  { %935 = vmatpush.bf16.msra.mxu0 %v4928_v44  ;;  %v5743_v21 = vld [vmem:[#allocation8 + $0x1cc] sm:$0xf0]  ;;  %v6534_v26 = vor.u32 %v5673_v16, %v4701_v17  ;;  %v4955_v27 = vld [vmem:[#allocation8 + $0x1a0] sm:$0xf]  ;;  %v4996_v35 = vor.u32 %v5748_v33, %v4995_v32  ;;  %v5123_v36 = vld [vmem:[#allocation8 + $0x2e8] sm:$0xf] }
  0x35   :  { %v5775_v25 = vld [vmem:[#allocation8 + $0x2cc] sm:$0xf0]  ;;  %v4972_v29 = vor.u32 %v5743_v21, %v4971_v20  ;;  %v5083_v31 = vld [vmem:[#allocation8 + $0x2a0] sm:$0xf]  ;;  %v5780_v37 = vld [vmem:[#allocation8 + $0x2f4] sm:$0xf0] }
  0x36   :  { %820 = vmatpush.bf16.msra.mxu1 %v4780_v51  ;;  %5906 = vmatpush.bf16.msra.mxu2 %v4780_v51  ;;  %v5739_v28 = vld [vmem:[#allocation8 + $0x1ac] sm:$0xf0]  ;;  %v5100_v30 = vor.u32 %v5775_v25, %v5099_v24  ;;  %v5124_v38 = vor.u32 %v5780_v37, %v5123_v36  ;;  %v4979_v39 = vld [vmem:[#allocation8 + $0x1c8] sm:$0xf]  ;;  %v5744_v40 = vld [vmem:[#allocation8 + $0x1d4] sm:$0xf0] }
  0x37   :  { %907 = vmatpush.bf16.msra.mxu3 %v4784_v52  ;;  %v5771_v34 = vld [vmem:[#allocation8 + $0x2ac] sm:$0xf0]  ;;  %v5107_v41 = vld [vmem:[#allocation8 + $0x2c8] sm:$0xf]  ;;  %v5776_v42 = vld [vmem:[#allocation8 + $0x2d4] sm:$0xf0]  ;;  %v4956_v43 = vor.u32 %v5739_v28, %v4955_v27  ;;  %v4980_v47 = vor.u32 %v5744_v40, %v4979_v39 }
  0x38   :  { %936 = vmatpush.bf16.msra.mxu0 %v4912_v53  ;;  %v5084_v44 = vor.u32 %v5771_v34, %v5083_v31  ;;  %v4939_v45 = vld [vmem:[#allocation8 + $0x180] sm:$0xf]  ;;  %v5735_v46 = vld [vmem:[#allocation8 + $0x18c] sm:$0xf0]  ;;  %v4963_v48 = vld [vmem:[#allocation8 + $0x1a8] sm:$0xf]  ;;  %v5108_v51 = vor.u32 %v5776_v42, %v5107_v41 }
  0x39   :  { %v5067_v49 = vld [vmem:[#allocation8 + $0x280] sm:$0xf]  ;;  %v5767_v50 = vld [vmem:[#allocation8 + $0x28c] sm:$0xf0]  ;;  %v5740_v52 = vld [vmem:[#allocation8 + $0x1b4] sm:$0xf0]  ;;  %v4940_v56 = vor.u32 %v5735_v46, %v4939_v45 }
  0x3a   :  { %821 = vmatpush.bf16.msra.mxu1 %v4764_v60  ;;  %5907 = vmatpush.bf16.msra.mxu2 %v4764_v60  ;;  %v5091_v53 = vld [vmem:[#allocation8 + $0x2a8] sm:$0xf]  ;;  %v5772_v54 = vld [vmem:[#allocation8 + $0x2b4] sm:$0xf0]  ;;  %v4964_v55 = vor.u32 %v5740_v52, %v4963_v48  ;;  %v5068_v57 = vor.u32 %v5767_v50, %v5067_v49  ;;  %v4923_v59 = vld [vmem:[#allocation8 + $0x160] sm:$0xf] }
  0x3b   :  { %908 = vmatpush.bf16.msra.mxu3 %v4768_v63  ;;  %v4711_v58 = vld [vmem:[#allocation5 + $0x18] sm:$0xf]  ;;  %v4947_v60 = vld [vmem:[#allocation8 + $0x188] sm:$0xf]  ;;  %v5731_v62 = vld [vmem:[#allocation8 + $0x16c] sm:$0xf0]  ;;  %v5092_v1 = vor.u32 %v5772_v54, %v5091_v53 }
  0x3c   :  { %937 = vmatpush.bf16.msra.mxu0 %v4896_v0  ;;  %v5736_v61 = vld [vmem:[#allocation8 + $0x194] sm:$0xf0]  ;;  %v5051_v63 = vld [vmem:[#allocation8 + $0x260] sm:$0xf]  ;;  %v5763_v0 = vld [vmem:[#allocation8 + $0x26c] sm:$0xf0]  ;;  %v4924_v8 = vor.u32 %v5731_v62, %v4923_v59 }
  0x3d   :  { %v5677_v2 = vld [vmem:[#allocation5 + $0x20] sm:$0xf0]  ;;  %v4735_v3 = vld [vmem:[#allocation5 + $0x48] sm:$0xf]  ;;  %v5683_v4 = vld [vmem:[#allocation5 + $0x50] sm:$0xf0]  ;;  %v4948_v7 = vor.u32 %v5736_v61, %v4947_v60  ;;  %v5052_v9 = vor.u32 %v5763_v0, %v5051_v63 }
  0x3e   :  { %822 = vmatpush.bf16.msra.mxu1 %v4748_v10  ;;  %5908 = vmatpush.bf16.msra.mxu2 %v4748_v10  ;;  %v5676_v5 = vld [vmem:[#allocation5 + $0x1c] sm:$0xf]  ;;  %v4713_v6 = vld [vmem:[#allocation5 + $0x24] sm:$0xf0]  ;;  %v4907_v10 = vld [vmem:[#allocation8 + $0x140] sm:$0xf]  ;;  %v6540_v13 = vor.u32 %v5677_v2, %v4711_v58 }
  0x3f   :  { %909 = vmatpush.bf16.msra.mxu3 %v4752_v14  ;;  %v5075_v11 = vld [vmem:[#allocation8 + $0x288] sm:$0xf]  ;;  %v5768_v12 = vld [vmem:[#allocation8 + $0x294] sm:$0xf0]  ;;  %v6542_v14 = vor.u32 %v5683_v4, %v4735_v3  ;;  %v5035_v16 = vld [vmem:[#allocation8 + $0x240] sm:$0xf] }
  0x40   :  { %938 = vmatpush.bf16.msra.mxu0 %v4880_v15  ;;  %v5727_v15 = vld [vmem:[#allocation8 + $0x14c] sm:$0xf0]  ;;  %v5076_v21 = vor.u32 %v5768_v12, %v5075_v11  ;;  %v5019_v27 = vld [vmem:[#allocation8 + $0x220] sm:$0xf]  ;;  %v4931_v28 = vld [vmem:[#allocation8 + $0x168] sm:$0xf] }
  0x41   :  { %823 = vmatmul.bf16.vlgmr.msra.gmra.mxu1 %v6530_v22  ;;  %833 = vmatmul.bf16.vlgmr.msra.gmra.mxu2 %v6532_v23  ;;  %v5759_v17 = vld [vmem:[#allocation8 + $0x24c] sm:$0xf0]  ;;  %v4908_v24 = vor.u32 %v5727_v15, %v4907_v10  ;;  %v5059_v32 = vld [vmem:[#allocation8 + $0x268] sm:$0xf]  ;;  %v5764_v33 = vld [vmem:[#allocation8 + $0x274] sm:$0xf0] }
  0x42   :  { %844 = vmatpush.bf16.msrb.mxu1 %v4988_v18  ;;  %873 = vmatpush.bf16.msrb.mxu2 %v5116_v19  ;;  %v6544_v18 = vor.u32 %v5676_v5, %v4713_v6  ;;  %v4891_v19 = vld [vmem:[#allocation8 + $0x120] sm:$0xf]  ;;  %v5723_v20 = vld [vmem:[#allocation8 + $0x12c] sm:$0xf0]  ;;  %v5036_v25 = vor.u32 %v5759_v17, %v5035_v16  ;;  %v4915_v34 = vld [vmem:[#allocation8 + $0x148] sm:$0xf] }
  0x43   :  { %910 = vmatmul.bf16.vlgmr.msra.gmra.mxu3 %v6530_v22  ;;  %939 = vmatmul.bf16.vlgmr.msra.gmra.mxu0 %v6534_v26  ;;  %v5719_v36 = vld [vmem:[#allocation8 + $0x10c] sm:$0xf0]  ;;  %v5003_v37 = vld [vmem:[#allocation8 + $0x200] sm:$0xf]  ;;  %v5728_v39 = vld [vmem:[#allocation8 + $0x154] sm:$0xf0]  ;;  %v4892_v40 = vor.u32 %v5723_v20, %v4891_v19 }
  0x44   :  { %1018 = vmatpush.bf16.msrb.mxu3 %v4996_v35  ;;  %1047 = vmatpush.bf16.msrb.mxu0 %v5124_v38  ;;  %v4875_v35 = vld [vmem:[#allocation8 + $0x100] sm:$0xf]  ;;  %v5060_v38 = vor.u32 %v5764_v33, %v5059_v32  ;;  %v5751_v42 = vld [vmem:[#allocation8 + $0x20c] sm:$0xf0]  ;;  %v5760_v45 = vld [vmem:[#allocation8 + $0x254] sm:$0xf0] }
  0x45   :  { %v5777_v46 = vld [vmem:[#allocation8 + $0x2e4] sm:$0xf]  ;;  %v5724_v48 = vld [vmem:[#allocation8 + $0x134] sm:$0xf0]  ;;  %v5117_v49 = vld [vmem:[#allocation8 + $0x2f0] sm:$0xf0] }
  0x46   :  { %845 = vmatpush.bf16.msrb.mxu1 %v4972_v29  ;;  %874 = vmatpush.bf16.msrb.mxu2 %v5100_v30  ;;  %v5732_v29 = vld [vmem:[#allocation8 + $0x174] sm:$0xf0]  ;;  %v5755_v30 = vld [vmem:[#allocation8 + $0x22c] sm:$0xf0]  ;;  %v4867_v50 = vld [vmem:[#allocation8 + $0xe8] sm:$0xf]  ;;  %v5120_v60 = vor.u32 %v5777_v46, %v5117_v49 }
  0x47   :  { %v4932_v31 = vor.u32 %v5732_v29, %v4931_v28  ;;  %v5020_v41 = vor.u32 %v5755_v30, %v5019_v27  ;;  %v5027_v54 = vld [vmem:[#allocation8 + $0x228] sm:$0xf]  ;;  %v5720_v59 = vld [vmem:[#allocation8 + $0x114] sm:$0xf0]  ;;  %v5675_v63 = vld [vmem:[#allocation5 + $0x10] sm:$0xf0] }
  0x48   :  { %1019 = vmatpush.bf16.msrb.mxu3 %v4980_v47  ;;  %1048 = vmatpush.bf16.msrb.mxu0 %v5108_v51  ;;  %v4899_v47 = vld [vmem:[#allocation8 + $0x128] sm:$0xf]  ;;  %v5716_v51 = vld [vmem:[#allocation8 + $0xf4] sm:$0xf0]  ;;  %v5679_v0 = vld [vmem:[#allocation5 + $0x34] sm:$0xf] }
  0x49   :  { %v4900_v53 = vor.u32 %v5724_v48, %v4899_v47  ;;  %v4883_v58 = vld [vmem:[#allocation8 + $0x108] sm:$0xf]  ;;  %v4868_v61 = vor.u32 %v5716_v51, %v4867_v50  ;;  %v5773_v2 = vld [vmem:[#allocation8 + $0x2c4] sm:$0xf]  ;;  %v5101_v5 = vld [vmem:[#allocation8 + $0x2d0] sm:$0xf0] }
  0x4a   :  { %846 = vmatpush.bf16.msrb.mxu1 %v4956_v43  ;;  %875 = vmatpush.bf16.msrb.mxu2 %v5084_v44  ;;  %v4916_v43 = vor.u32 %v5728_v39, %v4915_v34  ;;  %v5043_v44 = vld [vmem:[#allocation8 + $0x248] sm:$0xf]  ;;  %v4884_v4 = vor.u32 %v5720_v59, %v4883_v58  ;;  %v5752_v10 = vld [vmem:[#allocation8 + $0x214] sm:$0xf0]  ;;  %v5104_v12 = vor.u32 %v5773_v2, %v5101_v5  ;;  %v5769_v15 = vld [vmem:[#allocation8 + $0x2a4] sm:$0xf] }
  0x4b   :  { %v5044_v52 = vor.u32 %v5760_v45, %v5043_v44  ;;  %v4707_v62 = vld [vmem:[#allocation5 + $0x8] sm:$0xf]  ;;  %v5085_v17 = vld [vmem:[#allocation8 + $0x2b0] sm:$0xf0]  ;;  %v5704_v30 = vld [vmem:[#allocation8 + $0x94] sm:$0xf0] }
  0x4c   :  { %1020 = vmatpush.bf16.msrb.mxu3 %v4964_v55  ;;  %1049 = vmatpush.bf16.msrb.mxu0 %v5092_v1  ;;  %v4876_v55 = vor.u32 %v5719_v36, %v4875_v35  ;;  %v4725_v1 = vld [vmem:[#allocation5 + $0x3c] sm:$0xf0]  ;;  %v4851_v6 = vld [vmem:[#allocation8 + $0xc8] sm:$0xf]  ;;  %v5069_v28 = vld [vmem:[#allocation8 + $0x290] sm:$0xf0] }
  0x4d   :  { %v6552_v11 = vor.u32 %v5679_v0, %v4725_v1  ;;  %v4835_v20 = vld [vmem:[#allocation8 + $0xa8] sm:$0xf]  ;;  %v5761_v32 = vld [vmem:[#allocation8 + $0x264] sm:$0xf]  ;;  %v5053_v34 = vld [vmem:[#allocation8 + $0x270] sm:$0xf0] }
  0x4e   :  { %847 = vmatpush.bf16.msrb.mxu1 %v4940_v56  ;;  %876 = vmatpush.bf16.msrb.mxu2 %v5068_v57  ;;  %v5004_v56 = vor.u32 %v5751_v42, %v5003_v37  ;;  %v5756_v57 = vld [vmem:[#allocation8 + $0x234] sm:$0xf0]  ;;  %v4819_v29 = vld [vmem:[#allocation8 + $0x88] sm:$0xf]  ;;  %v4719_v37 = vld [vmem:[#allocation5 + $0x20] sm:$0xf] }
  0x4f   :  { %v5028_v3 = vor.u32 %v5756_v57, %v5027_v54  ;;  %v4820_v33 = vor.u32 %v5704_v30, %v4819_v29  ;;  %v4803_v35 = vld [vmem:[#allocation8 + $0x68] sm:$0xf]  ;;  %v5700_v36 = vld [vmem:[#allocation8 + $0x74] sm:$0xf0]  ;;  %v5682_v39 = vld [vmem:[#allocation5 + $0x4c] sm:$0xf] }
  0x50   :  { %1021 = vmatpush.bf16.msrb.mxu3 %v4948_v7  ;;  %1050 = vmatpush.bf16.msrb.mxu0 %v5076_v21  ;;  %v5712_v7 = vld [vmem:[#allocation8 + $0xd4] sm:$0xf0]  ;;  %v4804_v42 = vor.u32 %v5700_v36, %v4803_v35  ;;  %v5037_v44 = vld [vmem:[#allocation8 + $0x250] sm:$0xf0]  ;;  %v5753_v48 = vld [vmem:[#allocation8 + $0x224] sm:$0xf] }
  0x51   :  { %828 = vmatmul.bf16.gmra.mxu1 %v6540_v13  ;;  %838 = vmatmul.bf16.gmra.mxu2 %v6542_v14  ;;  %v4852_v16 = vor.u32 %v5712_v7, %v4851_v6  ;;  %v5708_v21 = vld [vmem:[#allocation8 + $0xb4] sm:$0xf0]  ;;  %v5021_v49 = vld [vmem:[#allocation8 + $0x230] sm:$0xf0]  ;;  %v4787_v50 = vld [vmem:[#allocation8 + $0x48] sm:$0xf] }
  0x52   :  { %848 = vmatpush.bf16.msrb.mxu1 %v4924_v8  ;;  %877 = vmatpush.bf16.msrb.mxu2 %v5052_v9  ;;  %v6550_v8 = vor.u32 %v5675_v63, %v4707_v62  ;;  %v5011_v9 = vld [vmem:[#allocation8 + $0x208] sm:$0xf]  ;;  %v4836_v27 = vor.u32 %v5708_v21, %v4835_v20  ;;  %v5696_v51 = vld [vmem:[#allocation8 + $0x54] sm:$0xf0]  ;;  %v5005_v57 = vld [vmem:[#allocation8 + $0x210] sm:$0xf0] }
  0x53   :  { %915 = vmatmul.bf16.gmra.mxu3 %v6540_v13  ;;  %944 = vmatmul.bf16.gmra.mxu0 %v6544_v18  ;;  %v5012_v19 = vor.u32 %v5752_v10, %v5011_v9  ;;  %v4771_v54 = vld [vmem:[#allocation8 + $0x28] sm:$0xf]  ;;  %v4731_v63 = vld [vmem:[#allocation5 + $0x38] sm:$0xf]  ;;  %v5681_v0 = vld [vmem:[#allocation5 + $0x40] sm:$0xf0] }
  0x54   :  { %1022 = vmatpush.bf16.msrb.mxu3 %v4932_v31  ;;  %1051 = vmatpush.bf16.msrb.mxu0 %v5060_v38  ;;  %v5678_v38 = vld [vmem:[#allocation5 + $0x28] sm:$0xf0]  ;;  %v4755_v59 = vld [vmem:[#allocation8 + $0x8] sm:$0xf]  ;;  %v6566_v1 = vor.u32 %v5681_v0, %v4731_v63  ;;  %v4869_v6 = vld [vmem:[#allocation8 + $0xf8] sm:$0xf0] }
  0x55   :  { %v6558_v45 = vor.u32 %v5678_v38, %v4719_v37  ;;  %v5778_v2 = vld [vmem:[#allocation8 + $0x2ec] sm:$0xf]  ;;  %v5109_v10 = vld [vmem:[#allocation8 + $0x2d8] sm:$0xf0]  ;;  %v4743_v30 = vld [vmem:[#allocation5 + $0x50] sm:$0xf] }
  0x56   :  { %849 = vmatpush.bf16.msrb.mxu1 %v4908_v24  ;;  %878 = vmatpush.bf16.msrb.mxu2 %v5036_v25  ;;  %v5088_v24 = vor.u32 %v5769_v15, %v5085_v17  ;;  %v5765_v25 = vld [vmem:[#allocation8 + $0x284] sm:$0xf]  ;;  %v5714_v5 = vld [vmem:[#allocation8 + $0xec] sm:$0xf]  ;;  %v4853_v15 = vld [vmem:[#allocation8 + $0xd8] sm:$0xf0] }
  0x57   :  { %v5072_v31 = vor.u32 %v5765_v25, %v5069_v28  ;;  %v5774_v7 = vld [vmem:[#allocation8 + $0x2cc] sm:$0xf]  ;;  %v4872_v9 = vor.u32 %v5714_v5, %v4869_v6  ;;  %v5077_v29 = vld [vmem:[#allocation8 + $0x298] sm:$0xf0]  ;;  %vm1281_vm0 = vcmask 261120   ;;  %s4681_s23 = sshll.u32 %s8216_s11, 4  ;;  %s4682_s23 = int_to_ptr.hbm [resolvable:$true] %s4681_s23 }
  0x58   :  { %1023 = vmatpush.bf16.msrb.mxu3 %v4916_v43  ;;  %1052 = vmatpush.bf16.msrb.mxu0 %v5044_v52  ;;  %v5757_v43 = vld [vmem:[#allocation8 + $0x244] sm:$0xf]  ;;  %v5024_v52 = vor.u32 %v5753_v48, %v5021_v49  ;;  %v5770_v17 = vld [vmem:[#allocation8 + $0x2ac] sm:$0xf]  ;;  %v5061_v35 = vld [vmem:[#allocation8 + $0x278] sm:$0xf0] }
  0x59   :  { %v5040_v47 = vor.u32 %v5757_v43, %v5037_v44  ;;  %v5746_v21 = vld [vmem:[#allocation8 + $0x1ec] sm:$0xf]  ;;  %v4837_v38 = vld [vmem:[#allocation8 + $0xb8] sm:$0xf0]  ;;  %s6432_s24 = smov 128   ;;  %s6433_s27 = smov 8  }
  0x5a   :  { %850 = vmatpush.bf16.msrb.mxu1 %v4892_v40  ;;  %879 = vmatpush.bf16.msrb.mxu2 %v5020_v41  ;;  %v4737_v40 = vld [vmem:[#allocation5 + $0x54] sm:$0xf0]  ;;  %v5056_v41 = vor.u32 %v5761_v32, %v5053_v34  ;;  %v5766_v28 = vld [vmem:[#allocation8 + $0x28c] sm:$0xf]  ;;  %v4981_v43 = vld [vmem:[#allocation8 + $0x1d8] sm:$0xf0] }
  0x5b   :  { %v6560_v46 = vor.u32 %v5682_v39, %v4737_v40  ;;  %v5080_v32 = vor.u32 %v5766_v28, %v5077_v29  ;;  %v5762_v34 = vld [vmem:[#allocation8 + $0x26c] sm:$0xf]  ;;  %v4821_v49 = vld [vmem:[#allocation8 + $0x98] sm:$0xf0] }
  0x5c   :  { %1024 = vmatpush.bf16.msrb.mxu3 %v4900_v53  ;;  %1053 = vmatpush.bf16.msrb.mxu0 %v5028_v3  ;;  %v4788_v53 = vor.u32 %v5696_v51, %v4787_v50  ;;  %v5125_v3 = vld [vmem:[#allocation8 + $0x2f8] sm:$0xf0]  ;;  %v5064_v36 = vor.u32 %v5762_v34, %v5061_v35  ;;  %v5706_v37 = vld [vmem:[#allocation8 + $0xac] sm:$0xf] }
  0x5d   :  { %v5758_v39 = vld [vmem:[#allocation8 + $0x24c] sm:$0xf]  ;;  %v4840_v40 = vor.u32 %v5706_v37, %v4837_v38  ;;  %v4965_v0 = vld [vmem:[#allocation8 + $0x1b8] sm:$0xf0] }
  0x5e   :  { %851 = vmatpush.bf16.msrb.mxu1 %v4876_v55  ;;  %880 = vmatpush.bf16.msrb.mxu2 %v5004_v56  ;;  %v5692_v55 = vld [vmem:[#allocation8 + $0x34] sm:$0xf0]  ;;  %v5749_v56 = vld [vmem:[#allocation8 + $0x204] sm:$0xf]  ;;  %v5702_v48 = vld [vmem:[#allocation8 + $0x8c] sm:$0xf] }
  0x5f   :  { %v4772_v58 = vor.u32 %v5692_v55, %v4771_v54  ;;  %v5754_v50 = vld [vmem:[#allocation8 + $0x22c] sm:$0xf]  ;;  %v4824_v51 = vor.u32 %v5702_v48, %v4821_v49  ;;  %v5791_v54 = vld [vmem:[#allocation11 + $0x2c] sm:$0xf0]  ;;  %v4901_v34 = vld [vmem:[#allocation8 + $0x138] sm:$0xf0] }
  0x60   :  { %1025 = vmatpush.bf16.msrb.mxu3 %v4884_v4  ;;  %1054 = vmatpush.bf16.msrb.mxu0 %v5012_v19  ;;  %v5128_v4 = vor.u32 %v5778_v2, %v5125_v3  ;;  %v5093_v19 = vld [vmem:[#allocation8 + $0x2b8] sm:$0xf0]  ;;  %v5738_v63 = vld [vmem:[#allocation8 + $0x1ac] sm:$0xf]  ;;  %v5789_v48 = vld [vmem:[#allocation11 + $0x24] sm:$0xf] }
  0x61   :  { %852 = vmatmul.bf16.vlgmr.msrb.gmra.mxu1 %v6534_v26  ;;  %881 = vmatmul.bf16.vlgmr.msrb.gmra.mxu2 %v6550_v8  ;;  %v4968_v2 = vor.u32 %v5738_v63, %v4965_v0  ;;  %v5698_v3 = vld [vmem:[#allocation8 + $0x6c] sm:$0xf]  ;;  %v4885_v37 = vld [vmem:[#allocation8 + $0x118] sm:$0xf0]  ;;  %v5165_v49 = vld [vmem:[#allocation11 + $0x30] sm:$0xf0] }
  0x62   :  { %960 = vmatpush.bf16.msra.mxu1 %v5120_v60  ;;  %989 = vmatpush.bf16.msra.mxu2 %v4868_v61  ;;  %v5688_v60 = vld [vmem:[#allocation8 + $0x14] sm:$0xf0]  ;;  %v5008_v61 = vor.u32 %v5749_v56, %v5005_v57  ;;  %v5750_v57 = vld [vmem:[#allocation8 + $0x20c] sm:$0xf]  ;;  %v5275_v63 = vld [vmem:[#allocation10 + $0xa0] sm:$0xf] }
  0x63   :  { %920 = vmatmul.bf16.gmra.mxu3 %v6532_v23  ;;  %949 = vmatmul.bf16.gmra.mxu0 %v6552_v11  ;;  %v4756_v62 = vor.u32 %v5688_v60, %v4755_v59  ;;  %v5147_v59 = vld [vmem:[#allocation11] sm:$0xf]  ;;  %v5734_v6 = vld [vmem:[#allocation8 + $0x18c] sm:$0xf] }
  0x64   :  { %1134 = vmatpush.bf16.msra.mxu3 %v5128_v4  ;;  %v4805_v4 = vld [vmem:[#allocation8 + $0x78] sm:$0xf0]  ;;  %v5686_v29 = vld [vmem:[#allocation8 + $0xc] sm:$0xf] }
  0x65   :  { %v4808_v5 = vor.u32 %v5698_v3, %v4805_v4 }
  0x66   :  { %961 = vmatpush.bf16.msra.mxu1 %v5104_v12  ;;  %990 = vmatpush.bf16.msra.mxu2 %v4852_v16  ;;  %v5710_v12 = vld [vmem:[#allocation8 + $0xcc] sm:$0xf]  ;;  %v5112_v16 = vor.u32 %v5774_v7, %v5109_v10  ;;  %v4949_v7 = vld [vmem:[#allocation8 + $0x198] sm:$0xf0] }
  0x67   :  { %v4856_v20 = vor.u32 %v5710_v12, %v4853_v15  ;;  %v4952_v10 = vor.u32 %v5734_v6, %v4949_v7  ;;  %v4789_v12 = vld [vmem:[#allocation8 + $0x58] sm:$0xf0]  ;;  %v5259_v6 = vld [vmem:[#allocation10 + $0x80] sm:$0xf]  ;;  %v5811_v7 = vld [vmem:[#allocation10 + $0x8c] sm:$0xf0] }
  0x68   :  { %1135 = vmatpush.bf16.msra.mxu3 %v5112_v16  ;;  %v5730_v16 = vld [vmem:[#allocation8 + $0x16c] sm:$0xf] }
  0x6a   :  { %962 = vmatpush.bf16.msra.mxu1 %v5088_v24  ;;  %991 = vmatpush.bf16.msra.mxu2 %v4836_v27  ;;  %v4997_v24 = vld [vmem:[#allocation8 + $0x1f8] sm:$0xf0]  ;;  %v5096_v27 = vor.u32 %v5770_v17, %v5093_v19 }
  0x6b   :  { %v5000_v25 = vor.u32 %v5746_v21, %v4997_v24  ;;  %v4933_v17 = vld [vmem:[#allocation8 + $0x178] sm:$0xf0] }
  0x6c   :  { %1136 = vmatpush.bf16.msra.mxu3 %v5096_v27  ;;  %v4936_v19 = vor.u32 %v5730_v16, %v4933_v17  ;;  %v4773_v21 = vld [vmem:[#allocation8 + $0x38] sm:$0xf0] }
  0x6d   :  { %v4917_v27 = vld [vmem:[#allocation8 + $0x158] sm:$0xf0] }
  0x6e   :  { %963 = vmatpush.bf16.msra.mxu1 %v5072_v31  ;;  %992 = vmatpush.bf16.msra.mxu2 %v4820_v33  ;;  %v5684_v31 = vld [vmem:[#allocation5 + $0x58] sm:$0xf0] }
  0x6f   :  { %v6572_v33 = vor.u32 %v5684_v31, %v4743_v30  ;;  %v4757_v30 = vld [vmem:[#allocation8 + $0x18] sm:$0xf0]  ;;  %v5722_v31 = vld [vmem:[#allocation8 + $0x12c] sm:$0xf] }
  0x70   :  { %1137 = vmatpush.bf16.msra.mxu3 %v5080_v32  ;;  %v4760_v32 = vor.u32 %v5686_v29, %v4757_v30  ;;  %v4904_v35 = vor.u32 %v5722_v31, %v4901_v34  ;;  %v5807_v29 = vld [vmem:[#allocation10 + $0x6c] sm:$0xf0]  ;;  %v5227_v34 = vld [vmem:[#allocation10 + $0x40] sm:$0xf] }
  0x71   :  { %857 = vmatmul.bf16.gmra.mxu1 %v6544_v18  ;;  %886 = vmatmul.bf16.gmra.mxu2 %v6558_v45 }
  0x72   :  { %964 = vmatpush.bf16.msra.mxu1 %v5056_v41  ;;  %993 = vmatpush.bf16.msra.mxu2 %v4804_v42  ;;  %v5045_v41 = vld [vmem:[#allocation8 + $0x258] sm:$0xf0]  ;;  %v5742_v42 = vld [vmem:[#allocation8 + $0x1cc] sm:$0xf] }
  0x73   :  { %925 = vmatmul.bf16.gmra.mxu3 %v6542_v14  ;;  %954 = vmatmul.bf16.gmra.mxu0 %v6560_v46  ;;  %v5048_v44 = vor.u32 %v5758_v39, %v5045_v41 }
  0x74   :  { %1138 = vmatpush.bf16.msra.mxu3 %v5064_v36  ;;  %v5718_v36 = vld [vmem:[#allocation8 + $0x10c] sm:$0xf] }
  0x75   :  { %v4888_v38 = vor.u32 %v5718_v36, %v4885_v37 }
  0x76   :  { %965 = vmatpush.bf16.msra.mxu1 %v5040_v47  ;;  %994 = vmatpush.bf16.msra.mxu2 %v4788_v53  ;;  %v4984_v47 = vor.u32 %v5742_v42, %v4981_v43  ;;  %v5163_v53 = vld [vmem:[#allocation11 + $0x20] sm:$0xf] }
  0x77   :  { %v5164_v55 = vor.u32 %v5791_v54, %v5163_v53  ;;  %v6596_v42 = vld [vmem:[%s8209_s4] sm:$0xf]  ;;  %v5819_v54 = vld [vmem:[#allocation10 + $0xcc] sm:$0xf0] }
  0x78   :  { %1139 = vmatpush.bf16.msra.mxu3 %v5048_v44  ;;  %v5307_v43 = vld [vmem:[#allocation10 + $0xe0] sm:$0xf]  ;;  %v5823_v44 = vld [vmem:[#allocation10 + $0xec] sm:$0xf0] }
  0x79   :  { %1300 = vmatpush.bf16.msra.mxu0 %v5164_v55  ;;  %v5291_v53 = vld [vmem:[#allocation10 + $0xc0] sm:$0xf] }
  0x7a   :  { %966 = vmatpush.bf16.msra.mxu1 %v5024_v52  ;;  %995 = vmatpush.bf16.msra.mxu2 %v4772_v58  ;;  %v5029_v52 = vld [vmem:[#allocation8 + $0x238] sm:$0xf0] }
  0x7b   :  { %v5032_v56 = vor.u32 %v5754_v50, %v5029_v52  ;;  %v5013_v58 = vld [vmem:[#allocation8 + $0x218] sm:$0xf0]  ;;  %v6606_v50 = vperm.slane %v6596_v42, 0 }
  0x7c   :  { %v5016_v60 = vor.u32 %v5750_v57, %v5013_v58  ;;  %v6615_v57 = vor.u32 %v5819_v54, %v5291_v53  ;;  %v5786_v53 = vld [vmem:[#allocation11 + $0xc] sm:$0xf]  ;;  %v5157_v54 = vld [vmem:[#allocation11 + $0x18] sm:$0xf0] }
  0x7d   :  { %1140 = vmatpush.bf16.msra.mxu3 %v5032_v56  ;;  %v6613_v56 = vperm.slane %v6596_v42, 1 }
  0x7e   :  { %967 = vmatpush.bf16.msra.mxu1 %v5008_v61  ;;  %996 = vmatpush.bf16.msra.mxu2 %v4756_v62  ;;  %v5787_v61 = vld [vmem:[#allocation11 + $0xc] sm:$0xf0] }
  0x7f   :  { %v5148_v62 = vor.u32 %v5787_v61, %v5147_v59  ;;  %v5790_v61 = vld [vmem:[#allocation11 + $0x2c] sm:$0xf] }
  0x81   :  { %862 = vmatmul.bf16.gmra.mxu1 %v6552_v11  ;;  %891 = vmatmul.bf16.gmra.mxu2 %v6566_v1 }
  0x82   :  { %1076 = vmatpush.bf16.msrb.mxu1 %v4872_v9  ;;  %1105 = vmatpush.bf16.msrb.mxu2 %v5000_v25  ;;  %v5694_v9 = vld [vmem:[#allocation8 + $0x4c] sm:$0xf] }
  0x83   :  { %1026 = vmatmul.bf16.vlgmr.msrb.gmra.mxu3 %v6534_v26  ;;  %1055 = vmatmul.bf16.vlgmr.msrb.gmra.mxu0 %v6550_v8  ;;  %v4792_v15 = vor.u32 %v5694_v9, %v4789_v12  ;;  %v5726_v25 = vld [vmem:[#allocation8 + $0x14c] sm:$0xf]  ;;  %v6628_v12 = vor.u32 %v5811_v7, %v5259_v6 }
  0x84   :  { %1141 = vmatpush.bf16.msra.mxu3 %v5016_v60  ;;  %1301 = vmatpush.bf16.msra.mxu0 %v5148_v62  ;;  %v4920_v28 = vor.u32 %v5726_v25, %v4917_v27  ;;  %v5173_v62 = vld [vmem:[#allocation11 + $0x38] sm:$0xf0]  ;;  %v5792_v25 = vld [vmem:[#allocation11 + $0x34] sm:$0xf0] }
  0x85   :  { %v5176_v0 = vor.u32 %v5790_v61, %v5173_v62  ;;  %v5160_v62 = vor.u32 %v5786_v53, %v5157_v54 }
  0x86   :  { %1077 = vmatpush.bf16.msrb.mxu1 %v4856_v20  ;;  %1106 = vmatpush.bf16.msrb.mxu2 %v4984_v47  ;;  %v5690_v20 = vld [vmem:[#allocation8 + $0x2c] sm:$0xf]  ;;  %v6600_v47 = vor.u32 %v5823_v44, %v5307_v43 }
  0x87   :  { %v4776_v24 = vor.u32 %v5690_v20, %v4773_v21 }
  0x88   :  { %1702 = vmatpush.bf16.msrb.mxu0 %v6600_v47  ;;  %1387 = vmatpush.bf16.msrb.mxu3 %v5176_v0 }
  0x8a   :  { %1078 = vmatpush.bf16.msrb.mxu1 %v4840_v40  ;;  %1107 = vmatpush.bf16.msrb.mxu2 %v4968_v2  ;;  %v6591_v40 = vld [vmem:[%s8205_s0] sm:$0xff]  ;;  %v5815_v2 = vld [vmem:[#allocation10 + $0xac] sm:$0xf0] }
  0x8b   :  { %v6622_v4 = vor.u32 %v5815_v2, %v5275_v63  ;;  %v5795_v63 = vld [vmem:[#allocation10 + $0xc] sm:$0xf0] }
  0x8c   :  { %1703 = vmatpush.bf16.msrb.mxu0 %v6615_v57  ;;  %1388 = vmatpush.bf16.msrb.mxu3 %v5160_v62 }
  0x8e   :  { %1079 = vmatpush.bf16.msrb.mxu1 %v4824_v51  ;;  %1108 = vmatpush.bf16.msrb.mxu2 %v4952_v10  ;;  %v5168_v51 = vor.u32 %v5789_v48, %v5165_v49  ;;  %v5211_v48 = vld [vmem:[#allocation10 + $0x20] sm:$0xf]  ;;  %v5799_v49 = vld [vmem:[#allocation10 + $0x2c] sm:$0xf0] }
  0x90   :  { %1704 = vmatpush.bf16.msrb.mxu0 %v6622_v4 }
  0x91   :  { %867 = vmatmul.bf16.gmra.mxu1 %v6560_v46  ;;  %896 = vmatmul.bf16.gmra.mxu2 %v6572_v33 }
  0x92   :  { %1080 = vmatpush.bf16.msrb.mxu1 %v4808_v5  ;;  %1109 = vmatpush.bf16.msrb.mxu2 %v4936_v19  ;;  %v6636_v19 = vld [vmem:[%s8205_s0 + $0x8] sm:$0xff] }
  0x93   :  { %1031 = vmatmul.bf16.gmra.mxu3 %v6544_v18  ;;  %1060 = vmatmul.bf16.gmra.mxu0 %v6558_v45 }
  0x94   :  { %1705 = vmatpush.bf16.msrb.mxu0 %v6628_v12 }
  0x96   :  { %1081 = vmatpush.bf16.msrb.mxu1 %v4792_v15  ;;  %1110 = vmatpush.bf16.msrb.mxu2 %v4920_v28  ;;  %v5243_v28 = vld [vmem:[#allocation10 + $0x60] sm:$0xf] }
  0x97   :  { %v6646_v31 = vor.u32 %v5807_v29, %v5243_v28 }
  0x99   :  { %1706 = vmatpush.bf16.msrb.mxu0 %v6646_v31 }
  0x9a   :  { %1082 = vmatpush.bf16.msrb.mxu1 %v4776_v24  ;;  %1111 = vmatpush.bf16.msrb.mxu2 %v4904_v35  ;;  %v5171_v24 = vld [vmem:[#allocation11 + $0x28] sm:$0xf]  ;;  %v5803_v35 = vld [vmem:[#allocation10 + $0x4c] sm:$0xf0] }
  0x9b   :  { %v5172_v27 = vor.u32 %v5792_v25, %v5171_v24 }
  0x9e   :  { %1083 = vmatpush.bf16.msrb.mxu1 %v4760_v32  ;;  %1112 = vmatpush.bf16.msrb.mxu2 %v4888_v38  ;;  %v6655_v38 = vor.u32 %v5803_v35, %v5227_v34 }
  0xa0   :  { %1707 = vmatpush.bf16.msrb.mxu0 %v6655_v38 }
  0xa1   :  { %968 = vmatmul.bf16.vlgmr.msra.gmra.mxu1 %v6550_v8  ;;  %997 = vmatmul.bf16.vlgmr.msra.gmra.mxu2 %v6530_v22 }
  0xa2   :  { %1329 = vmatpush.bf16.msra.mxu1 %v5168_v51  ;;  %1358 = vmatpush.bf16.msra.mxu2 %v5172_v27  ;;  %v6662_v51 = vor.u32 %v5799_v49, %v5211_v48  ;;  %v5788_v48 = vld [vmem:[#allocation11 + $0x14] sm:$0xf0] }
  0xa3   :  { %1036 = vmatmul.bf16.gmra.mxu3 %v6552_v11  ;;  %1065 = vmatmul.bf16.gmra.mxu0 %v6566_v1 }
  0xa4   :  { %1708 = vmatpush.bf16.msrb.mxu0 %v6662_v51 }
  0xb1   :  { %973 = vmatmul.bf16.gmra.mxu1 %v6558_v45  ;;  %1002 = vmatmul.bf16.gmra.mxu2 %v6540_v13 }
  0xb3   :  { %1041 = vmatmul.bf16.gmra.mxu3 %v6560_v46  ;;  %1070 = vmatmul.bf16.gmra.mxu0 %v6572_v33 }
  0xbe   :  { %v6586_v39 = vpop.f32.mrf.mxu1 }
  0xc0   :  { %v940_v41 = vpop.f32.mrf.mxu0 }
  0xc1   :  { %978 = vmatmul.bf16.gmra.mxu1 %v6566_v1  ;;  %1007 = vmatmul.bf16.gmra.mxu2 %v6532_v23 }
  0xc3   :  { %1142 = vmatmul.bf16.vlgmr.msra.gmra.mxu3 %v6550_v8  ;;  %5177 = vmatmul.msk.bf16.vlgmr.msra.gmra.mxu0 %vm1281_vm0, %v6591_v40 }
  0xc4   :  { %v834_v52 = vpop.f32.mrf.mxu2 }
  0xc5   :  { %v6610_v55 = vadd.f32 %v834_v52, %v6606_v50 }
  0xc6   :  { %v911_v8 = vpop.f32.mrf.mxu3  ;;  %v826_v58 = vpop.f32.mrf.mxu1 }
  0xc7   :  { %v6618_v59 = vadd.f32 %v826_v58, %v6606_v50  ;;  %v912_v3 = vadd.f32 %v911_v8, %v6613_v56  ;;  %v5195_v8 = vld [vmem:[#allocation10] sm:$0xf]  ;;  %v825_v58 = vadd.f32 %v6586_v39, %v6606_v50 }
  0xc8   :  { %v942_v60 = vpop.f32.mrf.mxu0  ;;  %v6680_v6 = vor.u32 %v5795_v63, %v5195_v8 }
  0xc9   :  { %v6630_v15 = vadd.f32 %v940_v41, %v912_v3 }
  0xca   :  { %1709 = vmatpush.bf16.msrb.mxu0 %v6680_v6 }
  0xcc   :  { %v836_v5 = vpop.f32.mrf.mxu2 }
  0xcd   :  { %v6626_v9 = vadd.f32 %v836_v5, %v6606_v50  ;;  %v6678_v5 = vld [vmem:[%s8205_s0 + $0x10] sm:$0xff] }
  0xce   :  { %v913_v10 = vpop.f32.mrf.mxu3  ;;  %v829_v17 = vpop.f32.mrf.mxu1 }
  0xcf   :  { %v914_v16 = vadd.f32 %v913_v10, %v6613_v56  ;;  %v6639_v20 = vadd.f32 %v829_v17, %v6606_v50  ;;  %v5149_v10 = vld [vmem:[#allocation11 + $0x10] sm:$0xf0] }
  0xd0   :  { %v945_v21 = vpop.f32.mrf.mxu0 }
  0xd1   :  { %v6642_v30 = vadd.f32 %v942_v60, %v914_v16  ;;  %983 = vmatmul.bf16.gmra.mxu1 %v6572_v33  ;;  %1012 = vmatmul.bf16.gmra.mxu2 %v6542_v14 }
  0xd3   :  { %1147 = vmatmul.bf16.gmra.mxu3 %v6558_v45  ;;  %5178 = vmatmul.msk.bf16.gmra.mxu0 %vm1281_vm0, %v6636_v19 }
  0xd4   :  { %v839_v32 = vpop.f32.mrf.mxu2 }
  0xd5   :  { %v6653_v36 = vadd.f32 %v839_v32, %v6606_v50 }
  0xd6   :  { %v916_v37 = vpop.f32.mrf.mxu3  ;;  %v831_v43 = vpop.f32.mrf.mxu1 }
  0xd7   :  { %v917_v41 = vadd.f32 %v916_v37, %v6613_v56  ;;  %v832_v45 = vadd.f32 %v831_v43, %v6606_v50  ;;  %v6704_v37 = vld [vmem:[%s8205_s0 + $0x18] sm:$0xff]  ;;  %v5155_v43 = vld [vmem:[#allocation11 + $0x8] sm:$0xf] }
  0xd8   :  { %v6659_v44 = vpop.f32.mrf.mxu0  ;;  %v5156_v49 = vor.u32 %v5788_v48, %v5155_v43  ;;  %v5814_v43 = vld [vmem:[#allocation10 + $0xac] sm:$0xf] }
  0xd9   :  { %8363 = vst [vmem:[#allocation23_spill] sm:$0xff] %v6659_v44  ;;  %v6670_v0 = vadd.f32 %v945_v21, %v917_v41 }
  0xda   :  { %1359 = vmatpush.bf16.msra.mxu2 %v5156_v49  ;;  %v5285_v49 = vld [vmem:[#allocation10 + $0xb8] sm:$0xf0] }
  0xdc   :  { %v841_v52 = vpop.f32.mrf.mxu2 }
  0xdd   :  { %v6668_v60 = vadd.f32 %v841_v52, %v6606_v50  ;;  %v5785_v50 = vld [vmem:[#allocation11 + $0x4] sm:$0xf] }
  0xde   :  { %v918_v61 = vpop.f32.mrf.mxu3  ;;  %v853_v3 = vpop.f32.mrf.mxu1  ;;  %v5152_v16 = vor.u32 %v5785_v50, %v5149_v10  ;;  %v5822_v50 = vld [vmem:[#allocation10 + $0xec] sm:$0xf]  ;;  %v5317_v10 = vld [vmem:[#allocation10 + $0xf8] sm:$0xf0] }
  0xdf   :  { %v6673_v2 = vadd.f32 %v918_v61, %v6613_v56  ;;  %v854_v39 = vadd.f32 %v853_v3, %v825_v58 }
  0xe0   :  { %v950_v7 = vpop.f32.mrf.mxu0  ;;  %1330 = vmatpush.bf16.msra.mxu1 %v5152_v16  ;;  %v8217_v16 = vmov 0  }
  0xe1   :  { %8364 = vst [vmem:[#allocation24_spill] sm:$0xff] %v6673_v2  ;;  %1084 = vmatmul.bf16.vlgmr.msrb.gmra.mxu1 %v6530_v22  ;;  %1113 = vmatmul.bf16.vlgmr.msrb.gmra.mxu2 %v6534_v26 }
  0xe3   :  { %1152 = vmatmul.bf16.gmra.mxu3 %v6566_v1  ;;  %5179 = vmatmul.msk.bf16.gmra.mxu0 %vm1281_vm0, %v6678_v5 }
  0xe4   :  { %v882_v17 = vpop.f32.mrf.mxu2 }
  0xe5   :  { %v6688_v21 = vadd.f32 %v882_v17, %v854_v39  ;;  %v5309_v17 = vld [vmem:[#allocation10 + $0xf0] sm:$0xf0] }
  0xe6   :  { %v921_v24 = vpop.f32.mrf.mxu3  ;;  %v855_v27 = vpop.f32.mrf.mxu1 }
  0xe7   :  { %v922_v25 = vadd.f32 %v921_v24, %v6613_v56  ;;  %v856_v22 = vadd.f32 %v855_v27, %v6618_v59  ;;  %v5301_v27 = vld [vmem:[#allocation10 + $0xd8] sm:$0xf0] }
  0xe8   :  { %v6692_v28 = vpop.f32.mrf.mxu0 }
  0xe9   :  { %8365 = vst [vmem:[#allocation25_spill] sm:$0xff] %v6692_v28  ;;  %v6696_v32 = vadd.f32 %v950_v7, %v922_v25  ;;  %v5818_v25 = vld [vmem:[#allocation10 + $0xcc] sm:$0xf] }
  0xec   :  { %v884_v26 = vpop.f32.mrf.mxu2 }
  0xed   :  { %v6694_v29 = vadd.f32 %v884_v26, %v856_v22  ;;  %v6742_v22 = vor.u32 %v5818_v25, %v5301_v27  ;;  %v5277_v27 = vld [vmem:[#allocation10 + $0xb0] sm:$0xf0] }
  0xee   :  { %v923_v1 = vpop.f32.mrf.mxu3  ;;  %v858_v35 = vpop.f32.mrf.mxu1 }
  0xef   :  { %8366 = vst [vmem:[#allocation26_spill] sm:$0xff] %v6694_v29  ;;  %v6699_v34 = vadd.f32 %v923_v1, %v6613_v56  ;;  %v859_v41 = vadd.f32 %v858_v35, %v6639_v20  ;;  %v5882_v29 = vld [vmem:[#allocation13 + $0xcc] sm:$0xf] }
  0xf0   :  { %v955_v59 = vpop.f32.mrf.mxu0 }
  0xf1   :  { %8367 = vst [vmem:[#allocation27_spill] sm:$0xff] %v6699_v34  ;;  %1089 = vmatmul.bf16.gmra.mxu1 %v6540_v13  ;;  %1118 = vmatmul.bf16.gmra.mxu2 %v6544_v18 }
  0xf3   :  { %1157 = vmatmul.bf16.gmra.mxu3 %v6572_v33  ;;  %5180 = vmatmul.msk.bf16.gmra.mxu0 %vm1281_vm0, %v6704_v37 }
  0xf4   :  { %v887_v52 = vpop.f32.mrf.mxu2 }
  0xf5   :  { %v6712_v53 = vadd.f32 %v887_v52, %v859_v41  ;;  %v5817_v41 = vld [vmem:[#allocation10 + $0xc4] sm:$0xf]  ;;  %v6750_v52 = vor.u32 %v5814_v43, %v5285_v49 }
  0xf6   :  { %v926_v54 = vpop.f32.mrf.mxu3  ;;  %v860_v8 = vpop.f32.mrf.mxu1 }
  0xf7   :  { %8368 = vst [vmem:[#allocation28_spill] sm:$0xff] %v6712_v53  ;;  %v927_v20 = vadd.f32 %v926_v54, %v6613_v56  ;;  %v861_v58 = vadd.f32 %v860_v8, %v832_v45  ;;  %v6729_v45 = vor.u32 %v5822_v50, %v5317_v10  ;;  %v5269_v8 = vld [vmem:[#allocation10 + $0x98] sm:$0xf0]  ;;  %v5315_v50 = vld [vmem:[#allocation10 + $0xe8] sm:$0xf] }
  0xf8   :  { %v6715_v61 = vpop.f32.mrf.mxu0  ;;  %v5824_v10 = vld [vmem:[#allocation10 + $0xf4] sm:$0xf0] }
  0xf9   :  { %8369 = vst [vmem:[#allocation29_spill] sm:$0xff] %v6715_v61  ;;  %v6719_v63 = vadd.f32 %v955_v59, %v927_v20  ;;  %1741 = vmatpush.bf16.msra.mxu3 %v6729_v45  ;;  %v5293_v59 = vld [vmem:[#allocation10 + $0xd0] sm:$0xf0]  ;;  %v5810_v20 = vld [vmem:[#allocation10 + $0x8c] sm:$0xf] }
  0xfa   :  { %v6748_v48 = vor.u32 %v5817_v41, %v5293_v59  ;;  %v5802_v41 = vld [vmem:[#allocation10 + $0x4c] sm:$0xf]  ;;  %v5237_v59 = vld [vmem:[#allocation10 + $0x58] sm:$0xf0] }
  0xfc   :  { %v889_v62 = vpop.f32.mrf.mxu2 }
  0xfd   :  { %v6717_v13 = vadd.f32 %v889_v62, %v861_v58  ;;  %1742 = vmatpush.bf16.msra.mxu3 %v6742_v22  ;;  %v6758_v62 = vor.u32 %v5810_v20, %v5269_v8  ;;  %v5299_v8 = vld [vmem:[#allocation10 + $0xc8] sm:$0xf] }
  0xfe   :  { %v928_v18 = vpop.f32.mrf.mxu3  ;;  %v863_v3 = vpop.f32.mrf.mxu1 }
  0xff   :  { %8370 = vst [vmem:[#allocation30_spill] sm:$0xff] %v6717_v13  ;;  %v6722_v33 = vadd.f32 %v928_v18, %v6613_v56  ;;  %v864_v39 = vadd.f32 %v863_v3, %v6610_v55  ;;  %v5821_v56 = vld [vmem:[#allocation10 + $0xe4] sm:$0xf]  ;;  %v5800_v13 = vld [vmem:[#allocation10 + $0x34] sm:$0xf0] }
 0x100   :  { %v6725_v7 = vpop.f32.mrf.mxu0  ;;  %v6734_v24 = vor.u32 %v5821_v56, %v5309_v17  ;;  %v6764_v56 = vor.u32 %v5824_v10, %v5315_v50  ;;  %v5806_v17 = vld [vmem:[#allocation10 + $0x6c] sm:$0xf]  ;;  %v5809_v50 = vld [vmem:[#allocation10 + $0x84] sm:$0xf] }
 0x101   :  { %8371 = vst [vmem:[#allocation31_spill] sm:$0xff] %v6722_v33  ;;  %1094 = vmatmul.bf16.gmra.mxu1 %v6532_v23  ;;  %1123 = vmatmul.bf16.gmra.mxu2 %v6552_v11  ;;  %v5267_v33 = vld [vmem:[#allocation10 + $0x88] sm:$0xf] }
 0x102   :  { %1715 = vmatpush.bf16.msrb.mxu1 %v6734_v24  ;;  %1743 = vmatpush.bf16.msra.mxu3 %v6750_v52 }
 0x103   :  { %5189 = vmatmul.msk.bf16.vlgmr.msrb.gmra.mxu3 %vm1281_vm0, %v6591_v40  ;;  %1710 = vmatmul.bf16.vlgmr.msrb.gmra.mxu0 %v8217_v16 }
 0x104   :  { %v892_v55 = vpop.f32.mrf.mxu2  ;;  %1728 = vmatpush.bf16.msrb.mxu2 %v6764_v56 }
 0x105   :  { %v6737_v23 = vadd.f32 %v892_v55, %v864_v39  ;;  %v5253_v55 = vld [vmem:[#allocation10 + $0x78] sm:$0xf0] }
 0x106   :  { %v6739_v11 = vpop.f32.mrf.mxu3  ;;  %v865_v26 = vpop.f32.mrf.mxu1  ;;  %1716 = vmatpush.bf16.msrb.mxu1 %v6748_v48  ;;  %1744 = vmatpush.bf16.msra.mxu3 %v6758_v62  ;;  %v6768_v25 = vor.u32 %v5806_v17, %v5253_v55  ;;  %v5798_v17 = vld [vmem:[#allocation10 + $0x2c] sm:$0xf]  ;;  %v5221_v55 = vld [vmem:[#allocation10 + $0x38] sm:$0xf0] }
 0x107   :  { %8372 = vst [vmem:[#allocation32_spill] sm:$0xff] %v6737_v23  ;;  %v866_v1 = vadd.f32 %v865_v26, %v6626_v9 }
 0x108   :  { %v6745_v35 = vpop.f32.mrf.mxu0 }
 0x109   :  { %8373 = vst [vmem:[#allocation33_spill] sm:$0xff] %v6745_v35  ;;  %v5888_v35 = vld [vmem:[#allocation13 + $0xf4] sm:$0xf0] }
 0x10a   :  { %1745 = vmatpush.bf16.msra.mxu3 %v6768_v25 }
 0x10c   :  { %v894_v54 = vpop.f32.mrf.mxu2 }
 0x10d   :  { %v6754_v9 = vadd.f32 %v894_v54, %v866_v1 }
 0x10e   :  { %v6756_v58 = vpop.f32.mrf.mxu3  ;;  %v868_v18 = vpop.f32.mrf.mxu1 }
 0x10f   :  { %8374 = vst [vmem:[#allocation34_spill] sm:$0xff] %v6754_v9  ;;  %v869_v3 = vadd.f32 %v868_v18, %v6653_v36  ;;  %v5813_v36 = vld [vmem:[#allocation10 + $0xa4] sm:$0xf]  ;;  %v5820_v18 = vld [vmem:[#allocation10 + $0xd4] sm:$0xf0] }
 0x110   :  { %v6761_v39 = vpop.f32.mrf.mxu0  ;;  %v6773_v26 = vor.u32 %v5813_v36, %v5277_v27  ;;  %v6787_v10 = vor.u32 %v5820_v18, %v5299_v8  ;;  %v6791_v27 = vor.u32 %v5798_v17, %v5221_v55  ;;  %v5283_v17 = vld [vmem:[#allocation10 + $0xa8] sm:$0xf]  ;;  %v5816_v55 = vld [vmem:[#allocation10 + $0xb4] sm:$0xf0]  ;;  %v5229_v9 = vld [vmem:[#allocation10 + $0x50] sm:$0xf0] }
 0x111   :  { %1099 = vmatmul.bf16.gmra.mxu1 %v6542_v14  ;;  %1128 = vmatmul.bf16.gmra.mxu2 %v6560_v46  ;;  %v6781_v46 = vor.u32 %v5802_v41, %v5237_v59  ;;  %v5205_v41 = vld [vmem:[#allocation10 + $0x18] sm:$0xf0] }
 0x112   :  { %1717 = vmatpush.bf16.msrb.mxu1 %v6773_v26  ;;  %1729 = vmatpush.bf16.msrb.mxu2 %v6787_v10 }
 0x113   :  { %5190 = vmatmul.msk.bf16.gmra.mxu3 %vm1281_vm0, %v6636_v19 }
 0x114   :  { %v897_v1 = vpop.f32.mrf.mxu2  ;;  %1746 = vmatpush.bf16.msra.mxu3 %v6781_v46 }
 0x115   :  { %v6776_v43 = vadd.f32 %v897_v1, %v869_v3  ;;  %v5261_v3 = vld [vmem:[#allocation10 + $0x90] sm:$0xf0]  ;;  %v5794_v1 = vld [vmem:[#allocation10 + $0xc] sm:$0xf] }
 0x116   :  { %v6778_v14 = vpop.f32.mrf.mxu3  ;;  %v870_v49 = vpop.f32.mrf.mxu1  ;;  %v6789_v36 = vor.u32 %v5809_v50, %v5261_v3  ;;  %v6800_v8 = vor.u32 %v5794_v1, %v5205_v41  ;;  %v5805_v1 = vld [vmem:[#allocation10 + $0x64] sm:$0xf] }
 0x117   :  { %8375 = vst [vmem:[#allocation35_spill] sm:$0xff] %v6776_v43  ;;  %v871_v54 = vadd.f32 %v870_v49, %v6668_v60 }
 0x118   :  { %v6784_v20 = vpop.f32.mrf.mxu0  ;;  %1718 = vmatpush.bf16.msrb.mxu1 %v6789_v36  ;;  %1747 = vmatpush.bf16.msra.mxu3 %v6791_v27  ;;  %8379 = vst [vmem:[#allocation39_spill] sm:$0xff] %v6800_v8 }
 0x119   :  { %8376 = vst [vmem:[#allocation36_spill] sm:$0xff] %v6784_v20  ;;  %v5219_v20 = vld [vmem:[#allocation10 + $0x28] sm:$0xf] }
 0x11c   :  { %v899_v60 = vpop.f32.mrf.mxu2  ;;  %1748 = vmatpush.bf16.msra.mxu3 %v6800_v8 }
 0x11d   :  { %v6796_v59 = vadd.f32 %v899_v60, %v871_v54  ;;  %v6813_v54 = vperm.slane %v6596_v42, 2  ;;  %v6815_v60 = vor.u32 %v5816_v55, %v5283_v17 }
 0x11e   :  { %v6798_v49 = vpop.f32.mrf.mxu3  ;;  %v969_v18 = vpop.f32.mrf.mxu1 }
 0x11f   :  { %8377 = vst [vmem:[#allocation37_spill] sm:$0xff] %v6796_v59  ;;  %v6803_v50 = vadd.f32 %v969_v18, %v6630_v15  ;;  %v5245_v15 = vld [vmem:[#allocation10 + $0x70] sm:$0xf0]  ;;  %1730 = vmatpush.bf16.msrb.mxu2 %v6815_v60 }
 0x120   :  { %8378 = vst [vmem:[#allocation38_spill] sm:$0xff] %v6798_v49  ;;  %v6805_v3 = vpop.f32.mrf.mxu0  ;;  %v6819_v41 = vor.u32 %v5805_v1, %v5245_v15  ;;  %v5812_v1 = vld [vmem:[#allocation10 + $0x94] sm:$0xf0]  ;;  %v5801_v15 = vld [vmem:[#allocation10 + $0x44] sm:$0xf] }
 0x121   :  { %5181 = vmatmul.msk.bf16.vlgmr.msra.gmra.mxu1 %vm1281_vm0, %v6591_v40  ;;  %5185 = vmatmul.msk.bf16.vlgmr.msra.gmra.mxu2 %vm1281_vm0, %v6591_v40  ;;  %8380 = vst [vmem:[#allocation40_spill] sm:$0xff] %v6813_v54  ;;  %v6832_v43 = vor.u32 %v5812_v1, %v5267_v33  ;;  %v5797_v1 = vld [vmem:[#allocation10 + $0x24] sm:$0xf] }
 0x122   :  { %1719 = vmatpush.bf16.msrb.mxu1 %v6819_v41 }
 0x123   :  { %5191 = vmatmul.msk.bf16.gmra.mxu3 %vm1281_vm0, %v6678_v5  ;;  %1731 = vmatpush.bf16.msrb.mxu2 %v6832_v43 }
 0x124   :  { %v998_v18 = vpop.f32.mrf.mxu2 }
 0x125   :  { %v999_v16 = vadd.f32 %v998_v18, %v6813_v54  ;;  %v6837_v18 = vor.u32 %v5801_v15, %v5229_v9  ;;  %v5251_v9 = vld [vmem:[#allocation10 + $0x68] sm:$0xf]  ;;  %v5213_v15 = vld [vmem:[#allocation10 + $0x30] sm:$0xf0] }
 0x126   :  { %v6824_v40 = vpop.f32.mrf.mxu3  ;;  %v971_v59 = vpop.f32.mrf.mxu1 }
 0x127   :  { %v1028_v17 = vadd.f32 %v6739_v11, %v999_v16  ;;  %v6828_v55 = vadd.f32 %v971_v59, %v6642_v30  ;;  %1720 = vmatpush.bf16.msrb.mxu1 %v6837_v18 }
 0x128   :  { %v6830_v61 = vpop.f32.mrf.mxu0 }
 0x129   :  { %8381 = vst [vmem:[#allocation41_spill] sm:$0xff] %v6828_v55  ;;  %v6835_v28 = vadd.f32 %v6725_v7, %v1028_v17  ;;  %v5808_v17 = vld [vmem:[#allocation10 + $0x74] sm:$0xf0] }
 0x12a   :  { %8382 = vst [vmem:[#allocation42_spill] sm:$0xff] %v6830_v61 }
 0x12c   :  { %v1000_v34 = vpop.f32.mrf.mxu2 }
 0x12d   :  { %v1001_v30 = vadd.f32 %v1000_v34, %v6813_v54  ;;  %v6856_v34 = vor.u32 %v5808_v17, %v5251_v9 }
 0x12e   :  { %v6842_v16 = vpop.f32.mrf.mxu3  ;;  %v974_v11 = vpop.f32.mrf.mxu1 }
 0x12f   :  { %8383 = vst [vmem:[#allocation43_spill] sm:$0xff] %v6842_v16  ;;  %v6845_v59 = vadd.f32 %v6756_v58, %v1001_v30  ;;  %v6848_v33 = vadd.f32 %v974_v11, %v6670_v0  ;;  %v6860_v58 = vor.u32 %v5797_v1, %v5213_v15  ;;  %1732 = vmatpush.bf16.msrb.mxu2 %v6856_v34  ;;  %v5235_v30 = vld [vmem:[#allocation10 + $0x48] sm:$0xf]  ;;  %v5804_v11 = vld [vmem:[#allocation10 + $0x54] sm:$0xf0] }
 0x130   :  { %v6850_v7 = vpop.f32.mrf.mxu0  ;;  %v5793_v1 = vld [vmem:[#allocation10 + $0x4] sm:$0xf]  ;;  %v5197_v15 = vld [vmem:[#allocation10 + $0x10] sm:$0xf0] }
 0x131   :  { %8384 = vst [vmem:[#allocation44_spill] sm:$0xff] %v6845_v59  ;;  %5182 = vmatmul.msk.bf16.gmra.mxu1 %vm1281_vm0, %v6636_v19  ;;  %5186 = vmatmul.msk.bf16.gmra.mxu2 %vm1281_vm0, %v6636_v19  ;;  %v6865_v19 = vor.u32 %v5804_v11, %v5235_v30  ;;  %v6873_v49 = vor.u32 %v5793_v1, %v5197_v15 }
 0x132   :  { %8385 = vst [vmem:[#allocation45_spill] sm:$0xff] %v6848_v33  ;;  %1721 = vmatpush.bf16.msrb.mxu1 %v6860_v58 }
 0x133   :  { %5192 = vmatmul.msk.bf16.gmra.mxu3 %vm1281_vm0, %v6704_v37  ;;  %1733 = vmatpush.bf16.msrb.mxu2 %v6865_v19 }
 0x134   :  { %v1003_v0 = vpop.f32.mrf.mxu2 }
 0x135   :  { %v1004_v61 = vadd.f32 %v1003_v0, %v6813_v54  ;;  %v6878_v0 = vor.u32 %v5800_v13, %v5219_v20  ;;  %v8393_v13 = vmov 0  }
 0x136   :  { %v1042_v16 = vpop.f32.mrf.mxu3  ;;  %v6867_v9 = vpop.f32.mrf.mxu1  ;;  %1722 = vmatpush.bf16.msrb.mxu1 %v6873_v49 }
 0x137   :  { %8386 = vst [vmem:[#allocation46_spill] sm:$0xff] %v6867_v9  ;;  %v1033_v17 = vadd.f32 %v6778_v14, %v1004_v61  ;;  %1734 = vmatpush.bf16.msrb.mxu2 %v6878_v0  ;;  %v5203_v61 = vld [vmem:[#allocation10 + $0x8] sm:$0xf]  ;;  %v5796_v14 = vld [vmem:[#allocation10 + $0x14] sm:$0xf0] }
 0x138   :  { %v6870_v23 = vpop.f32.mrf.mxu0 }
 0x139   :  { %8387 = vst [vmem:[#allocation47_spill] sm:$0xff] %v6870_v23  ;;  %v6876_v44 = vadd.f32 %v6761_v39, %v1033_v17  ;;  %v6886_v23 = vor.u32 %v5796_v14, %v5203_v61 }
 0x13b   :  { %8388 = vst [vmem:[#allocation48_spill] sm:$0xff] %v6876_v44  ;;  %1735 = vmatpush.bf16.msrb.mxu2 %v6886_v23 }
 0x13c   :  { %v6881_v30 = vpop.f32.mrf.mxu2 }
 0x13d   :  { %8389 = vst [vmem:[#allocation49_spill] sm:$0xff] %v6881_v30 }
 0x13e   :  { %v6884_v11 = vpop.f32.mrf.mxu3  ;;  %v979_v1 = vpop.f32.mrf.mxu1 }
 0x13f   :  { %8390 = vst [vmem:[#allocation50_spill] sm:$0xff] %v6884_v11  ;;  %v6889_v15 = vadd.f32 %v979_v1, %v6696_v32 }
 0x140   :  { %v6891_v39 = vpop.f32.mrf.mxu0 }
 0x141   :  { %8391 = vst [vmem:[#allocation51_spill] sm:$0xff] %v6889_v15  ;;  %5183 = vmatmul.msk.bf16.gmra.mxu1 %vm1281_vm0, %v6678_v5  ;;  %5187 = vmatmul.msk.bf16.gmra.mxu2 %vm1281_vm0, %v6678_v5  ;;  %v6911_v15 = vld [vmem:[%s8213_s8] sm:$0xf] }
 0x142   :  { %8392 = vst [vmem:[#allocation52_spill] sm:$0xff] %v6891_v39  ;;  %v5874_v39 = vld [vmem:[#allocation13 + $0x8c] sm:$0xf] }
 0x143   :  { %1749 = vmatmul.bf16.vlgmr.msra.gmra.mxu3 %v8393_v13 }
 0x144   :  { %v1008_v20 = vpop.f32.mrf.mxu2 }
 0x145   :  { %v1009_v17 = vadd.f32 %v1008_v20, %v6813_v54  ;;  %v6918_v20 = vperm.slane %v6911_v15, 0 }
 0x146   :  { %v1143_v61 = vpop.f32.mrf.mxu3  ;;  %v6900_v14 = vpop.f32.mrf.mxu1 }
 0x147   :  { %8394 = vst [vmem:[#allocation53_spill] sm:$0xff] %v6900_v14  ;;  %v1038_v32 = vadd.f32 %v6824_v40, %v1009_v17 }
 0x148   :  { %v6903_v1 = vpop.f32.mrf.mxu0  ;;  %8399 = vst [vmem:[#allocation58_spill] sm:$0xff] %v6918_v20 }
 0x149   :  { %8395 = vst [vmem:[#allocation54_spill] sm:$0xff] %v6903_v1  ;;  %v6906_v11 = vadd.f32 %v6805_v3, %v1038_v32 }
 0x14b   :  { %8396 = vst [vmem:[#allocation55_spill] sm:$0xff] %v6906_v11 }
 0x14c   :  { %v6913_v5 = vpop.f32.mrf.mxu2 }
 0x14d   :  { %8397 = vst [vmem:[#allocation56_spill] sm:$0xff] %v6913_v5 }
 0x14e   :  { %v6915_v30 = vpop.f32.mrf.mxu3  ;;  %v984_v14 = vpop.f32.mrf.mxu1 }
 0x14f   :  { %8398 = vst [vmem:[#allocation57_spill] sm:$0xff] %v6915_v30  ;;  %v6921_v40 = vadd.f32 %v984_v14, %v6719_v63  ;;  %v5448_v30 = vld [vmem:[#allocation13 + $0xf8] sm:$0xf0] }
 0x150   :  { %v1308_v17 = vpop.f32.mrf.mxu0 }
 0x151   :  { %8400 = vst [vmem:[#allocation59_spill] sm:$0xff] %v6921_v40  ;;  %v6924_v3 = vadd.f32 %v1308_v17, %v6918_v20  ;;  %5184 = vmatmul.msk.bf16.gmra.mxu1 %vm1281_vm0, %v6704_v37  ;;  %5188 = vmatmul.msk.bf16.gmra.mxu2 %vm1281_vm0, %v6704_v37 }
 0x153   :  { %8401 = vst [vmem:[#allocation60_spill] sm:$0xff] %v6924_v3  ;;  %v6943_v3 = vperm.slane %v6596_v42, 3 }
 0x154   :  { %v1013_v32 = vpop.f32.mrf.mxu2 }
 0x155   :  { %v1014_v5 = vadd.f32 %v1013_v32, %v6813_v54  ;;  %8407 = vst [vmem:[#allocation66_spill] sm:$0xff] %v6943_v3 }
 0x156   :  { %v1148_v11 = vpop.f32.mrf.mxu3  ;;  %v6931_v9 = vpop.f32.mrf.mxu1 }
 0x157   :  { %8402 = vst [vmem:[#allocation61_spill] sm:$0xff] %v6931_v9  ;;  %v1043_v2 = vadd.f32 %v1042_v16, %v1014_v5 }
 0x158   :  { %v6933_v44 = vpop.f32.mrf.mxu0 }
 0x159   :  { %8403 = vst [vmem:[#allocation62_spill] sm:$0xff] %v6933_v44  ;;  %v6936_v63 = vadd.f32 %v6850_v7, %v1043_v2 }
 0x15b   :  { %8404 = vst [vmem:[#allocation63_spill] sm:$0xff] %v6936_v63 }
 0x15c   :  { %v6938_v14 = vpop.f32.mrf.mxu2 }
 0x15d   :  { %8405 = vst [vmem:[#allocation64_spill] sm:$0xff] %v6938_v14 }
 0x15e   :  { %v6940_v17 = vpop.f32.mrf.mxu3  ;;  %v1085_v40 = vpop.f32.mrf.mxu1 }
 0x15f   :  { %8406 = vst [vmem:[#allocation65_spill] sm:$0xff] %v6940_v17  ;;  %v1086_v16 = vadd.f32 %v1085_v40, %v6943_v3 }
 0x160   :  { %v1313_v37 = vpop.f32.mrf.mxu0 }
 0x161   :  { %v6946_v32 = vadd.f32 %v1313_v37, %v6918_v20  ;;  %1723 = vmatmul.bf16.vlgmr.msrb.gmra.mxu1 %v8393_v13  ;;  %1736 = vmatmul.bf16.vlgmr.msrb.gmra.mxu2 %v8393_v13 }
 0x163   :  { %8408 = vst [vmem:[#allocation67_spill] sm:$0xff] %v6946_v32 }
 0x164   :  { %v1114_v2 = vpop.f32.mrf.mxu2 }
 0x165   :  { %v1115_v7 = vadd.f32 %v1114_v2, %v1086_v16 }
 0x166   :  { %v1153_v5 = vpop.f32.mrf.mxu3  ;;  %v6951_v14 = vpop.f32.mrf.mxu1 }
 0x167   :  { %8409 = vst [vmem:[#allocation68_spill] sm:$0xff] %v6951_v14  ;;  %v6955_v63 = vadd.f32 %v1143_v61, %v1115_v7  ;;  %v5432_v14 = vld [vmem:[#allocation13 + $0xd8] sm:$0xf0] }
 0x168   :  { %v6953_v9 = vpop.f32.mrf.mxu0 }
 0x169   :  { %8410 = vst [vmem:[#allocation69_spill] sm:$0xff] %v6953_v9 }
 0x16c   :  { %v6957_v42 = vpop.f32.mrf.mxu2 }
 0x16d   :  { %8411 = vst [vmem:[#allocation70_spill] sm:$0xff] %v6957_v42 }
 0x16e   :  { %v6959_v44 = vpop.f32.mrf.mxu3  ;;  %v1090_v37 = vpop.f32.mrf.mxu1 }
 0x16f   :  { %8412 = vst [vmem:[#allocation71_spill] sm:$0xff] %v6959_v44  ;;  %v1091_v32 = vadd.f32 %v1090_v37, %v6943_v3 }
 0x170   :  { %v1318_v54 = vpop.f32.mrf.mxu0 }
 0x171   :  { %v6963_v17 = vadd.f32 %v1318_v54, %v6918_v20  ;;  %v5400_v20 = vld [vmem:[#allocation13 + $0x98] sm:$0xf0] }
 0x173   :  { %8413 = vst [vmem:[#allocation72_spill] sm:$0xff] %v6963_v17 }
 0x174   :  { %v1119_v40 = vpop.f32.mrf.mxu2 }
 0x175   :  { %v1120_v16 = vadd.f32 %v1119_v40, %v1091_v32 }
 0x176   :  { %v1158_v2 = vpop.f32.mrf.mxu3  ;;  %v6965_v33 = vpop.f32.mrf.mxu1 }
 0x177   :  { %8414 = vst [vmem:[#allocation73_spill] sm:$0xff] %v6965_v33  ;;  %v6969_v61 = vadd.f32 %v1148_v11, %v1120_v16 }
 0x178   :  { %v6967_v53 = vpop.f32.mrf.mxu0 }
 0x179   :  { %8415 = vst [vmem:[#allocation74_spill] sm:$0xff] %v6967_v53 }
 0x17a   :  { %8416 = vst [vmem:[#allocation75_spill] sm:$0xff] %v6969_v61  ;;  %v6991_v61 = vperm.slane %v6911_v15, 3 }
 0x17c   :  { %v6971_v7 = vpop.f32.mrf.mxu2  ;;  %8424 = vst [vmem:[#allocation83_spill] sm:$0xff] %v6991_v61 }
 0x17d   :  { %8417 = vst [vmem:[#allocation76_spill] sm:$0xff] %v6971_v7 }
 0x17e   :  { %v6973_v9 = vpop.f32.mrf.mxu3  ;;  %v1095_v44 = vpop.f32.mrf.mxu1 }
 0x17f   :  { %8418 = vst [vmem:[#allocation77_spill] sm:$0xff] %v6973_v9  ;;  %v1096_v37 = vadd.f32 %v1095_v44, %v6943_v3 }
 0x180   :  { %v1711_v1 = vpop.f32.mrf.mxu0 }
 0x181   :  { %v6977_v54 = vadd.f32 %v1711_v1, %v6688_v21 }
 0x184   :  { %v1124_v17 = vpop.f32.mrf.mxu2 }
 0x185   :  { %v1125_v32 = vadd.f32 %v1124_v17, %v1096_v37 }
 0x186   :  { %v6979_v40 = vpop.f32.mrf.mxu3  ;;  %v6981_v33 = vpop.f32.mrf.mxu1 }
 0x187   :  { %8419 = vst [vmem:[#allocation78_spill] sm:$0xff] %v6979_v40  ;;  %v6983_v11 = vadd.f32 %v1153_v5, %v1125_v32 }
 0x188   :  { %8420 = vst [vmem:[#allocation79_spill] sm:$0xff] %v6981_v33  ;;  %v1713_v53 = vpop.f32.mrf.mxu0 }
 0x189   :  { %8421 = vst [vmem:[#allocation80_spill] sm:$0xff] %v6983_v11 }
 0x18c   :  { %v6985_v16 = vpop.f32.mrf.mxu2 }
 0x18d   :  { %8422 = vst [vmem:[#allocation81_spill] sm:$0xff] %v6985_v16 }
 0x18e   :  { %v6987_v7 = vpop.f32.mrf.mxu3  ;;  %v1100_v9 = vpop.f32.mrf.mxu1 }
 0x18f   :  { %8423 = vst [vmem:[#allocation82_spill] sm:$0xff] %v6987_v7  ;;  %v1101_v44 = vadd.f32 %v1100_v9, %v6943_v3  ;;  %v7053_v3 = vor.u32 %v5882_v29, %v5432_v14  ;;  %v5878_v29 = vld [vmem:[#allocation13 + $0xac] sm:$0xf]  ;;  %v5416_v14 = vld [vmem:[#allocation13 + $0xb8] sm:$0xf0] }
 0x190   :  { %v7067_v40 = vor.u32 %v5878_v29, %v5416_v14 }
 0x191   :  { %8449 = vst [vmem:[#allocation108_spill] sm:$0xff] %v7053_v3 }
 0x192   :  { %8454 = vst [vmem:[#allocation113_spill] sm:$0xff] %v7067_v40 }
 0x194   :  { %v1129_v21 = vpop.f32.mrf.mxu2 }
 0x195   :  { %v1130_v1 = vadd.f32 %v1129_v21, %v1101_v44 }
 0x196   :  { %v1395_v17 = vpop.f32.mrf.mxu3  ;;  %v6996_v33 = vpop.f32.mrf.mxu1 }
 0x197   :  { %v6994_v37 = vadd.f32 %v1395_v17, %v6991_v61  ;;  %8426 = vst [vmem:[#allocation85_spill] sm:$0xff] %v6996_v33  ;;  %v6998_v53 = vadd.f32 %v1158_v2, %v1130_v1  ;;  %v7016_v17 = vperm.slane %v6911_v15, 1  ;;  %v5438_v33 = vld [vmem:[#allocation13 + $0xe0] sm:$0xf] }
 0x199   :  { %8425 = vst [vmem:[#allocation84_spill] sm:$0xff] %v6994_v37 }
 0x19a   :  { %8427 = vst [vmem:[#allocation86_spill] sm:$0xff] %v6998_v53  ;;  %v5887_v53 = vld [vmem:[#allocation13 + $0xec] sm:$0xf0] }
 0x19b   :  { %8435 = vst [vmem:[#allocation94_spill] sm:$0xff] %v7016_v17  ;;  %v7023_v37 = vor.u32 %v5887_v53, %v5438_v33 }
 0x19c   :  { %v7000_v5 = vpop.f32.mrf.mxu2 }
 0x19d   :  { %8428 = vst [vmem:[#allocation87_spill] sm:$0xff] %v7000_v5  ;;  %1986 = vmatpush.bf16.msra.mxu0 %v7023_v37 }
 0x19e   :  { %v7002_v32 = vpop.f32.mrf.mxu3  ;;  %v7004_v16 = vpop.f32.mrf.mxu1  ;;  %8438 = vst [vmem:[#allocation97_spill] sm:$0xff] %v7023_v37 }
 0x19f   :  { %8429 = vst [vmem:[#allocation88_spill] sm:$0xff] %v7002_v32  ;;  %v5885_v32 = vld [vmem:[#allocation13 + $0xe4] sm:$0xf] }
 0x1a0   :  { %8430 = vst [vmem:[#allocation89_spill] sm:$0xff] %v7004_v16  ;;  %v5876_v16 = vld [vmem:[#allocation13 + $0x94] sm:$0xf0] }
 0x1a4   :  { %v7006_v9 = vpop.f32.mrf.mxu2 }
 0x1a5   :  { %8431 = vst [vmem:[#allocation90_spill] sm:$0xff] %v7006_v9 }
 0x1a6   :  { %v1400_v11 = vpop.f32.mrf.mxu3  ;;  %v7011_v44 = vpop.f32.mrf.mxu1 }
 0x1a7   :  { %v7009_v7 = vadd.f32 %v1400_v11, %v6991_v61  ;;  %8433 = vst [vmem:[#allocation92_spill] sm:$0xff] %v7011_v44  ;;  %v5440_v11 = vld [vmem:[#allocation13 + $0xf0] sm:$0xf0]  ;;  %v7026_v44 = vperm.slane %v6911_v15, 2  ;;  %v5422_v15 = vld [vmem:[#allocation13 + $0xc0] sm:$0xf] }
 0x1a9   :  { %8432 = vst [vmem:[#allocation91_spill] sm:$0xff] %v7009_v7  ;;  %v5446_v7 = vld [vmem:[#allocation13 + $0xe8] sm:$0xf] }
 0x1aa   :  { %8439 = vst [vmem:[#allocation98_spill] sm:$0xff] %v7026_v44  ;;  %v7030_v59 = vor.u32 %v5888_v35, %v5446_v7 }
 0x1ac   :  { %v7013_v21 = vpop.f32.mrf.mxu2  ;;  %8441 = vst [vmem:[#allocation100_spill] sm:$0xff] %v7030_v59  ;;  %2012 = vmatpush.bf16.msra.mxu2 %v7030_v59 }
 0x1ad   :  { %8434 = vst [vmem:[#allocation93_spill] sm:$0xff] %v7013_v21  ;;  %v7028_v21 = vor.u32 %v5885_v32, %v5440_v11  ;;  %v5883_v32 = vld [vmem:[#allocation13 + $0xcc] sm:$0xf0]  ;;  %v5881_v11 = vld [vmem:[#allocation13 + $0xc4] sm:$0xf] }
 0x1ae   :  { %v7018_v2 = vpop.f32.mrf.mxu3  ;;  %v1337_v1 = vpop.f32.mrf.mxu1 }
 0x1af   :  { %8436 = vst [vmem:[#allocation95_spill] sm:$0xff] %v7018_v2  ;;  %v7021_v5 = vadd.f32 %v1337_v1, %v7016_v17  ;;  %v5886_v2 = vld [vmem:[#allocation13 + $0xec] sm:$0xf]  ;;  %1999 = vmatpush.bf16.msra.mxu1 %v7028_v21 }
 0x1b0   :  { %8440 = vst [vmem:[#allocation99_spill] sm:$0xff] %v7028_v21  ;;  %v7033_v1 = vor.u32 %v5886_v2, %v5448_v30  ;;  %v7046_v30 = vor.u32 %v5883_v32, %v5422_v15  ;;  %v5424_v2 = vld [vmem:[#allocation13 + $0xd0] sm:$0xf0]  ;;  %v5879_v15 = vld [vmem:[#allocation13 + $0xac] sm:$0xf0] }
 0x1b1   :  { %8437 = vst [vmem:[#allocation96_spill] sm:$0xff] %v7021_v5  ;;  %v7048_v5 = vor.u32 %v5881_v11, %v5424_v2  ;;  %v5877_v32 = vld [vmem:[#allocation13 + $0xa4] sm:$0xf]  ;;  %v5408_v11 = vld [vmem:[#allocation13 + $0xb0] sm:$0xf0] }
 0x1b2   :  { %8442 = vst [vmem:[#allocation101_spill] sm:$0xff] %v7033_v1  ;;  %2025 = vmatpush.bf16.msrb.mxu3 %v7033_v1  ;;  %1987 = vmatpush.bf16.msra.mxu0 %v7046_v30  ;;  %v5880_v2 = vld [vmem:[#allocation13 + $0xb4] sm:$0xf0] }
 0x1b3   :  { %8446 = vst [vmem:[#allocation105_spill] sm:$0xff] %v7046_v30  ;;  %2000 = vmatpush.bf16.msra.mxu1 %v7048_v5 }
 0x1b4   :  { %v1366_v42 = vpop.f32.mrf.mxu2  ;;  %8447 = vst [vmem:[#allocation106_spill] sm:$0xff] %v7048_v5 }
 0x1b5   :  { %v7036_v33 = vadd.f32 %v1366_v42, %v7026_v44  ;;  %v5430_v42 = vld [vmem:[#allocation13 + $0xc8] sm:$0xf] }
 0x1b6   :  { %v1405_v53 = vpop.f32.mrf.mxu3  ;;  %v7043_v7 = vpop.f32.mrf.mxu1  ;;  %2026 = vmatpush.bf16.msrb.mxu3 %v7053_v3  ;;  %v5841_v3 = vld [vmem:[#allocation14 + $0x84] sm:$0xf] }
 0x1b7   :  { %8443 = vst [vmem:[#allocation102_spill] sm:$0xff] %v7036_v33  ;;  %v7041_v35 = vadd.f32 %v1405_v53, %v6991_v61  ;;  %v5884_v33 = vld [vmem:[#allocation13 + $0xd4] sm:$0xf0]  ;;  %v5406_v53 = vld [vmem:[#allocation13 + $0xa0] sm:$0xf] }
 0x1b8   :  { %8445 = vst [vmem:[#allocation104_spill] sm:$0xff] %v7043_v7  ;;  %v7050_v55 = vor.u32 %v5884_v33, %v5430_v42  ;;  %v5414_v33 = vld [vmem:[#allocation13 + $0xa8] sm:$0xf]  ;;  %v7060_v42 = vor.u32 %v5877_v32, %v5408_v11  ;;  %v5873_v32 = vld [vmem:[#allocation13 + $0x84] sm:$0xf] }
 0x1b9   :  { %8444 = vst [vmem:[#allocation103_spill] sm:$0xff] %v7041_v35  ;;  %v7058_v35 = vor.u32 %v5879_v15, %v5406_v53  ;;  %v7062_v7 = vor.u32 %v5880_v2, %v5414_v33  ;;  %v5390_v53 = vld [vmem:[#allocation13 + $0x80] sm:$0xf]  ;;  %v5875_v15 = vld [vmem:[#allocation13 + $0x8c] sm:$0xf0] }
 0x1ba   :  { %8448 = vst [vmem:[#allocation107_spill] sm:$0xff] %v7050_v55  ;;  %2013 = vmatpush.bf16.msra.mxu2 %v7050_v55  ;;  %2001 = vmatpush.bf16.msra.mxu1 %v7060_v42  ;;  %v7074_v33 = vor.u32 %v5875_v15, %v5390_v53  ;;  %v5392_v2 = vld [vmem:[#allocation13 + $0x90] sm:$0xf0]  ;;  %v5374_v53 = vld [vmem:[#allocation13 + $0x60] sm:$0xf] }
 0x1bb   :  { %8450 = vst [vmem:[#allocation109_spill] sm:$0xff] %v7058_v35  ;;  %1988 = vmatpush.bf16.msra.mxu0 %v7058_v35  ;;  %2027 = vmatpush.bf16.msrb.mxu3 %v7067_v40  ;;  %v7079_v14 = vor.u32 %v5873_v32, %v5392_v2  ;;  %v5871_v15 = vld [vmem:[#allocation13 + $0x6c] sm:$0xf0]  ;;  %v5872_v2 = vld [vmem:[#allocation13 + $0x74] sm:$0xf0] }
 0x1bc   :  { %8451 = vst [vmem:[#allocation110_spill] sm:$0xff] %v7060_v42  ;;  %v7064_v9 = vpop.f32.mrf.mxu2  ;;  %v7085_v42 = vor.u32 %v5874_v39, %v5400_v20  ;;  %v7090_v32 = vor.u32 %v5871_v15, %v5374_v53  ;;  %v5870_v39 = vld [vmem:[#allocation13 + $0x6c] sm:$0xf]  ;;  %v5384_v20 = vld [vmem:[#allocation13 + $0x78] sm:$0xf0] }
 0x1bd   :  { %8452 = vst [vmem:[#allocation111_spill] sm:$0xff] %v7062_v7 }
 0x1be   :  { %8453 = vst [vmem:[#allocation112_spill] sm:$0xff] %v7064_v9  ;;  %v7069_v61 = vpop.f32.mrf.mxu3  ;;  %2014 = vmatpush.bf16.msra.mxu2 %v7062_v7  ;;  %v1342_v11 = vpop.f32.mrf.mxu1  ;;  %v5398_v9 = vld [vmem:[#allocation13 + $0x88] sm:$0xf]  ;;  %v5321_v7 = vmul.f32 -1.442695, %v6977_v54  ;;  %2002 = vmatpush.bf16.msra.mxu1 %v7079_v14 }
 0x1bf   :  { %8455 = vst [vmem:[#allocation114_spill] sm:$0xff] %v7069_v61  ;;  %v7077_v29 = vadd.f32 %v1342_v11, %v7016_v17  ;;  %v7081_v61 = vor.u32 %v5876_v16, %v5398_v9  ;;  %1989 = vmatpush.bf16.msra.mxu0 %v7074_v33  ;;  %v5869_v11 = vld [vmem:[#allocation13 + $0x64] sm:$0xf]  ;;  %2028 = vmatpush.bf16.msrb.mxu3 %v7085_v42  ;;  %v5376_v16 = vld [vmem:[#allocation13 + $0x70] sm:$0xf0] }
 0x1c0   :  { %8456 = vst [vmem:[#allocation115_spill] sm:$0xff] %v7074_v33  ;;  %v5382_v9 = vld [vmem:[#allocation13 + $0x68] sm:$0xf]  ;;  %5927 = vpow2.f32 %v5321_v7  ;;  %v5865_v7 = vld [vmem:[#allocation13 + $0x44] sm:$0xf] }
 0x1c1   :  { %8457 = vst [vmem:[#allocation116_spill] sm:$0xff] %v7077_v29  ;;  %v7092_v29 = vor.u32 %v5869_v11, %v5376_v16  ;;  %v7094_v54 = vor.u32 %v5872_v2, %v5382_v9  ;;  %v5358_v11 = vld [vmem:[#allocation13 + $0x40] sm:$0xf]  ;;  %v5867_v16 = vld [vmem:[#allocation13 + $0x4c] sm:$0xf0] }
 0x1c2   :  { %8458 = vst [vmem:[#allocation117_spill] sm:$0xff] %v7079_v14  ;;  %2015 = vmatpush.bf16.msra.mxu2 %v7081_v61  ;;  %v7107_v9 = vor.u32 %v5867_v16, %v5358_v11  ;;  %v5360_v2 = vld [vmem:[#allocation13 + $0x50] sm:$0xf0]  ;;  %v5342_v11 = vld [vmem:[#allocation13 + $0x20] sm:$0xf] }
 0x1c3   :  { %8459 = vst [vmem:[#allocation118_spill] sm:$0xff] %v7081_v61  ;;  %1990 = vmatpush.bf16.msra.mxu0 %v7090_v32  ;;  %v7097_v61 = vor.u32 %v5870_v39, %v5384_v20  ;;  %2003 = vmatpush.bf16.msra.mxu1 %v7092_v29  ;;  %v5366_v39 = vld [vmem:[#allocation13 + $0x48] sm:$0xf]  ;;  %v5868_v20 = vld [vmem:[#allocation13 + $0x54] sm:$0xf0] }
 0x1c4   :  { %8460 = vst [vmem:[#allocation119_spill] sm:$0xff] %v7085_v42  ;;  %v1371_v14 = vpop.f32.mrf.mxu2  ;;  %v5863_v16 = vld [vmem:[#allocation13 + $0x2c] sm:$0xf0] }
 0x1c5   :  { %8461 = vst [vmem:[#allocation120_spill] sm:$0xff] %v7090_v32  ;;  %v7100_v33 = vadd.f32 %v1371_v14, %v7026_v44  ;;  %2029 = vmatpush.bf16.msrb.mxu3 %v7097_v61  ;;  %v7109_v32 = vor.u32 %v5865_v7, %v5360_v2  ;;  %v7111_v14 = vor.u32 %v5868_v20, %v5366_v39  ;;  %v5344_v2 = vld [vmem:[#allocation13 + $0x30] sm:$0xf0]  ;;  %v5350_v39 = vld [vmem:[#allocation13 + $0x28] sm:$0xf] }
 0x1c6   :  { %8462 = vst [vmem:[#allocation121_spill] sm:$0xff] %v7092_v29  ;;  %v1750_v53 = vpop.f32.mrf.mxu3  ;;  %2016 = vmatpush.bf16.msra.mxu2 %v7094_v54  ;;  %v7104_v15 = vpop.f32.mrf.mxu1  ;;  %v5368_v29 = vld [vmem:[#allocation13 + $0x58] sm:$0xf0]  ;;  %v7119_v7 = vor.u32 %v5863_v16, %v5342_v11  ;;  %v5864_v20 = vld [vmem:[#allocation13 + $0x34] sm:$0xf0] }
 0x1c7   :  { %8463 = vst [vmem:[#allocation122_spill] sm:$0xff] %v7094_v54  ;;  %1991 = vmatpush.bf16.msra.mxu0 %v7107_v9  ;;  %2004 = vmatpush.bf16.msra.mxu1 %v7109_v32  ;;  %v5326_v16 = vld [vmem:[#allocation13] sm:$0xf] }
 0x1c8   :  { %8464 = vst [vmem:[#allocation123_spill] sm:$0xff] %v7097_v61  ;;  %v5861_v61 = vld [vmem:[#allocation13 + $0x24] sm:$0xf] }
 0x1c9   :  { %8465 = vst [vmem:[#allocation124_spill] sm:$0xff] %v7100_v33  ;;  %v5866_v33 = vld [vmem:[#allocation13 + $0x4c] sm:$0xf] }
 0x1ca   :  { %8466 = vst [vmem:[#allocation125_spill] sm:$0xff] %v7104_v15  ;;  %v7114_v54 = vor.u32 %v5866_v33, %v5368_v29  ;;  %v5928_v15 = vpop.eup %5927  ;;  %2017 = vmatpush.bf16.msra.mxu2 %v7111_v14  ;;  %v7125_v33 = vor.u32 %v5864_v20, %v5350_v39  ;;  %v5862_v29 = vld [vmem:[#allocation13 + $0x2c] sm:$0xf]  ;;  %v5334_v39 = vld [vmem:[#allocation13 + $0x8] sm:$0xf] }
 0x1cb   :  { %8467 = vst [vmem:[#allocation126_spill] sm:$0xff] %v7107_v9  ;;  %v7123_v9 = vor.u32 %v5861_v61, %v5344_v2  ;;  %v7127_v40 = vadd.f32 1.0, %v5928_v15  ;;  %1992 = vmatpush.bf16.msra.mxu0 %v7119_v7  ;;  %v5857_v61 = vld [vmem:[#allocation13 + $0x4] sm:$0xf]  ;;  %v5860_v20 = vld [vmem:[#allocation13 + $0x14] sm:$0xf0] }
 0x1cc   :  { %8468 = vst [vmem:[#allocation127_spill] sm:$0xff] %v7109_v32  ;;  %2030 = vmatpush.bf16.msrb.mxu3 %v7114_v54  ;;  %v7121_v42 = vpop.f32.mrf.mxu2  ;;  %v5352_v32 = vld [vmem:[#allocation13 + $0x38] sm:$0xf0] }
 0x1cd   :  { %8469 = vst [vmem:[#allocation128_spill] sm:$0xff] %v7111_v14  ;;  %v7130_v35 = vor.u32 %v5862_v29, %v5352_v32  ;;  %2005 = vmatpush.bf16.msra.mxu1 %v7123_v9  ;;  %v7142_v29 = vor.u32 %v5860_v20, %v5334_v39  ;;  %5929 = vrcp.f32 %v7127_v40  ;;  %v5574_v39 = vld [vmem:[#allocation14 + $0xe8] sm:$0xf]  ;;  %v5856_v20 = vld [vmem:[#allocation14 + $0xf4] sm:$0xf0]  ;;  %vm1767_vm2 = vweird.f32 %v7127_v40 }
 0x1ce   :  { %8470 = vst [vmem:[#allocation129_spill] sm:$0xff] %v7114_v54  ;;  %v1752_v14 = vpop.f32.mrf.mxu3  ;;  %v1347_v11 = vpop.f32.mrf.mxu1  ;;  %2018 = vmatpush.bf16.msra.mxu2 %v7125_v33  ;;  %v1757_v54 = vadd.f32 %v1750_v53, %v6955_v63  ;;  %v7157_v53 = vor.u32 %v5856_v20, %v5574_v39  ;;  %v5558_v39 = vld [vmem:[#allocation14 + $0xc8] sm:$0xf]  ;;  %v5852_v20 = vld [vmem:[#allocation14 + $0xd4] sm:$0xf0] }
 0x1cf   :  { %8471 = vst [vmem:[#allocation130_spill] sm:$0xff] %v7119_v7  ;;  %v7135_v2 = vadd.f32 %v1347_v11, %v7016_v17  ;;  %v5328_v14 = vld [vmem:[#allocation13 + $0x10] sm:$0xf0]  ;;  %v5336_v7 = vld [vmem:[#allocation13 + $0x18] sm:$0xf0] }
 0x1d0   :  { %8472 = vst [vmem:[#allocation131_spill] sm:$0xff] %v7121_v42  ;;  %v5859_v42 = vld [vmem:[#allocation13 + $0xc] sm:$0xf0]  ;;  %2031 = vmatpush.bf16.msrb.mxu3 %v7130_v35  ;;  %v7140_v32 = vor.u32 %v5857_v61, %v5328_v14  ;;  %v5568_v14 = vld [vmem:[#allocation14 + $0xf0] sm:$0xf0] }
 0x1d1   :  { %8473 = vst [vmem:[#allocation132_spill] sm:$0xff] %v7123_v9  ;;  %v7138_v15 = vor.u32 %v5859_v42, %v5326_v16  ;;  %v5858_v9 = vld [vmem:[#allocation13 + $0xc] sm:$0xf]  ;;  %v5855_v42 = vld [vmem:[#allocation14 + $0xec] sm:$0xf0] }
 0x1d2   :  { %8474 = vst [vmem:[#allocation133_spill] sm:$0xff] %v7125_v33  ;;  %v5566_v33 = vld [vmem:[#allocation14 + $0xe0] sm:$0xf]  ;;  %v7147_v11 = vor.u32 %v5858_v9, %v5336_v7  ;;  %v5853_v16 = vld [vmem:[#allocation14 + $0xe4] sm:$0xf]  ;;  %2006 = vmatpush.bf16.msra.mxu1 %v7140_v32  ;;  %2019 = vmatpush.bf16.msra.mxu2 %v7142_v29 }
 0x1d3   :  { %8475 = vst [vmem:[#allocation134_spill] sm:$0xff] %v7130_v35  ;;  %1993 = vmatpush.bf16.msra.mxu0 %v7138_v15  ;;  %v7151_v61 = vor.u32 %v5855_v42, %v5566_v33  ;;  %v7155_v63 = vor.u32 %v5853_v16, %v5568_v14  ;;  %v5576_v9 = vld [vmem:[#allocation14 + $0xf8] sm:$0xf0]  ;;  %v5550_v7 = vld [vmem:[#allocation14 + $0xc0] sm:$0xf] }
 0x1d4   :  { %8476 = vst [vmem:[#allocation135_spill] sm:$0xff] %v7135_v2  ;;  %2032 = vmatpush.bf16.msrb.mxu3 %v7147_v11  ;;  %v5854_v2 = vld [vmem:[#allocation14 + $0xec] sm:$0xf]  ;;  %v1376_v17 = vpop.f32.mrf.mxu2  ;;  %v5552_v35 = vld [vmem:[#allocation14 + $0xd0] sm:$0xf0] }
 0x1d5   :  { %8477 = vst [vmem:[#allocation136_spill] sm:$0xff] %v7138_v15  ;;  %v5323_v15 = vmul.f32 -1.442695, %v1757_v54  ;;  %v7160_v33 = vadd.f32 %v1376_v17, %v7026_v44  ;;  %v7162_v42 = vor.u32 %v5854_v2, %v5576_v9  ;;  %v5850_v54 = vld [vmem:[#allocation14 + $0xcc] sm:$0xf]  ;;  %v7175_v17 = vor.u32 %v5852_v20, %v5558_v39 }
 0x1d6   :  { %8478 = vst [vmem:[#allocation137_spill] sm:$0xff] %v7140_v32  ;;  %v5851_v32 = vld [vmem:[#allocation14 + $0xcc] sm:$0xf0]  ;;  %2215 = vmatpush.bf16.msrb.mxu1 %v7155_v63  ;;  %2228 = vmatpush.bf16.msrb.mxu2 %v7157_v53  ;;  %v5560_v2 = vld [vmem:[#allocation14 + $0xd8] sm:$0xf0] }
 0x1d7   :  { %8479 = vst [vmem:[#allocation138_spill] sm:$0xff] %v7142_v29  ;;  %2202 = vmatpush.bf16.msrb.mxu0 %v7151_v61  ;;  %v5849_v29 = vld [vmem:[#allocation14 + $0xc4] sm:$0xf]  ;;  %v7168_v16 = vor.u32 %v5851_v32, %v5550_v7  ;;  %v5534_v9 = vld [vmem:[#allocation14 + $0xa0] sm:$0xf]  ;;  %5931 = vpow2.f32 %v5323_v15 }
 0x1d8   :  { %8480 = vst [vmem:[#allocation139_spill] sm:$0xff] %v7147_v11  ;;  %v7164_v11 = vpop.f32.mrf.mxu1  ;;  %v7170_v14 = vor.u32 %v5849_v29, %v5552_v35  ;;  %2241 = vmatpush.bf16.msra.mxu3 %v7162_v42  ;;  %v5845_v35 = vld [vmem:[#allocation14 + $0xa4] sm:$0xf]  ;;  %v5536_v29 = vld [vmem:[#allocation14 + $0xb0] sm:$0xf0] }
 0x1d9   :  { %8481 = vst [vmem:[#allocation140_spill] sm:$0xff] %v7151_v61  ;;  %v7172_v61 = vpop.eup %5929  ;;  %v5542_v7 = vld [vmem:[#allocation14 + $0xa8] sm:$0xf]  ;;  %v5848_v44 = vld [vmem:[#allocation14 + $0xb4] sm:$0xf0]  ;;  %v7186_v39 = vor.u32 %v5845_v35, %v5536_v29 }
 0x1da   :  { %8482 = vst [vmem:[#allocation141_spill] sm:$0xff] %v7155_v63  ;;  %v5544_v63 = vld [vmem:[#allocation14 + $0xb8] sm:$0xf0]  ;;  %2216 = vmatpush.bf16.msrb.mxu1 %v7170_v14  ;;  %2229 = vmatpush.bf16.msrb.mxu2 %v7175_v17  ;;  %v7188_v20 = vor.u32 %v5848_v44, %v5542_v7  ;;  %v5844_v35 = vld [vmem:[#allocation14 + $0x94] sm:$0xf0]  ;;  %vm1768_vm1 = vweird.f32 %v7172_v61 }
 0x1db   :  { %8483 = vst [vmem:[#allocation142_spill] sm:$0xff] %v7157_v53  ;;  %2203 = vmatpush.bf16.msrb.mxu0 %v7168_v16  ;;  %v5846_v53 = vld [vmem:[#allocation14 + $0xac] sm:$0xf]  ;;  %v5502_v15 = vld [vmem:[#allocation14 + $0x60] sm:$0xf]  ;;  %vm7246_vm3 = vmor %vm1767_vm2, %vm1768_vm1 }
 0x1dc   :  { %8484 = vst [vmem:[#allocation143_spill] sm:$0xff] %v7160_v33  ;;  %v7178_v33 = vor.u32 %v5850_v54, %v5560_v2  ;;  %v5518_v54 = vld [vmem:[#allocation14 + $0x80] sm:$0xf]  ;;  %v5843_v2 = vld [vmem:[#allocation14 + $0x8c] sm:$0xf0] }
 0x1dd   :  { %8485 = vst [vmem:[#allocation144_spill] sm:$0xff] %v7162_v42  ;;  %v1763_v42 = vmul.f32 %v7172_v61, %v7127_v40  ;;  %v5842_v29 = vld [vmem:[#allocation14 + $0x8c] sm:$0xf] }
 0x1de   :  { %8486 = vst [vmem:[#allocation145_spill] sm:$0xff] %v7164_v11  ;;  %v5847_v11 = vld [vmem:[#allocation14 + $0xac] sm:$0xf0]  ;;  %2242 = vmatpush.bf16.msra.mxu3 %v7178_v33  ;;  %2217 = vmatpush.bf16.msrb.mxu1 %v7186_v39 }
 0x1df   :  { %8487 = vst [vmem:[#allocation146_spill] sm:$0xff] %v7168_v16  ;;  %v7180_v32 = vor.u32 %v5847_v11, %v5534_v9  ;;  %v7191_v11 = vor.u32 %v5846_v53, %v5544_v63  ;;  %v7193_v9 = vpop.f32.mrf.mxu2  ;;  %v7196_v16 = vor.u32 %v5843_v2, %v5518_v54  ;;  %v1764_v44 = vsub.f32 1.0, %v1763_v42  ;;  %2230 = vmatpush.bf16.msrb.mxu2 %v7188_v20 }
 0x1e0   :  { %8488 = vst [vmem:[#allocation147_spill] sm:$0xff] %v7170_v14  ;;  %v5520_v14 = vld [vmem:[#allocation14 + $0x90] sm:$0xf0]  ;;  %v1724_v7 = vpop.f32.mrf.mxu1 }
 0x1e1   :  { %8489 = vst [vmem:[#allocation148_spill] sm:$0xff] %v7175_v17  ;;  %2204 = vmatpush.bf16.msrb.mxu0 %v7180_v32  ;;  %v5526_v17 = vld [vmem:[#allocation14 + $0x88] sm:$0xf]  ;;  %v7200_v63 = vor.u32 %v5841_v3, %v5520_v14  ;;  %v1755_v54 = vadd.f32 %v1724_v7, %v6803_v50  ;;  %v5840_v3 = vld [vmem:[#allocation14 + $0x74] sm:$0xf0]  ;;  %v1765_v55 = vmul.f32 %v7172_v61, %v1764_v44 }
 0x1e2   :  { %8490 = vst [vmem:[#allocation149_spill] sm:$0xff] %v7178_v33  ;;  %v7202_v53 = vor.u32 %v5844_v35, %v5526_v17  ;;  %2243 = vmatpush.bf16.msra.mxu3 %v7191_v11  ;;  %v5837_v33 = vld [vmem:[#allocation14 + $0x64] sm:$0xf]  ;;  %v5838_v17 = vld [vmem:[#allocation14 + $0x6c] sm:$0xf] }
 0x1e3   :  { %8491 = vst [vmem:[#allocation150_spill] sm:$0xff] %v7180_v32  ;;  %v5839_v32 = vld [vmem:[#allocation14 + $0x6c] sm:$0xf0]  ;;  %v5322_v14 = vmul.f32 -1.442695, %v1755_v54  ;;  %2218 = vmatpush.bf16.msrb.mxu1 %v7200_v63 }
 0x1e4   :  { %8492 = vst [vmem:[#allocation151_spill] sm:$0xff] %v7186_v39  ;;  %v7209_v42 = vor.u32 %v5839_v32, %v5502_v15  ;;  %v5504_v39 = vld [vmem:[#allocation14 + $0x70] sm:$0xf0]  ;;  %v5512_v35 = vld [vmem:[#allocation14 + $0x78] sm:$0xf0]  ;;  %2231 = vmatpush.bf16.msrb.mxu2 %v7202_v53  ;;  %v5932_v32 = vpop.eup %5931 }
 0x1e5   :  { %8493 = vst [vmem:[#allocation152_spill] sm:$0xff] %v7188_v20  ;;  %2205 = vmatpush.bf16.msrb.mxu0 %v7196_v16  ;;  %v5510_v20 = vld [vmem:[#allocation14 + $0x68] sm:$0xf]  ;;  %v1771_v50 = vand.u32 2147483647, %v7127_v40  ;;  %5933 = vpow2.f32 %v5322_v14  ;;  %v7220_v7 = vor.u32 %v5838_v17, %v5512_v35  ;;  %v7228_v17 = vadd.f32 1.0, %v5932_v32 }
 0x1e6   :  { %8494 = vst [vmem:[#allocation153_spill] sm:$0xff] %v7191_v11  ;;  %v5486_v54 = vld [vmem:[#allocation14 + $0x40] sm:$0xf]  ;;  %v5835_v15 = vld [vmem:[#allocation14 + $0x4c] sm:$0xf0]  ;;  %v1766_v35 = vadd.f32 %v7172_v61, %v1765_v55 }
 0x1e7   :  { %8495 = vst [vmem:[#allocation154_spill] sm:$0xff] %v7193_v9  ;;  %v5528_v9 = vld [vmem:[#allocation14 + $0x98] sm:$0xf0]  ;;  %v1737_v44 = vpop.f32.mrf.mxu2  ;;  %v7223_v11 = vor.u32 %v5835_v15, %v5486_v54  ;;  %v5829_v32 = vld [vmem:[#allocation14 + $0x24] sm:$0xf]  ;;  %vm1772_vm4 = vcmp.eq.f32.partialorder %v1771_v50, 8.507059e+37  ;;  %vm1806_vm10 = vweird.f32 %v7228_v17 }
 0x1e8   :  { %8496 = vst [vmem:[#allocation155_spill] sm:$0xff] %v7196_v16  ;;  %v7206_v2 = vor.u32 %v5842_v29, %v5528_v9  ;;  %v7215_v9 = vor.u32 %v5837_v33, %v5504_v39  ;;  %v7217_v29 = vor.u32 %v5840_v3, %v5510_v20  ;;  %v5833_v16 = vld [vmem:[#allocation14 + $0x44] sm:$0xf]  ;;  %v5836_v33 = vld [vmem:[#allocation14 + $0x54] sm:$0xf0]  ;;  %v1756_v39 = vadd.f32 %v1737_v44, %v6835_v28 }
 0x1e9   :  { %8497 = vst [vmem:[#allocation156_spill] sm:$0xff] %v7200_v63  ;;  %2206 = vmatpush.bf16.msrb.mxu0 %v7209_v42  ;;  %v5488_v63 = vld [vmem:[#allocation14 + $0x50] sm:$0xf0]  ;;  %v1773_v20 = vand.u32 2147483648, %v7127_v40  ;;  %v5834_v3 = vld [vmem:[#allocation14 + $0x4c] sm:$0xf]  ;;  %v1770_v40 = vsel %vm7246_vm3, %v7172_v61, %v1766_v35 }
 0x1ea   :  { %8498 = vst [vmem:[#allocation157_spill] sm:$0xff] %v7202_v53  ;;  %2244 = vmatpush.bf16.msra.mxu3 %v7206_v2  ;;  %v5494_v53 = vld [vmem:[#allocation14 + $0x48] sm:$0xf]  ;;  %v5496_v14 = vld [vmem:[#allocation14 + $0x58] sm:$0xf0]  ;;  %2219 = vmatpush.bf16.msrb.mxu1 %v7215_v9  ;;  %v7233_v54 = vor.u32 %v5833_v16, %v5488_v63  ;;  %5935 = vtanh.f32 %v1756_v39 }
 0x1eb   :  { %8499 = vst [vmem:[#allocation158_spill] sm:$0xff] %v7206_v2  ;;  %v1726_v2 = vpop.f32.mrf.mxu1  ;;  %2232 = vmatpush.bf16.msrb.mxu2 %v7217_v29  ;;  %v7235_v15 = vor.u32 %v5836_v33, %v5494_v53  ;;  %v7238_v28 = vor.u32 %v5834_v3, %v5496_v14  ;;  %v5470_v44 = vld [vmem:[#allocation14 + $0x20] sm:$0xf]  ;;  %v5832_v16 = vld [vmem:[#allocation14 + $0x34] sm:$0xf0]  ;;  %v5934_v63 = vpop.eup %5933  ;;  %v1774_v33 = vor.u32 1.1754944e-38, %v1773_v20  ;;  %5937 = vrcp.f32 %v7228_v17 }
 0x1ec   :  { %8500 = vst [vmem:[#allocation159_spill] sm:$0xff] %v7209_v42  ;;  %v5831_v42 = vld [vmem:[#allocation14 + $0x2c] sm:$0xf0]  ;;  %v5472_v2 = vld [vmem:[#allocation14 + $0x30] sm:$0xf0]  ;;  %v1780_v14 = vadd.f32 1.0, %v5934_v63 }
 0x1ed   :  { %8501 = vst [vmem:[#allocation160_spill] sm:$0xff] %v7215_v9  ;;  %2207 = vmatpush.bf16.msrb.mxu0 %v7223_v11  ;;  %v7242_v55 = vor.u32 %v5831_v42, %v5470_v44  ;;  %v5830_v39 = vld [vmem:[#allocation14 + $0x2c] sm:$0xf]  ;;  %v5480_v3 = vld [vmem:[#allocation14 + $0x38] sm:$0xf0]  ;;  %v7255_v42 = vor.u32 %v5829_v32, %v5472_v2  ;;  %v1775_v32 = vsel %vm1772_vm4, %v1774_v33, %v1770_v40 }
 0x1ee   :  { %8502 = vst [vmem:[#allocation161_spill] sm:$0xff] %v7217_v29  ;;  %2245 = vmatpush.bf16.msra.mxu3 %v7220_v7  ;;  %v5478_v29 = vld [vmem:[#allocation14 + $0x28] sm:$0xf]  ;;  %2220 = vmatpush.bf16.msrb.mxu1 %v7233_v54  ;;  %v7261_v20 = vor.u32 %v5830_v39, %v5480_v3  ;;  %v5827_v63 = vld [vmem:[#allocation14 + $0xc] sm:$0xf0]  ;;  %5939 = vrcp.f32 %v1780_v14  ;;  %vm1786_vm6 = vweird.f32 %v1780_v14 }
 0x1ef   :  { %8503 = vst [vmem:[#allocation162_spill] sm:$0xff] %v7220_v7  ;;  %2233 = vmatpush.bf16.msrb.mxu2 %v7235_v15  ;;  %v7257_v44 = vor.u32 %v5832_v16, %v5478_v29  ;;  %v5825_v7 = vld [vmem:[#allocation14 + $0x4] sm:$0xf]  ;;  %v1739_v61 = vpop.f32.mrf.mxu2  ;;  %v5456_v35 = vld [vmem:[#allocation14 + $0x10] sm:$0xf0] }
 0x1f0   :  { %8504 = vst [vmem:[#allocation163_spill] sm:$0xff] %v7223_v11  ;;  %v5454_v11 = vld [vmem:[#allocation14] sm:$0xf]  ;;  %v5936_v53 = vpop.eup %5935  ;;  %v5462_v29 = vld [vmem:[#allocation14 + $0x8] sm:$0xf]  ;;  %v7268_v39 = vor.u32 %v5825_v7, %v5456_v35  ;;  %v1792_v35 = vand.u32 2147483648, %v1780_v14 }
 0x1f1   :  { %8505 = vst [vmem:[#allocation164_spill] sm:$0xff] %v7233_v54  ;;  %2208 = vmatpush.bf16.msrb.mxu0 %v7242_v55  ;;  %v7264_v2 = vor.u32 %v5827_v63, %v5454_v11  ;;  %v5828_v16 = vld [vmem:[#allocation14 + $0x14] sm:$0xf0]  ;;  %v1817_v54 = vmul.f32 %v5936_v53, %v1775_v32  ;;  %v5464_v50 = vld [vmem:[#allocation14 + $0x18] sm:$0xf0]  ;;  %v5938_v11 = vpop.eup %5937 }
 0x1f2   :  { %8506 = vst [vmem:[#allocation165_spill] sm:$0xff] %v7235_v15  ;;  %2246 = vmatpush.bf16.msra.mxu3 %v7238_v28  ;;  %v5826_v15 = vld [vmem:[#allocation14 + $0xc] sm:$0xf]  ;;  %2221 = vmatpush.bf16.msrb.mxu1 %v7255_v42  ;;  %v7270_v3 = vor.u32 %v5828_v16, %v5462_v29  ;;  %v1802_v7 = vmul.f32 %v5938_v11, %v7228_v17  ;;  %v1790_v32 = vand.u32 2147483647, %v1780_v14  ;;  %v1793_v16 = vor.u32 1.1754944e-38, %v1792_v35 }
 0x1f3   :  { %8507 = vst [vmem:[#allocation166_spill] sm:$0xff] %v7238_v28  ;;  %2234 = vmatpush.bf16.msrb.mxu2 %v7257_v44  ;;  %v7273_v61 = vor.u32 %v5826_v15, %v5464_v50  ;;  %vm1807_vm9 = vweird.f32 %v5938_v11 }
 0x1f4   :  { %8508 = vst [vmem:[#allocation167_spill] sm:$0xff] %v7242_v55  ;;  %v5940_v33 = vpop.eup %5939  ;;  %v1803_v15 = vsub.f32 1.0, %v1802_v7  ;;  %vm1791_vm8 = vcmp.eq.f32.partialorder %v1790_v32, 8.507059e+37  ;;  %vm1808_vm11 = vmor %vm1806_vm10, %vm1807_vm9  ;;  %v8525_v32 = vld [vmem:[#allocation117_spill] sm:$0xff] }
 0x1f5   :  { %8511 = vst [vmem:[#allocation168_spill] sm:$0xff] %v7255_v42  ;;  %2209 = vmatpush.bf16.msrb.mxu0 %v7264_v2  ;;  %v1782_v40 = vmul.f32 %v5940_v33, %v1780_v14  ;;  %vm1787_vm5 = vweird.f32 %v5940_v33  ;;  %v1810_v14 = vand.u32 2147483647, %v7228_v17 }
 0x1f6   :  { %8512 = vst [vmem:[#allocation169_spill] sm:$0xff] %v7257_v44  ;;  %2247 = vmatpush.bf16.msra.mxu3 %v7261_v20  ;;  %2222 = vmatpush.bf16.msrb.mxu1 %v7268_v39  ;;  %vm1788_vm7 = vmor %vm1786_vm6, %vm1787_vm5 }
 0x1f7   :  { %8513 = vst [vmem:[#allocation170_spill] sm:$0xff] %v7261_v20  ;;  %2235 = vmatpush.bf16.msrb.mxu2 %v7270_v3  ;;  %v1783_v63 = vsub.f32 1.0, %v1782_v40  ;;  %v1812_v40 = vand.u32 2147483648, %v7228_v17  ;;  %vm1811_vm12 = vcmp.eq.f32.partialorder %v1810_v14, 8.507059e+37  ;;  %v8519_v17 = vld [vmem:[#allocation108_spill] sm:$0xff]  ;;  %v8531_v14 = vld [vmem:[#allocation123_spill] sm:$0xff] }
 0x1f8   :  { %8514 = vst [vmem:[#allocation171_spill] sm:$0xff] %v7264_v2 }
 0x1f9   :  { %8515 = vst [vmem:[#allocation172_spill] sm:$0xff] %v7268_v39  ;;  %v1784_v53 = vmul.f32 %v5940_v33, %v1783_v63  ;;  %v1804_v39 = vmul.f32 %v5938_v11, %v1803_v15  ;;  %v1813_v63 = vor.u32 1.1754944e-38, %v1812_v40  ;;  %v8526_v15 = vld [vmem:[#allocation118_spill] sm:$0xff] }
 0x1fa   :  { %8516 = vst [vmem:[#allocation173_spill] sm:$0xff] %v7270_v3  ;;  %2248 = vmatpush.bf16.msra.mxu3 %v7273_v61  ;;  %v8530_v40 = vld [vmem:[#allocation122_spill] sm:$0xff] }
 0x1fb   :  { %8517 = vst [vmem:[#allocation174_spill] sm:$0xff] %v7273_v61  ;;  %v1785_v29 = vadd.f32 %v5940_v33, %v1784_v53  ;;  %v1805_v61 = vadd.f32 %v5938_v11, %v1804_v39  ;;  %v8521_v39 = vld [vmem:[#allocation110_spill] sm:$0xff] }
 0x1fd   :  { %v1789_v50 = vsel %vm1788_vm7, %v5940_v33, %v1785_v29  ;;  %v1809_v7 = vsel %vm1808_vm11, %v5938_v11, %v1805_v61  ;;  %v8523_v61 = vld [vmem:[#allocation113_spill] sm:$0xff]  ;;  %v8524_v11 = vld [vmem:[#allocation115_spill] sm:$0xff] }
 0x1fe   :  { %v1794_v2 = vsel %vm1791_vm8, %v1793_v16, %v1789_v50  ;;  %v1814_v35 = vsel %vm1811_vm12, %v1813_v63, %v1809_v7  ;;  %v8527_v29 = vld [vmem:[#allocation119_spill] sm:$0xff]  ;;  %v8528_v16 = vld [vmem:[#allocation120_spill] sm:$0xff]  ;;  %v8529_v50 = vld [vmem:[#allocation121_spill] sm:$0xff] }
 0x1ff   :  { %v1816_v3 = vmul.f32 0.0, %v1794_v2  ;;  %v8532_v7 = vld [vmem:[#allocation126_spill] sm:$0xff]  ;;  %v8533_v63 = vld [vmem:[#allocation127_spill] sm:$0xff] }
 0x201   :  { %v7280_v20 = vadd.f32 %v1817_v54, %v1816_v3  ;;  %v8520_v54 = vld [vmem:[#allocation109_spill] sm:$0xff]  ;;  %v8522_v3 = vld [vmem:[#allocation111_spill] sm:$0xff] }
 0x203   :  { %5941 = vtanh.f32 %v7280_v20 }
 0x209   :  { %v5942_v33 = vpop.eup %5941 }
 0x20a   :  { %v1820_v53 = vmul.f32 %v5942_v33, %v1814_v35  ;;  %v8534_v33 = vld [vmem:[#allocation128_spill] sm:$0xff]  ;;  %v8535_v35 = vld [vmem:[#allocation129_spill] sm:$0xff] }
 0x20c   :  { %v1825_v2 = vpack.c.bf16 %v1820_v53, %v1820_v53  ;;  %v8536_v53 = vld [vmem:[#allocation130_spill] sm:$0xff] }
 0x20e   :  { %1994 = vmatmul.bf16.vlgmr.msra.gmra.mxu0 %v1825_v2  ;;  %2007 = vmatmul.bf16.vlgmr.msra.gmra.mxu1 %v1825_v2 }
 0x20f   :  { %2020 = vmatmul.bf16.vlgmr.msra.gmra.mxu2 %v1825_v2  ;;  %2033 = vmatmul.bf16.vlgmr.msrb.gmra.mxu3 %v1825_v2 }
 0x210   :  { %2327 = vmatpush.bf16.msra.mxu0 %v6600_v47  ;;  %2340 = vmatpush.bf16.msra.mxu1 %v6734_v24 }
 0x211   :  { %2353 = vmatpush.bf16.msra.mxu2 %v6764_v56  ;;  %2366 = vmatpush.bf16.msrb.mxu3 %v6729_v45 }
 0x214   :  { %2328 = vmatpush.bf16.msra.mxu0 %v6615_v57  ;;  %2341 = vmatpush.bf16.msra.mxu1 %v6748_v48 }
 0x215   :  { %2354 = vmatpush.bf16.msra.mxu2 %v6787_v10  ;;  %2367 = vmatpush.bf16.msrb.mxu3 %v6742_v22 }
 0x218   :  { %2329 = vmatpush.bf16.msra.mxu0 %v6622_v4  ;;  %2342 = vmatpush.bf16.msra.mxu1 %v6773_v26 }
 0x219   :  { %2355 = vmatpush.bf16.msra.mxu2 %v6815_v60  ;;  %2368 = vmatpush.bf16.msrb.mxu3 %v6750_v52 }
 0x21c   :  { %2330 = vmatpush.bf16.msra.mxu0 %v6628_v12  ;;  %2343 = vmatpush.bf16.msra.mxu1 %v6789_v36 }
 0x21d   :  { %2356 = vmatpush.bf16.msra.mxu2 %v6832_v43  ;;  %2369 = vmatpush.bf16.msrb.mxu3 %v6758_v62 }
 0x21e   :  { %2210 = vmatmul.bf16.vlgmr.msrb.gmra.mxu0 %v8393_v13  ;;  %2223 = vmatmul.bf16.vlgmr.msrb.gmra.mxu1 %v8393_v13 }
 0x21f   :  { %2236 = vmatmul.bf16.vlgmr.msrb.gmra.mxu2 %v8393_v13  ;;  %2249 = vmatmul.bf16.vlgmr.msra.gmra.mxu3 %v8393_v13  ;;  %v8518_v13 = vld [vmem:[#allocation107_spill] sm:$0xff] }
 0x220   :  { %2331 = vmatpush.bf16.msra.mxu0 %v6646_v31  ;;  %2344 = vmatpush.bf16.msra.mxu1 %v6819_v41 }
 0x221   :  { %2357 = vmatpush.bf16.msra.mxu2 %v6856_v34  ;;  %2370 = vmatpush.bf16.msrb.mxu3 %v6768_v25 }
 0x224   :  { %2332 = vmatpush.bf16.msra.mxu0 %v6655_v38  ;;  %2345 = vmatpush.bf16.msra.mxu1 %v6837_v18 }
 0x225   :  { %2358 = vmatpush.bf16.msra.mxu2 %v6865_v19  ;;  %2371 = vmatpush.bf16.msrb.mxu3 %v6781_v46 }
 0x228   :  { %2333 = vmatpush.bf16.msra.mxu0 %v6662_v51  ;;  %2346 = vmatpush.bf16.msra.mxu1 %v6860_v58 }
 0x229   :  { %2359 = vmatpush.bf16.msra.mxu2 %v6878_v0  ;;  %2372 = vmatpush.bf16.msrb.mxu3 %v6791_v27 }
 0x22c   :  { %2334 = vmatpush.bf16.msra.mxu0 %v6680_v6  ;;  %2347 = vmatpush.bf16.msra.mxu1 %v6873_v49 }
 0x22d   :  { %2360 = vmatpush.bf16.msra.mxu2 %v6886_v23  ;;  %2373 = vmatpush.bf16.msrb.mxu3 %v6800_v8 }
 0x22f   :  { %2335 = vmatmul.bf16.vlgmr.msra.gmra.mxu0 %v1825_v2  ;;  %2348 = vmatmul.bf16.vlgmr.msra.gmra.mxu1 %v1825_v2 }
 0x230   :  { %2451 = vmatpush.bf16.msrb.mxu0 %v7023_v37  ;;  %2464 = vmatpush.bf16.msrb.mxu1 %v7028_v21 }
 0x231   :  { %2361 = vmatmul.bf16.vlgmr.msra.gmra.mxu2 %v1825_v2  ;;  %2374 = vmatmul.bf16.vlgmr.msrb.gmra.mxu3 %v1825_v2  ;;  %v8537_v2 = vld [vmem:[#allocation132_spill] sm:$0xff] }
 0x232   :  { %2477 = vmatpush.bf16.msrb.mxu2 %v7030_v59  ;;  %2490 = vmatpush.bf16.msra.mxu3 %v7033_v1 }
 0x234   :  { %2452 = vmatpush.bf16.msrb.mxu0 %v7046_v30  ;;  %2465 = vmatpush.bf16.msrb.mxu1 %v7048_v5 }
 0x236   :  { %2478 = vmatpush.bf16.msrb.mxu2 %v8518_v13  ;;  %2491 = vmatpush.bf16.msra.mxu3 %v8519_v17  ;;  %v8576_v17 = vld [vmem:[#allocation78_spill] sm:$0xff] }
 0x238   :  { %2453 = vmatpush.bf16.msrb.mxu0 %v8520_v54  ;;  %2466 = vmatpush.bf16.msrb.mxu1 %v8521_v39  ;;  %v8575_v54 = vld [vmem:[#allocation83_spill] sm:$0xff] }
 0x23a   :  { %2479 = vmatpush.bf16.msrb.mxu2 %v8522_v3  ;;  %2492 = vmatpush.bf16.msra.mxu3 %v8523_v61 }
 0x23c   :  { %2454 = vmatpush.bf16.msrb.mxu0 %v8524_v11  ;;  %2467 = vmatpush.bf16.msrb.mxu1 %v8525_v32 }
 0x23e   :  { %2480 = vmatpush.bf16.msrb.mxu2 %v8526_v15  ;;  %2493 = vmatpush.bf16.msra.mxu3 %v8527_v29  ;;  %v8538_v29 = vld [vmem:[#allocation133_spill] sm:$0xff] }
 0x240   :  { %2455 = vmatpush.bf16.msrb.mxu0 %v8528_v16  ;;  %2468 = vmatpush.bf16.msrb.mxu1 %v8529_v50  ;;  %v8539_v16 = vld [vmem:[#allocation134_spill] sm:$0xff]  ;;  %v8540_v50 = vld [vmem:[#allocation136_spill] sm:$0xff] }
 0x242   :  { %2481 = vmatpush.bf16.msrb.mxu2 %v8530_v40  ;;  %2494 = vmatpush.bf16.msra.mxu3 %v8531_v14  ;;  %v8541_v40 = vld [vmem:[#allocation137_spill] sm:$0xff]  ;;  %v8542_v14 = vld [vmem:[#allocation140_spill] sm:$0xff] }
 0x244   :  { %2456 = vmatpush.bf16.msrb.mxu0 %v8532_v7  ;;  %2469 = vmatpush.bf16.msrb.mxu1 %v8533_v63  ;;  %v8543_v7 = vld [vmem:[#allocation141_spill] sm:$0xff]  ;;  %v8544_v63 = vld [vmem:[#allocation138_spill] sm:$0xff] }
 0x246   :  { %2482 = vmatpush.bf16.msrb.mxu2 %v8534_v33  ;;  %2495 = vmatpush.bf16.msra.mxu3 %v8535_v35  ;;  %v8545_v33 = vld [vmem:[#allocation139_spill] sm:$0xff]  ;;  %v8546_v35 = vld [vmem:[#allocation142_spill] sm:$0xff] }
 0x248   :  { %2457 = vmatpush.bf16.msrb.mxu0 %v8536_v53  ;;  %2470 = vmatpush.bf16.msrb.mxu1 %v8537_v2  ;;  %v8547_v53 = vld [vmem:[#allocation144_spill] sm:$0xff]  ;;  %v8548_v2 = vld [vmem:[#allocation146_spill] sm:$0xff] }
 0x24a   :  { %2483 = vmatpush.bf16.msrb.mxu2 %v8538_v29  ;;  %2496 = vmatpush.bf16.msra.mxu3 %v8539_v16  ;;  %v8549_v29 = vld [vmem:[#allocation147_spill] sm:$0xff]  ;;  %v8550_v16 = vld [vmem:[#allocation148_spill] sm:$0xff] }
 0x24c   :  { %2458 = vmatpush.bf16.msrb.mxu0 %v8540_v50  ;;  %2471 = vmatpush.bf16.msrb.mxu1 %v8541_v40  ;;  %v8551_v50 = vld [vmem:[#allocation149_spill] sm:$0xff]  ;;  %v8552_v40 = vld [vmem:[#allocation150_spill] sm:$0xff] }
 0x24e   :  { %2484 = vmatpush.bf16.msrb.mxu2 %v8544_v63  ;;  %2497 = vmatpush.bf16.msra.mxu3 %v8545_v33  ;;  %v8555_v63 = vld [vmem:[#allocation153_spill] sm:$0xff]  ;;  %v8556_v33 = vld [vmem:[#allocation155_spill] sm:$0xff] }
 0x250   :  { %2507 = vmatpush.bf16.msra.mxu0 %v8542_v14  ;;  %2520 = vmatpush.bf16.msra.mxu1 %v8543_v7  ;;  %v8553_v14 = vld [vmem:[#allocation151_spill] sm:$0xff]  ;;  %v8554_v7 = vld [vmem:[#allocation152_spill] sm:$0xff] }
 0x252   :  { %2533 = vmatpush.bf16.msra.mxu2 %v8546_v35  ;;  %2546 = vmatpush.bf16.msrb.mxu3 %v8547_v53  ;;  %v8557_v35 = vld [vmem:[#allocation156_spill] sm:$0xff]  ;;  %v8558_v53 = vld [vmem:[#allocation157_spill] sm:$0xff] }
 0x254   :  { %2508 = vmatpush.bf16.msra.mxu0 %v8548_v2  ;;  %2521 = vmatpush.bf16.msra.mxu1 %v8549_v29  ;;  %v8559_v2 = vld [vmem:[#allocation158_spill] sm:$0xff]  ;;  %v8560_v29 = vld [vmem:[#allocation159_spill] sm:$0xff] }
 0x256   :  { %2534 = vmatpush.bf16.msra.mxu2 %v8550_v16  ;;  %2547 = vmatpush.bf16.msrb.mxu3 %v8551_v50  ;;  %v8561_v50 = vld [vmem:[#allocation161_spill] sm:$0xff] }
 0x257   :  { %v8574_v16 = vld [vmem:[#allocation89_spill] sm:$0xff] }
 0x258   :  { %2509 = vmatpush.bf16.msra.mxu0 %v8552_v40  ;;  %2522 = vmatpush.bf16.msra.mxu1 %v8553_v14  ;;  %v8562_v40 = vld [vmem:[#allocation162_spill] sm:$0xff]  ;;  %v8563_v14 = vld [vmem:[#allocation163_spill] sm:$0xff] }
 0x25a   :  { %2535 = vmatpush.bf16.msra.mxu2 %v8554_v7  ;;  %2548 = vmatpush.bf16.msrb.mxu3 %v8555_v63  ;;  %v8564_v7 = vld [vmem:[#allocation164_spill] sm:$0xff]  ;;  %v8565_v63 = vld [vmem:[#allocation165_spill] sm:$0xff] }
 0x25c   :  { %2510 = vmatpush.bf16.msra.mxu0 %v8556_v33  ;;  %2523 = vmatpush.bf16.msra.mxu1 %v8557_v35  ;;  %v8571_v35 = vld [vmem:[#allocation58_spill] sm:$0xff] }
 0x25e   :  { %2536 = vmatpush.bf16.msra.mxu2 %v8558_v53  ;;  %2549 = vmatpush.bf16.msrb.mxu3 %v8559_v2 }
 0x260   :  { %2511 = vmatpush.bf16.msra.mxu0 %v8560_v29  ;;  %2524 = vmatpush.bf16.msra.mxu1 %v7215_v9  ;;  %v8566_v29 = vld [vmem:[#allocation170_spill] sm:$0xff]  ;;  %v8567_v9 = vld [vmem:[#allocation171_spill] sm:$0xff] }
 0x262   :  { %2537 = vmatpush.bf16.msra.mxu2 %v8561_v50  ;;  %2550 = vmatpush.bf16.msrb.mxu3 %v8562_v40  ;;  %v8568_v50 = vld [vmem:[#allocation172_spill] sm:$0xff]  ;;  %v8569_v40 = vld [vmem:[#allocation173_spill] sm:$0xff] }
 0x264   :  { %2512 = vmatpush.bf16.msra.mxu0 %v8563_v14  ;;  %2525 = vmatpush.bf16.msra.mxu1 %v8564_v7  ;;  %v8570_v14 = vld [vmem:[#allocation174_spill] sm:$0xff] }
 0x266   :  { %2538 = vmatpush.bf16.msra.mxu2 %v8565_v63  ;;  %2551 = vmatpush.bf16.msrb.mxu3 %v7238_v28 }
 0x268   :  { %2513 = vmatpush.bf16.msra.mxu0 %v7242_v55  ;;  %2526 = vmatpush.bf16.msra.mxu1 %v7255_v42  ;;  %v8572_v42 = vld [vmem:[#allocation52_spill] sm:$0xff] }
 0x269   :  { %v1304_v33 = vadd.f32 %v8572_v42, %v8571_v35 }
 0x26a   :  { %2539 = vmatpush.bf16.msra.mxu2 %v7257_v44  ;;  %2552 = vmatpush.bf16.msrb.mxu3 %v8566_v29  ;;  %v8573_v44 = vld [vmem:[#allocation94_spill] sm:$0xff] }
 0x26b   :  { %v1333_v29 = vadd.f32 %v8574_v16, %v8573_v44 }
 0x26c   :  { %2514 = vmatpush.bf16.msra.mxu0 %v8567_v9  ;;  %2527 = vmatpush.bf16.msra.mxu1 %v8568_v50 }
 0x26e   :  { %2540 = vmatpush.bf16.msra.mxu2 %v8569_v40  ;;  %2553 = vmatpush.bf16.msrb.mxu3 %v8570_v14 }
 0x28b   :  { %v1995_v7 = vpop.f32.mrf.mxu0  ;;  %v2008_v63 = vpop.f32.mrf.mxu1 }
 0x28c   :  { %v2038_v15 = vadd.f32 %v1995_v7, %v1304_v33  ;;  %v2039_v9 = vadd.f32 %v2008_v63, %v1333_v29 }
 0x292   :  { %v2021_v2 = vpop.f32.mrf.mxu2  ;;  %v2034_v28 = vpop.f32.mrf.mxu3 }
 0x293   :  { %v1997_v53 = vpop.f32.mrf.mxu0  ;;  %v2010_v55 = vpop.f32.mrf.mxu1 }
 0x294   :  { %v1391_v53 = vadd.f32 %v8576_v17, %v8575_v54 }
 0x296   :  { %v2041_v55 = vadd.f32 %v2034_v28, %v1391_v53 }
 0x29a   :  { %v2023_v32 = vpop.f32.mrf.mxu2  ;;  %v2036_v50 = vpop.f32.mrf.mxu3 }
 0x29b   :  { %v2211_v11 = vpop.f32.mrf.mxu0  ;;  %v2224_v40 = vpop.f32.mrf.mxu1 }
 0x29c   :  { %v2254_v61 = vadd.f32 %v2211_v11, %v2038_v15  ;;  %v2255_v14 = vadd.f32 %v2224_v40, %v2039_v9  ;;  %v8577_v9 = vld [vmem:[#allocation98_spill] sm:$0xff]  ;;  %v8580_v40 = vld [vmem:[#allocation68_spill] sm:$0xff] }
 0x29e   :  { %v5580_v3 = vmul.f32 -1.442695, %v2254_v61  ;;  %v5581_v39 = vmul.f32 -1.442695, %v2255_v14  ;;  %v8578_v61 = vld [vmem:[#allocation90_spill] sm:$0xff] }
 0x29f   :  { %v1362_v15 = vadd.f32 %v8578_v61, %v8577_v9 }
 0x2a0   :  { %5943 = vpow2.f32 %v5580_v3 }
 0x2a1   :  { %5945 = vpow2.f32 %v5581_v39  ;;  %v2040_v28 = vadd.f32 %v2021_v2, %v1362_v15  ;;  %v8579_v39 = vld [vmem:[#allocation66_spill] sm:$0xff] }
 0x2a2   :  { %v2237_v42 = vpop.f32.mrf.mxu2  ;;  %v2250_v35 = vpop.f32.mrf.mxu3  ;;  %v1088_v14 = vadd.f32 %v8580_v40, %v8579_v39 }
 0x2a3   :  { %v2257_v13 = vadd.f32 %v2250_v35, %v2041_v55  ;;  %v2213_v16 = vpop.f32.mrf.mxu0  ;;  %v2226_v7 = vpop.f32.mrf.mxu1  ;;  %v8581_v55 = vld [vmem:[#allocation26_spill] sm:$0xff] }
 0x2a4   :  { %v8582_v7 = vld [vmem:[#allocation41_spill] sm:$0xff] }
 0x2a5   :  { %v5582_v29 = vmul.f32 -1.442695, %v2257_v13  ;;  %v2256_v13 = vadd.f32 %v2237_v42, %v2040_v28  ;;  %v8584_v42 = vld [vmem:[#allocation57_spill] sm:$0xff] }
 0x2a6   :  { %v5944_v32 = vpop.eup %5943 }
 0x2a7   :  { %v5946_v50 = vpop.eup %5945  ;;  %v2261_v63 = vadd.f32 1.0, %v5944_v32  ;;  %5947 = vpow2.f32 %v5582_v29  ;;  %v8583_v32 = vld [vmem:[#allocation70_spill] sm:$0xff] }
 0x2a8   :  { %v2280_v11 = vadd.f32 1.0, %v5946_v50  ;;  %v1117_v50 = vadd.f32 %v8583_v32, %v1088_v14 }
 0x2a9   :  { %5949 = vrcp.f32 %v2261_v63  ;;  %v2271_v39 = vand.u32 2147483647, %v2261_v63  ;;  %vm2267_vm0 = vweird.f32 %v2261_v63 }
 0x2aa   :  { %5951 = vrcp.f32 %v2280_v11  ;;  %v2239_v17 = vpop.f32.mrf.mxu2  ;;  %v2252_v3 = vpop.f32.mrf.mxu3  ;;  %v1146_v28 = vadd.f32 %v8584_v42, %v1117_v50  ;;  %vm2286_vm15 = vweird.f32 %v2280_v11 }
 0x2ab   :  { %vm2272_vm2 = vcmp.eq.f32.partialorder %v2271_v39, 8.507059e+37 }
 0x2ac   :  { %v2336_v33 = vpop.f32.mrf.mxu0  ;;  %v2349_v35 = vpop.f32.mrf.mxu1 }
 0x2ad   :  { %v5948_v53 = vpop.eup %5947  ;;  %v2379_v16 = vadd.f32 %v2336_v33, %v8581_v55  ;;  %v2380_v29 = vadd.f32 %v2349_v35, %v8582_v7  ;;  %v2292_v35 = vand.u32 2147483648, %v2280_v11  ;;  %v2273_v55 = vand.u32 2147483648, %v2261_v63 }
 0x2ae   :  { %v7399_v54 = vadd.f32 1.0, %v5948_v53 }
 0x2af   :  { %v5950_v61 = vpop.eup %5949  ;;  %v5583_v9 = vmul.f32 -1.442695, %v2379_v16  ;;  %v5584_v17 = vmul.f32 -1.442695, %v2380_v29  ;;  %v2290_v16 = vand.u32 2147483647, %v2280_v11 }
 0x2b0   :  { %v5952_v3 = vpop.eup %5951  ;;  %v2263_v2 = vmul.f32 %v5950_v61, %v2261_v63  ;;  %5953 = vrcp.f32 %v7399_v54  ;;  %vm2268_vm13 = vweird.f32 %v5950_v61  ;;  %v2293_v30 = vor.u32 1.1754944e-38, %v2292_v35 }
 0x2b1   :  { %v2282_v15 = vmul.f32 %v5952_v3, %v2280_v11  ;;  %5955 = vtanh.f32 %v2256_v13  ;;  %vm2287_vm14 = vweird.f32 %v5952_v3  ;;  %vm2269_vm1 = vmor %vm2267_vm0, %vm2268_vm13  ;;  %vm2291_vm4 = vcmp.eq.f32.partialorder %v2290_v16, 8.507059e+37  ;;  %v8585_v16 = vld [vmem:[#allocation44_spill] sm:$0xff] }
 0x2b2   :  { %v2264_v40 = vsub.f32 1.0, %v2263_v2  ;;  %5957 = vpow2.f32 %v5583_v9  ;;  %vm2288_vm3 = vmor %vm2286_vm15, %vm2287_vm14  ;;  %vm2306_vm6 = vweird.f32 %v7399_v54 }
 0x2b3   :  { %v2283_v33 = vsub.f32 1.0, %v2282_v15  ;;  %5959 = vpow2.f32 %v5584_v17  ;;  %v2274_v15 = vor.u32 1.1754944e-38, %v2273_v55 }
 0x2b4   :  { %v2362_v14 = vpop.f32.mrf.mxu2  ;;  %v2375_v53 = vpop.f32.mrf.mxu3  ;;  %v2265_v7 = vmul.f32 %v5950_v61, %v2264_v40 }
 0x2b5   :  { %v2382_v29 = vadd.f32 %v2375_v53, %v1146_v28  ;;  %v2338_v32 = vpop.f32.mrf.mxu0  ;;  %v2351_v44 = vpop.f32.mrf.mxu1  ;;  %v2284_v5 = vmul.f32 %v5952_v3, %v2283_v33 }
 0x2b6   :  { %v5954_v13 = vpop.eup %5953  ;;  %v2266_v2 = vadd.f32 %v5950_v61, %v2265_v7 }
 0x2b7   :  { %v5585_v9 = vmul.f32 -1.442695, %v2382_v29  ;;  %v5956_v50 = vpop.eup %5955  ;;  %v2285_v17 = vadd.f32 %v5952_v3, %v2284_v5  ;;  %v2302_v42 = vmul.f32 %v5954_v13, %v7399_v54  ;;  %vm2307_vm5 = vweird.f32 %v5954_v13 }
 0x2b8   :  { %v5958_v40 = vpop.eup %5957  ;;  %v2270_v1 = vsel %vm2269_vm1, %v5950_v61, %v2266_v2  ;;  %v8586_v2 = vld [vmem:[#allocation33_spill] sm:$0xff]  ;;  %vm2308_vm7 = vmor %vm2306_vm6, %vm2307_vm5 }
 0x2b9   :  { %5961 = vpow2.f32 %v5585_v9  ;;  %v5960_v44 = vpop.eup %5959  ;;  %v2275_v28 = vsel %vm2272_vm2, %v2274_v15, %v2270_v1  ;;  %v2289_v11 = vsel %vm2288_vm3, %v5952_v3, %v2285_v17  ;;  %v2303_v33 = vsub.f32 1.0, %v2302_v42 }
 0x2ba   :  { %v2386_v63 = vadd.f32 1.0, %v5958_v40  ;;  %v2294_v53 = vsel %vm2291_vm4, %v2293_v30, %v2289_v11  ;;  %v2317_v7 = vmul.f32 %v5956_v50, %v2275_v28  ;;  %v2405_v29 = vadd.f32 1.0, %v5960_v44 }
 0x2bb   :  { %v2316_v39 = vmul.f32 0.0, %v2294_v53  ;;  %v2304_v55 = vmul.f32 %v5954_v13, %v2303_v33  ;;  %v1059_v9 = vadd.f32 %v8586_v2, %v8585_v16  ;;  %v2312_v30 = vand.u32 2147483648, %v7399_v54 }
 0x2bc   :  { %5963 = vrcp.f32 %v2386_v63  ;;  %v2364_v5 = vpop.f32.mrf.mxu2  ;;  %v2377_v32 = vpop.f32.mrf.mxu3  ;;  %v2310_v50 = vand.u32 2147483647, %v7399_v54  ;;  %v2396_v54 = vand.u32 2147483647, %v2386_v63  ;;  %v2415_v2 = vand.u32 2147483647, %v2405_v29 }
 0x2bd   :  { %5965 = vrcp.f32 %v2405_v29  ;;  %v7405_v35 = vadd.f32 %v2317_v7, %v2316_v39  ;;  %v2305_v1 = vadd.f32 %v5954_v13, %v2304_v55  ;;  %v2381_v15 = vadd.f32 %v2362_v14, %v1059_v9 }
 0x2be   :  { %v2313_v28 = vor.u32 1.1754944e-38, %v2312_v30  ;;  %vm2311_vm8 = vcmp.eq.f32.partialorder %v2310_v50, 8.507059e+37  ;;  %v2417_v39 = vand.u32 2147483648, %v2405_v29  ;;  %v2398_v55 = vand.u32 2147483648, %v2386_v63 }
 0x2bf   :  { %v5962_v61 = vpop.eup %5961  ;;  %5967 = vtanh.f32 %v7405_v35  ;;  %v2309_v44 = vsel %vm2308_vm7, %v5954_v13, %v2305_v1  ;;  %vm2392_vm11 = vweird.f32 %v2386_v63  ;;  %vm2411_vm12 = vweird.f32 %v2405_v29 }
 0x2c0   :  { %v2425_v3 = vadd.f32 1.0, %v5962_v61  ;;  %v2314_v5 = vsel %vm2311_vm8, %v2313_v28, %v2309_v44  ;;  %v2399_v30 = vor.u32 1.1754944e-38, %v2398_v55  ;;  %vm2397_vm15 = vcmp.eq.f32.partialorder %v2396_v54, 8.507059e+37 }
 0x2c1   :  { %vm2416_vm0 = vcmp.eq.f32.partialorder %v2415_v2, 8.507059e+37 }
 0x2c2   :  { %v5964_v17 = vpop.eup %5963  ;;  %5969 = vrcp.f32 %v2425_v3  ;;  %v2437_v55 = vand.u32 2147483648, %v2425_v3  ;;  %vm2431_vm2 = vweird.f32 %v2425_v3 }
 0x2c3   :  { %v5966_v42 = vpop.eup %5965  ;;  %v2388_v40 = vmul.f32 %v5964_v17, %v2386_v63  ;;  %5971 = vtanh.f32 %v2381_v15  ;;  %vm2393_vm9 = vweird.f32 %v5964_v17 }
 0x2c4   :  { %v2407_v11 = vmul.f32 %v5966_v42, %v2405_v29  ;;  %vm2412_vm10 = vweird.f32 %v5966_v42  ;;  %vm2394_vm13 = vmor %vm2392_vm11, %vm2393_vm9  ;;  %v2438_v54 = vor.u32 1.1754944e-38, %v2437_v55  ;;  %v8606_v55 = vld [vmem:[#allocation128_spill] sm:$0xff] }
 0x2c5   :  { %v2389_v33 = vsub.f32 1.0, %v2388_v40  ;;  %v5968_v53 = vpop.eup %5967  ;;  %vm2413_vm14 = vmor %vm2411_vm12, %vm2412_vm10  ;;  %v2418_v40 = vor.u32 1.1754944e-38, %v2417_v39 }
 0x2c6   :  { %v2408_v7 = vsub.f32 1.0, %v2407_v11  ;;  %v2320_v14 = vmul.f32 %v5968_v53, %v2314_v5 }
 0x2c7   :  { %v2390_v32 = vmul.f32 %v5964_v17, %v2389_v33 }
 0x2c8   :  { %v5970_v61 = vpop.eup %5969  ;;  %v2409_v16 = vmul.f32 %v5966_v42, %v2408_v7  ;;  %v2321_v1 = vpack.c.bf16 %v2320_v14, %v2320_v14 }
 0x2c9   :  { %v2391_v9 = vadd.f32 %v5964_v17, %v2390_v32  ;;  %v2427_v13 = vmul.f32 %v5970_v61, %v2425_v3  ;;  %v5972_v15 = vpop.eup %5971  ;;  %vm2432_vm1 = vweird.f32 %v5970_v61 }
 0x2ca   :  { %v2410_v50 = vadd.f32 %v5966_v42, %v2409_v16  ;;  %2322 = vst [vmem:[#allocation4] sm:$0xf] %v2321_v1  ;;  %vm2433_vm3 = vmor %vm2431_vm2, %vm2432_vm1 }
 0x2cb   :  { %v2395_v44 = vsel %vm2394_vm13, %v5964_v17, %v2391_v9  ;;  %v2428_v28 = vsub.f32 1.0, %v2427_v13  ;;  %v2435_v17 = vand.u32 2147483647, %v2425_v3  ;;  %v8588_v3 = vld [vmem:[#allocation105_spill] sm:$0xff]  ;;  %v8590_v9 = vld [vmem:[#allocation107_spill] sm:$0xff]  ;;  %v8591_v13 = vld [vmem:[#allocation108_spill] sm:$0xff] }
 0x2cc   :  { %v2400_v11 = vsel %vm2397_vm15, %v2399_v30, %v2395_v44  ;;  %v2414_v33 = vsel %vm2413_vm14, %v5966_v42, %v2410_v50  ;;  %v8593_v30 = vld [vmem:[#allocation110_spill] sm:$0xff]  ;;  %v8594_v50 = vld [vmem:[#allocation111_spill] sm:$0xff]  ;;  %v8597_v44 = vld [vmem:[#allocation117_spill] sm:$0xff] }
 0x2cd   :  { %v2419_v53 = vsel %vm2416_vm0, %v2418_v40, %v2414_v33  ;;  %v2442_v7 = vmul.f32 %v5972_v15, %v2400_v11  ;;  %v2429_v5 = vmul.f32 %v5970_v61, %v2428_v28  ;;  %vm2436_vm4 = vcmp.eq.f32.partialorder %v2435_v17, 8.507059e+37  ;;  %v8595_v15 = vld [vmem:[#allocation113_spill] sm:$0xff]  ;;  %v8596_v40 = vld [vmem:[#allocation115_spill] sm:$0xff]  ;;  %v8598_v28 = vld [vmem:[#allocation118_spill] sm:$0xff] }
 0x2ce   :  { %v2441_v63 = vmul.f32 %v2419_v53, %v7280_v20  ;;  %v8587_v20 = vld [vmem:[#allocation101_spill] sm:$0xff]  ;;  %v8599_v11 = vld [vmem:[#allocation119_spill] sm:$0xff]  ;;  %v8600_v33 = vld [vmem:[#allocation120_spill] sm:$0xff] }
 0x2cf   :  { %v2430_v29 = vadd.f32 %v5970_v61, %v2429_v5  ;;  %v8601_v53 = vld [vmem:[#allocation121_spill] sm:$0xff]  ;;  %v8603_v5 = vld [vmem:[#allocation123_spill] sm:$0xff] }
 0x2d0   :  { %v7414_v32 = vadd.f32 %v2442_v7, %v2441_v63  ;;  %v8602_v7 = vld [vmem:[#allocation122_spill] sm:$0xff]  ;;  %v8607_v17 = vld [vmem:[#allocation129_spill] sm:$0xff] }
 0x2d1   :  { %v2434_v39 = vsel %vm2433_vm3, %v5970_v61, %v2430_v29  ;;  %v8589_v61 = vld [vmem:[#allocation106_spill] sm:$0xff]  ;;  %v8605_v29 = vld [vmem:[#allocation127_spill] sm:$0xff] }
 0x2d2   :  { %5973 = vtanh.f32 %v7414_v32  ;;  %v2439_v14 = vsel %vm2436_vm4, %v2438_v54, %v2434_v39  ;;  %v8604_v63 = vld [vmem:[#allocation126_spill] sm:$0xff]  ;;  %v8609_v54 = vld [vmem:[#allocation132_spill] sm:$0xff] }
 0x2d3   :  { %v8608_v39 = vld [vmem:[#allocation130_spill] sm:$0xff] }
 0x2d8   :  { %v5974_v42 = vpop.eup %5973 }
 0x2d9   :  { %v2445_v16 = vmul.f32 %v5974_v42, %v2439_v14  ;;  %v8610_v42 = vld [vmem:[#allocation133_spill] sm:$0xff]  ;;  %v8611_v14 = vld [vmem:[#allocation134_spill] sm:$0xff] }
 0x2db   :  { %v2450_v2 = vpack.c.bf16 %v2445_v16, %v2445_v16  ;;  %v8612_v16 = vld [vmem:[#allocation136_spill] sm:$0xff] }
 0x2dd   :  { %2459 = vmatmul.bf16.vlgmr.msrb.gmra.mxu0 %v2450_v2  ;;  %2472 = vmatmul.bf16.vlgmr.msrb.gmra.mxu1 %v2450_v2 }
 0x2de   :  { %2485 = vmatmul.bf16.vlgmr.msrb.gmra.mxu2 %v2450_v2  ;;  %2498 = vmatmul.bf16.vlgmr.msra.gmra.mxu3 %v2450_v2 }
 0x2df   :  { %2632 = vmatpush.bf16.msrb.mxu0 %v6600_v47  ;;  %2645 = vmatpush.bf16.msrb.mxu1 %v6734_v24 }
 0x2e0   :  { %2658 = vmatpush.bf16.msrb.mxu2 %v6764_v56  ;;  %2671 = vmatpush.bf16.msra.mxu3 %v6729_v45 }
 0x2e3   :  { %2633 = vmatpush.bf16.msrb.mxu0 %v6615_v57  ;;  %2646 = vmatpush.bf16.msrb.mxu1 %v6748_v48 }
 0x2e4   :  { %2659 = vmatpush.bf16.msrb.mxu2 %v6787_v10  ;;  %2672 = vmatpush.bf16.msra.mxu3 %v6742_v22 }
 0x2e7   :  { %2634 = vmatpush.bf16.msrb.mxu0 %v6622_v4  ;;  %2647 = vmatpush.bf16.msrb.mxu1 %v6773_v26 }
 0x2e8   :  { %2660 = vmatpush.bf16.msrb.mxu2 %v6815_v60  ;;  %2673 = vmatpush.bf16.msra.mxu3 %v6750_v52 }
 0x2eb   :  { %2635 = vmatpush.bf16.msrb.mxu0 %v6628_v12  ;;  %2648 = vmatpush.bf16.msrb.mxu1 %v6789_v36 }
 0x2ec   :  { %2661 = vmatpush.bf16.msrb.mxu2 %v6832_v43  ;;  %2674 = vmatpush.bf16.msra.mxu3 %v6758_v62 }
 0x2ed   :  { %2515 = vmatmul.bf16.vlgmr.msra.gmra.mxu0 %v2321_v1  ;;  %2528 = vmatmul.bf16.vlgmr.msra.gmra.mxu1 %v2321_v1 }
 0x2ee   :  { %2541 = vmatmul.bf16.vlgmr.msra.gmra.mxu2 %v2321_v1  ;;  %2554 = vmatmul.bf16.vlgmr.msrb.gmra.mxu3 %v2321_v1  ;;  %v8592_v1 = vld [vmem:[#allocation109_spill] sm:$0xff] }
 0x2ef   :  { %2636 = vmatpush.bf16.msrb.mxu0 %v6646_v31  ;;  %2649 = vmatpush.bf16.msrb.mxu1 %v6819_v41 }
 0x2f0   :  { %2662 = vmatpush.bf16.msrb.mxu2 %v6856_v34  ;;  %2675 = vmatpush.bf16.msra.mxu3 %v6768_v25 }
 0x2f3   :  { %2637 = vmatpush.bf16.msrb.mxu0 %v6655_v38  ;;  %2650 = vmatpush.bf16.msrb.mxu1 %v6837_v18 }
 0x2f4   :  { %2663 = vmatpush.bf16.msrb.mxu2 %v6865_v19  ;;  %2676 = vmatpush.bf16.msra.mxu3 %v6781_v46 }
 0x2f7   :  { %2638 = vmatpush.bf16.msrb.mxu0 %v6662_v51  ;;  %2651 = vmatpush.bf16.msrb.mxu1 %v6860_v58 }
 0x2f8   :  { %2664 = vmatpush.bf16.msrb.mxu2 %v6878_v0  ;;  %2677 = vmatpush.bf16.msra.mxu3 %v6791_v27 }
 0x2fb   :  { %2639 = vmatpush.bf16.msrb.mxu0 %v6680_v6  ;;  %2652 = vmatpush.bf16.msrb.mxu1 %v6873_v49 }
 0x2fc   :  { %2665 = vmatpush.bf16.msrb.mxu2 %v6886_v23  ;;  %2678 = vmatpush.bf16.msra.mxu3 %v6800_v8 }
 0x2fe   :  { %2640 = vmatmul.bf16.vlgmr.msrb.gmra.mxu0 %v2450_v2  ;;  %2653 = vmatmul.bf16.vlgmr.msrb.gmra.mxu1 %v2450_v2 }
 0x2ff   :  { %2756 = vmatpush.bf16.msra.mxu0 %v7023_v37  ;;  %2769 = vmatpush.bf16.msra.mxu1 %v7028_v21 }
 0x300   :  { %2666 = vmatmul.bf16.vlgmr.msrb.gmra.mxu2 %v2450_v2  ;;  %2679 = vmatmul.bf16.vlgmr.msra.gmra.mxu3 %v2450_v2  ;;  %v8613_v2 = vld [vmem:[#allocation137_spill] sm:$0xff] }
 0x301   :  { %2782 = vmatpush.bf16.msra.mxu2 %v7030_v59  ;;  %2795 = vmatpush.bf16.msrb.mxu3 %v8587_v20 }
 0x303   :  { %2757 = vmatpush.bf16.msra.mxu0 %v8588_v3  ;;  %2770 = vmatpush.bf16.msra.mxu1 %v8589_v61 }
 0x305   :  { %2783 = vmatpush.bf16.msra.mxu2 %v8590_v9  ;;  %2796 = vmatpush.bf16.msrb.mxu3 %v8591_v13  ;;  %v8652_v13 = vld [vmem:[#allocation83_spill] sm:$0xff]  ;;  %v8653_v9 = vld [vmem:[#allocation82_spill] sm:$0xff] }
 0x307   :  { %2758 = vmatpush.bf16.msra.mxu0 %v8592_v1  ;;  %2771 = vmatpush.bf16.msra.mxu1 %v8593_v30 }
 0x309   :  { %2784 = vmatpush.bf16.msra.mxu2 %v8594_v50  ;;  %2797 = vmatpush.bf16.msrb.mxu3 %v8595_v15 }
 0x30b   :  { %2759 = vmatpush.bf16.msra.mxu0 %v8596_v40  ;;  %2772 = vmatpush.bf16.msra.mxu1 %v8597_v44 }
 0x30d   :  { %2785 = vmatpush.bf16.msra.mxu2 %v8598_v28  ;;  %2798 = vmatpush.bf16.msrb.mxu3 %v8599_v11  ;;  %v8651_v28 = vld [vmem:[#allocation92_spill] sm:$0xff] }
 0x30f   :  { %2760 = vmatpush.bf16.msra.mxu0 %v8600_v33  ;;  %2773 = vmatpush.bf16.msra.mxu1 %v8601_v53  ;;  %v8648_v33 = vld [vmem:[#allocation58_spill] sm:$0xff] }
 0x311   :  { %2786 = vmatpush.bf16.msra.mxu2 %v8602_v7  ;;  %2799 = vmatpush.bf16.msrb.mxu3 %v8603_v5  ;;  %v8614_v5 = vld [vmem:[#allocation140_spill] sm:$0xff] }
 0x313   :  { %2761 = vmatpush.bf16.msra.mxu0 %v8604_v63  ;;  %2774 = vmatpush.bf16.msra.mxu1 %v8605_v29  ;;  %v8615_v63 = vld [vmem:[#allocation141_spill] sm:$0xff]  ;;  %v8616_v29 = vld [vmem:[#allocation138_spill] sm:$0xff] }
 0x315   :  { %2787 = vmatpush.bf16.msra.mxu2 %v8606_v55  ;;  %2800 = vmatpush.bf16.msrb.mxu3 %v8607_v17  ;;  %v8617_v55 = vld [vmem:[#allocation139_spill] sm:$0xff]  ;;  %v8618_v17 = vld [vmem:[#allocation142_spill] sm:$0xff] }
 0x317   :  { %2762 = vmatpush.bf16.msra.mxu0 %v8608_v39  ;;  %2775 = vmatpush.bf16.msra.mxu1 %v8609_v54  ;;  %v8619_v39 = vld [vmem:[#allocation144_spill] sm:$0xff]  ;;  %v8620_v54 = vld [vmem:[#allocation146_spill] sm:$0xff] }
 0x319   :  { %2788 = vmatpush.bf16.msra.mxu2 %v8610_v42  ;;  %2801 = vmatpush.bf16.msrb.mxu3 %v8611_v14  ;;  %v8621_v42 = vld [vmem:[#allocation147_spill] sm:$0xff]  ;;  %v8622_v14 = vld [vmem:[#allocation148_spill] sm:$0xff] }
 0x31b   :  { %2763 = vmatpush.bf16.msra.mxu0 %v8612_v16  ;;  %2776 = vmatpush.bf16.msra.mxu1 %v8613_v2  ;;  %v8623_v16 = vld [vmem:[#allocation149_spill] sm:$0xff]  ;;  %v8624_v2 = vld [vmem:[#allocation150_spill] sm:$0xff] }
 0x31d   :  { %2789 = vmatpush.bf16.msra.mxu2 %v8616_v29  ;;  %2802 = vmatpush.bf16.msrb.mxu3 %v8617_v55  ;;  %v8627_v29 = vld [vmem:[#allocation153_spill] sm:$0xff]  ;;  %v8628_v55 = vld [vmem:[#allocation155_spill] sm:$0xff] }
 0x31f   :  { %2812 = vmatpush.bf16.msrb.mxu0 %v8614_v5  ;;  %2825 = vmatpush.bf16.msrb.mxu1 %v8615_v63  ;;  %v8625_v5 = vld [vmem:[#allocation151_spill] sm:$0xff]  ;;  %v8626_v63 = vld [vmem:[#allocation152_spill] sm:$0xff] }
 0x321   :  { %2838 = vmatpush.bf16.msrb.mxu2 %v8618_v17  ;;  %2851 = vmatpush.bf16.msra.mxu3 %v8619_v39  ;;  %v8629_v17 = vld [vmem:[#allocation156_spill] sm:$0xff]  ;;  %v8630_v39 = vld [vmem:[#allocation157_spill] sm:$0xff] }
 0x323   :  { %2813 = vmatpush.bf16.msrb.mxu0 %v8620_v54  ;;  %2826 = vmatpush.bf16.msrb.mxu1 %v8621_v42  ;;  %v8631_v54 = vld [vmem:[#allocation158_spill] sm:$0xff]  ;;  %v8632_v42 = vld [vmem:[#allocation159_spill] sm:$0xff] }
 0x325   :  { %2839 = vmatpush.bf16.msrb.mxu2 %v8622_v14  ;;  %2852 = vmatpush.bf16.msra.mxu3 %v8623_v16  ;;  %v8633_v14 = vld [vmem:[#allocation160_spill] sm:$0xff]  ;;  %v8634_v16 = vld [vmem:[#allocation161_spill] sm:$0xff] }
 0x327   :  { %2814 = vmatpush.bf16.msrb.mxu0 %v8624_v2  ;;  %2827 = vmatpush.bf16.msrb.mxu1 %v8625_v5  ;;  %v8635_v2 = vld [vmem:[#allocation162_spill] sm:$0xff]  ;;  %v8636_v5 = vld [vmem:[#allocation163_spill] sm:$0xff] }
 0x329   :  { %2840 = vmatpush.bf16.msrb.mxu2 %v8626_v63  ;;  %2853 = vmatpush.bf16.msra.mxu3 %v8627_v29  ;;  %v8637_v63 = vld [vmem:[#allocation164_spill] sm:$0xff]  ;;  %v8638_v29 = vld [vmem:[#allocation165_spill] sm:$0xff] }
 0x32b   :  { %2815 = vmatpush.bf16.msrb.mxu0 %v8628_v55  ;;  %2828 = vmatpush.bf16.msrb.mxu1 %v8629_v17  ;;  %v8639_v55 = vld [vmem:[#allocation166_spill] sm:$0xff]  ;;  %v8640_v17 = vld [vmem:[#allocation167_spill] sm:$0xff] }
 0x32d   :  { %2841 = vmatpush.bf16.msrb.mxu2 %v8630_v39  ;;  %2854 = vmatpush.bf16.msra.mxu3 %v8631_v54  ;;  %v8641_v39 = vld [vmem:[#allocation168_spill] sm:$0xff]  ;;  %v8642_v54 = vld [vmem:[#allocation169_spill] sm:$0xff] }
 0x32f   :  { %2816 = vmatpush.bf16.msrb.mxu0 %v8632_v42  ;;  %2829 = vmatpush.bf16.msrb.mxu1 %v8633_v14  ;;  %v8643_v42 = vld [vmem:[#allocation170_spill] sm:$0xff]  ;;  %v8644_v14 = vld [vmem:[#allocation171_spill] sm:$0xff] }
 0x331   :  { %2842 = vmatpush.bf16.msrb.mxu2 %v8634_v16  ;;  %2855 = vmatpush.bf16.msra.mxu3 %v8635_v2  ;;  %v8645_v16 = vld [vmem:[#allocation172_spill] sm:$0xff]  ;;  %v8646_v2 = vld [vmem:[#allocation173_spill] sm:$0xff] }
 0x333   :  { %2817 = vmatpush.bf16.msrb.mxu0 %v8636_v5  ;;  %2830 = vmatpush.bf16.msrb.mxu1 %v8637_v63  ;;  %v8647_v5 = vld [vmem:[#allocation174_spill] sm:$0xff] }
 0x335   :  { %2843 = vmatpush.bf16.msrb.mxu2 %v8638_v29  ;;  %2856 = vmatpush.bf16.msra.mxu3 %v8639_v55 }
 0x337   :  { %2818 = vmatpush.bf16.msrb.mxu0 %v8640_v17  ;;  %2831 = vmatpush.bf16.msrb.mxu1 %v8641_v39  ;;  %v8649_v39 = vld [vmem:[#allocation54_spill] sm:$0xff] }
 0x338   :  { %v1306_v11 = vadd.f32 %v8649_v39, %v8648_v33 }
 0x339   :  { %2844 = vmatpush.bf16.msrb.mxu2 %v8642_v54  ;;  %2857 = vmatpush.bf16.msra.mxu3 %v8643_v42  ;;  %v8650_v54 = vld [vmem:[#allocation94_spill] sm:$0xff] }
 0x33a   :  { %v1335_v42 = vadd.f32 %v8651_v28, %v8650_v54 }
 0x33b   :  { %2819 = vmatpush.bf16.msrb.mxu0 %v8644_v14  ;;  %2832 = vmatpush.bf16.msrb.mxu1 %v8645_v16 }
 0x33d   :  { %2845 = vmatpush.bf16.msrb.mxu2 %v8646_v2  ;;  %2858 = vmatpush.bf16.msra.mxu3 %v8647_v5 }
 0x35a   :  { %v2460_v63 = vpop.f32.mrf.mxu0  ;;  %v2473_v29 = vpop.f32.mrf.mxu1 }
 0x35b   :  { %v2503_v44 = vadd.f32 %v2460_v63, %v1306_v11  ;;  %v2504_v14 = vadd.f32 %v2473_v29, %v1335_v42 }
 0x361   :  { %v2486_v7 = vpop.f32.mrf.mxu2  ;;  %v2499_v55 = vpop.f32.mrf.mxu3 }
 0x362   :  { %v2462_v53 = vpop.f32.mrf.mxu0  ;;  %v2475_v17 = vpop.f32.mrf.mxu1 }
 0x363   :  { %v1393_v53 = vadd.f32 %v8653_v9, %v8652_v13 }
 0x365   :  { %v2506_v17 = vadd.f32 %v2499_v55, %v1393_v53 }
 0x369   :  { %v2488_v40 = vpop.f32.mrf.mxu2  ;;  %v2501_v16 = vpop.f32.mrf.mxu3 }
 0x36a   :  { %v2516_v15 = vpop.f32.mrf.mxu0  ;;  %v2529_v2 = vpop.f32.mrf.mxu1 }
 0x36b   :  { %v2559_v50 = vadd.f32 %v2516_v15, %v2503_v44  ;;  %v2560_v5 = vadd.f32 %v2529_v2, %v2504_v14  ;;  %v8654_v44 = vld [vmem:[#allocation98_spill] sm:$0xff]  ;;  %v8656_v2 = vld [vmem:[#allocation28_spill] sm:$0xff] }
 0x36d   :  { %v5586_v30 = vmul.f32 -1.442695, %v2559_v50  ;;  %v5587_v1 = vmul.f32 -1.442695, %v2560_v5  ;;  %v8655_v50 = vld [vmem:[#allocation93_spill] sm:$0xff] }
 0x36e   :  { %v1364_v5 = vadd.f32 %v8655_v50, %v8654_v44 }
 0x36f   :  { %5975 = vpow2.f32 %v5586_v30 }
 0x370   :  { %5977 = vpow2.f32 %v5587_v1  ;;  %v2505_v55 = vadd.f32 %v2486_v7, %v1364_v5 }
 0x371   :  { %v2542_v39 = vpop.f32.mrf.mxu2  ;;  %v2555_v33 = vpop.f32.mrf.mxu3 }
 0x372   :  { %v2562_v61 = vadd.f32 %v2555_v33, %v2506_v17  ;;  %v2518_v28 = vpop.f32.mrf.mxu0  ;;  %v2531_v11 = vpop.f32.mrf.mxu1  ;;  %v2561_v33 = vadd.f32 %v2542_v39, %v2505_v55 }
 0x374   :  { %v5588_v63 = vmul.f32 -1.442695, %v2562_v61  ;;  %v8657_v61 = vld [vmem:[#allocation45_spill] sm:$0xff] }
 0x375   :  { %v5976_v40 = vpop.eup %5975 }
 0x376   :  { %v5978_v29 = vpop.eup %5977  ;;  %v2566_v42 = vadd.f32 1.0, %v5976_v40  ;;  %5979 = vpow2.f32 %v5588_v63 }
 0x377   :  { %v2585_v15 = vadd.f32 1.0, %v5978_v29 }
 0x378   :  { %5981 = vrcp.f32 %v2566_v42  ;;  %v2576_v5 = vand.u32 2147483647, %v2566_v42  ;;  %v2578_v55 = vand.u32 2147483648, %v2566_v42  ;;  %vm2572_vm8 = vweird.f32 %v2566_v42 }
 0x379   :  { %5983 = vrcp.f32 %v2585_v15  ;;  %v2544_v9 = vpop.f32.mrf.mxu2  ;;  %v2557_v30 = vpop.f32.mrf.mxu3  ;;  %v2597_v39 = vand.u32 2147483648, %v2585_v15  ;;  %vm2591_vm7 = vweird.f32 %v2585_v15 }
 0x37a   :  { %vm2577_vm10 = vcmp.eq.f32.partialorder %v2576_v5, 8.507059e+37 }
 0x37b   :  { %v2641_v1 = vpop.f32.mrf.mxu0  ;;  %v2654_v14 = vpop.f32.mrf.mxu1  ;;  %v2598_v20 = vor.u32 1.1754944e-38, %v2597_v39 }
 0x37c   :  { %v5980_v16 = vpop.eup %5979  ;;  %v2684_v53 = vadd.f32 %v2641_v1, %v8656_v2  ;;  %v2685_v17 = vadd.f32 %v2654_v14, %v8657_v61  ;;  %v2595_v2 = vand.u32 2147483647, %v2585_v15 }
 0x37d   :  { %v7523_v28 = vadd.f32 1.0, %v5980_v16 }
 0x37e   :  { %v5982_v11 = vpop.eup %5981  ;;  %v5589_v63 = vmul.f32 -1.442695, %v2684_v53  ;;  %v5590_v40 = vmul.f32 -1.442695, %v2685_v17  ;;  %v8658_v53 = vld [vmem:[#allocation75_spill] sm:$0xff]  ;;  %vm2596_vm12 = vcmp.eq.f32.partialorder %v2595_v2, 8.507059e+37 }
 0x37f   :  { %v5984_v29 = vpop.eup %5983  ;;  %v2568_v50 = vmul.f32 %v5982_v11, %v2566_v42  ;;  %5985 = vrcp.f32 %v7523_v28  ;;  %vm2573_vm5 = vweird.f32 %v5982_v11  ;;  %vm2611_vm14 = vweird.f32 %v7523_v28 }
 0x380   :  { %v2587_v9 = vmul.f32 %v5984_v29, %v2585_v15  ;;  %5987 = vtanh.f32 %v2561_v33  ;;  %vm2592_vm6 = vweird.f32 %v5984_v29  ;;  %vm2574_vm9 = vmor %vm2572_vm8, %vm2573_vm5 }
 0x381   :  { %v2569_v7 = vsub.f32 1.0, %v2568_v50  ;;  %5989 = vpow2.f32 %v5589_v63  ;;  %vm2593_vm11 = vmor %vm2591_vm7, %vm2592_vm6 }
 0x382   :  { %v2588_v30 = vsub.f32 1.0, %v2587_v9  ;;  %5991 = vpow2.f32 %v5590_v40  ;;  %v2579_v40 = vor.u32 1.1754944e-38, %v2578_v55 }
 0x383   :  { %v2667_v1 = vpop.f32.mrf.mxu2  ;;  %v2680_v14 = vpop.f32.mrf.mxu3  ;;  %v2570_v16 = vmul.f32 %v5982_v11, %v2569_v7 }
 0x384   :  { %v2687_v61 = vadd.f32 %v2680_v14, %v8658_v53  ;;  %v2643_v17 = vpop.f32.mrf.mxu0  ;;  %v2656_v44 = vpop.f32.mrf.mxu1  ;;  %v2589_v13 = vmul.f32 %v5984_v29, %v2588_v30 }
 0x385   :  { %v5986_v54 = vpop.eup %5985  ;;  %v2571_v33 = vadd.f32 %v5982_v11, %v2570_v16 }
 0x386   :  { %v5591_v63 = vmul.f32 -1.442695, %v2687_v61  ;;  %v5988_v50 = vpop.eup %5987  ;;  %v2590_v9 = vadd.f32 %v5984_v29, %v2589_v13  ;;  %v2607_v7 = vmul.f32 %v5986_v54, %v7523_v28  ;;  %vm2612_vm13 = vweird.f32 %v5986_v54 }
 0x387   :  { %v5990_v3 = vpop.eup %5989  ;;  %v2575_v14 = vsel %vm2574_vm9, %v5982_v11, %v2571_v33  ;;  %vm2613_vm15 = vmor %vm2611_vm14, %vm2612_vm13 }
 0x388   :  { %5993 = vpow2.f32 %v5591_v63  ;;  %v5992_v44 = vpop.eup %5991  ;;  %v2580_v30 = vsel %vm2577_vm10, %v2579_v40, %v2575_v14  ;;  %v2594_v53 = vsel %vm2593_vm11, %v5984_v29, %v2590_v9  ;;  %v2608_v15 = vsub.f32 1.0, %v2607_v7 }
 0x389   :  { %v2691_v16 = vadd.f32 1.0, %v5990_v3  ;;  %v2599_v42 = vsel %vm2596_vm12, %v2598_v20, %v2594_v53  ;;  %v2622_v61 = vmul.f32 %v5988_v50, %v2580_v30  ;;  %v2710_v17 = vadd.f32 1.0, %v5992_v44 }
 0x38a   :  { %v2621_v5 = vmul.f32 %v2599_v42, %v7405_v35  ;;  %v2609_v55 = vmul.f32 %v5986_v54, %v2608_v15  ;;  %v2617_v29 = vand.u32 2147483648, %v7523_v28  ;;  %v2615_v20 = vand.u32 2147483647, %v7523_v28  ;;  %v8659_v35 = vld [vmem:[#allocation48_spill] sm:$0xff] }
 0x38b   :  { %5995 = vrcp.f32 %v2691_v16  ;;  %v2669_v13 = vpop.f32.mrf.mxu2  ;;  %v2682_v59 = vpop.f32.mrf.mxu3  ;;  %v2686_v2 = vadd.f32 %v2667_v1, %v8659_v35  ;;  %v2722_v30 = vand.u32 2147483648, %v2710_v17  ;;  %v2703_v53 = vand.u32 2147483648, %v2691_v16 }
 0x38c   :  { %5997 = vrcp.f32 %v2710_v17  ;;  %v7529_v21 = vadd.f32 %v2622_v61, %v2621_v5  ;;  %v2610_v39 = vadd.f32 %v5986_v54, %v2609_v55  ;;  %v2618_v40 = vor.u32 1.1754944e-38, %v2617_v29 }
 0x38d   :  { %vm2616_vm0 = vcmp.eq.f32.partialorder %v2615_v20, 8.507059e+37  ;;  %v2701_v28 = vand.u32 2147483647, %v2691_v16  ;;  %v2720_v55 = vand.u32 2147483647, %v2710_v17  ;;  %vm2697_vm3 = vweird.f32 %v2691_v16 }
 0x38e   :  { %v5994_v11 = vpop.eup %5993  ;;  %5999 = vtanh.f32 %v7529_v21  ;;  %v2614_v50 = vsel %vm2613_vm15, %v5986_v54, %v2610_v39  ;;  %vm2716_vm4 = vweird.f32 %v2710_v17  ;;  %v2704_v39 = vor.u32 1.1754944e-38, %v2703_v53 }
 0x38f   :  { %v2730_v3 = vadd.f32 1.0, %v5994_v11  ;;  %v2619_v15 = vsel %vm2616_vm0, %v2618_v40, %v2614_v50  ;;  %v2723_v35 = vor.u32 1.1754944e-38, %v2722_v30  ;;  %vm2702_vm7 = vcmp.eq.f32.partialorder %v2701_v28, 8.507059e+37 }
 0x390   :  { %vm2721_vm8 = vcmp.eq.f32.partialorder %v2720_v55, 8.507059e+37  ;;  %v8664_v55 = vld [vmem:[#allocation106_spill] sm:$0xff] }
 0x391   :  { %v5996_v33 = vpop.eup %5995  ;;  %6001 = vrcp.f32 %v2730_v3  ;;  %v2742_v53 = vand.u32 2147483648, %v2730_v3  ;;  %vm2736_vm10 = vweird.f32 %v2730_v3 }
 0x392   :  { %v5998_v59 = vpop.eup %5997  ;;  %v2693_v63 = vmul.f32 %v5996_v33, %v2691_v16  ;;  %6003 = vtanh.f32 %v2686_v2  ;;  %vm2698_vm1 = vweird.f32 %v5996_v33 }
 0x393   :  { %v2712_v9 = vmul.f32 %v5998_v59, %v2710_v17  ;;  %vm2717_vm2 = vweird.f32 %v5998_v59  ;;  %vm2699_vm5 = vmor %vm2697_vm3, %vm2698_vm1 }
 0x394   :  { %v2694_v7 = vsub.f32 1.0, %v2693_v63  ;;  %v6000_v14 = vpop.eup %5999  ;;  %vm2718_vm6 = vmor %vm2716_vm4, %vm2717_vm2 }
 0x395   :  { %v2713_v44 = vsub.f32 1.0, %v2712_v9  ;;  %v2625_v1 = vmul.f32 %v6000_v14, %v2619_v15  ;;  %v2743_v15 = vor.u32 1.1754944e-38, %v2742_v53  ;;  %v8681_v53 = vld [vmem:[#allocation128_spill] sm:$0xff] }
 0x396   :  { %v2695_v42 = vmul.f32 %v5996_v33, %v2694_v7 }
 0x397   :  { %v6002_v61 = vpop.eup %6001  ;;  %v2714_v5 = vmul.f32 %v5998_v59, %v2713_v44  ;;  %v2626_v11 = vpack.c.bf16 %v2625_v1, %v2625_v1 }
 0x398   :  { %v2696_v13 = vadd.f32 %v5996_v33, %v2695_v42  ;;  %v2732_v54 = vmul.f32 %v6002_v61, %v2730_v3  ;;  %v6004_v20 = vpop.eup %6003  ;;  %vm2737_vm9 = vweird.f32 %v6002_v61 }
 0x399   :  { %v2715_v29 = vadd.f32 %v5998_v59, %v2714_v5  ;;  %2627 = vst [vmem:[#allocation4 + $0x4] sm:$0xf] %v2626_v11  ;;  %vm2738_vm11 = vmor %vm2736_vm10, %vm2737_vm9  ;;  %v8663_v5 = vld [vmem:[#allocation105_spill] sm:$0xff] }
 0x39a   :  { %v2700_v2 = vsel %vm2699_vm5, %v5996_v33, %v2696_v13  ;;  %v2733_v63 = vsub.f32 1.0, %v2732_v54  ;;  %v2740_v33 = vand.u32 2147483647, %v2730_v3  ;;  %v8661_v3 = vld [vmem:[#allocation100_spill] sm:$0xff]  ;;  %v8665_v13 = vld [vmem:[#allocation107_spill] sm:$0xff] }
 0x39b   :  { %v2705_v50 = vsel %vm2702_vm7, %v2704_v39, %v2700_v2  ;;  %v2719_v40 = vsel %vm2718_vm6, %v5998_v59, %v2715_v29  ;;  %v8666_v54 = vld [vmem:[#allocation108_spill] sm:$0xff]  ;;  %v8668_v39 = vld [vmem:[#allocation110_spill] sm:$0xff]  ;;  %v8669_v29 = vld [vmem:[#allocation111_spill] sm:$0xff] }
 0x39c   :  { %v2724_v9 = vsel %vm2721_vm8, %v2723_v35, %v2719_v40  ;;  %v2747_v7 = vmul.f32 %v6004_v20, %v2705_v50  ;;  %v2734_v14 = vmul.f32 %v6002_v61, %v2733_v63  ;;  %vm2741_vm12 = vcmp.eq.f32.partialorder %v2740_v33, 8.507059e+37  ;;  %v8670_v20 = vld [vmem:[#allocation113_spill] sm:$0xff]  ;;  %v8671_v35 = vld [vmem:[#allocation115_spill] sm:$0xff]  ;;  %v8673_v63 = vld [vmem:[#allocation118_spill] sm:$0xff] }
 0x39d   :  { %v2746_v16 = vmul.f32 %v2724_v9, %v7414_v32  ;;  %v8660_v32 = vld [vmem:[#allocation99_spill] sm:$0xff]  ;;  %v8672_v2 = vld [vmem:[#allocation117_spill] sm:$0xff]  ;;  %v8675_v40 = vld [vmem:[#allocation120_spill] sm:$0xff] }
 0x39e   :  { %v2735_v17 = vadd.f32 %v6002_v61, %v2734_v14  ;;  %v8674_v50 = vld [vmem:[#allocation119_spill] sm:$0xff]  ;;  %v8676_v9 = vld [vmem:[#allocation121_spill] sm:$0xff] }
 0x39f   :  { %v7537_v44 = vadd.f32 %v2747_v7, %v2746_v16  ;;  %v8677_v7 = vld [vmem:[#allocation122_spill] sm:$0xff]  ;;  %v8678_v14 = vld [vmem:[#allocation123_spill] sm:$0xff]  ;;  %v8682_v33 = vld [vmem:[#allocation129_spill] sm:$0xff] }
 0x3a0   :  { %v2739_v30 = vsel %vm2738_vm11, %v6002_v61, %v2735_v17  ;;  %v8662_v61 = vld [vmem:[#allocation101_spill] sm:$0xff]  ;;  %v8679_v16 = vld [vmem:[#allocation126_spill] sm:$0xff]  ;;  %v8680_v17 = vld [vmem:[#allocation127_spill] sm:$0xff] }
 0x3a1   :  { %6005 = vtanh.f32 %v7537_v44  ;;  %v2744_v42 = vsel %vm2741_vm12, %v2743_v15, %v2739_v30  ;;  %v8683_v30 = vld [vmem:[#allocation130_spill] sm:$0xff]  ;;  %v8684_v15 = vld [vmem:[#allocation132_spill] sm:$0xff] }
 0x3a7   :  { %v6006_v59 = vpop.eup %6005 }
 0x3a8   :  { %v2750_v28 = vmul.f32 %v6006_v59, %v2744_v42  ;;  %v8685_v59 = vld [vmem:[#allocation133_spill] sm:$0xff]  ;;  %v8686_v42 = vld [vmem:[#allocation134_spill] sm:$0xff] }
 0x3aa   :  { %v2755_v1 = vpack.c.bf16 %v2750_v28, %v2750_v28  ;;  %v8687_v28 = vld [vmem:[#allocation136_spill] sm:$0xff] }
 0x3ac   :  { %2764 = vmatmul.bf16.vlgmr.msra.gmra.mxu0 %v2755_v1  ;;  %2777 = vmatmul.bf16.vlgmr.msra.gmra.mxu1 %v2755_v1 }
 0x3ad   :  { %2790 = vmatmul.bf16.vlgmr.msra.gmra.mxu2 %v2755_v1  ;;  %2803 = vmatmul.bf16.vlgmr.msrb.gmra.mxu3 %v2755_v1 }
 0x3ae   :  { %2937 = vmatpush.bf16.msra.mxu0 %v6600_v47  ;;  %2950 = vmatpush.bf16.msra.mxu1 %v6734_v24 }
 0x3af   :  { %2963 = vmatpush.bf16.msra.mxu2 %v6764_v56  ;;  %2976 = vmatpush.bf16.msrb.mxu3 %v6729_v45 }
 0x3b2   :  { %2938 = vmatpush.bf16.msra.mxu0 %v6615_v57  ;;  %2951 = vmatpush.bf16.msra.mxu1 %v6748_v48 }
 0x3b3   :  { %2964 = vmatpush.bf16.msra.mxu2 %v6787_v10  ;;  %2977 = vmatpush.bf16.msrb.mxu3 %v6742_v22 }
 0x3b6   :  { %2939 = vmatpush.bf16.msra.mxu0 %v6622_v4  ;;  %2952 = vmatpush.bf16.msra.mxu1 %v6773_v26 }
 0x3b7   :  { %2965 = vmatpush.bf16.msra.mxu2 %v6815_v60  ;;  %2978 = vmatpush.bf16.msrb.mxu3 %v6750_v52 }
 0x3ba   :  { %2940 = vmatpush.bf16.msra.mxu0 %v6628_v12  ;;  %2953 = vmatpush.bf16.msra.mxu1 %v6789_v36 }
 0x3bb   :  { %2966 = vmatpush.bf16.msra.mxu2 %v6832_v43  ;;  %2979 = vmatpush.bf16.msrb.mxu3 %v6758_v62 }
 0x3bc   :  { %2820 = vmatmul.bf16.vlgmr.msrb.gmra.mxu0 %v2626_v11  ;;  %2833 = vmatmul.bf16.vlgmr.msrb.gmra.mxu1 %v2626_v11 }
 0x3bd   :  { %2846 = vmatmul.bf16.vlgmr.msrb.gmra.mxu2 %v2626_v11  ;;  %2859 = vmatmul.bf16.vlgmr.msra.gmra.mxu3 %v2626_v11  ;;  %v8667_v11 = vld [vmem:[#allocation109_spill] sm:$0xff] }
 0x3be   :  { %2941 = vmatpush.bf16.msra.mxu0 %v6646_v31  ;;  %2954 = vmatpush.bf16.msra.mxu1 %v6819_v41 }
 0x3bf   :  { %2967 = vmatpush.bf16.msra.mxu2 %v6856_v34  ;;  %2980 = vmatpush.bf16.msrb.mxu3 %v6768_v25 }
 0x3c2   :  { %2942 = vmatpush.bf16.msra.mxu0 %v6655_v38  ;;  %2955 = vmatpush.bf16.msra.mxu1 %v6837_v18 }
 0x3c3   :  { %2968 = vmatpush.bf16.msra.mxu2 %v6865_v19  ;;  %2981 = vmatpush.bf16.msrb.mxu3 %v6781_v46 }
 0x3c6   :  { %2943 = vmatpush.bf16.msra.mxu0 %v6662_v51  ;;  %2956 = vmatpush.bf16.msra.mxu1 %v6860_v58 }
 0x3c7   :  { %2969 = vmatpush.bf16.msra.mxu2 %v6878_v0  ;;  %2982 = vmatpush.bf16.msrb.mxu3 %v6791_v27 }
 0x3ca   :  { %2944 = vmatpush.bf16.msra.mxu0 %v6680_v6  ;;  %2957 = vmatpush.bf16.msra.mxu1 %v6873_v49 }
 0x3cb   :  { %2970 = vmatpush.bf16.msra.mxu2 %v6886_v23  ;;  %2983 = vmatpush.bf16.msrb.mxu3 %v6800_v8 }
 0x3cd   :  { %2945 = vmatmul.bf16.vlgmr.msra.gmra.mxu0 %v2755_v1  ;;  %2958 = vmatmul.bf16.vlgmr.msra.gmra.mxu1 %v2755_v1 }
 0x3ce   :  { %3061 = vmatpush.bf16.msrb.mxu0 %v7023_v37  ;;  %3074 = vmatpush.bf16.msrb.mxu1 %v8660_v32 }
 0x3cf   :  { %2971 = vmatmul.bf16.vlgmr.msra.gmra.mxu2 %v2755_v1  ;;  %2984 = vmatmul.bf16.vlgmr.msrb.gmra.mxu3 %v2755_v1  ;;  %v8688_v1 = vld [vmem:[#allocation137_spill] sm:$0xff] }
 0x3d0   :  { %3087 = vmatpush.bf16.msrb.mxu2 %v8661_v3  ;;  %3100 = vmatpush.bf16.msra.mxu3 %v8662_v61  ;;  %v8736_v61 = vld [vmem:[#allocation49_spill] sm:$0xff] }
 0x3d2   :  { %3062 = vmatpush.bf16.msrb.mxu0 %v8663_v5  ;;  %3075 = vmatpush.bf16.msrb.mxu1 %v8664_v55  ;;  %v8735_v5 = vld [vmem:[#allocation40_spill] sm:$0xff] }
 0x3d4   :  { %3088 = vmatpush.bf16.msrb.mxu2 %v8665_v13  ;;  %3101 = vmatpush.bf16.msra.mxu3 %v8666_v54  ;;  %v8733_v13 = vld [vmem:[#allocation76_spill] sm:$0xff] }
 0x3d6   :  { %3063 = vmatpush.bf16.msrb.mxu0 %v8667_v11  ;;  %3076 = vmatpush.bf16.msrb.mxu1 %v8668_v39 }
 0x3d8   :  { %3089 = vmatpush.bf16.msrb.mxu2 %v8669_v29  ;;  %3102 = vmatpush.bf16.msra.mxu3 %v8670_v20 }
 0x3da   :  { %3064 = vmatpush.bf16.msrb.mxu0 %v8671_v35  ;;  %3077 = vmatpush.bf16.msrb.mxu1 %v8672_v2 }
 0x3dc   :  { %3090 = vmatpush.bf16.msrb.mxu2 %v8673_v63  ;;  %3103 = vmatpush.bf16.msra.mxu3 %v8674_v50  ;;  %v8724_v50 = vld [vmem:[#allocation96_spill] sm:$0xff] }
 0x3de   :  { %3065 = vmatpush.bf16.msrb.mxu0 %v8675_v40  ;;  %3078 = vmatpush.bf16.msrb.mxu1 %v8676_v9  ;;  %v8723_v40 = vld [vmem:[#allocation60_spill] sm:$0xff] }
 0x3e0   :  { %3091 = vmatpush.bf16.msrb.mxu2 %v8677_v7  ;;  %3104 = vmatpush.bf16.msra.mxu3 %v8678_v14  ;;  %v8689_v14 = vld [vmem:[#allocation140_spill] sm:$0xff] }
 0x3e2   :  { %3066 = vmatpush.bf16.msrb.mxu0 %v8679_v16  ;;  %3079 = vmatpush.bf16.msrb.mxu1 %v8680_v17  ;;  %v8690_v16 = vld [vmem:[#allocation141_spill] sm:$0xff]  ;;  %v8691_v17 = vld [vmem:[#allocation138_spill] sm:$0xff] }
 0x3e4   :  { %3092 = vmatpush.bf16.msrb.mxu2 %v8681_v53  ;;  %3105 = vmatpush.bf16.msra.mxu3 %v8682_v33  ;;  %v8692_v53 = vld [vmem:[#allocation139_spill] sm:$0xff]  ;;  %v8693_v33 = vld [vmem:[#allocation142_spill] sm:$0xff] }
 0x3e6   :  { %3067 = vmatpush.bf16.msrb.mxu0 %v8683_v30  ;;  %3080 = vmatpush.bf16.msrb.mxu1 %v8684_v15  ;;  %v8694_v30 = vld [vmem:[#allocation144_spill] sm:$0xff]  ;;  %v8695_v15 = vld [vmem:[#allocation146_spill] sm:$0xff] }
 0x3e8   :  { %3093 = vmatpush.bf16.msrb.mxu2 %v8685_v59  ;;  %3106 = vmatpush.bf16.msra.mxu3 %v8686_v42  ;;  %v8696_v59 = vld [vmem:[#allocation147_spill] sm:$0xff]  ;;  %v8697_v42 = vld [vmem:[#allocation148_spill] sm:$0xff] }
 0x3ea   :  { %3068 = vmatpush.bf16.msrb.mxu0 %v8687_v28  ;;  %3081 = vmatpush.bf16.msrb.mxu1 %v8688_v1  ;;  %v8698_v28 = vld [vmem:[#allocation149_spill] sm:$0xff]  ;;  %v8699_v1 = vld [vmem:[#allocation150_spill] sm:$0xff] }
 0x3ec   :  { %3094 = vmatpush.bf16.msrb.mxu2 %v8691_v17  ;;  %3107 = vmatpush.bf16.msra.mxu3 %v8692_v53  ;;  %v8702_v17 = vld [vmem:[#allocation153_spill] sm:$0xff]  ;;  %v8703_v53 = vld [vmem:[#allocation155_spill] sm:$0xff] }
 0x3ee   :  { %3117 = vmatpush.bf16.msra.mxu0 %v8689_v14  ;;  %3130 = vmatpush.bf16.msra.mxu1 %v8690_v16  ;;  %v8700_v14 = vld [vmem:[#allocation151_spill] sm:$0xff]  ;;  %v8701_v16 = vld [vmem:[#allocation152_spill] sm:$0xff] }
 0x3f0   :  { %3143 = vmatpush.bf16.msra.mxu2 %v8693_v33  ;;  %3156 = vmatpush.bf16.msrb.mxu3 %v8694_v30  ;;  %v8704_v33 = vld [vmem:[#allocation156_spill] sm:$0xff]  ;;  %v8705_v30 = vld [vmem:[#allocation157_spill] sm:$0xff] }
 0x3f2   :  { %3118 = vmatpush.bf16.msra.mxu0 %v8695_v15  ;;  %3131 = vmatpush.bf16.msra.mxu1 %v8696_v59  ;;  %v8706_v15 = vld [vmem:[#allocation158_spill] sm:$0xff]  ;;  %v8707_v59 = vld [vmem:[#allocation159_spill] sm:$0xff] }
 0x3f4   :  { %3144 = vmatpush.bf16.msra.mxu2 %v8697_v42  ;;  %3157 = vmatpush.bf16.msrb.mxu3 %v8698_v28  ;;  %v8708_v42 = vld [vmem:[#allocation160_spill] sm:$0xff]  ;;  %v8709_v28 = vld [vmem:[#allocation161_spill] sm:$0xff] }
 0x3f6   :  { %3119 = vmatpush.bf16.msra.mxu0 %v8699_v1  ;;  %3132 = vmatpush.bf16.msra.mxu1 %v8700_v14  ;;  %v8710_v1 = vld [vmem:[#allocation162_spill] sm:$0xff]  ;;  %v8711_v14 = vld [vmem:[#allocation163_spill] sm:$0xff] }
 0x3f8   :  { %3145 = vmatpush.bf16.msra.mxu2 %v8701_v16  ;;  %3158 = vmatpush.bf16.msrb.mxu3 %v8702_v17  ;;  %v8712_v16 = vld [vmem:[#allocation164_spill] sm:$0xff]  ;;  %v8713_v17 = vld [vmem:[#allocation165_spill] sm:$0xff] }
 0x3fa   :  { %3120 = vmatpush.bf16.msra.mxu0 %v8703_v53  ;;  %3133 = vmatpush.bf16.msra.mxu1 %v8704_v33  ;;  %v8714_v53 = vld [vmem:[#allocation166_spill] sm:$0xff]  ;;  %v8715_v33 = vld [vmem:[#allocation167_spill] sm:$0xff] }
 0x3fc   :  { %3146 = vmatpush.bf16.msra.mxu2 %v8705_v30  ;;  %3159 = vmatpush.bf16.msrb.mxu3 %v8706_v15  ;;  %v8716_v30 = vld [vmem:[#allocation168_spill] sm:$0xff]  ;;  %v8717_v15 = vld [vmem:[#allocation169_spill] sm:$0xff] }
 0x3fe   :  { %3121 = vmatpush.bf16.msra.mxu0 %v8707_v59  ;;  %3134 = vmatpush.bf16.msra.mxu1 %v8708_v42  ;;  %v8718_v59 = vld [vmem:[#allocation170_spill] sm:$0xff]  ;;  %v8719_v42 = vld [vmem:[#allocation171_spill] sm:$0xff] }
 0x400   :  { %3147 = vmatpush.bf16.msra.mxu2 %v8709_v28  ;;  %3160 = vmatpush.bf16.msrb.mxu3 %v8710_v1  ;;  %v8720_v28 = vld [vmem:[#allocation172_spill] sm:$0xff]  ;;  %v8721_v1 = vld [vmem:[#allocation173_spill] sm:$0xff] }
 0x402   :  { %3122 = vmatpush.bf16.msra.mxu0 %v8711_v14  ;;  %3135 = vmatpush.bf16.msra.mxu1 %v8712_v16  ;;  %v8722_v14 = vld [vmem:[#allocation174_spill] sm:$0xff] }
 0x404   :  { %3148 = vmatpush.bf16.msra.mxu2 %v8713_v17  ;;  %3161 = vmatpush.bf16.msrb.mxu3 %v8714_v53 }
 0x406   :  { %3123 = vmatpush.bf16.msra.mxu0 %v8715_v33  ;;  %3136 = vmatpush.bf16.msra.mxu1 %v8716_v30 }
 0x408   :  { %3149 = vmatpush.bf16.msra.mxu2 %v8717_v15  ;;  %3162 = vmatpush.bf16.msrb.mxu3 %v8718_v59 }
 0x40a   :  { %3124 = vmatpush.bf16.msra.mxu0 %v8719_v42  ;;  %3137 = vmatpush.bf16.msra.mxu1 %v8720_v28 }
 0x40c   :  { %3150 = vmatpush.bf16.msra.mxu2 %v8721_v1  ;;  %3163 = vmatpush.bf16.msrb.mxu3 %v8722_v14  ;;  %v8725_v14 = vld [vmem:[#allocation84_spill] sm:$0xff] }
 0x429   :  { %v2765_v16 = vpop.f32.mrf.mxu0  ;;  %v2778_v17 = vpop.f32.mrf.mxu1 }
 0x42a   :  { %v2808_v30 = vadd.f32 %v2765_v16, %v8723_v40  ;;  %v2809_v15 = vadd.f32 %v2778_v17, %v8724_v50 }
 0x430   :  { %v2791_v7 = vpop.f32.mrf.mxu2  ;;  %v2804_v53 = vpop.f32.mrf.mxu3 }
 0x431   :  { %v2767_v9 = vpop.f32.mrf.mxu0  ;;  %v2780_v33 = vpop.f32.mrf.mxu1  ;;  %v2811_v29 = vadd.f32 %v2804_v53, %v8725_v14  ;;  %v8728_v14 = vld [vmem:[#allocation46_spill] sm:$0xff] }
 0x438   :  { %v2793_v63 = vpop.f32.mrf.mxu2  ;;  %v2806_v59 = vpop.f32.mrf.mxu3 }
 0x439   :  { %v2821_v2 = vpop.f32.mrf.mxu0  ;;  %v2834_v42 = vpop.f32.mrf.mxu1  ;;  %v8726_v59 = vld [vmem:[#allocation24_spill] sm:$0xff] }
 0x43a   :  { %v2864_v35 = vadd.f32 %v2821_v2, %v2808_v30  ;;  %v2865_v28 = vadd.f32 %v2834_v42, %v2809_v15  ;;  %v8727_v2 = vld [vmem:[#allocation23_spill] sm:$0xff]  ;;  %v8729_v15 = vld [vmem:[#allocation102_spill] sm:$0xff] }
 0x43b   :  { %v948_v30 = vadd.f32 %v8727_v2, %v8726_v59  ;;  %v2810_v42 = vadd.f32 %v2791_v7, %v8729_v15 }
 0x43c   :  { %v5592_v20 = vmul.f32 -1.442695, %v2864_v35  ;;  %v5593_v1 = vmul.f32 -1.442695, %v2865_v28 }
 0x43d   :  { %v977_v53 = vadd.f32 %v8728_v14, %v948_v30 }
 0x43e   :  { %6007 = vpow2.f32 %v5592_v20 }
 0x43f   :  { %6009 = vpow2.f32 %v5593_v1 }
 0x440   :  { %v2847_v39 = vpop.f32.mrf.mxu2  ;;  %v2860_v11 = vpop.f32.mrf.mxu3 }
 0x441   :  { %v2867_v9 = vadd.f32 %v2860_v11, %v2811_v29  ;;  %v2823_v33 = vpop.f32.mrf.mxu0  ;;  %v2836_v54 = vpop.f32.mrf.mxu1  ;;  %v8730_v11 = vld [vmem:[#allocation66_spill] sm:$0xff]  ;;  %v8731_v29 = vld [vmem:[#allocation73_spill] sm:$0xff] }
 0x442   :  { %v1093_v54 = vadd.f32 %v8731_v29, %v8730_v11  ;;  %v2866_v33 = vadd.f32 %v2847_v39, %v2810_v42  ;;  %v8734_v39 = vld [vmem:[#allocation65_spill] sm:$0xff] }
 0x443   :  { %v5594_v40 = vmul.f32 -1.442695, %v2867_v9 }
 0x444   :  { %v6008_v16 = vpop.eup %6007  ;;  %v1122_v59 = vadd.f32 %v8733_v13, %v1093_v54 }
 0x445   :  { %v6010_v50 = vpop.eup %6009  ;;  %v2871_v63 = vadd.f32 1.0, %v6008_v16  ;;  %6011 = vpow2.f32 %v5594_v40  ;;  %v8732_v40 = vld [vmem:[#allocation30_spill] sm:$0xff] }
 0x446   :  { %v2890_v17 = vadd.f32 1.0, %v6010_v50  ;;  %v1151_v42 = vadd.f32 %v8734_v39, %v1122_v59 }
 0x447   :  { %6013 = vrcp.f32 %v2871_v63  ;;  %v2881_v29 = vand.u32 2147483647, %v2871_v63  ;;  %vm2877_vm0 = vweird.f32 %v2871_v63 }
 0x448   :  { %6015 = vrcp.f32 %v2890_v17  ;;  %v2849_v20 = vpop.f32.mrf.mxu2  ;;  %v2862_v35 = vpop.f32.mrf.mxu3  ;;  %vm2896_vm15 = vweird.f32 %v2890_v17 }
 0x449   :  { %vm2882_vm2 = vcmp.eq.f32.partialorder %v2881_v29, 8.507059e+37 }
 0x44a   :  { %v2946_v28 = vpop.f32.mrf.mxu0  ;;  %v2959_v1 = vpop.f32.mrf.mxu1 }
 0x44b   :  { %v6012_v9 = vpop.eup %6011  ;;  %v2989_v16 = vadd.f32 %v2946_v28, %v8732_v40  ;;  %v2990_v50 = vadd.f32 %v2959_v1, %v977_v53  ;;  %v2902_v53 = vand.u32 2147483648, %v2890_v17  ;;  %v2883_v1 = vand.u32 2147483648, %v2871_v63 }
 0x44c   :  { %v7647_v2 = vadd.f32 1.0, %v6012_v9  ;;  %v2900_v40 = vand.u32 2147483647, %v2890_v17 }
 0x44d   :  { %v6014_v20 = vpop.eup %6013  ;;  %v5595_v35 = vmul.f32 -1.442695, %v2989_v16  ;;  %v5596_v55 = vmul.f32 -1.442695, %v2990_v50 }
 0x44e   :  { %v6016_v30 = vpop.eup %6015  ;;  %v2873_v14 = vmul.f32 %v6014_v20, %v2871_v63  ;;  %6017 = vrcp.f32 %v7647_v2  ;;  %vm2878_vm13 = vweird.f32 %v6014_v20  ;;  %vm2901_vm4 = vcmp.eq.f32.partialorder %v2900_v40, 8.507059e+37  ;;  %v8737_v63 = vld [vmem:[#allocation38_spill] sm:$0xff]  ;;  %v8738_v40 = vld [vmem:[#allocation36_spill] sm:$0xff] }
 0x44f   :  { %v2892_v7 = vmul.f32 %v6016_v30, %v2890_v17  ;;  %6019 = vtanh.f32 %v2866_v33  ;;  %v1006_v33 = vadd.f32 %v8736_v61, %v8735_v5  ;;  %vm2897_vm14 = vweird.f32 %v6016_v30  ;;  %vm2879_vm1 = vmor %vm2877_vm0, %vm2878_vm13 }
 0x450   :  { %v2874_v15 = vsub.f32 1.0, %v2873_v14  ;;  %6021 = vpow2.f32 %v5595_v35  ;;  %vm2898_vm3 = vmor %vm2896_vm15, %vm2897_vm14  ;;  %vm2916_vm6 = vweird.f32 %v7647_v2 }
 0x451   :  { %v2893_v28 = vsub.f32 1.0, %v2892_v7  ;;  %6023 = vpow2.f32 %v5596_v55  ;;  %v2884_v55 = vor.u32 1.1754944e-38, %v2883_v1 }
 0x452   :  { %v2972_v13 = vpop.f32.mrf.mxu2  ;;  %v2985_v54 = vpop.f32.mrf.mxu3  ;;  %v2875_v9 = vmul.f32 %v6014_v20, %v2874_v15 }
 0x453   :  { %v2992_v16 = vadd.f32 %v2985_v54, %v1151_v42  ;;  %v2948_v50 = vpop.f32.mrf.mxu0  ;;  %v2961_v11 = vpop.f32.mrf.mxu1  ;;  %v2894_v14 = vmul.f32 %v6016_v30, %v2893_v28 }
 0x454   :  { %v6018_v35 = vpop.eup %6017  ;;  %v2876_v59 = vadd.f32 %v6014_v20, %v2875_v9  ;;  %v2903_v11 = vor.u32 1.1754944e-38, %v2902_v53 }
 0x455   :  { %v5597_v7 = vmul.f32 -1.442695, %v2992_v16  ;;  %v6020_v39 = vpop.eup %6019  ;;  %v2895_v15 = vadd.f32 %v6016_v30, %v2894_v14  ;;  %v2912_v3 = vmul.f32 %v6018_v35, %v7647_v2  ;;  %v1035_v16 = vadd.f32 %v8737_v63, %v1006_v33 }
 0x456   :  { %v6022_v42 = vpop.eup %6021  ;;  %v2880_v54 = vsel %vm2879_vm1, %v6014_v20, %v2876_v59  ;;  %vm2917_vm5 = vweird.f32 %v6018_v35  ;;  %v2922_v33 = vand.u32 2147483648, %v7647_v2 }
 0x457   :  { %6025 = vpow2.f32 %v5597_v7  ;;  %v6024_v61 = vpop.eup %6023  ;;  %v2885_v28 = vsel %vm2882_vm2, %v2884_v55, %v2880_v54  ;;  %v2899_v50 = vsel %vm2898_vm3, %v6016_v30, %v2895_v15  ;;  %v2913_v17 = vsub.f32 1.0, %v2912_v3  ;;  %vm2918_vm7 = vmor %vm2916_vm6, %vm2917_vm5 }
 0x458   :  { %v2996_v9 = vadd.f32 1.0, %v6022_v42  ;;  %v2904_v5 = vsel %vm2901_vm4, %v2903_v11, %v2899_v50  ;;  %v2927_v32 = vmul.f32 %v6020_v39, %v2885_v28  ;;  %v3015_v29 = vadd.f32 1.0, %v6024_v61 }
 0x459   :  { %v2926_v1 = vmul.f32 %v2904_v5, %v7529_v21  ;;  %v2914_v14 = vmul.f32 %v6018_v35, %v2913_v17  ;;  %v1064_v30 = vadd.f32 %v8738_v40, %v1035_v16  ;;  %v2920_v21 = vand.u32 2147483647, %v7647_v2 }
 0x45a   :  { %6027 = vrcp.f32 %v2996_v9  ;;  %v2974_v37 = vpop.f32.mrf.mxu2  ;;  %v2987_v8 = vpop.f32.mrf.mxu3  ;;  %v2923_v39 = vor.u32 1.1754944e-38, %v2922_v33  ;;  %v3027_v54 = vand.u32 2147483648, %v3015_v29  ;;  %v3008_v61 = vand.u32 2147483648, %v2996_v9 }
 0x45b   :  { %6029 = vrcp.f32 %v3015_v29  ;;  %v7656_v20 = vadd.f32 %v2927_v32, %v2926_v1  ;;  %v2915_v3 = vadd.f32 %v6018_v35, %v2914_v14  ;;  %v2991_v5 = vadd.f32 %v2972_v13, %v1064_v30 }
 0x45c   :  { %vm2921_vm8 = vcmp.eq.f32.partialorder %v2920_v21, 8.507059e+37  ;;  %v3006_v2 = vand.u32 2147483647, %v2996_v9  ;;  %v3025_v16 = vand.u32 2147483647, %v3015_v29  ;;  %vm3002_vm11 = vweird.f32 %v2996_v9 }
 0x45d   :  { %v6026_v53 = vpop.eup %6025  ;;  %6031 = vtanh.f32 %v7656_v20  ;;  %v2919_v7 = vsel %vm2918_vm7, %v6018_v35, %v2915_v3  ;;  %vm3021_vm12 = vweird.f32 %v3015_v29  ;;  %v3028_v3 = vor.u32 1.1754944e-38, %v3027_v54 }
 0x45e   :  { %v3035_v59 = vadd.f32 1.0, %v6026_v53  ;;  %v2924_v28 = vsel %vm2921_vm8, %v2923_v39, %v2919_v7  ;;  %v3009_v53 = vor.u32 1.1754944e-38, %v3008_v61  ;;  %vm3007_vm15 = vcmp.eq.f32.partialorder %v3006_v2, 8.507059e+37  ;;  %v8741_v2 = vld [vmem:[#allocation99_spill] sm:$0xff] }
 0x45f   :  { %vm3026_vm0 = vcmp.eq.f32.partialorder %v3025_v16, 8.507059e+37  ;;  %v8745_v16 = vld [vmem:[#allocation106_spill] sm:$0xff] }
 0x460   :  { %v6028_v37 = vpop.eup %6027  ;;  %6033 = vrcp.f32 %v3035_v59  ;;  %vm3041_vm2 = vweird.f32 %v3035_v59 }
 0x461   :  { %v6030_v8 = vpop.eup %6029  ;;  %v2998_v32 = vmul.f32 %v6028_v37, %v2996_v9  ;;  %6035 = vtanh.f32 %v2991_v5  ;;  %vm3003_vm9 = vweird.f32 %v6028_v37 }
 0x462   :  { %v3017_v55 = vmul.f32 %v6030_v8, %v3015_v29  ;;  %vm3022_vm10 = vweird.f32 %v6030_v8  ;;  %vm3004_vm13 = vmor %vm3002_vm11, %vm3003_vm9 }
 0x463   :  { %v2999_v15 = vsub.f32 1.0, %v2998_v32  ;;  %v6032_v42 = vpop.eup %6031  ;;  %vm3023_vm14 = vmor %vm3021_vm12, %vm3022_vm10 }
 0x464   :  { %v3018_v11 = vsub.f32 1.0, %v3017_v55  ;;  %v2930_v13 = vmul.f32 %v6032_v42, %v2924_v28  ;;  %v3047_v42 = vand.u32 2147483648, %v3035_v59 }
 0x465   :  { %v3000_v50 = vmul.f32 %v6028_v37, %v2999_v15 }
 0x466   :  { %v6034_v17 = vpop.eup %6033  ;;  %v3019_v63 = vmul.f32 %v6030_v8, %v3018_v11  ;;  %v2931_v14 = vpack.c.bf16 %v2930_v13, %v2930_v13  ;;  %v3048_v54 = vor.u32 1.1754944e-38, %v3047_v42  ;;  %v8742_v13 = vld [vmem:[#allocation100_spill] sm:$0xff] }
 0x467   :  { %v3001_v1 = vadd.f32 %v6028_v37, %v3000_v50  ;;  %v3037_v35 = vmul.f32 %v6034_v17, %v3035_v59  ;;  %v6036_v30 = vpop.eup %6035  ;;  %vm3042_vm1 = vweird.f32 %v6034_v17  ;;  %v8762_v42 = vld [vmem:[#allocation128_spill] sm:$0xff] }
 0x468   :  { %v3020_v40 = vadd.f32 %v6030_v8, %v3019_v63  ;;  %2932 = vst [vmem:[#allocation4 + $0x8] sm:$0xf] %v2931_v14  ;;  %vm3043_vm3 = vmor %vm3041_vm2, %vm3042_vm1  ;;  %v8744_v63 = vld [vmem:[#allocation105_spill] sm:$0xff] }
 0x469   :  { %v3005_v33 = vsel %vm3004_vm13, %v6028_v37, %v3001_v1  ;;  %v3038_v21 = vsub.f32 1.0, %v3037_v35  ;;  %v3045_v37 = vand.u32 2147483647, %v3035_v59  ;;  %v8740_v59 = vld [vmem:[#allocation97_spill] sm:$0xff]  ;;  %v8746_v1 = vld [vmem:[#allocation107_spill] sm:$0xff]  ;;  %v8747_v35 = vld [vmem:[#allocation108_spill] sm:$0xff] }
 0x46a   :  { %v3010_v5 = vsel %vm3007_vm15, %v3009_v53, %v3005_v33  ;;  %v3024_v32 = vsel %vm3023_vm14, %v6030_v8, %v3020_v40  ;;  %v8749_v53 = vld [vmem:[#allocation110_spill] sm:$0xff]  ;;  %v8750_v40 = vld [vmem:[#allocation111_spill] sm:$0xff]  ;;  %v8753_v33 = vld [vmem:[#allocation117_spill] sm:$0xff] }
 0x46b   :  { %v3029_v7 = vsel %vm3026_vm0, %v3028_v3, %v3024_v32  ;;  %v3052_v39 = vmul.f32 %v6036_v30, %v3010_v5  ;;  %v3039_v55 = vmul.f32 %v6034_v17, %v3038_v21  ;;  %vm3046_vm4 = vcmp.eq.f32.partialorder %v3045_v37, 8.507059e+37  ;;  %v8751_v30 = vld [vmem:[#allocation113_spill] sm:$0xff]  ;;  %v8752_v3 = vld [vmem:[#allocation115_spill] sm:$0xff]  ;;  %v8754_v21 = vld [vmem:[#allocation118_spill] sm:$0xff] }
 0x46c   :  { %v3051_v9 = vmul.f32 %v3029_v7, %v7537_v44  ;;  %v8739_v44 = vld [vmem:[#allocation39_spill] sm:$0xff]  ;;  %v8756_v32 = vld [vmem:[#allocation120_spill] sm:$0xff]  ;;  %v8757_v7 = vld [vmem:[#allocation121_spill] sm:$0xff] }
 0x46d   :  { %v3040_v29 = vadd.f32 %v6034_v17, %v3039_v55  ;;  %v8755_v5 = vld [vmem:[#allocation119_spill] sm:$0xff]  ;;  %v8763_v37 = vld [vmem:[#allocation129_spill] sm:$0xff] }
 0x46e   :  { %v7664_v15 = vadd.f32 %v3052_v39, %v3051_v9  ;;  %v8758_v39 = vld [vmem:[#allocation122_spill] sm:$0xff]  ;;  %v8759_v55 = vld [vmem:[#allocation123_spill] sm:$0xff] }
 0x46f   :  { %v3044_v11 = vsel %vm3043_vm3, %v6034_v17, %v3040_v29  ;;  %v8743_v17 = vld [vmem:[#allocation101_spill] sm:$0xff]  ;;  %v8760_v9 = vld [vmem:[#allocation126_spill] sm:$0xff]  ;;  %v8761_v29 = vld [vmem:[#allocation127_spill] sm:$0xff] }
 0x470   :  { %6037 = vtanh.f32 %v7664_v15  ;;  %v3049_v61 = vsel %vm3046_vm4, %v3048_v54, %v3044_v11  ;;  %v8764_v11 = vld [vmem:[#allocation130_spill] sm:$0xff]  ;;  %v8765_v54 = vld [vmem:[#allocation132_spill] sm:$0xff] }
 0x476   :  { %v6038_v8 = vpop.eup %6037 }
 0x477   :  { %v3055_v28 = vmul.f32 %v6038_v8, %v3049_v61  ;;  %v8766_v8 = vld [vmem:[#allocation133_spill] sm:$0xff]  ;;  %v8767_v61 = vld [vmem:[#allocation134_spill] sm:$0xff] }
 0x479   :  { %v3060_v50 = vpack.c.bf16 %v3055_v28, %v3055_v28  ;;  %v8768_v28 = vld [vmem:[#allocation136_spill] sm:$0xff] }
 0x47b   :  { %3069 = vmatmul.bf16.vlgmr.msrb.gmra.mxu0 %v3060_v50  ;;  %3082 = vmatmul.bf16.vlgmr.msrb.gmra.mxu1 %v3060_v50 }
 0x47c   :  { %3095 = vmatmul.bf16.vlgmr.msrb.gmra.mxu2 %v3060_v50  ;;  %3108 = vmatmul.bf16.vlgmr.msra.gmra.mxu3 %v3060_v50 }
 0x47d   :  { %3242 = vmatpush.bf16.msrb.mxu0 %v6600_v47  ;;  %3255 = vmatpush.bf16.msrb.mxu1 %v6734_v24 }
 0x47e   :  { %3268 = vmatpush.bf16.msrb.mxu2 %v6764_v56  ;;  %3281 = vmatpush.bf16.msra.mxu3 %v6729_v45 }
 0x481   :  { %3243 = vmatpush.bf16.msrb.mxu0 %v6615_v57  ;;  %3256 = vmatpush.bf16.msrb.mxu1 %v6748_v48 }
 0x482   :  { %3269 = vmatpush.bf16.msrb.mxu2 %v6787_v10  ;;  %3282 = vmatpush.bf16.msra.mxu3 %v6742_v22 }
 0x485   :  { %3244 = vmatpush.bf16.msrb.mxu0 %v6622_v4  ;;  %3257 = vmatpush.bf16.msrb.mxu1 %v6773_v26 }
 0x486   :  { %3270 = vmatpush.bf16.msrb.mxu2 %v6815_v60  ;;  %3283 = vmatpush.bf16.msra.mxu3 %v6750_v52 }
 0x489   :  { %3245 = vmatpush.bf16.msrb.mxu0 %v6628_v12  ;;  %3258 = vmatpush.bf16.msrb.mxu1 %v6789_v36 }
 0x48a   :  { %3271 = vmatpush.bf16.msrb.mxu2 %v6832_v43  ;;  %3284 = vmatpush.bf16.msra.mxu3 %v6758_v62 }
 0x48b   :  { %3125 = vmatmul.bf16.vlgmr.msra.gmra.mxu0 %v2931_v14  ;;  %3138 = vmatmul.bf16.vlgmr.msra.gmra.mxu1 %v2931_v14 }
 0x48c   :  { %3151 = vmatmul.bf16.vlgmr.msra.gmra.mxu2 %v2931_v14  ;;  %3164 = vmatmul.bf16.vlgmr.msrb.gmra.mxu3 %v2931_v14  ;;  %v8748_v14 = vld [vmem:[#allocation109_spill] sm:$0xff] }
 0x48d   :  { %3246 = vmatpush.bf16.msrb.mxu0 %v6646_v31  ;;  %3259 = vmatpush.bf16.msrb.mxu1 %v6819_v41 }
 0x48e   :  { %3272 = vmatpush.bf16.msrb.mxu2 %v6856_v34  ;;  %3285 = vmatpush.bf16.msra.mxu3 %v6768_v25 }
 0x491   :  { %3247 = vmatpush.bf16.msrb.mxu0 %v6655_v38  ;;  %3260 = vmatpush.bf16.msrb.mxu1 %v6837_v18 }
 0x492   :  { %3273 = vmatpush.bf16.msrb.mxu2 %v6865_v19  ;;  %3286 = vmatpush.bf16.msra.mxu3 %v6781_v46 }
 0x495   :  { %3248 = vmatpush.bf16.msrb.mxu0 %v6662_v51  ;;  %3261 = vmatpush.bf16.msrb.mxu1 %v6860_v58 }
 0x496   :  { %3274 = vmatpush.bf16.msrb.mxu2 %v6878_v0  ;;  %3287 = vmatpush.bf16.msra.mxu3 %v6791_v27 }
 0x499   :  { %3249 = vmatpush.bf16.msrb.mxu0 %v6680_v6  ;;  %3262 = vmatpush.bf16.msrb.mxu1 %v6873_v49 }
 0x49a   :  { %3275 = vmatpush.bf16.msrb.mxu2 %v6886_v23  ;;  %3288 = vmatpush.bf16.msra.mxu3 %v8739_v44 }
 0x49c   :  { %3250 = vmatmul.bf16.vlgmr.msrb.gmra.mxu0 %v3060_v50  ;;  %3263 = vmatmul.bf16.vlgmr.msrb.gmra.mxu1 %v3060_v50 }
 0x49d   :  { %3366 = vmatpush.bf16.msra.mxu0 %v8740_v59  ;;  %3379 = vmatpush.bf16.msra.mxu1 %v8741_v2 }
 0x49e   :  { %3276 = vmatmul.bf16.vlgmr.msrb.gmra.mxu2 %v3060_v50  ;;  %3289 = vmatmul.bf16.vlgmr.msra.gmra.mxu3 %v3060_v50  ;;  %v8769_v50 = vld [vmem:[#allocation137_spill] sm:$0xff] }
 0x49f   :  { %3392 = vmatpush.bf16.msra.mxu2 %v8742_v13  ;;  %3405 = vmatpush.bf16.msrb.mxu3 %v8743_v17 }
 0x4a1   :  { %3367 = vmatpush.bf16.msra.mxu0 %v8744_v63  ;;  %3380 = vmatpush.bf16.msra.mxu1 %v8745_v16 }
 0x4a3   :  { %3393 = vmatpush.bf16.msra.mxu2 %v8746_v1  ;;  %3406 = vmatpush.bf16.msrb.mxu3 %v8747_v35  ;;  %v8808_v35 = vld [vmem:[#allocation83_spill] sm:$0xff]  ;;  %v8809_v1 = vld [vmem:[#allocation88_spill] sm:$0xff] }
 0x4a5   :  { %3368 = vmatpush.bf16.msra.mxu0 %v8748_v14  ;;  %3381 = vmatpush.bf16.msra.mxu1 %v8749_v53 }
 0x4a7   :  { %3394 = vmatpush.bf16.msra.mxu2 %v8750_v40  ;;  %3407 = vmatpush.bf16.msrb.mxu3 %v8751_v30 }
 0x4a9   :  { %3369 = vmatpush.bf16.msra.mxu0 %v8752_v3  ;;  %3382 = vmatpush.bf16.msra.mxu1 %v8753_v33 }
 0x4ab   :  { %3395 = vmatpush.bf16.msra.mxu2 %v8754_v21  ;;  %3408 = vmatpush.bf16.msrb.mxu3 %v8755_v5  ;;  %v8807_v21 = vld [vmem:[#allocation104_spill] sm:$0xff] }
 0x4ad   :  { %3370 = vmatpush.bf16.msra.mxu0 %v8756_v32  ;;  %3383 = vmatpush.bf16.msra.mxu1 %v8757_v7  ;;  %v8804_v32 = vld [vmem:[#allocation58_spill] sm:$0xff] }
 0x4af   :  { %3396 = vmatpush.bf16.msra.mxu2 %v8758_v39  ;;  %3409 = vmatpush.bf16.msrb.mxu3 %v8759_v55  ;;  %v8770_v55 = vld [vmem:[#allocation140_spill] sm:$0xff] }
 0x4b1   :  { %3371 = vmatpush.bf16.msra.mxu0 %v8760_v9  ;;  %3384 = vmatpush.bf16.msra.mxu1 %v8761_v29  ;;  %v8771_v9 = vld [vmem:[#allocation141_spill] sm:$0xff]  ;;  %v8772_v29 = vld [vmem:[#allocation138_spill] sm:$0xff] }
 0x4b3   :  { %3397 = vmatpush.bf16.msra.mxu2 %v8762_v42  ;;  %3410 = vmatpush.bf16.msrb.mxu3 %v8763_v37  ;;  %v8773_v42 = vld [vmem:[#allocation139_spill] sm:$0xff]  ;;  %v8774_v37 = vld [vmem:[#allocation142_spill] sm:$0xff] }
 0x4b5   :  { %3372 = vmatpush.bf16.msra.mxu0 %v8764_v11  ;;  %3385 = vmatpush.bf16.msra.mxu1 %v8765_v54  ;;  %v8775_v11 = vld [vmem:[#allocation144_spill] sm:$0xff]  ;;  %v8776_v54 = vld [vmem:[#allocation146_spill] sm:$0xff] }
 0x4b7   :  { %3398 = vmatpush.bf16.msra.mxu2 %v8766_v8  ;;  %3411 = vmatpush.bf16.msrb.mxu3 %v8767_v61  ;;  %v8777_v8 = vld [vmem:[#allocation147_spill] sm:$0xff]  ;;  %v8778_v61 = vld [vmem:[#allocation148_spill] sm:$0xff] }
 0x4b9   :  { %3373 = vmatpush.bf16.msra.mxu0 %v8768_v28  ;;  %3386 = vmatpush.bf16.msra.mxu1 %v8769_v50  ;;  %v8779_v28 = vld [vmem:[#allocation149_spill] sm:$0xff]  ;;  %v8780_v50 = vld [vmem:[#allocation150_spill] sm:$0xff] }
 0x4bb   :  { %3399 = vmatpush.bf16.msra.mxu2 %v8772_v29  ;;  %3412 = vmatpush.bf16.msrb.mxu3 %v8773_v42  ;;  %v8783_v29 = vld [vmem:[#allocation153_spill] sm:$0xff]  ;;  %v8784_v42 = vld [vmem:[#allocation155_spill] sm:$0xff] }
 0x4bd   :  { %3422 = vmatpush.bf16.msrb.mxu0 %v8770_v55  ;;  %3435 = vmatpush.bf16.msrb.mxu1 %v8771_v9  ;;  %v8781_v55 = vld [vmem:[#allocation151_spill] sm:$0xff]  ;;  %v8782_v9 = vld [vmem:[#allocation152_spill] sm:$0xff] }
 0x4bf   :  { %3448 = vmatpush.bf16.msrb.mxu2 %v8774_v37  ;;  %3461 = vmatpush.bf16.msra.mxu3 %v8775_v11  ;;  %v8785_v37 = vld [vmem:[#allocation156_spill] sm:$0xff]  ;;  %v8786_v11 = vld [vmem:[#allocation157_spill] sm:$0xff] }
 0x4c1   :  { %3423 = vmatpush.bf16.msrb.mxu0 %v8776_v54  ;;  %3436 = vmatpush.bf16.msrb.mxu1 %v8777_v8  ;;  %v8787_v54 = vld [vmem:[#allocation158_spill] sm:$0xff]  ;;  %v8788_v8 = vld [vmem:[#allocation159_spill] sm:$0xff] }
 0x4c3   :  { %3449 = vmatpush.bf16.msrb.mxu2 %v8778_v61  ;;  %3462 = vmatpush.bf16.msra.mxu3 %v8779_v28  ;;  %v8789_v61 = vld [vmem:[#allocation160_spill] sm:$0xff]  ;;  %v8790_v28 = vld [vmem:[#allocation161_spill] sm:$0xff] }
 0x4c5   :  { %3424 = vmatpush.bf16.msrb.mxu0 %v8780_v50  ;;  %3437 = vmatpush.bf16.msrb.mxu1 %v8781_v55  ;;  %v8791_v50 = vld [vmem:[#allocation162_spill] sm:$0xff]  ;;  %v8792_v55 = vld [vmem:[#allocation163_spill] sm:$0xff] }
 0x4c7   :  { %3450 = vmatpush.bf16.msrb.mxu2 %v8782_v9  ;;  %3463 = vmatpush.bf16.msra.mxu3 %v8783_v29  ;;  %v8793_v9 = vld [vmem:[#allocation164_spill] sm:$0xff]  ;;  %v8794_v29 = vld [vmem:[#allocation165_spill] sm:$0xff] }
 0x4c9   :  { %3425 = vmatpush.bf16.msrb.mxu0 %v8784_v42  ;;  %3438 = vmatpush.bf16.msrb.mxu1 %v8785_v37  ;;  %v8795_v42 = vld [vmem:[#allocation166_spill] sm:$0xff]  ;;  %v8796_v37 = vld [vmem:[#allocation167_spill] sm:$0xff] }
 0x4cb   :  { %3451 = vmatpush.bf16.msrb.mxu2 %v8786_v11  ;;  %3464 = vmatpush.bf16.msra.mxu3 %v8787_v54  ;;  %v8797_v11 = vld [vmem:[#allocation168_spill] sm:$0xff]  ;;  %v8798_v54 = vld [vmem:[#allocation169_spill] sm:$0xff] }
 0x4cd   :  { %3426 = vmatpush.bf16.msrb.mxu0 %v8788_v8  ;;  %3439 = vmatpush.bf16.msrb.mxu1 %v8789_v61  ;;  %v8799_v8 = vld [vmem:[#allocation170_spill] sm:$0xff]  ;;  %v8800_v61 = vld [vmem:[#allocation171_spill] sm:$0xff] }
 0x4cf   :  { %3452 = vmatpush.bf16.msrb.mxu2 %v8790_v28  ;;  %3465 = vmatpush.bf16.msra.mxu3 %v8791_v50  ;;  %v8801_v28 = vld [vmem:[#allocation172_spill] sm:$0xff]  ;;  %v8802_v50 = vld [vmem:[#allocation173_spill] sm:$0xff] }
 0x4d1   :  { %3427 = vmatpush.bf16.msrb.mxu0 %v8792_v55  ;;  %3440 = vmatpush.bf16.msrb.mxu1 %v8793_v9  ;;  %v8803_v55 = vld [vmem:[#allocation174_spill] sm:$0xff] }
 0x4d3   :  { %3453 = vmatpush.bf16.msrb.mxu2 %v8794_v29  ;;  %3466 = vmatpush.bf16.msra.mxu3 %v8795_v42 }
 0x4d5   :  { %3428 = vmatpush.bf16.msrb.mxu0 %v8796_v37  ;;  %3441 = vmatpush.bf16.msrb.mxu1 %v8797_v11  ;;  %v8805_v11 = vld [vmem:[#allocation62_spill] sm:$0xff] }
 0x4d6   :  { %v1311_v5 = vadd.f32 %v8805_v11, %v8804_v32 }
 0x4d7   :  { %3454 = vmatpush.bf16.msrb.mxu2 %v8798_v54  ;;  %3467 = vmatpush.bf16.msra.mxu3 %v8799_v8  ;;  %v8806_v54 = vld [vmem:[#allocation94_spill] sm:$0xff] }
 0x4d8   :  { %v1340_v8 = vadd.f32 %v8807_v21, %v8806_v54 }
 0x4d9   :  { %3429 = vmatpush.bf16.msrb.mxu0 %v8800_v61  ;;  %3442 = vmatpush.bf16.msrb.mxu1 %v8801_v28 }
 0x4db   :  { %3455 = vmatpush.bf16.msrb.mxu2 %v8802_v50  ;;  %3468 = vmatpush.bf16.msra.mxu3 %v8803_v55 }
 0x4f8   :  { %v3070_v9 = vpop.f32.mrf.mxu0  ;;  %v3083_v29 = vpop.f32.mrf.mxu1 }
 0x4f9   :  { %v3113_v33 = vadd.f32 %v3070_v9, %v1311_v5  ;;  %v3114_v61 = vadd.f32 %v3083_v29, %v1340_v8 }
 0x4ff   :  { %v3096_v39 = vpop.f32.mrf.mxu2  ;;  %v3109_v42 = vpop.f32.mrf.mxu3 }
 0x500   :  { %v3072_v7 = vpop.f32.mrf.mxu0  ;;  %v3085_v37 = vpop.f32.mrf.mxu1 }
 0x501   :  { %v1398_v7 = vadd.f32 %v8809_v1, %v8808_v35 }
 0x503   :  { %v3116_v37 = vadd.f32 %v3109_v42, %v1398_v7 }
 0x507   :  { %v3098_v3 = vpop.f32.mrf.mxu2  ;;  %v3111_v28 = vpop.f32.mrf.mxu3 }
 0x508   :  { %v3126_v30 = vpop.f32.mrf.mxu0  ;;  %v3139_v50 = vpop.f32.mrf.mxu1 }
 0x509   :  { %v3169_v40 = vadd.f32 %v3126_v30, %v3113_v33  ;;  %v3170_v55 = vadd.f32 %v3139_v50, %v3114_v61  ;;  %v8810_v33 = vld [vmem:[#allocation98_spill] sm:$0xff]  ;;  %v8812_v50 = vld [vmem:[#allocation32_spill] sm:$0xff] }
 0x50b   :  { %v5598_v53 = vmul.f32 -1.442695, %v3169_v40  ;;  %v5599_v14 = vmul.f32 -1.442695, %v3170_v55  ;;  %v8811_v40 = vld [vmem:[#allocation112_spill] sm:$0xff] }
 0x50c   :  { %v1369_v55 = vadd.f32 %v8811_v40, %v8810_v33 }
 0x50d   :  { %6039 = vpow2.f32 %v5598_v53 }
 0x50e   :  { %6041 = vpow2.f32 %v5599_v14  ;;  %v3115_v42 = vadd.f32 %v3096_v39, %v1369_v55 }
 0x50f   :  { %v3152_v11 = vpop.f32.mrf.mxu2  ;;  %v3165_v32 = vpop.f32.mrf.mxu3 }
 0x510   :  { %v3172_v16 = vadd.f32 %v3165_v32, %v3116_v37  ;;  %v3128_v21 = vpop.f32.mrf.mxu0  ;;  %v3141_v5 = vpop.f32.mrf.mxu1  ;;  %v3171_v32 = vadd.f32 %v3152_v11, %v3115_v42 }
 0x512   :  { %v5600_v9 = vmul.f32 -1.442695, %v3172_v16  ;;  %v8813_v16 = vld [vmem:[#allocation51_spill] sm:$0xff] }
 0x513   :  { %v6040_v3 = vpop.eup %6039 }
 0x514   :  { %v6042_v29 = vpop.eup %6041  ;;  %v3176_v8 = vadd.f32 1.0, %v6040_v3  ;;  %6043 = vpow2.f32 %v5600_v9 }
 0x515   :  { %v3195_v30 = vadd.f32 1.0, %v6042_v29 }
 0x516   :  { %6045 = vrcp.f32 %v3176_v8  ;;  %v3186_v55 = vand.u32 2147483647, %v3176_v8  ;;  %v3188_v42 = vand.u32 2147483648, %v3176_v8  ;;  %vm3182_vm8 = vweird.f32 %v3176_v8 }
 0x517   :  { %6047 = vrcp.f32 %v3195_v30  ;;  %v3154_v1 = vpop.f32.mrf.mxu2  ;;  %v3167_v53 = vpop.f32.mrf.mxu3  ;;  %v3207_v11 = vand.u32 2147483648, %v3195_v30  ;;  %vm3201_vm7 = vweird.f32 %v3195_v30 }
 0x518   :  { %vm3187_vm10 = vcmp.eq.f32.partialorder %v3186_v55, 8.507059e+37 }
 0x519   :  { %v3251_v14 = vpop.f32.mrf.mxu0  ;;  %v3264_v61 = vpop.f32.mrf.mxu1  ;;  %v3208_v17 = vor.u32 1.1754944e-38, %v3207_v11 }
 0x51a   :  { %v6044_v28 = vpop.eup %6043  ;;  %v3294_v7 = vadd.f32 %v3251_v14, %v8812_v50  ;;  %v3295_v37 = vadd.f32 %v3264_v61, %v8813_v16  ;;  %v3205_v50 = vand.u32 2147483647, %v3195_v30 }
 0x51b   :  { %v7773_v21 = vadd.f32 1.0, %v6044_v28 }
 0x51c   :  { %v6046_v5 = vpop.eup %6045  ;;  %v5601_v9 = vmul.f32 -1.442695, %v3294_v7  ;;  %v5602_v3 = vmul.f32 -1.442695, %v3295_v37  ;;  %v8814_v7 = vld [vmem:[#allocation80_spill] sm:$0xff]  ;;  %vm3206_vm12 = vcmp.eq.f32.partialorder %v3205_v50, 8.507059e+37 }
 0x51d   :  { %v6048_v29 = vpop.eup %6047  ;;  %v3178_v40 = vmul.f32 %v6046_v5, %v3176_v8  ;;  %6049 = vrcp.f32 %v7773_v21  ;;  %vm3183_vm5 = vweird.f32 %v6046_v5  ;;  %vm3221_vm14 = vweird.f32 %v7773_v21 }
 0x51e   :  { %v3197_v1 = vmul.f32 %v6048_v29, %v3195_v30  ;;  %6051 = vtanh.f32 %v3171_v32  ;;  %vm3202_vm6 = vweird.f32 %v6048_v29  ;;  %vm3184_vm9 = vmor %vm3182_vm8, %vm3183_vm5 }
 0x51f   :  { %v3179_v39 = vsub.f32 1.0, %v3178_v40  ;;  %6053 = vpow2.f32 %v5601_v9  ;;  %vm3203_vm11 = vmor %vm3201_vm7, %vm3202_vm6 }
 0x520   :  { %v3198_v53 = vsub.f32 1.0, %v3197_v1  ;;  %6055 = vpow2.f32 %v5602_v3  ;;  %v3189_v3 = vor.u32 1.1754944e-38, %v3188_v42 }
 0x521   :  { %v3277_v14 = vpop.f32.mrf.mxu2  ;;  %v3290_v61 = vpop.f32.mrf.mxu3  ;;  %v3180_v28 = vmul.f32 %v6046_v5, %v3179_v39 }
 0x522   :  { %v3297_v16 = vadd.f32 %v3290_v61, %v8814_v7  ;;  %v3253_v37 = vpop.f32.mrf.mxu0  ;;  %v3266_v33 = vpop.f32.mrf.mxu1  ;;  %v3199_v35 = vmul.f32 %v6048_v29, %v3198_v53 }
 0x523   :  { %v6050_v54 = vpop.eup %6049  ;;  %v3181_v32 = vadd.f32 %v6046_v5, %v3180_v28 }
 0x524   :  { %v5603_v9 = vmul.f32 -1.442695, %v3297_v16  ;;  %v6052_v40 = vpop.eup %6051  ;;  %v3200_v1 = vadd.f32 %v6048_v29, %v3199_v35  ;;  %v3217_v39 = vmul.f32 %v6050_v54, %v7773_v21  ;;  %vm3222_vm13 = vweird.f32 %v6050_v54 }
 0x525   :  { %v6054_v63 = vpop.eup %6053  ;;  %v3185_v61 = vsel %vm3184_vm9, %v6046_v5, %v3181_v32  ;;  %vm3223_vm15 = vmor %vm3221_vm14, %vm3222_vm13 }
 0x526   :  { %6057 = vpow2.f32 %v5603_v9  ;;  %v6056_v33 = vpop.eup %6055  ;;  %v3190_v53 = vsel %vm3187_vm10, %v3189_v3, %v3185_v61  ;;  %v3204_v7 = vsel %vm3203_vm11, %v6048_v29, %v3200_v1  ;;  %v3218_v30 = vsub.f32 1.0, %v3217_v39 }
 0x527   :  { %v3301_v28 = vadd.f32 1.0, %v6054_v63  ;;  %v3209_v8 = vsel %vm3206_vm12, %v3208_v17, %v3204_v7  ;;  %v3232_v16 = vmul.f32 %v6052_v40, %v3190_v53  ;;  %v3320_v37 = vadd.f32 1.0, %v6056_v33 }
 0x528   :  { %v3231_v55 = vmul.f32 %v3209_v8, %v7656_v20  ;;  %v3219_v42 = vmul.f32 %v6050_v54, %v3218_v30  ;;  %v3227_v29 = vand.u32 2147483648, %v7773_v21  ;;  %v3225_v17 = vand.u32 2147483647, %v7773_v21  ;;  %v8815_v20 = vld [vmem:[#allocation55_spill] sm:$0xff] }
 0x529   :  { %6059 = vrcp.f32 %v3301_v28  ;;  %v3279_v35 = vpop.f32.mrf.mxu2  ;;  %v3292_v13 = vpop.f32.mrf.mxu3  ;;  %v3296_v50 = vadd.f32 %v3277_v14, %v8815_v20  ;;  %v3332_v53 = vand.u32 2147483648, %v3320_v37  ;;  %v3313_v7 = vand.u32 2147483648, %v3301_v28 }
 0x52a   :  { %6061 = vrcp.f32 %v3320_v37  ;;  %v7779_v2 = vadd.f32 %v3232_v16, %v3231_v55  ;;  %v3220_v11 = vadd.f32 %v6050_v54, %v3219_v42  ;;  %v3228_v3 = vor.u32 1.1754944e-38, %v3227_v29 }
 0x52b   :  { %vm3226_vm0 = vcmp.eq.f32.partialorder %v3225_v17, 8.507059e+37  ;;  %v3311_v21 = vand.u32 2147483647, %v3301_v28  ;;  %v3330_v42 = vand.u32 2147483647, %v3320_v37  ;;  %vm3307_vm3 = vweird.f32 %v3301_v28 }
 0x52c   :  { %v6058_v5 = vpop.eup %6057  ;;  %6063 = vtanh.f32 %v7779_v2  ;;  %v3224_v40 = vsel %vm3223_vm15, %v6050_v54, %v3220_v11  ;;  %vm3326_vm4 = vweird.f32 %v3320_v37  ;;  %v3314_v11 = vor.u32 1.1754944e-38, %v3313_v7 }
 0x52d   :  { %v3340_v63 = vadd.f32 1.0, %v6058_v5  ;;  %v3229_v30 = vsel %vm3226_vm0, %v3228_v3, %v3224_v40  ;;  %v3333_v20 = vor.u32 1.1754944e-38, %v3332_v53  ;;  %vm3312_vm7 = vcmp.eq.f32.partialorder %v3311_v21, 8.507059e+37 }
 0x52e   :  { %vm3331_vm8 = vcmp.eq.f32.partialorder %v3330_v42, 8.507059e+37  ;;  %v8820_v42 = vld [vmem:[#allocation106_spill] sm:$0xff] }
 0x52f   :  { %v6060_v32 = vpop.eup %6059  ;;  %6065 = vrcp.f32 %v3340_v63  ;;  %v3352_v7 = vand.u32 2147483648, %v3340_v63  ;;  %vm3346_vm10 = vweird.f32 %v3340_v63 }
 0x530   :  { %v6062_v13 = vpop.eup %6061  ;;  %v3303_v9 = vmul.f32 %v6060_v32, %v3301_v28  ;;  %6067 = vtanh.f32 %v3296_v50  ;;  %vm3308_vm1 = vweird.f32 %v6060_v32 }
 0x531   :  { %v3322_v1 = vmul.f32 %v6062_v13, %v3320_v37  ;;  %vm3327_vm2 = vweird.f32 %v6062_v13  ;;  %vm3309_vm5 = vmor %vm3307_vm3, %vm3308_vm1 }
 0x532   :  { %v3304_v39 = vsub.f32 1.0, %v3303_v9  ;;  %v6064_v61 = vpop.eup %6063  ;;  %vm3328_vm6 = vmor %vm3326_vm4, %vm3327_vm2 }
 0x533   :  { %v3323_v33 = vsub.f32 1.0, %v3322_v1  ;;  %v3235_v14 = vmul.f32 %v6064_v61, %v3229_v30  ;;  %v3353_v30 = vor.u32 1.1754944e-38, %v3352_v7  ;;  %v8837_v7 = vld [vmem:[#allocation128_spill] sm:$0xff] }
 0x534   :  { %v3305_v8 = vmul.f32 %v6060_v32, %v3304_v39 }
 0x535   :  { %v6066_v16 = vpop.eup %6065  ;;  %v3324_v55 = vmul.f32 %v6062_v13, %v3323_v33  ;;  %v3236_v5 = vpack.c.bf16 %v3235_v14, %v3235_v14 }
 0x536   :  { %v3306_v35 = vadd.f32 %v6060_v32, %v3305_v8  ;;  %v3342_v54 = vmul.f32 %v6066_v16, %v3340_v63  ;;  %v6068_v17 = vpop.eup %6067  ;;  %vm3347_vm9 = vweird.f32 %v6066_v16 }
 0x537   :  { %v3325_v29 = vadd.f32 %v6062_v13, %v3324_v55  ;;  %3237 = vst [vmem:[#allocation4 + $0xc] sm:$0xf] %v3236_v5  ;;  %vm3348_vm11 = vmor %vm3346_vm10, %vm3347_vm9  ;;  %v8819_v55 = vld [vmem:[#allocation105_spill] sm:$0xff] }
 0x538   :  { %v3310_v50 = vsel %vm3309_vm5, %v6060_v32, %v3306_v35  ;;  %v3343_v9 = vsub.f32 1.0, %v3342_v54  ;;  %v3350_v32 = vand.u32 2147483647, %v3340_v63  ;;  %v8817_v63 = vld [vmem:[#allocation100_spill] sm:$0xff]  ;;  %v8821_v35 = vld [vmem:[#allocation107_spill] sm:$0xff] }
 0x539   :  { %v3315_v40 = vsel %vm3312_vm7, %v3314_v11, %v3310_v50  ;;  %v3329_v3 = vsel %vm3328_vm6, %v6062_v13, %v3325_v29  ;;  %v8822_v54 = vld [vmem:[#allocation108_spill] sm:$0xff]  ;;  %v8824_v11 = vld [vmem:[#allocation110_spill] sm:$0xff]  ;;  %v8825_v29 = vld [vmem:[#allocation111_spill] sm:$0xff] }
 0x53a   :  { %v3334_v1 = vsel %vm3331_vm8, %v3333_v20, %v3329_v3  ;;  %v3357_v39 = vmul.f32 %v6068_v17, %v3315_v40  ;;  %v3344_v61 = vmul.f32 %v6066_v16, %v3343_v9  ;;  %vm3351_vm12 = vcmp.eq.f32.partialorder %v3350_v32, 8.507059e+37  ;;  %v8826_v17 = vld [vmem:[#allocation113_spill] sm:$0xff]  ;;  %v8827_v20 = vld [vmem:[#allocation115_spill] sm:$0xff]  ;;  %v8829_v9 = vld [vmem:[#allocation118_spill] sm:$0xff] }
 0x53b   :  { %v3356_v28 = vmul.f32 %v3334_v1, %v7664_v15  ;;  %v8816_v15 = vld [vmem:[#allocation99_spill] sm:$0xff]  ;;  %v8828_v50 = vld [vmem:[#allocation117_spill] sm:$0xff]  ;;  %v8831_v3 = vld [vmem:[#allocation120_spill] sm:$0xff] }
 0x53c   :  { %v3345_v37 = vadd.f32 %v6066_v16, %v3344_v61  ;;  %v8830_v40 = vld [vmem:[#allocation119_spill] sm:$0xff]  ;;  %v8832_v1 = vld [vmem:[#allocation121_spill] sm:$0xff] }
 0x53d   :  { %v7787_v33 = vadd.f32 %v3357_v39, %v3356_v28  ;;  %v8833_v39 = vld [vmem:[#allocation122_spill] sm:$0xff]  ;;  %v8834_v61 = vld [vmem:[#allocation123_spill] sm:$0xff]  ;;  %v8838_v32 = vld [vmem:[#allocation129_spill] sm:$0xff] }
 0x53e   :  { %v3349_v53 = vsel %vm3348_vm11, %v6066_v16, %v3345_v37  ;;  %v8818_v16 = vld [vmem:[#allocation101_spill] sm:$0xff]  ;;  %v8835_v28 = vld [vmem:[#allocation126_spill] sm:$0xff]  ;;  %v8836_v37 = vld [vmem:[#allocation127_spill] sm:$0xff] }
 0x53f   :  { %6069 = vtanh.f32 %v7787_v33  ;;  %v3354_v8 = vsel %vm3351_vm12, %v3353_v30, %v3349_v53  ;;  %v8839_v53 = vld [vmem:[#allocation130_spill] sm:$0xff]  ;;  %v8840_v30 = vld [vmem:[#allocation132_spill] sm:$0xff] }
 0x545   :  { %v6070_v13 = vpop.eup %6069 }
 0x546   :  { %v3360_v21 = vmul.f32 %v6070_v13, %v3354_v8  ;;  %v8841_v13 = vld [vmem:[#allocation133_spill] sm:$0xff]  ;;  %v8842_v8 = vld [vmem:[#allocation134_spill] sm:$0xff] }
 0x548   :  { %v3365_v14 = vpack.c.bf16 %v3360_v21, %v3360_v21  ;;  %v8843_v21 = vld [vmem:[#allocation136_spill] sm:$0xff] }
 0x54a   :  { %3374 = vmatmul.bf16.vlgmr.msra.gmra.mxu0 %v3365_v14  ;;  %3387 = vmatmul.bf16.vlgmr.msra.gmra.mxu1 %v3365_v14 }
 0x54b   :  { %3400 = vmatmul.bf16.vlgmr.msra.gmra.mxu2 %v3365_v14  ;;  %3413 = vmatmul.bf16.vlgmr.msrb.gmra.mxu3 %v3365_v14 }
 0x54c   :  { %3547 = vmatpush.bf16.msra.mxu0 %v6600_v47  ;;  %3560 = vmatpush.bf16.msra.mxu1 %v6734_v24 }
 0x54d   :  { %3573 = vmatpush.bf16.msra.mxu2 %v6764_v56  ;;  %3586 = vmatpush.bf16.msrb.mxu3 %v6729_v45 }
 0x550   :  { %3548 = vmatpush.bf16.msra.mxu0 %v6615_v57  ;;  %3561 = vmatpush.bf16.msra.mxu1 %v6748_v48 }
 0x551   :  { %3574 = vmatpush.bf16.msra.mxu2 %v6787_v10  ;;  %3587 = vmatpush.bf16.msrb.mxu3 %v6742_v22 }
 0x554   :  { %3549 = vmatpush.bf16.msra.mxu0 %v6622_v4  ;;  %3562 = vmatpush.bf16.msra.mxu1 %v6773_v26 }
 0x555   :  { %3575 = vmatpush.bf16.msra.mxu2 %v6815_v60  ;;  %3588 = vmatpush.bf16.msrb.mxu3 %v6750_v52 }
 0x558   :  { %3550 = vmatpush.bf16.msra.mxu0 %v6628_v12  ;;  %3563 = vmatpush.bf16.msra.mxu1 %v6789_v36 }
 0x559   :  { %3576 = vmatpush.bf16.msra.mxu2 %v6832_v43  ;;  %3589 = vmatpush.bf16.msrb.mxu3 %v6758_v62 }
 0x55a   :  { %3430 = vmatmul.bf16.vlgmr.msrb.gmra.mxu0 %v3236_v5  ;;  %3443 = vmatmul.bf16.vlgmr.msrb.gmra.mxu1 %v3236_v5 }
 0x55b   :  { %3456 = vmatmul.bf16.vlgmr.msrb.gmra.mxu2 %v3236_v5  ;;  %3469 = vmatmul.bf16.vlgmr.msra.gmra.mxu3 %v3236_v5  ;;  %v8823_v5 = vld [vmem:[#allocation109_spill] sm:$0xff] }
 0x55c   :  { %3551 = vmatpush.bf16.msra.mxu0 %v6646_v31  ;;  %3564 = vmatpush.bf16.msra.mxu1 %v6819_v41 }
 0x55d   :  { %3577 = vmatpush.bf16.msra.mxu2 %v6856_v34  ;;  %3590 = vmatpush.bf16.msrb.mxu3 %v6768_v25 }
 0x560   :  { %3552 = vmatpush.bf16.msra.mxu0 %v6655_v38  ;;  %3565 = vmatpush.bf16.msra.mxu1 %v6837_v18 }
 0x561   :  { %3578 = vmatpush.bf16.msra.mxu2 %v6865_v19  ;;  %3591 = vmatpush.bf16.msrb.mxu3 %v6781_v46 }
 0x564   :  { %3553 = vmatpush.bf16.msra.mxu0 %v6662_v51  ;;  %3566 = vmatpush.bf16.msra.mxu1 %v6860_v58 }
 0x565   :  { %3579 = vmatpush.bf16.msra.mxu2 %v6878_v0  ;;  %3592 = vmatpush.bf16.msrb.mxu3 %v6791_v27 }
 0x568   :  { %3554 = vmatpush.bf16.msra.mxu0 %v6680_v6  ;;  %3567 = vmatpush.bf16.msra.mxu1 %v6873_v49 }
 0x569   :  { %3580 = vmatpush.bf16.msra.mxu2 %v6886_v23  ;;  %3593 = vmatpush.bf16.msrb.mxu3 %v8739_v44 }
 0x56b   :  { %3555 = vmatmul.bf16.vlgmr.msra.gmra.mxu0 %v3365_v14  ;;  %3568 = vmatmul.bf16.vlgmr.msra.gmra.mxu1 %v3365_v14 }
 0x56c   :  { %3671 = vmatpush.bf16.msrb.mxu0 %v8740_v59  ;;  %3684 = vmatpush.bf16.msrb.mxu1 %v8816_v15 }
 0x56d   :  { %3581 = vmatmul.bf16.vlgmr.msra.gmra.mxu2 %v3365_v14  ;;  %3594 = vmatmul.bf16.vlgmr.msrb.gmra.mxu3 %v3365_v14  ;;  %v8844_v14 = vld [vmem:[#allocation137_spill] sm:$0xff] }
 0x56e   :  { %3697 = vmatpush.bf16.msrb.mxu2 %v8817_v63  ;;  %3710 = vmatpush.bf16.msra.mxu3 %v8818_v16  ;;  %v8892_v16 = vld [vmem:[#allocation56_spill] sm:$0xff] }
 0x570   :  { %3672 = vmatpush.bf16.msrb.mxu0 %v8819_v55  ;;  %3685 = vmatpush.bf16.msrb.mxu1 %v8820_v42  ;;  %v8891_v55 = vld [vmem:[#allocation40_spill] sm:$0xff] }
 0x572   :  { %3698 = vmatpush.bf16.msrb.mxu2 %v8821_v35  ;;  %3711 = vmatpush.bf16.msra.mxu3 %v8822_v54  ;;  %v8889_v35 = vld [vmem:[#allocation81_spill] sm:$0xff] }
 0x574   :  { %3673 = vmatpush.bf16.msrb.mxu0 %v8823_v5  ;;  %3686 = vmatpush.bf16.msrb.mxu1 %v8824_v11 }
 0x576   :  { %3699 = vmatpush.bf16.msrb.mxu2 %v8825_v29  ;;  %3712 = vmatpush.bf16.msra.mxu3 %v8826_v17 }
 0x578   :  { %3674 = vmatpush.bf16.msrb.mxu0 %v8827_v20  ;;  %3687 = vmatpush.bf16.msrb.mxu1 %v8828_v50 }
 0x57a   :  { %3700 = vmatpush.bf16.msrb.mxu2 %v8829_v9  ;;  %3713 = vmatpush.bf16.msra.mxu3 %v8830_v40  ;;  %v8880_v40 = vld [vmem:[#allocation116_spill] sm:$0xff] }
 0x57c   :  { %3675 = vmatpush.bf16.msrb.mxu0 %v8831_v3  ;;  %3688 = vmatpush.bf16.msrb.mxu1 %v8832_v1  ;;  %v8879_v3 = vld [vmem:[#allocation67_spill] sm:$0xff] }
 0x57e   :  { %3701 = vmatpush.bf16.msrb.mxu2 %v8833_v39  ;;  %3714 = vmatpush.bf16.msra.mxu3 %v8834_v61  ;;  %v8845_v61 = vld [vmem:[#allocation140_spill] sm:$0xff] }
 0x580   :  { %3676 = vmatpush.bf16.msrb.mxu0 %v8835_v28  ;;  %3689 = vmatpush.bf16.msrb.mxu1 %v8836_v37  ;;  %v8846_v28 = vld [vmem:[#allocation141_spill] sm:$0xff]  ;;  %v8847_v37 = vld [vmem:[#allocation138_spill] sm:$0xff] }
 0x582   :  { %3702 = vmatpush.bf16.msrb.mxu2 %v8837_v7  ;;  %3715 = vmatpush.bf16.msra.mxu3 %v8838_v32  ;;  %v8848_v7 = vld [vmem:[#allocation139_spill] sm:$0xff]  ;;  %v8849_v32 = vld [vmem:[#allocation142_spill] sm:$0xff] }
 0x584   :  { %3677 = vmatpush.bf16.msrb.mxu0 %v8839_v53  ;;  %3690 = vmatpush.bf16.msrb.mxu1 %v8840_v30  ;;  %v8850_v53 = vld [vmem:[#allocation144_spill] sm:$0xff]  ;;  %v8851_v30 = vld [vmem:[#allocation146_spill] sm:$0xff] }
 0x586   :  { %3703 = vmatpush.bf16.msrb.mxu2 %v8841_v13  ;;  %3716 = vmatpush.bf16.msra.mxu3 %v8842_v8  ;;  %v8852_v13 = vld [vmem:[#allocation147_spill] sm:$0xff]  ;;  %v8853_v8 = vld [vmem:[#allocation148_spill] sm:$0xff] }
 0x588   :  { %3678 = vmatpush.bf16.msrb.mxu0 %v8843_v21  ;;  %3691 = vmatpush.bf16.msrb.mxu1 %v8844_v14  ;;  %v8854_v21 = vld [vmem:[#allocation149_spill] sm:$0xff]  ;;  %v8855_v14 = vld [vmem:[#allocation150_spill] sm:$0xff] }
 0x58a   :  { %3704 = vmatpush.bf16.msrb.mxu2 %v8847_v37  ;;  %3717 = vmatpush.bf16.msra.mxu3 %v8848_v7  ;;  %v8858_v37 = vld [vmem:[#allocation153_spill] sm:$0xff]  ;;  %v8859_v7 = vld [vmem:[#allocation155_spill] sm:$0xff] }
 0x58c   :  { %3727 = vmatpush.bf16.msra.mxu0 %v8845_v61  ;;  %3740 = vmatpush.bf16.msra.mxu1 %v8846_v28  ;;  %v8856_v61 = vld [vmem:[#allocation151_spill] sm:$0xff]  ;;  %v8857_v28 = vld [vmem:[#allocation152_spill] sm:$0xff] }
 0x58e   :  { %3753 = vmatpush.bf16.msra.mxu2 %v8849_v32  ;;  %3766 = vmatpush.bf16.msrb.mxu3 %v8850_v53  ;;  %v8860_v32 = vld [vmem:[#allocation156_spill] sm:$0xff]  ;;  %v8861_v53 = vld [vmem:[#allocation157_spill] sm:$0xff] }
 0x590   :  { %3728 = vmatpush.bf16.msra.mxu0 %v8851_v30  ;;  %3741 = vmatpush.bf16.msra.mxu1 %v8852_v13  ;;  %v8862_v30 = vld [vmem:[#allocation158_spill] sm:$0xff]  ;;  %v8863_v13 = vld [vmem:[#allocation159_spill] sm:$0xff] }
 0x592   :  { %3754 = vmatpush.bf16.msra.mxu2 %v8853_v8  ;;  %3767 = vmatpush.bf16.msrb.mxu3 %v8854_v21  ;;  %v8864_v8 = vld [vmem:[#allocation160_spill] sm:$0xff]  ;;  %v8865_v21 = vld [vmem:[#allocation161_spill] sm:$0xff] }
 0x594   :  { %3729 = vmatpush.bf16.msra.mxu0 %v8855_v14  ;;  %3742 = vmatpush.bf16.msra.mxu1 %v8856_v61  ;;  %v8866_v14 = vld [vmem:[#allocation162_spill] sm:$0xff]  ;;  %v8867_v61 = vld [vmem:[#allocation163_spill] sm:$0xff] }
 0x596   :  { %3755 = vmatpush.bf16.msra.mxu2 %v8857_v28  ;;  %3768 = vmatpush.bf16.msrb.mxu3 %v8858_v37  ;;  %v8868_v28 = vld [vmem:[#allocation164_spill] sm:$0xff]  ;;  %v8869_v37 = vld [vmem:[#allocation165_spill] sm:$0xff] }
 0x598   :  { %3730 = vmatpush.bf16.msra.mxu0 %v8859_v7  ;;  %3743 = vmatpush.bf16.msra.mxu1 %v8860_v32  ;;  %v8870_v7 = vld [vmem:[#allocation166_spill] sm:$0xff]  ;;  %v8871_v32 = vld [vmem:[#allocation167_spill] sm:$0xff] }
 0x59a   :  { %3756 = vmatpush.bf16.msra.mxu2 %v8861_v53  ;;  %3769 = vmatpush.bf16.msrb.mxu3 %v8862_v30  ;;  %v8872_v53 = vld [vmem:[#allocation168_spill] sm:$0xff]  ;;  %v8873_v30 = vld [vmem:[#allocation169_spill] sm:$0xff] }
 0x59c   :  { %3731 = vmatpush.bf16.msra.mxu0 %v8863_v13  ;;  %3744 = vmatpush.bf16.msra.mxu1 %v8864_v8  ;;  %v8874_v13 = vld [vmem:[#allocation170_spill] sm:$0xff]  ;;  %v8875_v8 = vld [vmem:[#allocation171_spill] sm:$0xff] }
 0x59e   :  { %3757 = vmatpush.bf16.msra.mxu2 %v8865_v21  ;;  %3770 = vmatpush.bf16.msrb.mxu3 %v8866_v14  ;;  %v8876_v21 = vld [vmem:[#allocation172_spill] sm:$0xff]  ;;  %v8877_v14 = vld [vmem:[#allocation173_spill] sm:$0xff] }
 0x5a0   :  { %3732 = vmatpush.bf16.msra.mxu0 %v8867_v61  ;;  %3745 = vmatpush.bf16.msra.mxu1 %v8868_v28  ;;  %v8878_v61 = vld [vmem:[#allocation174_spill] sm:$0xff] }
 0x5a2   :  { %3758 = vmatpush.bf16.msra.mxu2 %v8869_v37  ;;  %3771 = vmatpush.bf16.msrb.mxu3 %v8870_v7 }
 0x5a4   :  { %3733 = vmatpush.bf16.msra.mxu0 %v8871_v32  ;;  %3746 = vmatpush.bf16.msra.mxu1 %v8872_v53 }
 0x5a6   :  { %3759 = vmatpush.bf16.msra.mxu2 %v8873_v30  ;;  %3772 = vmatpush.bf16.msrb.mxu3 %v8874_v13 }
 0x5a8   :  { %3734 = vmatpush.bf16.msra.mxu0 %v8875_v8  ;;  %3747 = vmatpush.bf16.msra.mxu1 %v8876_v21 }
 0x5aa   :  { %3760 = vmatpush.bf16.msra.mxu2 %v8877_v14  ;;  %3773 = vmatpush.bf16.msrb.mxu3 %v8878_v61  ;;  %v8881_v61 = vld [vmem:[#allocation91_spill] sm:$0xff] }
 0x5c7   :  { %v3375_v28 = vpop.f32.mrf.mxu0  ;;  %v3388_v37 = vpop.f32.mrf.mxu1 }
 0x5c8   :  { %v3418_v53 = vadd.f32 %v3375_v28, %v8879_v3  ;;  %v3419_v30 = vadd.f32 %v3388_v37, %v8880_v40 }
 0x5ce   :  { %v3401_v39 = vpop.f32.mrf.mxu2  ;;  %v3414_v7 = vpop.f32.mrf.mxu3 }
 0x5cf   :  { %v3377_v1 = vpop.f32.mrf.mxu0  ;;  %v3390_v32 = vpop.f32.mrf.mxu1  ;;  %v3421_v29 = vadd.f32 %v3414_v7, %v8881_v61  ;;  %v8884_v61 = vld [vmem:[#allocation53_spill] sm:$0xff] }
 0x5d6   :  { %v3403_v9 = vpop.f32.mrf.mxu2  ;;  %v3416_v13 = vpop.f32.mrf.mxu3 }
 0x5d7   :  { %v3431_v50 = vpop.f32.mrf.mxu0  ;;  %v3444_v8 = vpop.f32.mrf.mxu1  ;;  %v8882_v13 = vld [vmem:[#allocation27_spill] sm:$0xff] }
 0x5d8   :  { %v3474_v20 = vadd.f32 %v3431_v50, %v3418_v53  ;;  %v3475_v21 = vadd.f32 %v3444_v8, %v3419_v30  ;;  %v8883_v50 = vld [vmem:[#allocation25_spill] sm:$0xff]  ;;  %v8885_v30 = vld [vmem:[#allocation124_spill] sm:$0xff] }
 0x5d9   :  { %v953_v53 = vadd.f32 %v8883_v50, %v8882_v13  ;;  %v3420_v8 = vadd.f32 %v3401_v39, %v8885_v30 }
 0x5da   :  { %v5604_v17 = vmul.f32 -1.442695, %v3474_v20  ;;  %v5605_v14 = vmul.f32 -1.442695, %v3475_v21 }
 0x5db   :  { %v982_v7 = vadd.f32 %v8884_v61, %v953_v53 }
 0x5dc   :  { %6071 = vpow2.f32 %v5604_v17 }
 0x5dd   :  { %6073 = vpow2.f32 %v5605_v14 }
 0x5de   :  { %v3457_v11 = vpop.f32.mrf.mxu2  ;;  %v3470_v5 = vpop.f32.mrf.mxu3 }
 0x5df   :  { %v3477_v1 = vadd.f32 %v3470_v5, %v3421_v29  ;;  %v3433_v32 = vpop.f32.mrf.mxu0  ;;  %v3446_v54 = vpop.f32.mrf.mxu1  ;;  %v8886_v5 = vld [vmem:[#allocation66_spill] sm:$0xff]  ;;  %v8887_v29 = vld [vmem:[#allocation79_spill] sm:$0xff] }
 0x5e0   :  { %v1098_v54 = vadd.f32 %v8887_v29, %v8886_v5  ;;  %v3476_v32 = vadd.f32 %v3457_v11, %v3420_v8  ;;  %v8890_v11 = vld [vmem:[#allocation71_spill] sm:$0xff] }
 0x5e1   :  { %v5606_v3 = vmul.f32 -1.442695, %v3477_v1 }
 0x5e2   :  { %v6072_v28 = vpop.eup %6071  ;;  %v1127_v13 = vadd.f32 %v8889_v35, %v1098_v54 }
 0x5e3   :  { %v6074_v40 = vpop.eup %6073  ;;  %v3481_v9 = vadd.f32 1.0, %v6072_v28  ;;  %6075 = vpow2.f32 %v5606_v3  ;;  %v8888_v3 = vld [vmem:[#allocation34_spill] sm:$0xff] }
 0x5e4   :  { %v3500_v37 = vadd.f32 1.0, %v6074_v40  ;;  %v1156_v8 = vadd.f32 %v8890_v11, %v1127_v13 }
 0x5e5   :  { %6077 = vrcp.f32 %v3481_v9  ;;  %v3491_v29 = vand.u32 2147483647, %v3481_v9  ;;  %vm3487_vm0 = vweird.f32 %v3481_v9 }
 0x5e6   :  { %6079 = vrcp.f32 %v3500_v37  ;;  %v3459_v17 = vpop.f32.mrf.mxu2  ;;  %v3472_v20 = vpop.f32.mrf.mxu3  ;;  %vm3506_vm15 = vweird.f32 %v3500_v37 }
 0x5e7   :  { %vm3492_vm2 = vcmp.eq.f32.partialorder %v3491_v29, 8.507059e+37 }
 0x5e8   :  { %v3556_v21 = vpop.f32.mrf.mxu0  ;;  %v3569_v14 = vpop.f32.mrf.mxu1 }
 0x5e9   :  { %v6076_v1 = vpop.eup %6075  ;;  %v3599_v28 = vadd.f32 %v3556_v21, %v8888_v3  ;;  %v3600_v40 = vadd.f32 %v3569_v14, %v982_v7  ;;  %v3512_v7 = vand.u32 2147483648, %v3500_v37  ;;  %v3493_v14 = vand.u32 2147483648, %v3481_v9 }
 0x5ea   :  { %v7897_v50 = vadd.f32 1.0, %v6076_v1  ;;  %v3510_v3 = vand.u32 2147483647, %v3500_v37 }
 0x5eb   :  { %v6078_v17 = vpop.eup %6077  ;;  %v5607_v20 = vmul.f32 -1.442695, %v3599_v28  ;;  %v5608_v42 = vmul.f32 -1.442695, %v3600_v40 }
 0x5ec   :  { %v6080_v53 = vpop.eup %6079  ;;  %v3483_v61 = vmul.f32 %v6078_v17, %v3481_v9  ;;  %6081 = vrcp.f32 %v7897_v50  ;;  %vm3488_vm13 = vweird.f32 %v6078_v17  ;;  %vm3511_vm4 = vcmp.eq.f32.partialorder %v3510_v3, 8.507059e+37  ;;  %v8893_v9 = vld [vmem:[#allocation43_spill] sm:$0xff]  ;;  %v8894_v3 = vld [vmem:[#allocation42_spill] sm:$0xff] }
 0x5ed   :  { %v3502_v39 = vmul.f32 %v6080_v53, %v3500_v37  ;;  %6083 = vtanh.f32 %v3476_v32  ;;  %v1011_v32 = vadd.f32 %v8892_v16, %v8891_v55  ;;  %vm3507_vm14 = vweird.f32 %v6080_v53  ;;  %vm3489_vm1 = vmor %vm3487_vm0, %vm3488_vm13 }
 0x5ee   :  { %v3484_v30 = vsub.f32 1.0, %v3483_v61  ;;  %6085 = vpow2.f32 %v5607_v20  ;;  %vm3508_vm3 = vmor %vm3506_vm15, %vm3507_vm14  ;;  %vm3526_vm6 = vweird.f32 %v7897_v50 }
 0x5ef   :  { %v3503_v21 = vsub.f32 1.0, %v3502_v39  ;;  %6087 = vpow2.f32 %v5608_v42  ;;  %v3494_v42 = vor.u32 1.1754944e-38, %v3493_v14 }
 0x5f0   :  { %v3582_v35 = vpop.f32.mrf.mxu2  ;;  %v3595_v54 = vpop.f32.mrf.mxu3  ;;  %v3485_v1 = vmul.f32 %v6078_v17, %v3484_v30 }
 0x5f1   :  { %v3602_v28 = vadd.f32 %v3595_v54, %v1156_v8  ;;  %v3558_v40 = vpop.f32.mrf.mxu0  ;;  %v3571_v5 = vpop.f32.mrf.mxu1  ;;  %v3504_v61 = vmul.f32 %v6080_v53, %v3503_v21 }
 0x5f2   :  { %v6082_v20 = vpop.eup %6081  ;;  %v3486_v13 = vadd.f32 %v6078_v17, %v3485_v1  ;;  %v3513_v5 = vor.u32 1.1754944e-38, %v3512_v7 }
 0x5f3   :  { %v5609_v39 = vmul.f32 -1.442695, %v3602_v28  ;;  %v6084_v11 = vpop.eup %6083  ;;  %v3505_v30 = vadd.f32 %v6080_v53, %v3504_v61  ;;  %v3522_v63 = vmul.f32 %v6082_v20, %v7897_v50  ;;  %v1040_v28 = vadd.f32 %v8893_v9, %v1011_v32 }
 0x5f4   :  { %v6086_v8 = vpop.eup %6085  ;;  %v3490_v54 = vsel %vm3489_vm1, %v6078_v17, %v3486_v13  ;;  %vm3527_vm5 = vweird.f32 %v6082_v20  ;;  %v3532_v32 = vand.u32 2147483648, %v7897_v50 }
 0x5f5   :  { %6089 = vpow2.f32 %v5609_v39  ;;  %v6088_v16 = vpop.eup %6087  ;;  %v3495_v21 = vsel %vm3492_vm2, %v3494_v42, %v3490_v54  ;;  %v3509_v40 = vsel %vm3508_vm3, %v6080_v53, %v3505_v30  ;;  %v3523_v37 = vsub.f32 1.0, %v3522_v63  ;;  %vm3528_vm7 = vmor %vm3526_vm6, %vm3527_vm5 }
 0x5f6   :  { %v3606_v1 = vadd.f32 1.0, %v6086_v8  ;;  %v3514_v55 = vsel %vm3511_vm4, %v3513_v5, %v3509_v40  ;;  %v3537_v15 = vmul.f32 %v6084_v11, %v3495_v21  ;;  %v3625_v29 = vadd.f32 1.0, %v6088_v16 }
 0x5f7   :  { %v3536_v14 = vmul.f32 %v3514_v55, %v7779_v2  ;;  %v3524_v61 = vmul.f32 %v6082_v20, %v3523_v37  ;;  %v1069_v53 = vadd.f32 %v8894_v3, %v1040_v28  ;;  %v3530_v2 = vand.u32 2147483647, %v7897_v50 }
 0x5f8   :  { %6091 = vrcp.f32 %v3606_v1  ;;  %v3584_v59 = vpop.f32.mrf.mxu2  ;;  %v3597_v44 = vpop.f32.mrf.mxu3  ;;  %v3533_v11 = vor.u32 1.1754944e-38, %v3532_v32  ;;  %v3637_v54 = vand.u32 2147483648, %v3625_v29  ;;  %v3618_v16 = vand.u32 2147483648, %v3606_v1 }
 0x5f9   :  { %6093 = vrcp.f32 %v3625_v29  ;;  %v7906_v17 = vadd.f32 %v3537_v15, %v3536_v14  ;;  %v3525_v63 = vadd.f32 %v6082_v20, %v3524_v61  ;;  %v3601_v55 = vadd.f32 %v3582_v35, %v1069_v53 }
 0x5fa   :  { %vm3531_vm8 = vcmp.eq.f32.partialorder %v3530_v2, 8.507059e+37  ;;  %v3616_v50 = vand.u32 2147483647, %v3606_v1  ;;  %v3635_v28 = vand.u32 2147483647, %v3625_v29  ;;  %vm3612_vm11 = vweird.f32 %v3606_v1 }
 0x5fb   :  { %v6090_v7 = vpop.eup %6089  ;;  %6095 = vtanh.f32 %v7906_v17  ;;  %v3529_v39 = vsel %vm3528_vm7, %v6082_v20, %v3525_v63  ;;  %vm3631_vm12 = vweird.f32 %v3625_v29  ;;  %v3638_v63 = vor.u32 1.1754944e-38, %v3637_v54 }
 0x5fc   :  { %v3645_v13 = vadd.f32 1.0, %v6090_v7  ;;  %v3534_v21 = vsel %vm3531_vm8, %v3533_v11, %v3529_v39  ;;  %v3619_v7 = vor.u32 1.1754944e-38, %v3618_v16  ;;  %vm3617_vm15 = vcmp.eq.f32.partialorder %v3616_v50, 8.507059e+37  ;;  %v8897_v50 = vld [vmem:[#allocation99_spill] sm:$0xff] }
 0x5fd   :  { %vm3636_vm0 = vcmp.eq.f32.partialorder %v3635_v28, 8.507059e+37  ;;  %v8901_v28 = vld [vmem:[#allocation106_spill] sm:$0xff] }
 0x5fe   :  { %v6092_v59 = vpop.eup %6091  ;;  %6097 = vrcp.f32 %v3645_v13  ;;  %vm3651_vm2 = vweird.f32 %v3645_v13 }
 0x5ff   :  { %v6094_v44 = vpop.eup %6093  ;;  %v3608_v15 = vmul.f32 %v6092_v59, %v3606_v1  ;;  %6099 = vtanh.f32 %v3601_v55  ;;  %vm3613_vm9 = vweird.f32 %v6092_v59 }
 0x600   :  { %v3627_v42 = vmul.f32 %v6094_v44, %v3625_v29  ;;  %vm3632_vm10 = vweird.f32 %v6094_v44  ;;  %vm3614_vm13 = vmor %vm3612_vm11, %vm3613_vm9 }
 0x601   :  { %v3609_v30 = vsub.f32 1.0, %v3608_v15  ;;  %v6096_v8 = vpop.eup %6095  ;;  %vm3633_vm14 = vmor %vm3631_vm12, %vm3632_vm10 }
 0x602   :  { %v3628_v5 = vsub.f32 1.0, %v3627_v42  ;;  %v3540_v35 = vmul.f32 %v6096_v8, %v3534_v21  ;;  %v3657_v8 = vand.u32 2147483648, %v3645_v13 }
 0x603   :  { %v3610_v40 = vmul.f32 %v6092_v59, %v3609_v30 }
 0x604   :  { %v6098_v37 = vpop.eup %6097  ;;  %v3629_v9 = vmul.f32 %v6094_v44, %v3628_v5  ;;  %v3541_v61 = vpack.c.bf16 %v3540_v35, %v3540_v35  ;;  %v3658_v54 = vor.u32 1.1754944e-38, %v3657_v8  ;;  %v8898_v35 = vld [vmem:[#allocation100_spill] sm:$0xff] }
 0x605   :  { %v3611_v14 = vadd.f32 %v6092_v59, %v3610_v40  ;;  %v3647_v20 = vmul.f32 %v6098_v37, %v3645_v13  ;;  %v6100_v53 = vpop.eup %6099  ;;  %vm3652_vm1 = vweird.f32 %v6098_v37  ;;  %v8918_v8 = vld [vmem:[#allocation128_spill] sm:$0xff] }
 0x606   :  { %v3630_v3 = vadd.f32 %v6094_v44, %v3629_v9  ;;  %3542 = vst [vmem:[#allocation4 + $0x10] sm:$0xf] %v3541_v61  ;;  %vm3653_vm3 = vmor %vm3651_vm2, %vm3652_vm1  ;;  %v8900_v9 = vld [vmem:[#allocation105_spill] sm:$0xff] }
 0x607   :  { %v3615_v32 = vsel %vm3614_vm13, %v6092_v59, %v3611_v14  ;;  %v3648_v2 = vsub.f32 1.0, %v3647_v20  ;;  %v3655_v59 = vand.u32 2147483647, %v3645_v13  ;;  %v8896_v13 = vld [vmem:[#allocation97_spill] sm:$0xff]  ;;  %v8902_v14 = vld [vmem:[#allocation107_spill] sm:$0xff]  ;;  %v8903_v20 = vld [vmem:[#allocation108_spill] sm:$0xff] }
 0x608   :  { %v3620_v55 = vsel %vm3617_vm15, %v3619_v7, %v3615_v32  ;;  %v3634_v15 = vsel %vm3633_vm14, %v6094_v44, %v3630_v3  ;;  %v8905_v7 = vld [vmem:[#allocation110_spill] sm:$0xff]  ;;  %v8906_v3 = vld [vmem:[#allocation111_spill] sm:$0xff]  ;;  %v8909_v32 = vld [vmem:[#allocation117_spill] sm:$0xff] }
 0x609   :  { %v3639_v39 = vsel %vm3636_vm0, %v3638_v63, %v3634_v15  ;;  %v3662_v11 = vmul.f32 %v6100_v53, %v3620_v55  ;;  %v3649_v42 = vmul.f32 %v6098_v37, %v3648_v2  ;;  %vm3656_vm4 = vcmp.eq.f32.partialorder %v3655_v59, 8.507059e+37  ;;  %v8907_v53 = vld [vmem:[#allocation113_spill] sm:$0xff]  ;;  %v8908_v63 = vld [vmem:[#allocation115_spill] sm:$0xff]  ;;  %v8910_v2 = vld [vmem:[#allocation118_spill] sm:$0xff] }
 0x60a   :  { %v3661_v1 = vmul.f32 %v3639_v39, %v7787_v33  ;;  %v8895_v33 = vld [vmem:[#allocation39_spill] sm:$0xff]  ;;  %v8912_v15 = vld [vmem:[#allocation120_spill] sm:$0xff]  ;;  %v8913_v39 = vld [vmem:[#allocation121_spill] sm:$0xff] }
 0x60b   :  { %v3650_v29 = vadd.f32 %v6098_v37, %v3649_v42  ;;  %v8911_v55 = vld [vmem:[#allocation119_spill] sm:$0xff]  ;;  %v8919_v59 = vld [vmem:[#allocation129_spill] sm:$0xff] }
 0x60c   :  { %v7914_v30 = vadd.f32 %v3662_v11, %v3661_v1  ;;  %v8914_v11 = vld [vmem:[#allocation122_spill] sm:$0xff]  ;;  %v8915_v42 = vld [vmem:[#allocation123_spill] sm:$0xff] }
 0x60d   :  { %v3654_v5 = vsel %vm3653_vm3, %v6098_v37, %v3650_v29  ;;  %v8899_v37 = vld [vmem:[#allocation101_spill] sm:$0xff]  ;;  %v8916_v1 = vld [vmem:[#allocation126_spill] sm:$0xff]  ;;  %v8917_v29 = vld [vmem:[#allocation127_spill] sm:$0xff] }
 0x60e   :  { %6101 = vtanh.f32 %v7914_v30  ;;  %v3659_v16 = vsel %vm3656_vm4, %v3658_v54, %v3654_v5  ;;  %v8920_v5 = vld [vmem:[#allocation130_spill] sm:$0xff]  ;;  %v8921_v54 = vld [vmem:[#allocation132_spill] sm:$0xff] }
 0x614   :  { %v6102_v44 = vpop.eup %6101 }
 0x615   :  { %v3665_v21 = vmul.f32 %v6102_v44, %v3659_v16  ;;  %v8922_v44 = vld [vmem:[#allocation133_spill] sm:$0xff]  ;;  %v8923_v16 = vld [vmem:[#allocation134_spill] sm:$0xff] }
 0x617   :  { %v3670_v40 = vpack.c.bf16 %v3665_v21, %v3665_v21  ;;  %v8924_v21 = vld [vmem:[#allocation136_spill] sm:$0xff] }
 0x619   :  { %3679 = vmatmul.bf16.vlgmr.msrb.gmra.mxu0 %v3670_v40  ;;  %3692 = vmatmul.bf16.vlgmr.msrb.gmra.mxu1 %v3670_v40 }
 0x61a   :  { %3705 = vmatmul.bf16.vlgmr.msrb.gmra.mxu2 %v3670_v40  ;;  %3718 = vmatmul.bf16.vlgmr.msra.gmra.mxu3 %v3670_v40 }
 0x61b   :  { %3852 = vmatpush.bf16.msrb.mxu0 %v6600_v47  ;;  %3865 = vmatpush.bf16.msrb.mxu1 %v6734_v24 }
 0x61c   :  { %3878 = vmatpush.bf16.msrb.mxu2 %v6764_v56  ;;  %3891 = vmatpush.bf16.msra.mxu3 %v6729_v45 }
 0x61f   :  { %3853 = vmatpush.bf16.msrb.mxu0 %v6615_v57  ;;  %3866 = vmatpush.bf16.msrb.mxu1 %v6748_v48 }
 0x620   :  { %3879 = vmatpush.bf16.msrb.mxu2 %v6787_v10  ;;  %3892 = vmatpush.bf16.msra.mxu3 %v6742_v22 }
 0x623   :  { %3854 = vmatpush.bf16.msrb.mxu0 %v6622_v4  ;;  %3867 = vmatpush.bf16.msrb.mxu1 %v6773_v26 }
 0x624   :  { %3880 = vmatpush.bf16.msrb.mxu2 %v6815_v60  ;;  %3893 = vmatpush.bf16.msra.mxu3 %v6750_v52 }
 0x627   :  { %3855 = vmatpush.bf16.msrb.mxu0 %v6628_v12  ;;  %3868 = vmatpush.bf16.msrb.mxu1 %v6789_v36 }
 0x628   :  { %3881 = vmatpush.bf16.msrb.mxu2 %v6832_v43  ;;  %3894 = vmatpush.bf16.msra.mxu3 %v6758_v62 }
 0x629   :  { %3735 = vmatmul.bf16.vlgmr.msra.gmra.mxu0 %v3541_v61  ;;  %3748 = vmatmul.bf16.vlgmr.msra.gmra.mxu1 %v3541_v61 }
 0x62a   :  { %3761 = vmatmul.bf16.vlgmr.msra.gmra.mxu2 %v3541_v61  ;;  %3774 = vmatmul.bf16.vlgmr.msrb.gmra.mxu3 %v3541_v61  ;;  %v8904_v61 = vld [vmem:[#allocation109_spill] sm:$0xff] }
 0x62b   :  { %3856 = vmatpush.bf16.msrb.mxu0 %v6646_v31  ;;  %3869 = vmatpush.bf16.msrb.mxu1 %v6819_v41 }
 0x62c   :  { %3882 = vmatpush.bf16.msrb.mxu2 %v6856_v34  ;;  %3895 = vmatpush.bf16.msra.mxu3 %v6768_v25 }
 0x62f   :  { %3857 = vmatpush.bf16.msrb.mxu0 %v6655_v38  ;;  %3870 = vmatpush.bf16.msrb.mxu1 %v6837_v18 }
 0x630   :  { %3883 = vmatpush.bf16.msrb.mxu2 %v6865_v19  ;;  %3896 = vmatpush.bf16.msra.mxu3 %v6781_v46 }
 0x633   :  { %3858 = vmatpush.bf16.msrb.mxu0 %v6662_v51  ;;  %3871 = vmatpush.bf16.msrb.mxu1 %v6860_v58 }
 0x634   :  { %3884 = vmatpush.bf16.msrb.mxu2 %v6878_v0  ;;  %3897 = vmatpush.bf16.msra.mxu3 %v6791_v27 }
 0x637   :  { %3859 = vmatpush.bf16.msrb.mxu0 %v6680_v6  ;;  %3872 = vmatpush.bf16.msrb.mxu1 %v6873_v49 }
 0x638   :  { %3885 = vmatpush.bf16.msrb.mxu2 %v6886_v23  ;;  %3898 = vmatpush.bf16.msra.mxu3 %v8895_v33 }
 0x63a   :  { %3860 = vmatmul.bf16.vlgmr.msrb.gmra.mxu0 %v3670_v40  ;;  %3873 = vmatmul.bf16.vlgmr.msrb.gmra.mxu1 %v3670_v40 }
 0x63b   :  { %3976 = vmatpush.bf16.msra.mxu0 %v8896_v13  ;;  %3989 = vmatpush.bf16.msra.mxu1 %v8897_v50 }
 0x63c   :  { %3886 = vmatmul.bf16.vlgmr.msrb.gmra.mxu2 %v3670_v40  ;;  %3899 = vmatmul.bf16.vlgmr.msra.gmra.mxu3 %v3670_v40  ;;  %v8925_v40 = vld [vmem:[#allocation137_spill] sm:$0xff] }
 0x63d   :  { %4002 = vmatpush.bf16.msra.mxu2 %v8898_v35  ;;  %4015 = vmatpush.bf16.msrb.mxu3 %v8899_v37 }
 0x63f   :  { %3977 = vmatpush.bf16.msra.mxu0 %v8900_v9  ;;  %3990 = vmatpush.bf16.msra.mxu1 %v8901_v28 }
 0x641   :  { %4003 = vmatpush.bf16.msra.mxu2 %v8902_v14  ;;  %4016 = vmatpush.bf16.msrb.mxu3 %v8903_v20  ;;  %v8964_v20 = vld [vmem:[#allocation83_spill] sm:$0xff] }
 0x642   :  { %v8965_v14 = vld [vmem:[#allocation95_spill] sm:$0xff] }
 0x643   :  { %3978 = vmatpush.bf16.msra.mxu0 %v8904_v61  ;;  %3991 = vmatpush.bf16.msra.mxu1 %v8905_v7 }
 0x645   :  { %4004 = vmatpush.bf16.msra.mxu2 %v8906_v3  ;;  %4017 = vmatpush.bf16.msrb.mxu3 %v8907_v53 }
 0x647   :  { %3979 = vmatpush.bf16.msra.mxu0 %v8908_v63  ;;  %3992 = vmatpush.bf16.msra.mxu1 %v8909_v32 }
 0x649   :  { %4005 = vmatpush.bf16.msra.mxu2 %v8910_v2  ;;  %4018 = vmatpush.bf16.msrb.mxu3 %v8911_v55  ;;  %v8963_v2 = vld [vmem:[#allocation125_spill] sm:$0xff] }
 0x64b   :  { %3980 = vmatpush.bf16.msra.mxu0 %v8912_v15  ;;  %3993 = vmatpush.bf16.msra.mxu1 %v8913_v39  ;;  %v8960_v15 = vld [vmem:[#allocation58_spill] sm:$0xff] }
 0x64d   :  { %4006 = vmatpush.bf16.msra.mxu2 %v8914_v11  ;;  %4019 = vmatpush.bf16.msrb.mxu3 %v8915_v42  ;;  %v8926_v42 = vld [vmem:[#allocation140_spill] sm:$0xff] }
 0x64f   :  { %3981 = vmatpush.bf16.msra.mxu0 %v8916_v1  ;;  %3994 = vmatpush.bf16.msra.mxu1 %v8917_v29  ;;  %v8927_v1 = vld [vmem:[#allocation141_spill] sm:$0xff]  ;;  %v8928_v29 = vld [vmem:[#allocation138_spill] sm:$0xff] }
 0x651   :  { %4007 = vmatpush.bf16.msra.mxu2 %v8918_v8  ;;  %4020 = vmatpush.bf16.msrb.mxu3 %v8919_v59  ;;  %v8929_v8 = vld [vmem:[#allocation139_spill] sm:$0xff]  ;;  %v8930_v59 = vld [vmem:[#allocation142_spill] sm:$0xff] }
 0x653   :  { %3982 = vmatpush.bf16.msra.mxu0 %v8920_v5  ;;  %3995 = vmatpush.bf16.msra.mxu1 %v8921_v54  ;;  %v8931_v5 = vld [vmem:[#allocation144_spill] sm:$0xff]  ;;  %v8932_v54 = vld [vmem:[#allocation146_spill] sm:$0xff] }
 0x655   :  { %4008 = vmatpush.bf16.msra.mxu2 %v8922_v44  ;;  %4021 = vmatpush.bf16.msrb.mxu3 %v8923_v16  ;;  %v8933_v44 = vld [vmem:[#allocation147_spill] sm:$0xff]  ;;  %v8934_v16 = vld [vmem:[#allocation148_spill] sm:$0xff] }
 0x657   :  { %3983 = vmatpush.bf16.msra.mxu0 %v8924_v21  ;;  %3996 = vmatpush.bf16.msra.mxu1 %v8925_v40  ;;  %v8935_v21 = vld [vmem:[#allocation149_spill] sm:$0xff]  ;;  %v8936_v40 = vld [vmem:[#allocation150_spill] sm:$0xff] }
 0x659   :  { %4009 = vmatpush.bf16.msra.mxu2 %v8928_v29  ;;  %4022 = vmatpush.bf16.msrb.mxu3 %v8929_v8  ;;  %v8939_v29 = vld [vmem:[#allocation153_spill] sm:$0xff]  ;;  %v8940_v8 = vld [vmem:[#allocation155_spill] sm:$0xff] }
 0x65b   :  { %4032 = vmatpush.bf16.msrb.mxu0 %v8926_v42  ;;  %4045 = vmatpush.bf16.msrb.mxu1 %v8927_v1  ;;  %v8937_v42 = vld [vmem:[#allocation151_spill] sm:$0xff]  ;;  %v8938_v1 = vld [vmem:[#allocation152_spill] sm:$0xff] }
 0x65d   :  { %4058 = vmatpush.bf16.msrb.mxu2 %v8930_v59  ;;  %4071 = vmatpush.bf16.msra.mxu3 %v8931_v5  ;;  %v8941_v59 = vld [vmem:[#allocation156_spill] sm:$0xff]  ;;  %v8942_v5 = vld [vmem:[#allocation157_spill] sm:$0xff] }
 0x65f   :  { %4033 = vmatpush.bf16.msrb.mxu0 %v8932_v54  ;;  %4046 = vmatpush.bf16.msrb.mxu1 %v8933_v44  ;;  %v8943_v54 = vld [vmem:[#allocation158_spill] sm:$0xff]  ;;  %v8944_v44 = vld [vmem:[#allocation159_spill] sm:$0xff] }
 0x661   :  { %4059 = vmatpush.bf16.msrb.mxu2 %v8934_v16  ;;  %4072 = vmatpush.bf16.msra.mxu3 %v8935_v21  ;;  %v8945_v16 = vld [vmem:[#allocation160_spill] sm:$0xff]  ;;  %v8946_v21 = vld [vmem:[#allocation161_spill] sm:$0xff] }
 0x663   :  { %4034 = vmatpush.bf16.msrb.mxu0 %v8936_v40  ;;  %4047 = vmatpush.bf16.msrb.mxu1 %v8937_v42  ;;  %v8947_v40 = vld [vmem:[#allocation162_spill] sm:$0xff]  ;;  %v8948_v42 = vld [vmem:[#allocation163_spill] sm:$0xff] }
 0x665   :  { %4060 = vmatpush.bf16.msrb.mxu2 %v8938_v1  ;;  %4073 = vmatpush.bf16.msra.mxu3 %v8939_v29  ;;  %v8949_v1 = vld [vmem:[#allocation164_spill] sm:$0xff]  ;;  %v8950_v29 = vld [vmem:[#allocation165_spill] sm:$0xff] }
 0x667   :  { %4035 = vmatpush.bf16.msrb.mxu0 %v8940_v8  ;;  %4048 = vmatpush.bf16.msrb.mxu1 %v8941_v59  ;;  %v8951_v8 = vld [vmem:[#allocation166_spill] sm:$0xff]  ;;  %v8952_v59 = vld [vmem:[#allocation167_spill] sm:$0xff] }
 0x669   :  { %4061 = vmatpush.bf16.msrb.mxu2 %v8942_v5  ;;  %4074 = vmatpush.bf16.msra.mxu3 %v8943_v54  ;;  %v8953_v5 = vld [vmem:[#allocation168_spill] sm:$0xff]  ;;  %v8954_v54 = vld [vmem:[#allocation169_spill] sm:$0xff] }
 0x66b   :  { %4036 = vmatpush.bf16.msrb.mxu0 %v8944_v44  ;;  %4049 = vmatpush.bf16.msrb.mxu1 %v8945_v16  ;;  %v8955_v44 = vld [vmem:[#allocation170_spill] sm:$0xff]  ;;  %v8956_v16 = vld [vmem:[#allocation171_spill] sm:$0xff] }
 0x66d   :  { %4062 = vmatpush.bf16.msrb.mxu2 %v8946_v21  ;;  %4075 = vmatpush.bf16.msra.mxu3 %v8947_v40  ;;  %v8957_v21 = vld [vmem:[#allocation172_spill] sm:$0xff]  ;;  %v8958_v40 = vld [vmem:[#allocation173_spill] sm:$0xff] }
 0x66f   :  { %4037 = vmatpush.bf16.msrb.mxu0 %v8948_v42  ;;  %4050 = vmatpush.bf16.msrb.mxu1 %v8949_v1  ;;  %v8959_v42 = vld [vmem:[#allocation174_spill] sm:$0xff] }
 0x671   :  { %4063 = vmatpush.bf16.msrb.mxu2 %v8950_v29  ;;  %4076 = vmatpush.bf16.msra.mxu3 %v8951_v8 }
 0x673   :  { %4038 = vmatpush.bf16.msrb.mxu0 %v8952_v59  ;;  %4051 = vmatpush.bf16.msrb.mxu1 %v8953_v5  ;;  %v8961_v5 = vld [vmem:[#allocation69_spill] sm:$0xff] }
 0x674   :  { %v1316_v55 = vadd.f32 %v8961_v5, %v8960_v15 }
 0x675   :  { %4064 = vmatpush.bf16.msrb.mxu2 %v8954_v54  ;;  %4077 = vmatpush.bf16.msra.mxu3 %v8955_v44  ;;  %v8962_v54 = vld [vmem:[#allocation94_spill] sm:$0xff] }
 0x676   :  { %v1345_v44 = vadd.f32 %v8963_v2, %v8962_v54 }
 0x677   :  { %4039 = vmatpush.bf16.msrb.mxu0 %v8956_v16  ;;  %4052 = vmatpush.bf16.msrb.mxu1 %v8957_v21 }
 0x679   :  { %4065 = vmatpush.bf16.msrb.mxu2 %v8958_v40  ;;  %4078 = vmatpush.bf16.msra.mxu3 %v8959_v42 }
 0x696   :  { %v3680_v1 = vpop.f32.mrf.mxu0  ;;  %v3693_v29 = vpop.f32.mrf.mxu1 }
 0x697   :  { %v3723_v32 = vadd.f32 %v3680_v1, %v1316_v55  ;;  %v3724_v16 = vadd.f32 %v3693_v29, %v1345_v44 }
 0x69d   :  { %v3706_v11 = vpop.f32.mrf.mxu2  ;;  %v3719_v8 = vpop.f32.mrf.mxu3 }
 0x69e   :  { %v3682_v39 = vpop.f32.mrf.mxu0  ;;  %v3695_v59 = vpop.f32.mrf.mxu1 }
 0x69f   :  { %v1403_v39 = vadd.f32 %v8965_v14, %v8964_v20 }
 0x6a1   :  { %v3726_v59 = vadd.f32 %v3719_v8, %v1403_v39 }
 0x6a5   :  { %v3708_v63 = vpop.f32.mrf.mxu2  ;;  %v3721_v21 = vpop.f32.mrf.mxu3 }
 0x6a6   :  { %v3736_v53 = vpop.f32.mrf.mxu0  ;;  %v3749_v40 = vpop.f32.mrf.mxu1 }
 0x6a7   :  { %v3779_v3 = vadd.f32 %v3736_v53, %v3723_v32  ;;  %v3780_v42 = vadd.f32 %v3749_v40, %v3724_v16  ;;  %v8966_v32 = vld [vmem:[#allocation98_spill] sm:$0xff]  ;;  %v8968_v40 = vld [vmem:[#allocation35_spill] sm:$0xff] }
 0x6a9   :  { %v5610_v7 = vmul.f32 -1.442695, %v3779_v3  ;;  %v5611_v61 = vmul.f32 -1.442695, %v3780_v42  ;;  %v8967_v3 = vld [vmem:[#allocation131_spill] sm:$0xff] }
 0x6aa   :  { %v1374_v42 = vadd.f32 %v8967_v3, %v8966_v32 }
 0x6ab   :  { %6103 = vpow2.f32 %v5610_v7 }
 0x6ac   :  { %6105 = vpow2.f32 %v5611_v61  ;;  %v3725_v8 = vadd.f32 %v3706_v11, %v1374_v42 }
 0x6ad   :  { %v3762_v5 = vpop.f32.mrf.mxu2  ;;  %v3775_v15 = vpop.f32.mrf.mxu3 }
 0x6ae   :  { %v3782_v28 = vadd.f32 %v3775_v15, %v3726_v59  ;;  %v3738_v2 = vpop.f32.mrf.mxu0  ;;  %v3751_v55 = vpop.f32.mrf.mxu1  ;;  %v3781_v15 = vadd.f32 %v3762_v5, %v3725_v8 }
 0x6b0   :  { %v5612_v1 = vmul.f32 -1.442695, %v3782_v28  ;;  %v8969_v28 = vld [vmem:[#allocation59_spill] sm:$0xff] }
 0x6b1   :  { %v6104_v63 = vpop.eup %6103 }
 0x6b2   :  { %v6106_v29 = vpop.eup %6105  ;;  %v3786_v44 = vadd.f32 1.0, %v6104_v63  ;;  %6107 = vpow2.f32 %v5612_v1 }
 0x6b3   :  { %v3805_v53 = vadd.f32 1.0, %v6106_v29 }
 0x6b4   :  { %6109 = vrcp.f32 %v3786_v44  ;;  %v3796_v42 = vand.u32 2147483647, %v3786_v44  ;;  %v3798_v8 = vand.u32 2147483648, %v3786_v44  ;;  %vm3792_vm8 = vweird.f32 %v3786_v44 }
 0x6b5   :  { %6111 = vrcp.f32 %v3805_v53  ;;  %v3764_v14 = vpop.f32.mrf.mxu2  ;;  %v3777_v7 = vpop.f32.mrf.mxu3  ;;  %v3817_v5 = vand.u32 2147483648, %v3805_v53  ;;  %vm3811_vm7 = vweird.f32 %v3805_v53 }
 0x6b6   :  { %vm3797_vm10 = vcmp.eq.f32.partialorder %v3796_v42, 8.507059e+37 }
 0x6b7   :  { %v3861_v61 = vpop.f32.mrf.mxu0  ;;  %v3874_v16 = vpop.f32.mrf.mxu1  ;;  %v3818_v37 = vor.u32 1.1754944e-38, %v3817_v5 }
 0x6b8   :  { %v6108_v21 = vpop.eup %6107  ;;  %v3904_v39 = vadd.f32 %v3861_v61, %v8968_v40  ;;  %v3905_v59 = vadd.f32 %v3874_v16, %v8969_v28  ;;  %v3815_v40 = vand.u32 2147483647, %v3805_v53 }
 0x6b9   :  { %v8023_v2 = vadd.f32 1.0, %v6108_v21 }
 0x6ba   :  { %v6110_v55 = vpop.eup %6109  ;;  %v5613_v1 = vmul.f32 -1.442695, %v3904_v39  ;;  %v5614_v63 = vmul.f32 -1.442695, %v3905_v59  ;;  %v8970_v39 = vld [vmem:[#allocation86_spill] sm:$0xff]  ;;  %vm3816_vm12 = vcmp.eq.f32.partialorder %v3815_v40, 8.507059e+37 }
 0x6bb   :  { %v6112_v29 = vpop.eup %6111  ;;  %v3788_v3 = vmul.f32 %v6110_v55, %v3786_v44  ;;  %6113 = vrcp.f32 %v8023_v2  ;;  %vm3793_vm5 = vweird.f32 %v6110_v55  ;;  %vm3831_vm14 = vweird.f32 %v8023_v2 }
 0x6bc   :  { %v3807_v14 = vmul.f32 %v6112_v29, %v3805_v53  ;;  %6115 = vtanh.f32 %v3781_v15  ;;  %vm3812_vm6 = vweird.f32 %v6112_v29  ;;  %vm3794_vm9 = vmor %vm3792_vm8, %vm3793_vm5 }
 0x6bd   :  { %v3789_v11 = vsub.f32 1.0, %v3788_v3  ;;  %6117 = vpow2.f32 %v5613_v1  ;;  %vm3813_vm11 = vmor %vm3811_vm7, %vm3812_vm6 }
 0x6be   :  { %v3808_v7 = vsub.f32 1.0, %v3807_v14  ;;  %6119 = vpow2.f32 %v5614_v63  ;;  %v3799_v63 = vor.u32 1.1754944e-38, %v3798_v8 }
 0x6bf   :  { %v3887_v61 = vpop.f32.mrf.mxu2  ;;  %v3900_v16 = vpop.f32.mrf.mxu3  ;;  %v3790_v21 = vmul.f32 %v6110_v55, %v3789_v11 }
 0x6c0   :  { %v3907_v28 = vadd.f32 %v3900_v16, %v8970_v39  ;;  %v3863_v59 = vpop.f32.mrf.mxu0  ;;  %v3876_v32 = vpop.f32.mrf.mxu1  ;;  %v3809_v20 = vmul.f32 %v6112_v29, %v3808_v7 }
 0x6c1   :  { %v6114_v54 = vpop.eup %6113  ;;  %v3791_v15 = vadd.f32 %v6110_v55, %v3790_v21 }
 0x6c2   :  { %v5615_v1 = vmul.f32 -1.442695, %v3907_v28  ;;  %v6116_v3 = vpop.eup %6115  ;;  %v3810_v14 = vadd.f32 %v6112_v29, %v3809_v20  ;;  %v3827_v11 = vmul.f32 %v6114_v54, %v8023_v2  ;;  %vm3832_vm13 = vweird.f32 %v6114_v54 }
 0x6c3   :  { %v6118_v9 = vpop.eup %6117  ;;  %v3795_v16 = vsel %vm3794_vm9, %v6110_v55, %v3791_v15  ;;  %vm3833_vm15 = vmor %vm3831_vm14, %vm3832_vm13 }
 0x6c4   :  { %6121 = vpow2.f32 %v5615_v1  ;;  %v6120_v32 = vpop.eup %6119  ;;  %v3800_v7 = vsel %vm3797_vm10, %v3799_v63, %v3795_v16  ;;  %v3814_v39 = vsel %vm3813_vm11, %v6112_v29, %v3810_v14  ;;  %v3828_v53 = vsub.f32 1.0, %v3827_v11 }
 0x6c5   :  { %v3911_v21 = vadd.f32 1.0, %v6118_v9  ;;  %v3819_v44 = vsel %vm3816_vm12, %v3818_v37, %v3814_v39  ;;  %v3842_v28 = vmul.f32 %v6116_v3, %v3800_v7  ;;  %v3930_v59 = vadd.f32 1.0, %v6120_v32 }
 0x6c6   :  { %v3841_v42 = vmul.f32 %v3819_v44, %v7906_v17  ;;  %v3829_v8 = vmul.f32 %v6114_v54, %v3828_v53  ;;  %v3837_v29 = vand.u32 2147483648, %v8023_v2  ;;  %v3835_v37 = vand.u32 2147483647, %v8023_v2  ;;  %v8971_v17 = vld [vmem:[#allocation63_spill] sm:$0xff] }
 0x6c7   :  { %6123 = vrcp.f32 %v3911_v21  ;;  %v3889_v20 = vpop.f32.mrf.mxu2  ;;  %v3902_v35 = vpop.f32.mrf.mxu3  ;;  %v3906_v40 = vadd.f32 %v3887_v61, %v8971_v17  ;;  %v3942_v7 = vand.u32 2147483648, %v3930_v59  ;;  %v3923_v39 = vand.u32 2147483648, %v3911_v21 }
 0x6c8   :  { %6125 = vrcp.f32 %v3930_v59  ;;  %v8029_v50 = vadd.f32 %v3842_v28, %v3841_v42  ;;  %v3830_v5 = vadd.f32 %v6114_v54, %v3829_v8  ;;  %v3838_v63 = vor.u32 1.1754944e-38, %v3837_v29 }
 0x6c9   :  { %vm3836_vm0 = vcmp.eq.f32.partialorder %v3835_v37, 8.507059e+37  ;;  %v3921_v2 = vand.u32 2147483647, %v3911_v21  ;;  %v3940_v8 = vand.u32 2147483647, %v3930_v59  ;;  %vm3917_vm3 = vweird.f32 %v3911_v21 }
 0x6ca   :  { %v6122_v55 = vpop.eup %6121  ;;  %6127 = vtanh.f32 %v8029_v50  ;;  %v3834_v3 = vsel %vm3833_vm15, %v6114_v54, %v3830_v5  ;;  %vm3936_vm4 = vweird.f32 %v3930_v59  ;;  %v3924_v5 = vor.u32 1.1754944e-38, %v3923_v39 }
 0x6cb   :  { %v3950_v9 = vadd.f32 1.0, %v6122_v55  ;;  %v3839_v53 = vsel %vm3836_vm0, %v3838_v63, %v3834_v3  ;;  %v3943_v17 = vor.u32 1.1754944e-38, %v3942_v7  ;;  %vm3922_vm7 = vcmp.eq.f32.partialorder %v3921_v2, 8.507059e+37 }
 0x6cc   :  { %vm3941_vm8 = vcmp.eq.f32.partialorder %v3940_v8, 8.507059e+37  ;;  %v9009_v8 = vld [vmem:[#allocation148_spill] sm:$0xff] }
 0x6cd   :  { %v6124_v15 = vpop.eup %6123  ;;  %6129 = vrcp.f32 %v3950_v9  ;;  %v3962_v39 = vand.u32 2147483648, %v3950_v9  ;;  %vm3956_vm10 = vweird.f32 %v3950_v9 }
 0x6ce   :  { %v6126_v35 = vpop.eup %6125  ;;  %v3913_v1 = vmul.f32 %v6124_v15, %v3911_v21  ;;  %6131 = vtanh.f32 %v3906_v40  ;;  %vm3918_vm1 = vweird.f32 %v6124_v15 }
 0x6cf   :  { %v3932_v14 = vmul.f32 %v6126_v35, %v3930_v59  ;;  %vm3937_vm2 = vweird.f32 %v6126_v35  ;;  %vm3919_vm5 = vmor %vm3917_vm3, %vm3918_vm1 }
 0x6d0   :  { %v3914_v11 = vsub.f32 1.0, %v3913_v1  ;;  %v6128_v16 = vpop.eup %6127  ;;  %vm3938_vm6 = vmor %vm3936_vm4, %vm3937_vm2 }
 0x6d1   :  { %v3933_v32 = vsub.f32 1.0, %v3932_v14  ;;  %v3845_v61 = vmul.f32 %v6128_v16, %v3839_v53  ;;  %v3963_v53 = vor.u32 1.1754944e-38, %v3962_v39  ;;  %v9026_v39 = vld [vmem:[#allocation166_spill] sm:$0xff] }
 0x6d2   :  { %v3915_v44 = vmul.f32 %v6124_v15, %v3914_v11 }
 0x6d3   :  { %v6130_v28 = vpop.eup %6129  ;;  %v3934_v42 = vmul.f32 %v6126_v35, %v3933_v32  ;;  %v3846_v55 = vpack.c.bf16 %v3845_v61, %v3845_v61 }
 0x6d4   :  { %v3916_v20 = vadd.f32 %v6124_v15, %v3915_v44  ;;  %v3952_v54 = vmul.f32 %v6130_v28, %v3950_v9  ;;  %v6132_v37 = vpop.eup %6131  ;;  %vm3957_vm9 = vweird.f32 %v6130_v28 }
 0x6d5   :  { %v3935_v29 = vadd.f32 %v6126_v35, %v3934_v42  ;;  %3847 = vst [vmem:[#allocation4 + $0x14] sm:$0xf] %v3846_v55  ;;  %vm3958_vm11 = vmor %vm3956_vm10, %vm3957_vm9  ;;  %v9008_v42 = vld [vmem:[#allocation147_spill] sm:$0xff] }
 0x6d6   :  { %v3920_v40 = vsel %vm3919_vm5, %v6124_v15, %v3916_v20  ;;  %v3953_v1 = vsub.f32 1.0, %v3952_v54  ;;  %v3960_v15 = vand.u32 2147483647, %v3950_v9  ;;  %v9006_v9 = vld [vmem:[#allocation144_spill] sm:$0xff]  ;;  %v9010_v20 = vld [vmem:[#allocation149_spill] sm:$0xff]  ;;  %v9011_v54 = vld [vmem:[#allocation150_spill] sm:$0xff] }
 0x6d7   :  { %v3925_v3 = vsel %vm3922_vm7, %v3924_v5, %v3920_v40  ;;  %v3939_v63 = vsel %vm3938_vm6, %v6126_v35, %v3935_v29  ;;  %v9013_v5 = vld [vmem:[#allocation152_spill] sm:$0xff]  ;;  %v9014_v29 = vld [vmem:[#allocation153_spill] sm:$0xff] }
 0x6d8   :  { %v3944_v14 = vsel %vm3941_vm8, %v3943_v17, %v3939_v63  ;;  %v3967_v11 = vmul.f32 %v6132_v37, %v3925_v3  ;;  %v3954_v16 = vmul.f32 %v6130_v28, %v3953_v1  ;;  %vm3961_vm12 = vcmp.eq.f32.partialorder %v3960_v15, 8.507059e+37  ;;  %v9015_v37 = vld [vmem:[#allocation155_spill] sm:$0xff]  ;;  %v9016_v17 = vld [vmem:[#allocation156_spill] sm:$0xff]  ;;  %v9017_v40 = vld [vmem:[#allocation157_spill] sm:$0xff] }
 0x6d9   :  { %v3966_v21 = vmul.f32 %v3944_v14, %v7914_v30  ;;  %v9003_v30 = vld [vmem:[#allocation138_spill] sm:$0xff]  ;;  %v9019_v3 = vld [vmem:[#allocation159_spill] sm:$0xff]  ;;  %v9020_v63 = vld [vmem:[#allocation160_spill] sm:$0xff] }
 0x6da   :  { %v3955_v59 = vadd.f32 %v6130_v28, %v3954_v16  ;;  %v9018_v1 = vld [vmem:[#allocation158_spill] sm:$0xff]  ;;  %v9021_v14 = vld [vmem:[#allocation161_spill] sm:$0xff]  ;;  %v9023_v16 = vld [vmem:[#allocation163_spill] sm:$0xff] }
 0x6db   :  { %v8037_v32 = vadd.f32 %v3967_v11, %v3966_v21  ;;  %v9022_v11 = vld [vmem:[#allocation162_spill] sm:$0xff]  ;;  %v9024_v21 = vld [vmem:[#allocation164_spill] sm:$0xff]  ;;  %v9027_v15 = vld [vmem:[#allocation167_spill] sm:$0xff] }
 0x6dc   :  { %v3959_v7 = vsel %vm3958_vm11, %v6130_v28, %v3955_v59  ;;  %v9007_v28 = vld [vmem:[#allocation146_spill] sm:$0xff]  ;;  %v9025_v59 = vld [vmem:[#allocation165_spill] sm:$0xff] }
 0x6dd   :  { %6133 = vtanh.f32 %v8037_v32  ;;  %v3964_v44 = vsel %vm3961_vm12, %v3963_v53, %v3959_v7  ;;  %v9028_v7 = vld [vmem:[#allocation168_spill] sm:$0xff]  ;;  %v9029_v53 = vld [vmem:[#allocation169_spill] sm:$0xff] }
 0x6e3   :  { %v6134_v35 = vpop.eup %6133 }
 0x6e4   :  { %v3970_v2 = vmul.f32 %v6134_v35, %v3964_v44  ;;  %v9030_v35 = vld [vmem:[#allocation170_spill] sm:$0xff]  ;;  %v9031_v44 = vld [vmem:[#allocation171_spill] sm:$0xff] }
 0x6e6   :  { %v3975_v61 = vpack.c.bf16 %v3970_v2, %v3970_v2  ;;  %v9032_v2 = vld [vmem:[#allocation172_spill] sm:$0xff] }
 0x6e8   :  { %3984 = vmatmul.bf16.vlgmr.msra.gmra.mxu0 %v3975_v61  ;;  %3997 = vmatmul.bf16.vlgmr.msra.gmra.mxu1 %v3975_v61 }
 0x6e9   :  { %4010 = vmatmul.bf16.vlgmr.msra.gmra.mxu2 %v3975_v61  ;;  %4023 = vmatmul.bf16.vlgmr.msrb.gmra.mxu3 %v3975_v61 }
 0x6ea   :  { %4157 = vmatpush.bf16.msra.mxu0 %v6600_v47  ;;  %4170 = vmatpush.bf16.msra.mxu1 %v6734_v24  ;;  %v8972_v47 = vld [vmem:[#allocation99_spill] sm:$0xff] }
 0x6eb   :  { %4183 = vmatpush.bf16.msra.mxu2 %v6764_v56  ;;  %4196 = vmatpush.bf16.msrb.mxu3 %v6729_v45  ;;  %v8980_v45 = vld [vmem:[#allocation110_spill] sm:$0xff]  ;;  %v8981_v24 = vld [vmem:[#allocation111_spill] sm:$0xff]  ;;  %v8987_v56 = vld [vmem:[#allocation120_spill] sm:$0xff] }
 0x6ee   :  { %4158 = vmatpush.bf16.msra.mxu0 %v6615_v57  ;;  %4171 = vmatpush.bf16.msra.mxu1 %v6748_v48  ;;  %v8973_v57 = vld [vmem:[#allocation100_spill] sm:$0xff]  ;;  %v8984_v48 = vld [vmem:[#allocation117_spill] sm:$0xff] }
 0x6ef   :  { %4184 = vmatpush.bf16.msra.mxu2 %v6787_v10  ;;  %4197 = vmatpush.bf16.msrb.mxu3 %v6742_v22  ;;  %v8983_v22 = vld [vmem:[#allocation115_spill] sm:$0xff] }
 0x6f0   :  { %v8992_v10 = vld [vmem:[#allocation127_spill] sm:$0xff] }
 0x6f2   :  { %4159 = vmatpush.bf16.msra.mxu0 %v6622_v4  ;;  %4172 = vmatpush.bf16.msra.mxu1 %v6773_v26  ;;  %v8974_v4 = vld [vmem:[#allocation101_spill] sm:$0xff]  ;;  %v8989_v26 = vld [vmem:[#allocation122_spill] sm:$0xff] }
 0x6f3   :  { %4185 = vmatpush.bf16.msra.mxu2 %v6815_v60  ;;  %4198 = vmatpush.bf16.msrb.mxu3 %v6750_v52  ;;  %v8985_v52 = vld [vmem:[#allocation118_spill] sm:$0xff]  ;;  %v8996_v60 = vld [vmem:[#allocation132_spill] sm:$0xff] }
 0x6f6   :  { %4160 = vmatpush.bf16.msra.mxu0 %v6628_v12  ;;  %4173 = vmatpush.bf16.msra.mxu1 %v6789_v36  ;;  %v8975_v12 = vld [vmem:[#allocation105_spill] sm:$0xff]  ;;  %v8993_v36 = vld [vmem:[#allocation128_spill] sm:$0xff] }
 0x6f7   :  { %4186 = vmatpush.bf16.msra.mxu2 %v6832_v43  ;;  %4199 = vmatpush.bf16.msrb.mxu3 %v6758_v62  ;;  %v8986_v62 = vld [vmem:[#allocation119_spill] sm:$0xff] }
 0x6f8   :  { %4040 = vmatmul.bf16.vlgmr.msrb.gmra.mxu0 %v3846_v55  ;;  %4053 = vmatmul.bf16.vlgmr.msrb.gmra.mxu1 %v3846_v55  ;;  %v8990_v43 = vld [vmem:[#allocation123_spill] sm:$0xff] }
 0x6f9   :  { %4066 = vmatmul.bf16.vlgmr.msrb.gmra.mxu2 %v3846_v55  ;;  %4079 = vmatmul.bf16.vlgmr.msra.gmra.mxu3 %v3846_v55  ;;  %v9012_v55 = vld [vmem:[#allocation151_spill] sm:$0xff] }
 0x6fa   :  { %4161 = vmatpush.bf16.msra.mxu0 %v6646_v31  ;;  %4174 = vmatpush.bf16.msra.mxu1 %v6819_v41  ;;  %v8976_v31 = vld [vmem:[#allocation106_spill] sm:$0xff]  ;;  %v8997_v41 = vld [vmem:[#allocation133_spill] sm:$0xff] }
 0x6fb   :  { %4187 = vmatpush.bf16.msra.mxu2 %v6856_v34  ;;  %4200 = vmatpush.bf16.msrb.mxu3 %v6768_v25  ;;  %v8988_v25 = vld [vmem:[#allocation121_spill] sm:$0xff]  ;;  %v8999_v34 = vld [vmem:[#allocation136_spill] sm:$0xff] }
 0x6fe   :  { %4162 = vmatpush.bf16.msra.mxu0 %v6655_v38  ;;  %4175 = vmatpush.bf16.msra.mxu1 %v6837_v18  ;;  %v8977_v38 = vld [vmem:[#allocation107_spill] sm:$0xff]  ;;  %v8998_v18 = vld [vmem:[#allocation134_spill] sm:$0xff] }
 0x6ff   :  { %4188 = vmatpush.bf16.msra.mxu2 %v6865_v19  ;;  %4201 = vmatpush.bf16.msrb.mxu3 %v6781_v46  ;;  %v8991_v46 = vld [vmem:[#allocation126_spill] sm:$0xff]  ;;  %v9001_v19 = vld [vmem:[#allocation140_spill] sm:$0xff] }
 0x702   :  { %4163 = vmatpush.bf16.msra.mxu0 %v6662_v51  ;;  %4176 = vmatpush.bf16.msra.mxu1 %v6860_v58  ;;  %v8978_v51 = vld [vmem:[#allocation108_spill] sm:$0xff]  ;;  %v9000_v58 = vld [vmem:[#allocation137_spill] sm:$0xff] }
 0x703   :  { %4189 = vmatpush.bf16.msra.mxu2 %v6878_v0  ;;  %4202 = vmatpush.bf16.msrb.mxu3 %v6791_v27  ;;  %v8994_v27 = vld [vmem:[#allocation129_spill] sm:$0xff] }
 0x704   :  { %v9002_v0 = vld [vmem:[#allocation141_spill] sm:$0xff] }
 0x706   :  { %4164 = vmatpush.bf16.msra.mxu0 %v6680_v6  ;;  %4177 = vmatpush.bf16.msra.mxu1 %v6873_v49  ;;  %v8979_v6 = vld [vmem:[#allocation109_spill] sm:$0xff]  ;;  %v8995_v49 = vld [vmem:[#allocation130_spill] sm:$0xff] }
 0x707   :  { %4190 = vmatpush.bf16.msra.mxu2 %v6886_v23  ;;  %4203 = vmatpush.bf16.msrb.mxu3 %v8895_v33  ;;  %v8982_v23 = vld [vmem:[#allocation113_spill] sm:$0xff]  ;;  %v9004_v33 = vld [vmem:[#allocation139_spill] sm:$0xff] }
 0x709   :  { %4165 = vmatmul.bf16.vlgmr.msra.gmra.mxu0 %v3975_v61  ;;  %4178 = vmatmul.bf16.vlgmr.msra.gmra.mxu1 %v3975_v61 }
 0x70a   :  { %4281 = vmatpush.bf16.msrb.mxu0 %v8896_v13  ;;  %4294 = vmatpush.bf16.msrb.mxu1 %v8972_v47  ;;  %v9005_v13 = vld [vmem:[#allocation142_spill] sm:$0xff] }
 0x70b   :  { %4191 = vmatmul.bf16.vlgmr.msra.gmra.mxu2 %v3975_v61  ;;  %4204 = vmatmul.bf16.vlgmr.msrb.gmra.mxu3 %v3975_v61  ;;  %v9033_v61 = vld [vmem:[#allocation173_spill] sm:$0xff]  ;;  %v9034_v47 = vld [vmem:[#allocation174_spill] sm:$0xff] }
 0x70c   :  { %4307 = vmatpush.bf16.msrb.mxu2 %v8973_v57  ;;  %4320 = vmatpush.bf16.msra.mxu3 %v8974_v4 }
 0x70e   :  { %4282 = vmatpush.bf16.msrb.mxu0 %v8975_v12  ;;  %4295 = vmatpush.bf16.msrb.mxu1 %v8976_v31 }
 0x710   :  { %4308 = vmatpush.bf16.msrb.mxu2 %v8977_v38  ;;  %4321 = vmatpush.bf16.msra.mxu3 %v8978_v51 }
 0x712   :  { %4283 = vmatpush.bf16.msrb.mxu0 %v8979_v6  ;;  %4296 = vmatpush.bf16.msrb.mxu1 %v8980_v45  ;;  %v9035_v6 = vld [vmem:[#allocation72_spill] sm:$0xff] }
 0x714   :  { %4309 = vmatpush.bf16.msrb.mxu2 %v8981_v24  ;;  %4322 = vmatpush.bf16.msra.mxu3 %v8982_v23  ;;  %v9036_v24 = vld [vmem:[#allocation135_spill] sm:$0xff] }
 0x716   :  { %4284 = vmatpush.bf16.msrb.mxu0 %v8983_v22  ;;  %4297 = vmatpush.bf16.msrb.mxu1 %v8984_v48 }
 0x718   :  { %4310 = vmatpush.bf16.msrb.mxu2 %v8985_v52  ;;  %4323 = vmatpush.bf16.msra.mxu3 %v8986_v62 }
 0x71a   :  { %4285 = vmatpush.bf16.msrb.mxu0 %v8987_v56  ;;  %4298 = vmatpush.bf16.msrb.mxu1 %v8988_v25 }
 0x71c   :  { %4311 = vmatpush.bf16.msrb.mxu2 %v8989_v26  ;;  %4324 = vmatpush.bf16.msra.mxu3 %v8990_v43 }
 0x71e   :  { %4286 = vmatpush.bf16.msrb.mxu0 %v8991_v46  ;;  %4299 = vmatpush.bf16.msrb.mxu1 %v8992_v10  ;;  %v9037_v46 = vld [vmem:[#allocation103_spill] sm:$0xff] }
 0x720   :  { %4312 = vmatpush.bf16.msrb.mxu2 %v8993_v36  ;;  %4325 = vmatpush.bf16.msra.mxu3 %v8994_v27 }
 0x722   :  { %4287 = vmatpush.bf16.msrb.mxu0 %v8995_v49  ;;  %4300 = vmatpush.bf16.msrb.mxu1 %v8996_v60 }
 0x724   :  { %4313 = vmatpush.bf16.msrb.mxu2 %v8997_v41  ;;  %4326 = vmatpush.bf16.msra.mxu3 %v8998_v18 }
 0x726   :  { %4288 = vmatpush.bf16.msrb.mxu0 %v8999_v34  ;;  %4301 = vmatpush.bf16.msrb.mxu1 %v9000_v58 }
 0x728   :  { %4314 = vmatpush.bf16.msrb.mxu2 %v9003_v30  ;;  %4327 = vmatpush.bf16.msra.mxu3 %v9004_v33  ;;  %v9038_v30 = vld [vmem:[#allocation31_spill] sm:$0xff]  ;;  %v9039_v33 = vld [vmem:[#allocation29_spill] sm:$0xff] }
 0x72a   :  { %4337 = vmatpush.bf16.msra.mxu0 %v9001_v19  ;;  %4350 = vmatpush.bf16.msra.mxu1 %v9002_v0 }
 0x72c   :  { %4363 = vmatpush.bf16.msra.mxu2 %v9005_v13  ;;  %4376 = vmatpush.bf16.msrb.mxu3 %v9006_v9  ;;  %v958_v13 = vadd.f32 %v9039_v33, %v9038_v30 }
 0x72e   :  { %4338 = vmatpush.bf16.msra.mxu0 %v9007_v28  ;;  %4351 = vmatpush.bf16.msra.mxu1 %v9008_v42  ;;  %v9040_v42 = vld [vmem:[#allocation61_spill] sm:$0xff] }
 0x730   :  { %4364 = vmatpush.bf16.msra.mxu2 %v9009_v8  ;;  %4377 = vmatpush.bf16.msrb.mxu3 %v9010_v20  ;;  %v987_v8 = vadd.f32 %v9040_v42, %v958_v13  ;;  %v9041_v20 = vld [vmem:[#allocation143_spill] sm:$0xff] }
 0x732   :  { %4339 = vmatpush.bf16.msra.mxu0 %v9011_v54  ;;  %4352 = vmatpush.bf16.msra.mxu1 %v9012_v55  ;;  %v9042_v55 = vld [vmem:[#allocation66_spill] sm:$0xff] }
 0x734   :  { %4365 = vmatpush.bf16.msra.mxu2 %v9013_v5  ;;  %4378 = vmatpush.bf16.msrb.mxu3 %v9014_v29  ;;  %v9043_v5 = vld [vmem:[#allocation85_spill] sm:$0xff] }
 0x735   :  { %v1103_v29 = vadd.f32 %v9043_v5, %v9042_v55  ;;  %v9050_v5 = vld [vmem:[#allocation47_spill] sm:$0xff] }
 0x736   :  { %4340 = vmatpush.bf16.msra.mxu0 %v9015_v37  ;;  %4353 = vmatpush.bf16.msra.mxu1 %v9016_v17 }
 0x738   :  { %4366 = vmatpush.bf16.msra.mxu2 %v9017_v40  ;;  %4379 = vmatpush.bf16.msrb.mxu3 %v9018_v1 }
 0x73a   :  { %4341 = vmatpush.bf16.msra.mxu0 %v9019_v3  ;;  %4354 = vmatpush.bf16.msra.mxu1 %v9020_v63  ;;  %v9044_v3 = vld [vmem:[#allocation37_spill] sm:$0xff] }
 0x73c   :  { %4367 = vmatpush.bf16.msra.mxu2 %v9021_v14  ;;  %4380 = vmatpush.bf16.msrb.mxu3 %v9022_v11  ;;  %v9045_v11 = vld [vmem:[#allocation87_spill] sm:$0xff] }
 0x73e   :  { %4342 = vmatpush.bf16.msra.mxu0 %v9023_v16  ;;  %4355 = vmatpush.bf16.msra.mxu1 %v9024_v21  ;;  %v1132_v16 = vadd.f32 %v9045_v11, %v1103_v29 }
 0x740   :  { %4368 = vmatpush.bf16.msra.mxu2 %v9025_v59  ;;  %4381 = vmatpush.bf16.msrb.mxu3 %v9026_v39 }
 0x742   :  { %4343 = vmatpush.bf16.msra.mxu0 %v9027_v15  ;;  %4356 = vmatpush.bf16.msra.mxu1 %v9028_v7 }
 0x744   :  { %4369 = vmatpush.bf16.msra.mxu2 %v9029_v53  ;;  %4382 = vmatpush.bf16.msrb.mxu3 %v9030_v35 }
 0x746   :  { %4344 = vmatpush.bf16.msra.mxu0 %v9031_v44  ;;  %4357 = vmatpush.bf16.msra.mxu1 %v9032_v2 }
 0x748   :  { %4370 = vmatpush.bf16.msra.mxu2 %v9033_v61  ;;  %4383 = vmatpush.bf16.msrb.mxu3 %v9034_v47  ;;  %v9046_v61 = vld [vmem:[#allocation77_spill] sm:$0xff] }
 0x749   :  { %v1161_v47 = vadd.f32 %v9046_v61, %v1132_v16 }
 0x765   :  { %v3985_v57 = vpop.f32.mrf.mxu0  ;;  %v3998_v4 = vpop.f32.mrf.mxu1 }
 0x766   :  { %v4028_v45 = vadd.f32 %v3985_v57, %v9035_v6  ;;  %v4029_v23 = vadd.f32 %v3998_v4, %v9036_v24 }
 0x76c   :  { %v4011_v12 = vpop.f32.mrf.mxu2  ;;  %v4024_v31 = vpop.f32.mrf.mxu3 }
 0x76d   :  { %v3987_v38 = vpop.f32.mrf.mxu0  ;;  %v4000_v51 = vpop.f32.mrf.mxu1  ;;  %v4031_v10 = vadd.f32 %v4024_v31, %v9037_v46  ;;  %v4030_v54 = vadd.f32 %v4011_v12, %v9041_v20 }
 0x774   :  { %v4013_v22 = vpop.f32.mrf.mxu2  ;;  %v4026_v48 = vpop.f32.mrf.mxu3 }
 0x775   :  { %v4041_v52 = vpop.f32.mrf.mxu0  ;;  %v4054_v62 = vpop.f32.mrf.mxu1  ;;  %v9047_v22 = vld [vmem:[#allocation40_spill] sm:$0xff] }
 0x776   :  { %v4084_v56 = vadd.f32 %v4041_v52, %v4028_v45  ;;  %v4085_v25 = vadd.f32 %v4054_v62, %v4029_v23  ;;  %v9048_v48 = vld [vmem:[#allocation64_spill] sm:$0xff] }
 0x777   :  { %v1016_v52 = vadd.f32 %v9048_v48, %v9047_v22 }
 0x778   :  { %v5616_v26 = vmul.f32 -1.442695, %v4084_v56  ;;  %v5617_v43 = vmul.f32 -1.442695, %v4085_v25 }
 0x77a   :  { %6135 = vpow2.f32 %v5616_v26 }
 0x77b   :  { %6137 = vpow2.f32 %v5617_v43 }
 0x77c   :  { %v4067_v36 = vpop.f32.mrf.mxu2  ;;  %v4080_v27 = vpop.f32.mrf.mxu3 }
 0x77d   :  { %v4087_v49 = vadd.f32 %v4080_v27, %v4031_v10  ;;  %v4043_v60 = vpop.f32.mrf.mxu0  ;;  %v4056_v41 = vpop.f32.mrf.mxu1  ;;  %v4086_v1 = vadd.f32 %v4067_v36, %v4030_v54 }
 0x77f   :  { %v5618_v18 = vmul.f32 -1.442695, %v4087_v49 }
 0x780   :  { %v6136_v34 = vpop.eup %6135 }
 0x781   :  { %v6138_v58 = vpop.eup %6137  ;;  %v4091_v19 = vadd.f32 1.0, %v6136_v34  ;;  %6139 = vpow2.f32 %v5618_v18 }
 0x782   :  { %v4110_v0 = vadd.f32 1.0, %v6138_v58 }
 0x783   :  { %6141 = vrcp.f32 %v4091_v19  ;;  %v4101_v2 = vand.u32 2147483647, %v4091_v19  ;;  %v4103_v12 = vand.u32 2147483648, %v4091_v19  ;;  %vm4097_vm0 = vweird.f32 %v4091_v19 }
 0x784   :  { %6143 = vrcp.f32 %v4110_v0  ;;  %v4069_v9 = vpop.f32.mrf.mxu2  ;;  %v4082_v28 = vpop.f32.mrf.mxu3  ;;  %v4122_v4 = vand.u32 2147483648, %v4110_v0  ;;  %v4120_v6 = vand.u32 2147483647, %v4110_v0  ;;  %vm4116_vm15 = vweird.f32 %v4110_v0 }
 0x785   :  { %vm4102_vm2 = vcmp.eq.f32.partialorder %v4101_v2, 8.507059e+37  ;;  %v4104_v46 = vor.u32 1.1754944e-38, %v4103_v12 }
 0x786   :  { %v4166_v37 = vpop.f32.mrf.mxu0  ;;  %v4179_v17 = vpop.f32.mrf.mxu1  ;;  %v4123_v49 = vor.u32 1.1754944e-38, %v4122_v4  ;;  %vm4121_vm4 = vcmp.eq.f32.partialorder %v4120_v6, 8.507059e+37 }
 0x787   :  { %v6140_v40 = vpop.eup %6139  ;;  %v4209_v63 = vadd.f32 %v4166_v37, %v9044_v3  ;;  %v4210_v14 = vadd.f32 %v4179_v17, %v987_v8 }
 0x788   :  { %v8147_v21 = vadd.f32 1.0, %v6140_v40 }
 0x789   :  { %v6142_v59 = vpop.eup %6141  ;;  %v5619_v39 = vmul.f32 -1.442695, %v4209_v63  ;;  %v5620_v15 = vmul.f32 -1.442695, %v4210_v14 }
 0x78a   :  { %v6144_v7 = vpop.eup %6143  ;;  %v4093_v53 = vmul.f32 %v6142_v59, %v4091_v19  ;;  %6145 = vrcp.f32 %v8147_v21  ;;  %vm4098_vm13 = vweird.f32 %v6142_v59  ;;  %v9049_v19 = vld [vmem:[#allocation50_spill] sm:$0xff]  ;;  %v4142_v17 = vand.u32 2147483648, %v8147_v21 }
 0x78b   :  { %v4112_v35 = vmul.f32 %v6144_v7, %v4110_v0  ;;  %6147 = vtanh.f32 %v4086_v1  ;;  %vm4117_vm14 = vweird.f32 %v6144_v7  ;;  %vm4099_vm1 = vmor %vm4097_vm0, %vm4098_vm13  ;;  %v1045_v30 = vadd.f32 %v9049_v19, %v1016_v52  ;;  %v5897_v19 = vld [vmem:[#allocation16 + $0x20] sm:$0xff] }
 0x78c   :  { %v4094_v44 = vsub.f32 1.0, %v4093_v53  ;;  %6149 = vpow2.f32 %v5619_v39  ;;  %vm4118_vm3 = vmor %vm4116_vm15, %vm4117_vm14  ;;  %vm4136_vm6 = vweird.f32 %v8147_v21  ;;  %v4143_v16 = vor.u32 1.1754944e-38, %v4142_v17 }
 0x78d   :  { %v4113_v57 = vsub.f32 1.0, %v4112_v35  ;;  %6151 = vpow2.f32 %v5620_v15  ;;  %v1074_v29 = vadd.f32 %v9050_v5, %v1045_v30  ;;  %v5896_v30 = vld [vmem:[#allocation16 + $0x18] sm:$0xff] }
 0x78e   :  { %v4192_v31 = vpop.f32.mrf.mxu2  ;;  %v4205_v38 = vpop.f32.mrf.mxu3  ;;  %v4095_v51 = vmul.f32 %v6142_v59, %v4094_v44 }
 0x78f   :  { %v4212_v45 = vadd.f32 %v4205_v38, %v1161_v47  ;;  %v4168_v24 = vpop.f32.mrf.mxu0  ;;  %v4181_v23 = vpop.f32.mrf.mxu1  ;;  %v4114_v62 = vmul.f32 %v6144_v7, %v4113_v57  ;;  %v4211_v1 = vadd.f32 %v4192_v31, %v1074_v29 }
 0x790   :  { %v6146_v56 = vpop.eup %6145  ;;  %v4096_v25 = vadd.f32 %v6142_v59, %v4095_v51 }
 0x791   :  { %v5621_v26 = vmul.f32 -1.442695, %v4212_v45  ;;  %v6148_v43 = vpop.eup %6147  ;;  %v4115_v10 = vadd.f32 %v6144_v7, %v4114_v62  ;;  %v4132_v36 = vmul.f32 %v6146_v56, %v8147_v21  ;;  %vm4137_vm5 = vweird.f32 %v6146_v56 }
 0x792   :  { %v6150_v27 = vpop.eup %6149  ;;  %v4100_v60 = vsel %vm4099_vm1, %v6142_v59, %v4096_v25  ;;  %vm4138_vm7 = vmor %vm4136_vm6, %vm4137_vm5 }
 0x793   :  { %6153 = vpow2.f32 %v5621_v26  ;;  %v6152_v41 = vpop.eup %6151  ;;  %v4105_v18 = vsel %vm4102_vm2, %v4104_v46, %v4100_v60  ;;  %v4119_v34 = vsel %vm4118_vm3, %v6144_v7, %v4115_v10  ;;  %v4133_v58 = vsub.f32 1.0, %v4132_v36 }
 0x794   :  { %v4216_v0 = vadd.f32 1.0, %v6150_v27  ;;  %v4124_v33 = vsel %vm4121_vm4, %v4123_v49, %v4119_v34  ;;  %v4147_v13 = vmul.f32 %v6148_v43, %v4105_v18  ;;  %v4235_v9 = vadd.f32 1.0, %v6152_v41 }
 0x795   :  { %v4146_v28 = vmul.f32 %v4124_v33, %v8029_v50  ;;  %v4134_v42 = vmul.f32 %v6146_v56, %v4133_v58  ;;  %v4140_v50 = vand.u32 2147483647, %v8147_v21  ;;  %v5900_v58 = vld [vmem:[#allocation16 + $0x38] sm:$0xff]  ;;  %v5895_v33 = vld [vmem:[#allocation16 + $0x10] sm:$0xff] }
 0x796   :  { %6155 = vrcp.f32 %v4216_v0  ;;  %v4194_v8 = vpop.f32.mrf.mxu2  ;;  %v4207_v20 = vpop.f32.mrf.mxu3  ;;  %v4247_v53 = vand.u32 2147483648, %v4235_v9  ;;  %v4228_v35 = vand.u32 2147483648, %v4216_v0  ;;  %v4226_v21 = vand.u32 2147483647, %v4216_v0 }
 0x797   :  { %6157 = vrcp.f32 %v4235_v9  ;;  %v8156_v54 = vadd.f32 %v4147_v13, %v4146_v28  ;;  %v4135_v37 = vadd.f32 %v6146_v56, %v4134_v42  ;;  %vm4141_vm8 = vcmp.eq.f32.partialorder %v4140_v50, 8.507059e+37  ;;  %v5894_v13 = vld [vmem:[#allocation16 + $0x8] sm:$0xff]  ;;  %v5889_v28 = vld [vmem:[#allocation4] sm:$0xff]  ;;  %v5891_v8 = vld [vmem:[#allocation4 + $0x10] sm:$0xff] }
 0x798   :  { %v4245_v4 = vand.u32 2147483647, %v4235_v9  ;;  %vm4222_vm11 = vweird.f32 %v4216_v0  ;;  %vm4241_vm12 = vweird.f32 %v4235_v9  ;;  %v4229_v51 = vor.u32 1.1754944e-38, %v4228_v35  ;;  %v5890_v42 = vld [vmem:[#allocation4 + $0x8] sm:$0xff]  ;;  %v9052_v50 = vld [vmem:[#allocation74_spill] sm:$0xff] }
 0x799   :  { %v6154_v55 = vpop.eup %6153  ;;  %6159 = vtanh.f32 %v8156_v54  ;;  %v4139_v11 = vsel %vm4138_vm7, %v6146_v56, %v4135_v37  ;;  %v4248_v24 = vor.u32 1.1754944e-38, %v4247_v53  ;;  %vm4227_vm15 = vcmp.eq.f32.partialorder %v4226_v21, 8.507059e+37  ;;  %v9055_v21 = vld [vmem:[#allocation83_spill] sm:$0xff] }
 0x79a   :  { %v4255_v40 = vadd.f32 1.0, %v6154_v55  ;;  %v4144_v44 = vsel %vm4141_vm8, %v4143_v16, %v4139_v11  ;;  %vm4246_vm0 = vcmp.eq.f32.partialorder %v4245_v4, 8.507059e+37 }
 0x79c   :  { %v6156_v3 = vpop.eup %6155  ;;  %6161 = vrcp.f32 %v4255_v40  ;;  %v4267_v10 = vand.u32 2147483648, %v4255_v40  ;;  %vm4261_vm2 = vweird.f32 %v4255_v40  ;;  %v4265_v36 = vand.u32 2147483647, %v4255_v40 }
 0x79d   :  { %v6158_v63 = vpop.eup %6157  ;;  %v4218_v14 = vmul.f32 %v6156_v3, %v4216_v0  ;;  %6163 = vtanh.f32 %v4211_v1  ;;  %vm4223_vm9 = vweird.f32 %v6156_v3  ;;  %v5898_v0 = vld [vmem:[#allocation16 + $0x28] sm:$0xff] }
 0x79e   :  { %v4237_v59 = vmul.f32 %v6158_v63, %v4235_v9  ;;  %vm4242_vm10 = vweird.f32 %v6158_v63  ;;  %vm4224_vm13 = vmor %vm4222_vm11, %vm4223_vm9  ;;  %v4268_v49 = vor.u32 1.1754944e-38, %v4267_v10  ;;  %vm4266_vm4 = vcmp.eq.f32.partialorder %v4265_v36, 8.507059e+37  ;;  %v5893_v9 = vld [vmem:[#allocation16] sm:$0xff] }
 0x79f   :  { %v4219_v39 = vsub.f32 1.0, %v4218_v14  ;;  %v6160_v15 = vpop.eup %6159  ;;  %vm4243_vm14 = vmor %vm4241_vm12, %vm4242_vm10 }
 0x7a0   :  { %v4238_v7 = vsub.f32 1.0, %v4237_v59  ;;  %v4150_v61 = vmul.f32 %v6160_v15, %v4144_v44 }
 0x7a1   :  { %v4220_v2 = vmul.f32 %v6156_v3, %v4219_v39 }
 0x7a2   :  { %v6162_v47 = vpop.eup %6161  ;;  %v4239_v57 = vmul.f32 %v6158_v63, %v4238_v7  ;;  %v4151_v38 = vpack.c.bf16 %v4150_v61, %v4150_v61  ;;  %v9056_v61 = vld [vmem:[#allocation114_spill] sm:$0xff] }
 0x7a3   :  { %v4221_v12 = vadd.f32 %v6156_v3, %v4220_v2  ;;  %v4257_v31 = vmul.f32 %v6162_v47, %v4255_v40  ;;  %v6164_v45 = vpop.eup %6163  ;;  %vm4262_vm1 = vweird.f32 %v6162_v47  ;;  %v9051_v40 = vld [vmem:[#allocation58_spill] sm:$0xff] }
 0x7a4   :  { %v4240_v6 = vadd.f32 %v6158_v63, %v4239_v57  ;;  %4152 = vst [vmem:[#allocation4 + $0x18] sm:$0xf] %v4151_v38  ;;  %vm4263_vm3 = vmor %vm4261_vm2, %vm4262_vm1  ;;  %v1321_v1 = vadd.f32 %v9052_v50, %v9051_v40 }
 0x7a5   :  { %v4225_v23 = vsel %vm4224_vm13, %v6156_v3, %v4221_v12  ;;  %v4258_v22 = vsub.f32 1.0, %v4257_v31  ;;  %v9053_v3 = vld [vmem:[#allocation94_spill] sm:$0xff] }
 0x7a6   :  { %v4230_v48 = vsel %vm4227_vm15, %v4229_v51, %v4225_v23  ;;  %v4244_v52 = vsel %vm4243_vm14, %v6158_v63, %v4240_v6  ;;  %v9054_v63 = vld [vmem:[#allocation145_spill] sm:$0xff] }
 0x7a7   :  { %v4249_v62 = vsel %vm4246_vm0, %v4248_v24, %v4244_v52  ;;  %v4272_v56 = vmul.f32 %v6164_v45, %v4230_v48  ;;  %v4259_v25 = vmul.f32 %v6162_v47, %v4258_v22  ;;  %v1350_v14 = vadd.f32 %v9054_v63, %v9053_v3  ;;  %v8173_v48 = vld [vmem:[%s8215_s10] ss:$0 sm:$0xff]  ;;  %s6431_s10 = smov [#allocation17]  }
 0x7a8   :  { %v4271_v26 = vmul.f32 %v4249_v62, %v8037_v32  ;;  %v5899_v32 = vld [vmem:[#allocation16 + $0x30] sm:$0xff]  ;;  %s4679_s21 = sshll.u32 %s6431_s10, 4  ;;  %s4680_s21 = int_to_ptr.vmem [resolvable:$true] %s4679_s21 }
 0x7a9   :  { %v4260_v46 = vadd.f32 %v6162_v47, %v4259_v25  ;;  %v9058_v25 = vld [vmem:[#allocation154_spill] sm:$0xff] }
 0x7aa   :  { %v4273_v43 = vadd.f32 %v4272_v56, %v4271_v26  ;;  %v9057_v56 = vld [vmem:[#allocation98_spill] sm:$0xff] }
 0x7ab   :  { %v4264_v27 = vsel %vm4263_vm3, %v6162_v47, %v4260_v46  ;;  %v1408_v47 = vadd.f32 %v9056_v61, %v9055_v21  ;;  %v1379_v26 = vadd.f32 %v9058_v25, %v9057_v56 }
 0x7ac   :  { %6165 = vtanh.f32 %v4273_v43  ;;  %v4269_v41 = vsel %vm4266_vm4, %v4268_v49, %v4264_v27 }
 0x7b2   :  { %v6166_v60 = vpop.eup %6165 }
 0x7b3   :  { %v4275_v18 = vmul.f32 %v6166_v60, %v4269_v41 }
 0x7b5   :  { %v4280_v34 = vpack.c.bf16 %v4275_v18, %v4275_v18 }
 0x7b7   :  { %4289 = vmatmul.bf16.vlgmr.msrb.gmra.mxu0 %v4280_v34  ;;  %4302 = vmatmul.bf16.vlgmr.msrb.gmra.mxu1 %v4280_v34 }
 0x7b8   :  { %4315 = vmatmul.bf16.vlgmr.msrb.gmra.mxu2 %v4280_v34  ;;  %4328 = vmatmul.bf16.vlgmr.msra.gmra.mxu3 %v4280_v34 }
 0x7b9   :  { %4558 = vmatpush.bf16.msrb.mxu0 %v5900_v58 }
 0x7bd   :  { %4559 = vmatpush.bf16.msrb.mxu0 %v5899_v32 }
 0x7c1   :  { %4560 = vmatpush.bf16.msrb.mxu0 %v5898_v0 }
 0x7c5   :  { %4561 = vmatpush.bf16.msrb.mxu0 %v5897_v19 }
 0x7c7   :  { %4345 = vmatmul.bf16.vlgmr.msra.gmra.mxu0 %v4151_v38  ;;  %4358 = vmatmul.bf16.vlgmr.msra.gmra.mxu1 %v4151_v38 }
 0x7c8   :  { %4371 = vmatmul.bf16.vlgmr.msra.gmra.mxu2 %v4151_v38  ;;  %4384 = vmatmul.bf16.vlgmr.msrb.gmra.mxu3 %v4151_v38 }
 0x7c9   :  { %4562 = vmatpush.bf16.msrb.mxu0 %v5896_v30 }
 0x7cd   :  { %4563 = vmatpush.bf16.msrb.mxu0 %v5895_v33 }
 0x7d1   :  { %4564 = vmatpush.bf16.msrb.mxu0 %v5894_v13 }
 0x7d5   :  { %4565 = vmatpush.bf16.msrb.mxu0 %v5893_v9 }
 0x7d8   :  { %4566 = vmatmul.bf16.vlgmr.msrb.gmra.mxu0 %v5889_v28 }
 0x7e8   :  { %4571 = vmatmul.bf16.gmra.mxu0 %v5890_v42 }
 0x7f8   :  { %4576 = vmatmul.bf16.gmra.mxu0 %v5891_v8 }
 0x834   :  { %v4290_v20 = vpop.f32.mrf.mxu0  ;;  %v4303_v55 = vpop.f32.mrf.mxu1 }
 0x835   :  { %v4333_v11 = vadd.f32 %v4290_v20, %v1321_v1  ;;  %v4334_v16 = vadd.f32 %v4303_v55, %v1350_v14 }
 0x83b   :  { %v4316_v5 = vpop.f32.mrf.mxu2  ;;  %v4329_v29 = vpop.f32.mrf.mxu3 }
 0x83c   :  { %v4292_v37 = vpop.f32.mrf.mxu0  ;;  %v4305_v17 = vpop.f32.mrf.mxu1  ;;  %v4336_v57 = vadd.f32 %v4329_v29, %v1408_v47  ;;  %v4335_v10 = vadd.f32 %v4316_v5, %v1379_v26 }
 0x843   :  { %v4318_v59 = vpop.f32.mrf.mxu2  ;;  %v4331_v39 = vpop.f32.mrf.mxu3 }
 0x844   :  { %v4346_v15 = vpop.f32.mrf.mxu0  ;;  %v4359_v7 = vpop.f32.mrf.mxu1 }
 0x845   :  { %v4389_v53 = vadd.f32 %v4346_v15, %v4333_v11  ;;  %v4390_v35 = vadd.f32 %v4359_v7, %v4334_v16 }
 0x847   :  { %v5622_v44 = vmul.f32 -1.442695, %v4389_v53  ;;  %v5623_v2 = vmul.f32 -1.442695, %v4390_v35 }
 0x849   :  { %6167 = vpow2.f32 %v5622_v44 }
 0x84a   :  { %6169 = vpow2.f32 %v5623_v2 }
 0x84b   :  { %v4372_v4 = vpop.f32.mrf.mxu2  ;;  %v4385_v12 = vpop.f32.mrf.mxu3 }
 0x84c   :  { %v4392_v31 = vadd.f32 %v4385_v12, %v4336_v57  ;;  %v4348_v38 = vpop.f32.mrf.mxu0  ;;  %v4361_v51 = vpop.f32.mrf.mxu1  ;;  %v4391_v60 = vadd.f32 %v4372_v4, %v4335_v10 }
 0x84e   :  { %v5624_v6 = vmul.f32 -1.442695, %v4392_v31 }
 0x84f   :  { %v6168_v45 = vpop.eup %6167 }
 0x850   :  { %v6170_v24 = vpop.eup %6169  ;;  %v4396_v23 = vadd.f32 1.0, %v6168_v45  ;;  %6171 = vpow2.f32 %v5624_v6 }
 0x851   :  { %v4415_v22 = vadd.f32 1.0, %v6170_v24 }
 0x852   :  { %6173 = vrcp.f32 %v4396_v23  ;;  %v4408_v0 = vand.u32 2147483648, %v4396_v23  ;;  %v4406_v33 = vand.u32 2147483647, %v4396_v23  ;;  %vm4402_vm7 = vweird.f32 %v4396_v23 }
 0x853   :  { %6175 = vrcp.f32 %v4415_v22  ;;  %v4374_v52 = vpop.f32.mrf.mxu2  ;;  %v4387_v62 = vpop.f32.mrf.mxu3  ;;  %v4427_v19 = vand.u32 2147483648, %v4415_v22  ;;  %v4425_v28 = vand.u32 2147483647, %v4415_v22  ;;  %vm4421_vm8 = vweird.f32 %v4415_v22 }
 0x854   :  { %v4409_v55 = vor.u32 1.1754944e-38, %v4408_v0  ;;  %vm4407_vm11 = vcmp.eq.f32.partialorder %v4406_v33, 8.507059e+37 }
 0x855   :  { %v4567_v43 = vpop.f32.mrf.mxu0  ;;  %v4428_v37 = vor.u32 1.1754944e-38, %v4427_v19  ;;  %vm4426_vm12 = vcmp.eq.f32.partialorder %v4425_v28, 8.507059e+37 }
 0x856   :  { %v6172_v46 = vpop.eup %6171  ;;  %v8178_v36 = vadd.f32 %v8173_v48, %v4567_v43 }
 0x857   :  { %v4435_v27 = vadd.f32 1.0, %v6172_v46 }
 0x858   :  { %v6174_v49 = vpop.eup %6173  ;;  %4587 = vmax.xlane.f32.xlu0 %v8178_v36 }
 0x859   :  { %v6176_v41 = vpop.eup %6175  ;;  %v4398_v18 = vmul.f32 %v6174_v49, %v4396_v23  ;;  %6177 = vrcp.f32 %v4435_v27  ;;  %vm4403_vm5 = vweird.f32 %v6174_v49  ;;  %v4447_v53 = vand.u32 2147483648, %v4435_v27 }
 0x85a   :  { %v4417_v34 = vmul.f32 %v6176_v41, %v4415_v22  ;;  %6179 = vtanh.f32 %v4391_v60  ;;  %vm4422_vm6 = vweird.f32 %v6176_v41  ;;  %vm4404_vm9 = vmor %vm4402_vm7, %vm4403_vm5  ;;  %vm4441_vm14 = vweird.f32 %v4435_v27 }
 0x85b   :  { %v4399_v58 = vsub.f32 1.0, %v4398_v18  ;;  %vm4423_vm10 = vmor %vm4421_vm8, %vm4422_vm6  ;;  %v4445_v35 = vand.u32 2147483647, %v4435_v27  ;;  %v4448_v2 = vor.u32 1.1754944e-38, %v4447_v53 }
 0x85c   :  { %v4418_v32 = vsub.f32 1.0, %v4417_v34 }
 0x85d   :  { %v4400_v30 = vmul.f32 %v6174_v49, %v4399_v58  ;;  %v4569_v13 = vpop.f32.mrf.mxu0  ;;  %vm4446_vm0 = vcmp.eq.f32.partialorder %v4445_v35, 8.507059e+37 }
 0x85e   :  { %v4419_v9 = vmul.f32 %v6176_v41, %v4418_v32  ;;  %v8182_v42 = vadd.f32 %v8173_v48, %v4569_v13 }
 0x85f   :  { %v6178_v8 = vpop.eup %6177  ;;  %v4401_v20 = vadd.f32 %v6174_v49, %v4400_v30 }
 0x860   :  { %v4420_v5 = vadd.f32 %v6176_v41, %v4419_v9  ;;  %v4437_v29 = vmul.f32 %v6178_v8, %v4435_v27  ;;  %4589 = vmax.xlane.f32.xlu0 %v8182_v42  ;;  %v6180_v40 = vpop.eup %6179  ;;  %vm4442_vm13 = vweird.f32 %v6178_v8 }
 0x861   :  { %v4405_v17 = vsel %vm4404_vm9, %v6174_v49, %v4401_v20  ;;  %vm4443_vm15 = vmor %vm4441_vm14, %vm4442_vm13 }
 0x862   :  { %v4410_v50 = vsel %vm4407_vm11, %v4409_v55, %v4405_v17  ;;  %v4424_v1 = vsel %vm4423_vm10, %v6176_v41, %v4420_v5  ;;  %v4438_v3 = vsub.f32 1.0, %v4437_v29 }
 0x863   :  { %v4429_v63 = vsel %vm4426_vm12, %v4428_v37, %v4424_v1  ;;  %v4452_v14 = vmul.f32 %v6180_v40, %v4410_v50 }
 0x864   :  { %v4451_v11 = vmul.f32 %v4429_v63, %v8156_v54  ;;  %v4439_v16 = vmul.f32 %v6178_v8, %v4438_v3 }
 0x865   :  { %v4572_v59 = vpop.f32.mrf.mxu0 }
 0x866   :  { %v4453_v39 = vadd.f32 %v4452_v14, %v4451_v11  ;;  %v4573_v15 = vadd.f32 %v8173_v48, %v4572_v59  ;;  %v4440_v7 = vadd.f32 %v6178_v8, %v4439_v16 }
 0x868   :  { %6181 = vtanh.f32 %v4453_v39  ;;  %4591 = vmax.xlane.f32.xlu1 %v4573_v15  ;;  %v4444_v44 = vsel %vm4443_vm15, %v6178_v8, %v4440_v7 }
 0x869   :  { %v4449_v47 = vsel %vm4446_vm0, %v4448_v2, %v4444_v44 }
 0x86d   :  { %v4574_v21 = vpop.f32.mrf.mxu0 }
 0x86e   :  { %v6182_v61 = vpop.eup %6181  ;;  %v4575_v54 = vadd.f32 %v8173_v48, %v4574_v21 }
 0x86f   :  { %v4455_v57 = vmul.f32 %v6182_v61, %v4449_v47 }
 0x870   :  { %4593 = vmax.xlane.f32.xlu1 %v4575_v54 }
 0x871   :  { %v4456_v4 = vpack.c.bf16 %v4455_v57, %v4455_v57 }
 0x873   :  { %4457 = vst [vmem:[#allocation4 + $0x1c] sm:$0xf] %v4456_v4 }
 0x875   :  { %v4577_v12 = vpop.f32.mrf.mxu0 }
 0x876   :  { %v4578_v31 = vadd.f32 %v8173_v48, %v4577_v12 }
 0x878   :  { %4595 = vmax.xlane.f32.xlu2 %v4578_v31 }
 0x87a   :  { %v5892_v38 = vld [vmem:[#allocation4 + $0x18] sm:$0xff] }
 0x87b   :  { %4581 = vmatmul.bf16.gmra.mxu0 %v5892_v38 }
 0x87d   :  { %v4579_v51 = vpop.f32.mrf.mxu0 }
 0x87e   :  { %v4580_v6 = vadd.f32 %v8173_v48, %v4579_v51 }
 0x880   :  { %4597 = vmax.xlane.f32.xlu2 %v4580_v6 }
 0x8cb   :  { %v4588_v45 = vpop.xlane.xlu0 %4587 }
 0x8cc   :  { %v4603_v24 = vsub.f32 %v8178_v36, %v4588_v45 }
 0x8ce   :  { %v4611_v23 = vmul.f32 1.442695, %v4603_v24 }
 0x8d0   :  { %6183 = vpow2.f32 %v4611_v23 }
 0x8d3   :  { %v4590_v43 = vpop.xlane.xlu0 %4589 }
 0x8d4   :  { %v4604_v46 = vsub.f32 %v8182_v42, %v4590_v43 }
 0x8d6   :  { %v6184_v22 = vpop.eup %6183  ;;  %v4613_v27 = vmul.f32 1.442695, %v4604_v46 }
 0x8d7   :  { %4627 = vadd.xlane.f32.xlu2 %v6184_v22 }
 0x8db   :  { %v4592_v52 = vpop.xlane.xlu1 %4591 }
 0x8dc   :  { %v8193_v36 = vsub.f32 %v4573_v15, %v4592_v52 }
 0x8de   :  { %v4615_v18 = vmul.f32 1.442695, %v8193_v36 }
 0x8e3   :  { %v4594_v62 = vpop.xlane.xlu1 %4593 }
 0x8e4   :  { %v4606_v56 = vsub.f32 %v4575_v54, %v4594_v62 }
 0x8e6   :  { %v4617_v25 = vmul.f32 1.442695, %v4606_v56 }
 0x8e8   :  { %6185 = vpow2.f32 %v4617_v25 }
 0x8e9   :  { %6187 = vpow2.f32 %v4613_v27 }
 0x8ea   :  { %6189 = vpow2.f32 %v4615_v18 }
 0x8eb   :  { %v4596_v10 = vpop.xlane.xlu2 %4595 }
 0x8ec   :  { %v8195_v41 = vsub.f32 %v4578_v31, %v4596_v10 }
 0x8ee   :  { %v6186_v26 = vpop.eup %6185  ;;  %v4619_v34 = vmul.f32 1.442695, %v8195_v41 }
 0x8ef   :  { %4633 = vadd.xlane.f32.xlu2 %v6186_v26  ;;  %v6188_v19 = vpop.eup %6187 }
 0x8f0   :  { %6191 = vpow2.f32 %v4619_v34  ;;  %v6190_v13 = vpop.eup %6189 }
 0x8f3   :  { %v4598_v32 = vpop.xlane.xlu2 %4597 }
 0x8f4   :  { %v4608_v30 = vsub.f32 %v4580_v6, %v4598_v32 }
 0x8f6   :  { %v4621_v33 = vmul.f32 1.442695, %v4608_v30  ;;  %v6192_v9 = vpop.eup %6191 }
 0x8f8   :  { %v4582_v49 = vpop.f32.mrf.mxu0  ;;  %6193 = vpow2.f32 %v4621_v33 }
 0x8f9   :  { %v4583_v60 = vadd.f32 %v8173_v48, %v4582_v49 }
 0x8fb   :  { %4599 = vmax.xlane.f32.xlu0 %v4583_v60 }
 0x8fe   :  { %v6194_v28 = vpop.eup %6193 }
 0x900   :  { %v4584_v58 = vpop.f32.mrf.mxu0 }
 0x901   :  { %v4585_v0 = vadd.f32 %v8173_v48, %v4584_v58 }
 0x903   :  { %4601 = vmax.xlane.f32.xlu1 %v4585_v0  ;;  %4629 = vadd.xlane.f32.xlu0 %v6188_v19 }
 0x90b   :  { %4631 = vadd.xlane.f32.xlu1 %v6190_v13  ;;  %4635 = vadd.xlane.f32.xlu0 %v6192_v9 }
 0x913   :  { %4637 = vadd.xlane.f32.xlu1 %v6194_v28 }
 0x94a   :  { %v4628_v42 = vpop.xlane.xlu2 %4627 }
 0x94b   :  { %6195 = vlog2.f32 %v4628_v42 }
 0x951   :  { %v6196_v8 = vpop.eup %6195 }
 0x952   :  { %v4644_v20 = vmul.f32 0.6931472, %v6196_v8 }
 0x954   :  { %v4659_v55 = vsub.f32 %v4603_v24, %v4644_v20 }
 0x956   :  { %4667 = vst [vmem:[#allocation17] sm:$0xff] %v4659_v55 }
 0x962   :  { %v4634_v48 = vpop.xlane.xlu2 %4633 }
 0x963   :  { %6197 = vlog2.f32 %v4634_v48 }
 0x969   :  { %v6198_v5 = vpop.eup %6197 }
 0x96a   :  { %v4650_v29 = vmul.f32 0.6931472, %v6198_v5 }
 0x96c   :  { %v4662_v37 = vsub.f32 %v4606_v56, %v4650_v29 }
 0x96e   :  { %4670 = vst [vmem:[#allocation17 + $0x18] sm:$0xff] %v4662_v37  ;;  %v4600_v17 = vpop.xlane.xlu0 %4599 }
 0x96f   :  { %v4609_v40 = vsub.f32 %v4583_v60, %v4600_v17 }
 0x971   :  { %v4623_v50 = vmul.f32 1.442695, %v4609_v40 }
 0x973   :  { %6199 = vpow2.f32 %v4623_v50 }
 0x976   :  { %v4602_v1 = vpop.xlane.xlu1 %4601  ;;  %v4630_v3 = vpop.xlane.xlu0 %4629 }
 0x977   :  { %v4610_v63 = vsub.f32 %v4585_v0, %v4602_v1  ;;  %6201 = vlog2.f32 %v4630_v3 }
 0x979   :  { %v6200_v14 = vpop.eup %6199  ;;  %v4625_v11 = vmul.f32 1.442695, %v4610_v63 }
 0x97a   :  { %4639 = vadd.xlane.f32.xlu2 %v6200_v14 }
 0x97b   :  { %6203 = vpow2.f32 %v4625_v11 }
 0x97d   :  { %v6202_v16 = vpop.eup %6201 }
 0x97e   :  { %v4646_v59 = vmul.f32 0.6931472, %v6202_v16  ;;  %v4632_v39 = vpop.xlane.xlu1 %4631  ;;  %v4636_v15 = vpop.xlane.xlu0 %4635 }
 0x97f   :  { %6205 = vlog2.f32 %v4632_v39 }
 0x980   :  { %v4660_v7 = vsub.f32 %v4604_v46, %v4646_v59  ;;  %6207 = vlog2.f32 %v4636_v15 }
 0x981   :  { %v6204_v53 = vpop.eup %6203 }
 0x982   :  { %4668 = vst [vmem:[#allocation17 + $0x8] sm:$0xff] %v4660_v7  ;;  %4641 = vadd.xlane.f32.xlu0 %v6204_v53 }
 0x985   :  { %v6206_v35 = vpop.eup %6205 }
 0x986   :  { %v6208_v44 = vpop.eup %6207  ;;  %v4648_v2 = vmul.f32 0.6931472, %v6206_v35  ;;  %v4638_v21 = vpop.xlane.xlu1 %4637 }
 0x987   :  { %v4652_v61 = vmul.f32 0.6931472, %v6208_v44  ;;  %6209 = vlog2.f32 %v4638_v21 }
 0x988   :  { %v4661_v47 = vsub.f32 %v8193_v36, %v4648_v2 }
 0x989   :  { %v4663_v54 = vsub.f32 %v8195_v41, %v4652_v61 }
 0x98a   :  { %4669 = vst [vmem:[#allocation17 + $0x10] sm:$0xff] %v4661_v47 }
 0x98b   :  { %4671 = vst [vmem:[#allocation17 + $0x20] sm:$0xff] %v4663_v54 }
 0x98d   :  { %v6210_v57 = vpop.eup %6209 }
 0x98e   :  { %v4654_v4 = vmul.f32 0.6931472, %v6210_v57 }
 0x990   :  { %v4664_v12 = vsub.f32 %v4608_v30, %v4654_v4 }
 0x992   :  { %4672 = vst [vmem:[#allocation17 + $0x28] sm:$0xff] %v4664_v12 }
 0x9ed   :  { %v4640_v31 = vpop.xlane.xlu2 %4639 }
 0x9ee   :  { %6211 = vlog2.f32 %v4640_v31 }
 0x9f4   :  { %v6212_v38 = vpop.eup %6211 }
 0x9f5   :  { %v4656_v51 = vmul.f32 0.6931472, %v6212_v38  ;;  %v4642_v6 = vpop.xlane.xlu0 %4641 }
 0x9f6   :  { %6213 = vlog2.f32 %v4642_v6 }
 0x9f7   :  { %v4665_v45 = vsub.f32 %v4609_v40, %v4656_v51 }
 0x9f9   :  { %4673 = vst [vmem:[#allocation17 + $0x30] sm:$0xff] %v4665_v45 }
 0x9fc   :  { %v6214_v24 = vpop.eup %6213 }
 0x9fd   :  { %v4658_v23 = vmul.f32 0.6931472, %v6214_v24 }
 0x9ff   :  { %v4666_v22 = vsub.f32 %v4610_v63, %v4658_v23 }
 0xa01   :  { %4674 = vst [vmem:[#allocation17 + $0x38] sm:$0xff] %v4666_v22 }
 0xa02   :  { %4687 = dma.vmem_to_hbm [thread:$0]  %s4680_s21, 1024, %s4682_s23, [#allocation7], %s6432_s24, %s6432_s24, %s6433_s27  }
 0xa03   :  { %6415 = dma.done.wait [#allocation7], 1024  }
 0xa04   :  { %6416 = vsyncadd [#allocation7], 4294966272 }
 0xa05   :  { %4692 = vsyncpa [#allocation6], 1 }
 0xa06   :  { %4693 = vsyncpa [#allocation9], 1 }
 0xa07   :  { %4694 = vsyncpa [#allocation12], 1 }
 0xa08   :  { %4695 = vsyncpa [#allocation15], 1 }
 0xa09   :  { %4696 = vsyncpa [#allocation7], 1 }

</bundles_post_ra>
